<compile_context>
chip_gen: v7x
topology: tpu7x:2x2x1
jax: 0.10.0
libtpu: 0.0.40
codegen_flags: <defaults>
</compile_context>

<pallas_src>
import functools

import jax
import jax.numpy as jnp
from jax.experimental import pallas as pl
from jax.experimental.pallas import tpu as pltpu

# ---------------------------------------------------------------------------
# Architecture (SqueezeNetForMIMO defaults: in_channels=2, rx=1, tx=2 -> C_in=2)
# ---------------------------------------------------------------------------
IN_CH = 2
NUM_CLASSES = 8
#            (in_ch, squeeze, expand1x1, expand3x3)
FIRE_CFG = [(64, 16, 64, 64), (128, 16, 64, 64), (128, 32, 128, 128),
            (256, 32, 128, 128), (256, 48, 192, 192), (384, 48, 192, 192)]
N_FIRES = len(FIRE_CFG)
FINAL_CH = 512
FC1_CH = 256

MXU_DTYPE = jnp.bfloat16   # MXU operand dtype (f32 accumulation everywhere)


# ---------------------------------------------------------------------------
# In-kernel helpers
# ---------------------------------------------------------------------------
def _mm(parts, w_ref, b_ref):
    """1x1 conv / linear:  concat(parts, axis=-1) @ W + b, without the concat.

    `parts` is a list of (L, Ci) f32 arrays; the weight rows are sliced per
    part (static, sublane-aligned offsets) so the Fire-module channel concat
    never needs to be materialized.
    """
    out = None
    off = 0
    for p in parts:
        k = p.shape[1]
        d = jnp.dot(p.astype(MXU_DTYPE), w_ref[off:off + k, :],
                    preferred_element_type=jnp.float32)
        out = d if out is None else out + d
        off += k
    return out + b_ref[...]


def _conv3(h, w_ref, b_ref):
    """Conv1d(kernel_size=3, padding=1) as a single MXU matmul.

    Builds the [h[l-1] | h[l] | h[l+1]] operand with XLU rolls + boundary
    masks (no zero-pad array, no sublane-misaligned slices), then contracts
    against the (3*Cin, Cout) tap-major weight.
    """
    L = h.shape[0]
    row = jax.lax.broadcasted_iota(jnp.int32, (L, 1), 0)
    h_prev = jnp.where(row == 0, 0.0, pltpu.roll(h, 1, axis=0))       # h[l-1]
    h_next = jnp.where(row == L - 1, 0.0, pltpu.roll(h, L - 1, axis=0))  # h[l+1]
    a = jnp.concatenate([h_prev, h, h_next], axis=1)                  # (L, 3*Cin)
    return jnp.dot(a.astype(MXU_DTYPE), w_ref[...],
                   preferred_element_type=jnp.float32) + b_ref[...]


def _relu(v):
    return jnp.maximum(v, 0.0)


def _sigmoid(v):
    return 1.0 / (1.0 + jnp.exp(-v))


# ---------------------------------------------------------------------------
# Fused forward kernel: one grid step == one batch sample.
# refs = (x_ref, *weight_refs..., out_ref)
# ---------------------------------------------------------------------------
def squeezenet_kernel(*refs):
    x_ref, out_ref = refs[0], refs[-1]
    it = iter(refs[1:-1])
    take = lambda: next(it)

    x = x_ref[0].astype(jnp.float32)                       # (L, C_in)

    # Stem: Conv1d(C_in -> 64, k=3, pad=1) + ReLU.
    w, b = take(), take()
    h_parts = [_relu(_conv3(x, w, b))]                     # [(L, 64)]

    # Fire modules.
    for _ in range(N_FIRES):
        wsq, bsq = take(), take()
        we1, be1 = take(), take()
        we3, be3 = take(), take()
        s = _relu(_mm(h_parts, wsq, bsq))                  # squeeze   (L, S)
        e1 = _relu(_mm([s], we1, be1))                     # expand1x1 (L, E)
        e3 = _relu(_conv3(s, we3, be3))                    # expand3x3 (L, E)
        h_parts = [e1, e3]                                 # implicit channel concat

    # final_conv (1x1, 384 -> 512) + ReLU.
    wf, bf = take(), take()
    h = _relu(_mm(h_parts, wf, bf))                        # (L, 512)

    # Global average pool over L.
    p = jnp.mean(h, axis=0, keepdims=True)                 # (1, 512)

    # Classifier: Linear(512,256) + ReLU + [Dropout = identity] + Linear(256,8) + Sigmoid.
    w1, b1 = take(), take()
    c = _relu(_mm([p], w1, b1))                            # (1, 256)
    w2, b2 = take(), take()
    logits = _mm([c], w2, b2)                              # (1, num_classes)
    out_ref[0] = _sigmoid(logits).astype(out_ref.dtype)


# ---------------------------------------------------------------------------
# Weight preparation (PyTorch layout -> channels-last matmul layout)
# ---------------------------------------------------------------------------
def _prep_conv_k1(w, b):
    # (Cout, Cin, 1) -> (Cin, Cout)
    return [jnp.transpose(w[:, :, 0], (1, 0)).astype(MXU_DTYPE),
            b.reshape(1, -1).astype(jnp.float32)]


def _prep_conv_k3(w, b):
    # (Cout, Cin, 3) -> (3*Cin, Cout), tap-major rows: [tap l-1 | tap l | tap l+1]
    cout, cin, k = w.shape
    wt = jnp.transpose(w, (2, 1, 0)).reshape(k * cin, cout)
    return [wt.astype(MXU_DTYPE), b.reshape(1, -1).astype(jnp.float32)]


def _prep_linear(w, b):
    # (Cout, Cin) -> (Cin, Cout)
    return [jnp.transpose(w, (1, 0)).astype(MXU_DTYPE),
            b.reshape(1, -1).astype(jnp.float32)]


# ---------------------------------------------------------------------------
# Wrapper
# ---------------------------------------------------------------------------
@jax.jit
def squeezenet_forward(x_ncl, params):
    """x_ncl: (N, C_in, L) float32 (PyTorch layout). Returns (N, num_classes)."""
    N, C, L = x_ncl.shape

    flat = []
    flat += _prep_conv_k3(params["stem_w"], params["stem_b"])
    for f in params["fires"]:
        flat += _prep_conv_k1(f["sq_w"], f["sq_b"])
        flat += _prep_conv_k1(f["e1_w"], f["e1_b"])
        flat += _prep_conv_k3(f["e3_w"], f["e3_b"])
    flat += _prep_conv_k1(params["final_w"], params["final_b"])
    flat += _prep_linear(params["fc1_w"], params["fc1_b"])
    flat += _prep_linear(params["fc2_w"], params["fc2_b"])

    # Only HBM-level layout change: tiny input NCL -> NLC (channels -> lanes).
    x_nlc = jnp.transpose(x_ncl, (0, 2, 1))                # (N, L, C)

    in_specs = [pl.BlockSpec((1, L, C), lambda n: (n, 0, 0))]
    in_specs += [pl.BlockSpec(a.shape, lambda n: (0, 0)) for a in flat]

    out = pl.pallas_call(
        squeezenet_kernel,
        out_shape=jax.ShapeDtypeStruct((N, 1, NUM_CLASSES), jnp.float32),
        grid_spec=pltpu.PrefetchScalarGridSpec(
            num_scalar_prefetch=0,
            grid=(N,),
            in_specs=in_specs,
            out_specs=pl.BlockSpec((1, 1, NUM_CLASSES), lambda n: (n, 0, 0)),
        ),
        compiler_params=pltpu.CompilerParams(
            dimension_semantics=("parallel",)),
    )(x_nlc, *flat)

    return out[:, 0, :]                                    # (N, num_classes)


# ---------------------------------------------------------------------------
# Pure-JAX (f32) reference matching PyTorch eval-mode forward
# ---------------------------------------------------------------------------
def _conv1d_ref(x, w, b, padding):
    y = jax.lax.conv_general_dilated(
        x, w, window_strides=(1,), padding=[(padding, padding)],
        dimension_numbers=("NCH", "OIH", "NCH"))
    return y + b[None, :, None]


@jax.jit
def squeezenet_reference(x, params):
    h = jax.nn.relu(_conv1d_ref(x, params["stem_w"], params["stem_b"], 1))
    for f in params["fires"]:
        s = jax.nn.relu(_conv1d_ref(h, f["sq_w"], f["sq_b"], 0))
        e1 = jax.nn.relu(_conv1d_ref(s, f["e1_w"], f["e1_b"], 0))
        e3 = jax.nn.relu(_conv1d_ref(s, f["e3_w"], f["e3_b"], 1))
        h = jnp.concatenate([e1, e3], axis=1)
    h = jax.nn.relu(_conv1d_ref(h, params["final_w"], params["final_b"], 0))
    p = jnp.mean(h, axis=2)                                # global avg pool
    c = jax.nn.relu(p @ params["fc1_w"].T + params["fc1_b"])
    return jax.nn.sigmoid(c @ params["fc2_w"].T + params["fc2_b"])


# ---------------------------------------------------------------------------
# Deterministic parameter construction
# ---------------------------------------------------------------------------
def make_params(key):
    keys = iter(jax.random.split(key, 64))

    def conv(cout, cin, k):
        std = (2.0 / (cin * k)) ** 0.5
        w = std * jax.random.normal(next(keys), (cout, cin, k), jnp.float32)
        b = 0.05 * jax.random.normal(next(keys), (cout,), jnp.float32)
        return w, b

    def linear(cout, cin):
        std = (1.0 / cin) ** 0.5
        w = std * jax.random.normal(next(keys), (cout, cin), jnp.float32)
        b = 0.05 * jax.random.normal(next(keys), (cout,), jnp.float32)
        return w, b

    params = {}
    params["stem_w"], params["stem_b"] = conv(64, IN_CH, 3)
    fires = []
    for (cin, s, e1, e3) in FIRE_CFG:
        f = {}
        f["sq_w"], f["sq_b"] = conv(s, cin, 1)
        f["e1_w"], f["e1_b"] = conv(e1, s, 1)
        f["e3_w"], f["e3_b"] = conv(e3, s, 3)
        fires.append(f)
    params["fires"] = fires
    params["final_w"], params["final_b"] = conv(FINAL_CH, 384, 1)
    params["fc1_w"], params["fc1_b"] = linear(FC1_CH, FINAL_CH)
    params["fc2_w"], params["fc2_b"] = linear(NUM_CLASSES, FC1_CH)
    return params


if __name__ == "__main__":
    key = jax.random.PRNGKey(0)
    k_x, k_p = jax.random.split(key)

    N, L = 2, 128                       # batch, sequence length
    x = jax.random.normal(k_x, (N, IN_CH, L), jnp.float32)
    params = make_params(k_p)

    out = squeezenet_forward(x, params)
    out = jax.block_until_ready(out)

    ref = squeezenet_reference(x, params)
    assert out.shape == (N, NUM_CLASSES), out.shape
    # Tolerance accounts for bf16 MXU operands (f32 accumulation) vs f32 reference.
    err = float(jnp.max(jnp.abs(out - ref)))
    assert err < 3e-2, err

    print("KERNEL_OK")
</pallas_src>

<mosaic_0001>
module attributes {stable_mosaic.version = 11 : i64} {
  func.func @squeezenet_kernel(%arg0: i32, %arg1: memref<1x128x2xf32, #tpu.memory_space<vmem>>, %arg2: memref<6x64xbf16, #tpu.memory_space<vmem>>, %arg3: memref<1x64xf32, #tpu.memory_space<vmem>>, %arg4: memref<64x16xbf16, #tpu.memory_space<vmem>>, %arg5: memref<1x16xf32, #tpu.memory_space<vmem>>, %arg6: memref<16x64xbf16, #tpu.memory_space<vmem>>, %arg7: memref<1x64xf32, #tpu.memory_space<vmem>>, %arg8: memref<48x64xbf16, #tpu.memory_space<vmem>>, %arg9: memref<1x64xf32, #tpu.memory_space<vmem>>, %arg10: memref<128x16xbf16, #tpu.memory_space<vmem>>, %arg11: memref<1x16xf32, #tpu.memory_space<vmem>>, %arg12: memref<16x64xbf16, #tpu.memory_space<vmem>>, %arg13: memref<1x64xf32, #tpu.memory_space<vmem>>, %arg14: memref<48x64xbf16, #tpu.memory_space<vmem>>, %arg15: memref<1x64xf32, #tpu.memory_space<vmem>>, %arg16: memref<128x32xbf16, #tpu.memory_space<vmem>>, %arg17: memref<1x32xf32, #tpu.memory_space<vmem>>, %arg18: memref<32x128xbf16, #tpu.memory_space<vmem>>, %arg19: memref<1x128xf32, #tpu.memory_space<vmem>>, %arg20: memref<96x128xbf16, #tpu.memory_space<vmem>>, %arg21: memref<1x128xf32, #tpu.memory_space<vmem>>, %arg22: memref<256x32xbf16, #tpu.memory_space<vmem>>, %arg23: memref<1x32xf32, #tpu.memory_space<vmem>>, %arg24: memref<32x128xbf16, #tpu.memory_space<vmem>>, %arg25: memref<1x128xf32, #tpu.memory_space<vmem>>, %arg26: memref<96x128xbf16, #tpu.memory_space<vmem>>, %arg27: memref<1x128xf32, #tpu.memory_space<vmem>>, %arg28: memref<256x48xbf16, #tpu.memory_space<vmem>>, %arg29: memref<1x48xf32, #tpu.memory_space<vmem>>, %arg30: memref<48x192xbf16, #tpu.memory_space<vmem>>, %arg31: memref<1x192xf32, #tpu.memory_space<vmem>>, %arg32: memref<144x192xbf16, #tpu.memory_space<vmem>>, %arg33: memref<1x192xf32, #tpu.memory_space<vmem>>, %arg34: memref<384x48xbf16, #tpu.memory_space<vmem>>, %arg35: memref<1x48xf32, #tpu.memory_space<vmem>>, %arg36: memref<48x192xbf16, #tpu.memory_space<vmem>>, %arg37: memref<1x192xf32, #tpu.memory_space<vmem>>, %arg38: memref<144x192xbf16, #tpu.memory_space<vmem>>, %arg39: memref<1x192xf32, #tpu.memory_space<vmem>>, %arg40: memref<384x512xbf16, #tpu.memory_space<vmem>>, %arg41: memref<1x512xf32, #tpu.memory_space<vmem>>, %arg42: memref<512x256xbf16, #tpu.memory_space<vmem>>, %arg43: memref<1x256xf32, #tpu.memory_space<vmem>>, %arg44: memref<256x8xbf16, #tpu.memory_space<vmem>>, %arg45: memref<1x8xf32, #tpu.memory_space<vmem>>, %arg46: memref<1x1x8xf32, #tpu.memory_space<vmem>>) attributes {dimension_semantics = [#tpu.dimension_semantics<parallel>], iteration_bounds = array<i64: 2>, scalar_prefetch = 0 : i64, scratch_operands = 0 : i64, tpu.core_type = #tpu.core_type<tc>, window_params = [{transform_indices = @transform_0, window_bounds = array<i64: 1, 128, 2>}, {pipeline_mode = #tpu.pipeline_mode<synchronous>, transform_indices = @transform_1, window_bounds = array<i64: 6, 64>}, {pipeline_mode = #tpu.pipeline_mode<synchronous>, transform_indices = @transform_2, window_bounds = array<i64: 1, 64>}, {pipeline_mode = #tpu.pipeline_mode<synchronous>, transform_indices = @transform_3, window_bounds = array<i64: 64, 16>}, {pipeline_mode = #tpu.pipeline_mode<synchronous>, transform_indices = @transform_4, window_bounds = array<i64: 1, 16>}, {pipeline_mode = #tpu.pipeline_mode<synchronous>, transform_indices = @transform_5, window_bounds = array<i64: 16, 64>}, {pipeline_mode = #tpu.pipeline_mode<synchronous>, transform_indices = @transform_6, window_bounds = array<i64: 1, 64>}, {pipeline_mode = #tpu.pipeline_mode<synchronous>, transform_indices = @transform_7, window_bounds = array<i64: 48, 64>}, {pipeline_mode = #tpu.pipeline_mode<synchronous>, transform_indices = @transform_8, window_bounds = array<i64: 1, 64>}, {pipeline_mode = #tpu.pipeline_mode<synchronous>, transform_indices = @transform_9, window_bounds = array<i64: 128, 16>}, {pipeline_mode = #tpu.pipeline_mode<synchronous>, transform_indices = @transform_10, window_bounds = array<i64: 1, 16>}, {pipeline_mode = #tpu.pipeline_mode<synchronous>, transform_indices = @transform_11, window_bounds = array<i64: 16, 64>}, {pipeline_mode = #tpu.pipeline_mode<synchronous>, transform_indices = @transform_12, window_bounds = array<i64: 1, 64>}, {pipeline_mode = #tpu.pipeline_mode<synchronous>, transform_indices = @transform_13, window_bounds = array<i64: 48, 64>}, {pipeline_mode = #tpu.pipeline_mode<synchronous>, transform_indices = @transform_14, window_bounds = array<i64: 1, 64>}, {pipeline_mode = #tpu.pipeline_mode<synchronous>, transform_indices = @transform_15, window_bounds = array<i64: 128, 32>}, {pipeline_mode = #tpu.pipeline_mode<synchronous>, transform_indices = @transform_16, window_bounds = array<i64: 1, 32>}, {pipeline_mode = #tpu.pipeline_mode<synchronous>, transform_indices = @transform_17, window_bounds = array<i64: 32, 128>}, {pipeline_mode = #tpu.pipeline_mode<synchronous>, transform_indices = @transform_18, window_bounds = array<i64: 1, 128>}, {pipeline_mode = #tpu.pipeline_mode<synchronous>, transform_indices = @transform_19, window_bounds = array<i64: 96, 128>}, {pipeline_mode = #tpu.pipeline_mode<synchronous>, transform_indices = @transform_20, window_bounds = array<i64: 1, 128>}, {pipeline_mode = #tpu.pipeline_mode<synchronous>, transform_indices = @transform_21, window_bounds = array<i64: 256, 32>}, {pipeline_mode = #tpu.pipeline_mode<synchronous>, transform_indices = @transform_22, window_bounds = array<i64: 1, 32>}, {pipeline_mode = #tpu.pipeline_mode<synchronous>, transform_indices = @transform_23, window_bounds = array<i64: 32, 128>}, {pipeline_mode = #tpu.pipeline_mode<synchronous>, transform_indices = @transform_24, window_bounds = array<i64: 1, 128>}, {pipeline_mode = #tpu.pipeline_mode<synchronous>, transform_indices = @transform_25, window_bounds = array<i64: 96, 128>}, {pipeline_mode = #tpu.pipeline_mode<synchronous>, transform_indices = @transform_26, window_bounds = array<i64: 1, 128>}, {pipeline_mode = #tpu.pipeline_mode<synchronous>, transform_indices = @transform_27, window_bounds = array<i64: 256, 48>}, {pipeline_mode = #tpu.pipeline_mode<synchronous>, transform_indices = @transform_28, window_bounds = array<i64: 1, 48>}, {pipeline_mode = #tpu.pipeline_mode<synchronous>, transform_indices = @transform_29, window_bounds = array<i64: 48, 192>}, {pipeline_mode = #tpu.pipeline_mode<synchronous>, transform_indices = @transform_30, window_bounds = array<i64: 1, 192>}, {pipeline_mode = #tpu.pipeline_mode<synchronous>, transform_indices = @transform_31, window_bounds = array<i64: 144, 192>}, {pipeline_mode = #tpu.pipeline_mode<synchronous>, transform_indices = @transform_32, window_bounds = array<i64: 1, 192>}, {pipeline_mode = #tpu.pipeline_mode<synchronous>, transform_indices = @transform_33, window_bounds = array<i64: 384, 48>}, {pipeline_mode = #tpu.pipeline_mode<synchronous>, transform_indices = @transform_34, window_bounds = array<i64: 1, 48>}, {pipeline_mode = #tpu.pipeline_mode<synchronous>, transform_indices = @transform_35, window_bounds = array<i64: 48, 192>}, {pipeline_mode = #tpu.pipeline_mode<synchronous>, transform_indices = @transform_36, window_bounds = array<i64: 1, 192>}, {pipeline_mode = #tpu.pipeline_mode<synchronous>, transform_indices = @transform_37, window_bounds = array<i64: 144, 192>}, {pipeline_mode = #tpu.pipeline_mode<synchronous>, transform_indices = @transform_38, window_bounds = array<i64: 1, 192>}, {pipeline_mode = #tpu.pipeline_mode<synchronous>, transform_indices = @transform_39, window_bounds = array<i64: 384, 512>}, {pipeline_mode = #tpu.pipeline_mode<synchronous>, transform_indices = @transform_40, window_bounds = array<i64: 1, 512>}, {pipeline_mode = #tpu.pipeline_mode<synchronous>, transform_indices = @transform_41, window_bounds = array<i64: 512, 256>}, {pipeline_mode = #tpu.pipeline_mode<synchronous>, transform_indices = @transform_42, window_bounds = array<i64: 1, 256>}, {pipeline_mode = #tpu.pipeline_mode<synchronous>, transform_indices = @transform_43, window_bounds = array<i64: 256, 8>}, {pipeline_mode = #tpu.pipeline_mode<synchronous>, transform_indices = @transform_44, window_bounds = array<i64: 1, 8>}, {transform_indices = @transform_45, window_bounds = array<i64: 1, 1, 8>}]} {
    %c0 = arith.constant 0 : index
    %c0_0 = arith.constant 0 : index
    %c0_1 = arith.constant 0 : index
    %0 = vector.load %arg1[%c0, %c0_0, %c0_1] : memref<1x128x2xf32, #tpu.memory_space<vmem>>, vector<1x128x2xf32>
    %1 = vector.shape_cast %0 : vector<1x128x2xf32> to vector<128x2xf32>
    %2 = tpu.iota {dimensions = array<i32: 0>} : vector<128x1xi32>
    %c0_i32 = arith.constant 0 : i32
    %3 = vector.broadcast %c0_i32 : i32 to vector<128x1xi32>
    %4 = arith.cmpi eq, %2, %3 : vector<128x1xi32>
    %c1_i32 = arith.constant 1 : i32
    %5 = tpu.dynamic_rotate %1 by %c1_i32 dim 0 : vector<128x2xf32>, i32 -> vector<128x2xf32>
    %cst = arith.constant 0.000000e+00 : f32
    %6 = vector.shape_cast %4 : vector<128x1xi1> to vector<128x1xi1>
    %7 = vector.broadcast %6 : vector<128x1xi1> to vector<128x2xi1>
    %8 = vector.broadcast %cst : f32 to vector<128x2xf32>
    %9 = arith.select %7, %8, %5 : vector<128x2xi1>, vector<128x2xf32>
    %c127_i32 = arith.constant 127 : i32
    %10 = vector.broadcast %c127_i32 : i32 to vector<128x1xi32>
    %11 = arith.cmpi eq, %2, %10 : vector<128x1xi32>
    %c127_i32_2 = arith.constant 127 : i32
    %12 = tpu.dynamic_rotate %1 by %c127_i32_2 dim 0 : vector<128x2xf32>, i32 -> vector<128x2xf32>
    %cst_3 = arith.constant 0.000000e+00 : f32
    %13 = vector.shape_cast %11 : vector<128x1xi1> to vector<128x1xi1>
    %14 = vector.broadcast %13 : vector<128x1xi1> to vector<128x2xi1>
    %15 = vector.broadcast %cst_3 : f32 to vector<128x2xf32>
    %16 = arith.select %14, %15, %12 : vector<128x2xi1>, vector<128x2xf32>
    %17 = tpu.concatenate %9, %1, %16 in 1 : vector<128x2xf32>, vector<128x2xf32>, vector<128x2xf32> -> vector<128x6xf32>
    %18 = arith.truncf %17 : vector<128x6xf32> to vector<128x6xbf16>
    %c0_4 = arith.constant 0 : index
    %c0_5 = arith.constant 0 : index
    %19 = vector.load %arg2[%c0_4, %c0_5] : memref<6x64xbf16, #tpu.memory_space<vmem>>, vector<6x64xbf16>
    %cst_6 = arith.constant dense<0.000000e+00> : vector<128x64xf32>
    %20 = tpu.matmul %18, %19, %cst_6 {dimension_numbers = #tpu.dot_dimension_numbers<[1], [0], [0], [1], [0, 0, 1, 1], [], []>} : vector<128x6xbf16>, vector<6x64xbf16>, vector<128x64xf32> -> vector<128x64xf32>
    %c0_7 = arith.constant 0 : index
    %c0_8 = arith.constant 0 : index
    %21 = vector.load %arg3[%c0_7, %c0_8] : memref<1x64xf32, #tpu.memory_space<vmem>>, vector<1x64xf32>
    %22 = vector.broadcast %21 : vector<1x64xf32> to vector<128x64xf32>
    %23 = arith.addf %20, %22 : vector<128x64xf32>
    %cst_9 = arith.constant 0.000000e+00 : f32
    %24 = vector.broadcast %cst_9 : f32 to vector<128x64xf32>
    %25 = arith.maximumf %23, %24 : vector<128x64xf32>
    %26 = arith.truncf %25 : vector<128x64xf32> to vector<128x64xbf16>
    %c0_10 = arith.constant 0 : index
    %c0_11 = arith.constant 0 : index
    %27 = vector.load %arg4[%c0_10, %c0_11] : memref<64x16xbf16, #tpu.memory_space<vmem>>, vector<64x16xbf16>
    %cst_12 = arith.constant dense<0.000000e+00> : vector<128x16xf32>
    %28 = tpu.matmul %26, %27, %cst_12 {dimension_numbers = #tpu.dot_dimension_numbers<[1], [0], [0], [1], [0, 0, 1, 1], [], []>} : vector<128x64xbf16>, vector<64x16xbf16>, vector<128x16xf32> -> vector<128x16xf32>
    %c0_13 = arith.constant 0 : index
    %c0_14 = arith.constant 0 : index
    %29 = vector.load %arg5[%c0_13, %c0_14] : memref<1x16xf32, #tpu.memory_space<vmem>>, vector<1x16xf32>
    %30 = vector.broadcast %29 : vector<1x16xf32> to vector<128x16xf32>
    %31 = arith.addf %28, %30 : vector<128x16xf32>
    %cst_15 = arith.constant 0.000000e+00 : f32
    %32 = vector.broadcast %cst_15 : f32 to vector<128x16xf32>
    %33 = arith.maximumf %31, %32 : vector<128x16xf32>
    %34 = arith.truncf %33 : vector<128x16xf32> to vector<128x16xbf16>
    %c0_16 = arith.constant 0 : index
    %c0_17 = arith.constant 0 : index
    %35 = vector.load %arg6[%c0_16, %c0_17] : memref<16x64xbf16, #tpu.memory_space<vmem>>, vector<16x64xbf16>
    %cst_18 = arith.constant dense<0.000000e+00> : vector<128x64xf32>
    %36 = tpu.matmul %34, %35, %cst_18 {dimension_numbers = #tpu.dot_dimension_numbers<[1], [0], [0], [1], [0, 0, 1, 1], [], []>} : vector<128x16xbf16>, vector<16x64xbf16>, vector<128x64xf32> -> vector<128x64xf32>
    %c0_19 = arith.constant 0 : index
    %c0_20 = arith.constant 0 : index
    %37 = vector.load %arg7[%c0_19, %c0_20] : memref<1x64xf32, #tpu.memory_space<vmem>>, vector<1x64xf32>
    %38 = vector.broadcast %37 : vector<1x64xf32> to vector<128x64xf32>
    %39 = arith.addf %36, %38 : vector<128x64xf32>
    %cst_21 = arith.constant 0.000000e+00 : f32
    %40 = vector.broadcast %cst_21 : f32 to vector<128x64xf32>
    %41 = arith.maximumf %39, %40 : vector<128x64xf32>
    %42 = tpu.iota {dimensions = array<i32: 0>} : vector<128x1xi32>
    %c0_i32_22 = arith.constant 0 : i32
    %43 = vector.broadcast %c0_i32_22 : i32 to vector<128x1xi32>
    %44 = arith.cmpi eq, %42, %43 : vector<128x1xi32>
    %c1_i32_23 = arith.constant 1 : i32
    %45 = tpu.dynamic_rotate %33 by %c1_i32_23 dim 0 : vector<128x16xf32>, i32 -> vector<128x16xf32>
    %cst_24 = arith.constant 0.000000e+00 : f32
    %46 = vector.shape_cast %44 : vector<128x1xi1> to vector<128x1xi1>
    %47 = vector.broadcast %46 : vector<128x1xi1> to vector<128x16xi1>
    %48 = vector.broadcast %cst_24 : f32 to vector<128x16xf32>
    %49 = arith.select %47, %48, %45 : vector<128x16xi1>, vector<128x16xf32>
    %c127_i32_25 = arith.constant 127 : i32
    %50 = vector.broadcast %c127_i32_25 : i32 to vector<128x1xi32>
    %51 = arith.cmpi eq, %42, %50 : vector<128x1xi32>
    %c127_i32_26 = arith.constant 127 : i32
    %52 = tpu.dynamic_rotate %33 by %c127_i32_26 dim 0 : vector<128x16xf32>, i32 -> vector<128x16xf32>
    %cst_27 = arith.constant 0.000000e+00 : f32
    %53 = vector.shape_cast %51 : vector<128x1xi1> to vector<128x1xi1>
    %54 = vector.broadcast %53 : vector<128x1xi1> to vector<128x16xi1>
    %55 = vector.broadcast %cst_27 : f32 to vector<128x16xf32>
    %56 = arith.select %54, %55, %52 : vector<128x16xi1>, vector<128x16xf32>
    %57 = tpu.concatenate %49, %33, %56 in 1 : vector<128x16xf32>, vector<128x16xf32>, vector<128x16xf32> -> vector<128x48xf32>
    %58 = arith.truncf %57 : vector<128x48xf32> to vector<128x48xbf16>
    %c0_28 = arith.constant 0 : index
    %c0_29 = arith.constant 0 : index
    %59 = vector.load %arg8[%c0_28, %c0_29] : memref<48x64xbf16, #tpu.memory_space<vmem>>, vector<48x64xbf16>
    %cst_30 = arith.constant dense<0.000000e+00> : vector<128x64xf32>
    %60 = tpu.matmul %58, %59, %cst_30 {dimension_numbers = #tpu.dot_dimension_numbers<[1], [0], [0], [1], [0, 0, 1, 1], [], []>} : vector<128x48xbf16>, vector<48x64xbf16>, vector<128x64xf32> -> vector<128x64xf32>
    %c0_31 = arith.constant 0 : index
    %c0_32 = arith.constant 0 : index
    %61 = vector.load %arg9[%c0_31, %c0_32] : memref<1x64xf32, #tpu.memory_space<vmem>>, vector<1x64xf32>
    %62 = vector.broadcast %61 : vector<1x64xf32> to vector<128x64xf32>
    %63 = arith.addf %60, %62 : vector<128x64xf32>
    %cst_33 = arith.constant 0.000000e+00 : f32
    %64 = vector.broadcast %cst_33 : f32 to vector<128x64xf32>
    %65 = arith.maximumf %63, %64 : vector<128x64xf32>
    %66 = arith.truncf %41 : vector<128x64xf32> to vector<128x64xbf16>
    %c0_34 = arith.constant 0 : index
    %c0_35 = arith.constant 0 : index
    %67 = vector.load %arg10[%c0_34, %c0_35] : memref<128x16xbf16, #tpu.memory_space<vmem>>, vector<64x16xbf16>
    %cst_36 = arith.constant dense<0.000000e+00> : vector<128x16xf32>
    %68 = tpu.matmul %66, %67, %cst_36 {dimension_numbers = #tpu.dot_dimension_numbers<[1], [0], [0], [1], [0, 0, 1, 1], [], []>} : vector<128x64xbf16>, vector<64x16xbf16>, vector<128x16xf32> -> vector<128x16xf32>
    %69 = arith.truncf %65 : vector<128x64xf32> to vector<128x64xbf16>
    %c64 = arith.constant 64 : index
    %c0_37 = arith.constant 0 : index
    %70 = vector.load %arg10[%c64, %c0_37] : memref<128x16xbf16, #tpu.memory_space<vmem>>, vector<64x16xbf16>
    %cst_38 = arith.constant dense<0.000000e+00> : vector<128x16xf32>
    %71 = tpu.matmul %69, %70, %cst_38 {dimension_numbers = #tpu.dot_dimension_numbers<[1], [0], [0], [1], [0, 0, 1, 1], [], []>} : vector<128x64xbf16>, vector<64x16xbf16>, vector<128x16xf32> -> vector<128x16xf32>
    %72 = arith.addf %68, %71 : vector<128x16xf32>
    %c0_39 = arith.constant 0 : index
    %c0_40 = arith.constant 0 : index
    %73 = vector.load %arg11[%c0_39, %c0_40] : memref<1x16xf32, #tpu.memory_space<vmem>>, vector<1x16xf32>
    %74 = vector.broadcast %73 : vector<1x16xf32> to vector<128x16xf32>
    %75 = arith.addf %72, %74 : vector<128x16xf32>
    %cst_41 = arith.constant 0.000000e+00 : f32
    %76 = vector.broadcast %cst_41 : f32 to vector<128x16xf32>
    %77 = arith.maximumf %75, %76 : vector<128x16xf32>
    %78 = arith.truncf %77 : vector<128x16xf32> to vector<128x16xbf16>
    %c0_42 = arith.constant 0 : index
    %c0_43 = arith.constant 0 : index
    %79 = vector.load %arg12[%c0_42, %c0_43] : memref<16x64xbf16, #tpu.memory_space<vmem>>, vector<16x64xbf16>
    %cst_44 = arith.constant dense<0.000000e+00> : vector<128x64xf32>
    %80 = tpu.matmul %78, %79, %cst_44 {dimension_numbers = #tpu.dot_dimension_numbers<[1], [0], [0], [1], [0, 0, 1, 1], [], []>} : vector<128x16xbf16>, vector<16x64xbf16>, vector<128x64xf32> -> vector<128x64xf32>
    %c0_45 = arith.constant 0 : index
    %c0_46 = arith.constant 0 : index
    %81 = vector.load %arg13[%c0_45, %c0_46] : memref<1x64xf32, #tpu.memory_space<vmem>>, vector<1x64xf32>
    %82 = vector.broadcast %81 : vector<1x64xf32> to vector<128x64xf32>
    %83 = arith.addf %80, %82 : vector<128x64xf32>
    %cst_47 = arith.constant 0.000000e+00 : f32
    %84 = vector.broadcast %cst_47 : f32 to vector<128x64xf32>
    %85 = arith.maximumf %83, %84 : vector<128x64xf32>
    %86 = tpu.iota {dimensions = array<i32: 0>} : vector<128x1xi32>
    %c0_i32_48 = arith.constant 0 : i32
    %87 = vector.broadcast %c0_i32_48 : i32 to vector<128x1xi32>
    %88 = arith.cmpi eq, %86, %87 : vector<128x1xi32>
    %c1_i32_49 = arith.constant 1 : i32
    %89 = tpu.dynamic_rotate %77 by %c1_i32_49 dim 0 : vector<128x16xf32>, i32 -> vector<128x16xf32>
    %cst_50 = arith.constant 0.000000e+00 : f32
    %90 = vector.shape_cast %88 : vector<128x1xi1> to vector<128x1xi1>
    %91 = vector.broadcast %90 : vector<128x1xi1> to vector<128x16xi1>
    %92 = vector.broadcast %cst_50 : f32 to vector<128x16xf32>
    %93 = arith.select %91, %92, %89 : vector<128x16xi1>, vector<128x16xf32>
    %c127_i32_51 = arith.constant 127 : i32
    %94 = vector.broadcast %c127_i32_51 : i32 to vector<128x1xi32>
    %95 = arith.cmpi eq, %86, %94 : vector<128x1xi32>
    %c127_i32_52 = arith.constant 127 : i32
    %96 = tpu.dynamic_rotate %77 by %c127_i32_52 dim 0 : vector<128x16xf32>, i32 -> vector<128x16xf32>
    %cst_53 = arith.constant 0.000000e+00 : f32
    %97 = vector.shape_cast %95 : vector<128x1xi1> to vector<128x1xi1>
    %98 = vector.broadcast %97 : vector<128x1xi1> to vector<128x16xi1>
    %99 = vector.broadcast %cst_53 : f32 to vector<128x16xf32>
    %100 = arith.select %98, %99, %96 : vector<128x16xi1>, vector<128x16xf32>
    %101 = tpu.concatenate %93, %77, %100 in 1 : vector<128x16xf32>, vector<128x16xf32>, vector<128x16xf32> -> vector<128x48xf32>
    %102 = arith.truncf %101 : vector<128x48xf32> to vector<128x48xbf16>
    %c0_54 = arith.constant 0 : index
    %c0_55 = arith.constant 0 : index
    %103 = vector.load %arg14[%c0_54, %c0_55] : memref<48x64xbf16, #tpu.memory_space<vmem>>, vector<48x64xbf16>
    %cst_56 = arith.constant dense<0.000000e+00> : vector<128x64xf32>
    %104 = tpu.matmul %102, %103, %cst_56 {dimension_numbers = #tpu.dot_dimension_numbers<[1], [0], [0], [1], [0, 0, 1, 1], [], []>} : vector<128x48xbf16>, vector<48x64xbf16>, vector<128x64xf32> -> vector<128x64xf32>
    %c0_57 = arith.constant 0 : index
    %c0_58 = arith.constant 0 : index
    %105 = vector.load %arg15[%c0_57, %c0_58] : memref<1x64xf32, #tpu.memory_space<vmem>>, vector<1x64xf32>
    %106 = vector.broadcast %105 : vector<1x64xf32> to vector<128x64xf32>
    %107 = arith.addf %104, %106 : vector<128x64xf32>
    %cst_59 = arith.constant 0.000000e+00 : f32
    %108 = vector.broadcast %cst_59 : f32 to vector<128x64xf32>
    %109 = arith.maximumf %107, %108 : vector<128x64xf32>
    %110 = arith.truncf %85 : vector<128x64xf32> to vector<128x64xbf16>
    %c0_60 = arith.constant 0 : index
    %c0_61 = arith.constant 0 : index
    %111 = vector.load %arg16[%c0_60, %c0_61] : memref<128x32xbf16, #tpu.memory_space<vmem>>, vector<64x32xbf16>
    %cst_62 = arith.constant dense<0.000000e+00> : vector<128x32xf32>
    %112 = tpu.matmul %110, %111, %cst_62 {dimension_numbers = #tpu.dot_dimension_numbers<[1], [0], [0], [1], [0, 0, 1, 1], [], []>} : vector<128x64xbf16>, vector<64x32xbf16>, vector<128x32xf32> -> vector<128x32xf32>
    %113 = arith.truncf %109 : vector<128x64xf32> to vector<128x64xbf16>
    %c64_63 = arith.constant 64 : index
    %c0_64 = arith.constant 0 : index
    %114 = vector.load %arg16[%c64_63, %c0_64] : memref<128x32xbf16, #tpu.memory_space<vmem>>, vector<64x32xbf16>
    %cst_65 = arith.constant dense<0.000000e+00> : vector<128x32xf32>
    %115 = tpu.matmul %113, %114, %cst_65 {dimension_numbers = #tpu.dot_dimension_numbers<[1], [0], [0], [1], [0, 0, 1, 1], [], []>} : vector<128x64xbf16>, vector<64x32xbf16>, vector<128x32xf32> -> vector<128x32xf32>
    %116 = arith.addf %112, %115 : vector<128x32xf32>
    %c0_66 = arith.constant 0 : index
    %c0_67 = arith.constant 0 : index
    %117 = vector.load %arg17[%c0_66, %c0_67] : memref<1x32xf32, #tpu.memory_space<vmem>>, vector<1x32xf32>
    %118 = vector.broadcast %117 : vector<1x32xf32> to vector<128x32xf32>
    %119 = arith.addf %116, %118 : vector<128x32xf32>
    %cst_68 = arith.constant 0.000000e+00 : f32
    %120 = vector.broadcast %cst_68 : f32 to vector<128x32xf32>
    %121 = arith.maximumf %119, %120 : vector<128x32xf32>
    %122 = arith.truncf %121 : vector<128x32xf32> to vector<128x32xbf16>
    %c0_69 = arith.constant 0 : index
    %c0_70 = arith.constant 0 : index
    %123 = vector.load %arg18[%c0_69, %c0_70] : memref<32x128xbf16, #tpu.memory_space<vmem>>, vector<32x128xbf16>
    %cst_71 = arith.constant dense<0.000000e+00> : vector<128x128xf32>
    %124 = tpu.matmul %122, %123, %cst_71 {dimension_numbers = #tpu.dot_dimension_numbers<[1], [0], [0], [1], [0, 0, 1, 1], [], []>} : vector<128x32xbf16>, vector<32x128xbf16>, vector<128x128xf32> -> vector<128x128xf32>
    %c0_72 = arith.constant 0 : index
    %c0_73 = arith.constant 0 : index
    %125 = vector.load %arg19[%c0_72, %c0_73] : memref<1x128xf32, #tpu.memory_space<vmem>>, vector<1x128xf32>
    %126 = vector.broadcast %125 : vector<1x128xf32> to vector<128x128xf32>
    %127 = arith.addf %124, %126 : vector<128x128xf32>
    %cst_74 = arith.constant 0.000000e+00 : f32
    %128 = vector.broadcast %cst_74 : f32 to vector<128x128xf32>
    %129 = arith.maximumf %127, %128 : vector<128x128xf32>
    %130 = tpu.iota {dimensions = array<i32: 0>} : vector<128x1xi32>
    %c0_i32_75 = arith.constant 0 : i32
    %131 = vector.broadcast %c0_i32_75 : i32 to vector<128x1xi32>
    %132 = arith.cmpi eq, %130, %131 : vector<128x1xi32>
    %c1_i32_76 = arith.constant 1 : i32
    %133 = tpu.dynamic_rotate %121 by %c1_i32_76 dim 0 : vector<128x32xf32>, i32 -> vector<128x32xf32>
    %cst_77 = arith.constant 0.000000e+00 : f32
    %134 = vector.shape_cast %132 : vector<128x1xi1> to vector<128x1xi1>
    %135 = vector.broadcast %134 : vector<128x1xi1> to vector<128x32xi1>
    %136 = vector.broadcast %cst_77 : f32 to vector<128x32xf32>
    %137 = arith.select %135, %136, %133 : vector<128x32xi1>, vector<128x32xf32>
    %c127_i32_78 = arith.constant 127 : i32
    %138 = vector.broadcast %c127_i32_78 : i32 to vector<128x1xi32>
    %139 = arith.cmpi eq, %130, %138 : vector<128x1xi32>
    %c127_i32_79 = arith.constant 127 : i32
    %140 = tpu.dynamic_rotate %121 by %c127_i32_79 dim 0 : vector<128x32xf32>, i32 -> vector<128x32xf32>
    %cst_80 = arith.constant 0.000000e+00 : f32
    %141 = vector.shape_cast %139 : vector<128x1xi1> to vector<128x1xi1>
    %142 = vector.broadcast %141 : vector<128x1xi1> to vector<128x32xi1>
    %143 = vector.broadcast %cst_80 : f32 to vector<128x32xf32>
    %144 = arith.select %142, %143, %140 : vector<128x32xi1>, vector<128x32xf32>
    %145 = tpu.concatenate %137, %121, %144 in 1 : vector<128x32xf32>, vector<128x32xf32>, vector<128x32xf32> -> vector<128x96xf32>
    %146 = arith.truncf %145 : vector<128x96xf32> to vector<128x96xbf16>
    %c0_81 = arith.constant 0 : index
    %c0_82 = arith.constant 0 : index
    %147 = vector.load %arg20[%c0_81, %c0_82] : memref<96x128xbf16, #tpu.memory_space<vmem>>, vector<96x128xbf16>
    %cst_83 = arith.constant dense<0.000000e+00> : vector<128x128xf32>
    %148 = tpu.matmul %146, %147, %cst_83 {dimension_numbers = #tpu.dot_dimension_numbers<[1], [0], [0], [1], [0, 0, 1, 1], [], []>} : vector<128x96xbf16>, vector<96x128xbf16>, vector<128x128xf32> -> vector<128x128xf32>
    %c0_84 = arith.constant 0 : index
    %c0_85 = arith.constant 0 : index
    %149 = vector.load %arg21[%c0_84, %c0_85] : memref<1x128xf32, #tpu.memory_space<vmem>>, vector<1x128xf32>
    %150 = vector.broadcast %149 : vector<1x128xf32> to vector<128x128xf32>
    %151 = arith.addf %148, %150 : vector<128x128xf32>
    %cst_86 = arith.constant 0.000000e+00 : f32
    %152 = vector.broadcast %cst_86 : f32 to vector<128x128xf32>
    %153 = arith.maximumf %151, %152 : vector<128x128xf32>
    %154 = arith.truncf %129 : vector<128x128xf32> to vector<128x128xbf16>
    %c0_87 = arith.constant 0 : index
    %c0_88 = arith.constant 0 : index
    %155 = vector.load %arg22[%c0_87, %c0_88] : memref<256x32xbf16, #tpu.memory_space<vmem>>, vector<128x32xbf16>
    %cst_89 = arith.constant dense<0.000000e+00> : vector<128x32xf32>
    %156 = tpu.matmul %154, %155, %cst_89 {dimension_numbers = #tpu.dot_dimension_numbers<[1], [0], [0], [1], [0, 0, 1, 1], [], []>} : vector<128x128xbf16>, vector<128x32xbf16>, vector<128x32xf32> -> vector<128x32xf32>
    %157 = arith.truncf %153 : vector<128x128xf32> to vector<128x128xbf16>
    %c128 = arith.constant 128 : index
    %c0_90 = arith.constant 0 : index
    %158 = vector.load %arg22[%c128, %c0_90] : memref<256x32xbf16, #tpu.memory_space<vmem>>, vector<128x32xbf16>
    %cst_91 = arith.constant dense<0.000000e+00> : vector<128x32xf32>
    %159 = tpu.matmul %157, %158, %cst_91 {dimension_numbers = #tpu.dot_dimension_numbers<[1], [0], [0], [1], [0, 0, 1, 1], [], []>} : vector<128x128xbf16>, vector<128x32xbf16>, vector<128x32xf32> -> vector<128x32xf32>
    %160 = arith.addf %156, %159 : vector<128x32xf32>
    %c0_92 = arith.constant 0 : index
    %c0_93 = arith.constant 0 : index
    %161 = vector.load %arg23[%c0_92, %c0_93] : memref<1x32xf32, #tpu.memory_space<vmem>>, vector<1x32xf32>
    %162 = vector.broadcast %161 : vector<1x32xf32> to vector<128x32xf32>
    %163 = arith.addf %160, %162 : vector<128x32xf32>
    %cst_94 = arith.constant 0.000000e+00 : f32
    %164 = vector.broadcast %cst_94 : f32 to vector<128x32xf32>
    %165 = arith.maximumf %163, %164 : vector<128x32xf32>
    %166 = arith.truncf %165 : vector<128x32xf32> to vector<128x32xbf16>
    %c0_95 = arith.constant 0 : index
    %c0_96 = arith.constant 0 : index
    %167 = vector.load %arg24[%c0_95, %c0_96] : memref<32x128xbf16, #tpu.memory_space<vmem>>, vector<32x128xbf16>
    %cst_97 = arith.constant dense<0.000000e+00> : vector<128x128xf32>
    %168 = tpu.matmul %166, %167, %cst_97 {dimension_numbers = #tpu.dot_dimension_numbers<[1], [0], [0], [1], [0, 0, 1, 1], [], []>} : vector<128x32xbf16>, vector<32x128xbf16>, vector<128x128xf32> -> vector<128x128xf32>
    %c0_98 = arith.constant 0 : index
    %c0_99 = arith.constant 0 : index
    %169 = vector.load %arg25[%c0_98, %c0_99] : memref<1x128xf32, #tpu.memory_space<vmem>>, vector<1x128xf32>
    %170 = vector.broadcast %169 : vector<1x128xf32> to vector<128x128xf32>
    %171 = arith.addf %168, %170 : vector<128x128xf32>
    %cst_100 = arith.constant 0.000000e+00 : f32
    %172 = vector.broadcast %cst_100 : f32 to vector<128x128xf32>
    %173 = arith.maximumf %171, %172 : vector<128x128xf32>
    %174 = tpu.iota {dimensions = array<i32: 0>} : vector<128x1xi32>
    %c0_i32_101 = arith.constant 0 : i32
    %175 = vector.broadcast %c0_i32_101 : i32 to vector<128x1xi32>
    %176 = arith.cmpi eq, %174, %175 : vector<128x1xi32>
    %c1_i32_102 = arith.constant 1 : i32
    %177 = tpu.dynamic_rotate %165 by %c1_i32_102 dim 0 : vector<128x32xf32>, i32 -> vector<128x32xf32>
    %cst_103 = arith.constant 0.000000e+00 : f32
    %178 = vector.shape_cast %176 : vector<128x1xi1> to vector<128x1xi1>
    %179 = vector.broadcast %178 : vector<128x1xi1> to vector<128x32xi1>
    %180 = vector.broadcast %cst_103 : f32 to vector<128x32xf32>
    %181 = arith.select %179, %180, %177 : vector<128x32xi1>, vector<128x32xf32>
    %c127_i32_104 = arith.constant 127 : i32
    %182 = vector.broadcast %c127_i32_104 : i32 to vector<128x1xi32>
    %183 = arith.cmpi eq, %174, %182 : vector<128x1xi32>
    %c127_i32_105 = arith.constant 127 : i32
    %184 = tpu.dynamic_rotate %165 by %c127_i32_105 dim 0 : vector<128x32xf32>, i32 -> vector<128x32xf32>
    %cst_106 = arith.constant 0.000000e+00 : f32
    %185 = vector.shape_cast %183 : vector<128x1xi1> to vector<128x1xi1>
    %186 = vector.broadcast %185 : vector<128x1xi1> to vector<128x32xi1>
    %187 = vector.broadcast %cst_106 : f32 to vector<128x32xf32>
    %188 = arith.select %186, %187, %184 : vector<128x32xi1>, vector<128x32xf32>
    %189 = tpu.concatenate %181, %165, %188 in 1 : vector<128x32xf32>, vector<128x32xf32>, vector<128x32xf32> -> vector<128x96xf32>
    %190 = arith.truncf %189 : vector<128x96xf32> to vector<128x96xbf16>
    %c0_107 = arith.constant 0 : index
    %c0_108 = arith.constant 0 : index
    %191 = vector.load %arg26[%c0_107, %c0_108] : memref<96x128xbf16, #tpu.memory_space<vmem>>, vector<96x128xbf16>
    %cst_109 = arith.constant dense<0.000000e+00> : vector<128x128xf32>
    %192 = tpu.matmul %190, %191, %cst_109 {dimension_numbers = #tpu.dot_dimension_numbers<[1], [0], [0], [1], [0, 0, 1, 1], [], []>} : vector<128x96xbf16>, vector<96x128xbf16>, vector<128x128xf32> -> vector<128x128xf32>
    %c0_110 = arith.constant 0 : index
    %c0_111 = arith.constant 0 : index
    %193 = vector.load %arg27[%c0_110, %c0_111] : memref<1x128xf32, #tpu.memory_space<vmem>>, vector<1x128xf32>
    %194 = vector.broadcast %193 : vector<1x128xf32> to vector<128x128xf32>
    %195 = arith.addf %192, %194 : vector<128x128xf32>
    %cst_112 = arith.constant 0.000000e+00 : f32
    %196 = vector.broadcast %cst_112 : f32 to vector<128x128xf32>
    %197 = arith.maximumf %195, %196 : vector<128x128xf32>
    %198 = arith.truncf %173 : vector<128x128xf32> to vector<128x128xbf16>
    %c0_113 = arith.constant 0 : index
    %c0_114 = arith.constant 0 : index
    %199 = vector.load %arg28[%c0_113, %c0_114] : memref<256x48xbf16, #tpu.memory_space<vmem>>, vector<128x48xbf16>
    %cst_115 = arith.constant dense<0.000000e+00> : vector<128x48xf32>
    %200 = tpu.matmul %198, %199, %cst_115 {dimension_numbers = #tpu.dot_dimension_numbers<[1], [0], [0], [1], [0, 0, 1, 1], [], []>} : vector<128x128xbf16>, vector<128x48xbf16>, vector<128x48xf32> -> vector<128x48xf32>
    %201 = arith.truncf %197 : vector<128x128xf32> to vector<128x128xbf16>
    %c128_116 = arith.constant 128 : index
    %c0_117 = arith.constant 0 : index
    %202 = vector.load %arg28[%c128_116, %c0_117] : memref<256x48xbf16, #tpu.memory_space<vmem>>, vector<128x48xbf16>
    %cst_118 = arith.constant dense<0.000000e+00> : vector<128x48xf32>
    %203 = tpu.matmul %201, %202, %cst_118 {dimension_numbers = #tpu.dot_dimension_numbers<[1], [0], [0], [1], [0, 0, 1, 1], [], []>} : vector<128x128xbf16>, vector<128x48xbf16>, vector<128x48xf32> -> vector<128x48xf32>
    %204 = arith.addf %200, %203 : vector<128x48xf32>
    %c0_119 = arith.constant 0 : index
    %c0_120 = arith.constant 0 : index
    %205 = vector.load %arg29[%c0_119, %c0_120] : memref<1x48xf32, #tpu.memory_space<vmem>>, vector<1x48xf32>
    %206 = vector.broadcast %205 : vector<1x48xf32> to vector<128x48xf32>
    %207 = arith.addf %204, %206 : vector<128x48xf32>
    %cst_121 = arith.constant 0.000000e+00 : f32
    %208 = vector.broadcast %cst_121 : f32 to vector<128x48xf32>
    %209 = arith.maximumf %207, %208 : vector<128x48xf32>
    %210 = arith.truncf %209 : vector<128x48xf32> to vector<128x48xbf16>
    %c0_122 = arith.constant 0 : index
    %c0_123 = arith.constant 0 : index
    %211 = vector.load %arg30[%c0_122, %c0_123] : memref<48x192xbf16, #tpu.memory_space<vmem>>, vector<48x192xbf16>
    %cst_124 = arith.constant dense<0.000000e+00> : vector<128x192xf32>
    %212 = tpu.matmul %210, %211, %cst_124 {dimension_numbers = #tpu.dot_dimension_numbers<[1], [0], [0], [1], [0, 0, 1, 1], [], []>} : vector<128x48xbf16>, vector<48x192xbf16>, vector<128x192xf32> -> vector<128x192xf32>
    %c0_125 = arith.constant 0 : index
    %c0_126 = arith.constant 0 : index
    %213 = vector.load %arg31[%c0_125, %c0_126] : memref<1x192xf32, #tpu.memory_space<vmem>>, vector<1x192xf32>
    %214 = vector.broadcast %213 : vector<1x192xf32> to vector<128x192xf32>
    %215 = arith.addf %212, %214 : vector<128x192xf32>
    %cst_127 = arith.constant 0.000000e+00 : f32
    %216 = vector.broadcast %cst_127 : f32 to vector<128x192xf32>
    %217 = arith.maximumf %215, %216 : vector<128x192xf32>
    %218 = tpu.iota {dimensions = array<i32: 0>} : vector<128x1xi32>
    %c0_i32_128 = arith.constant 0 : i32
    %219 = vector.broadcast %c0_i32_128 : i32 to vector<128x1xi32>
    %220 = arith.cmpi eq, %218, %219 : vector<128x1xi32>
    %c1_i32_129 = arith.constant 1 : i32
    %221 = tpu.dynamic_rotate %209 by %c1_i32_129 dim 0 : vector<128x48xf32>, i32 -> vector<128x48xf32>
    %cst_130 = arith.constant 0.000000e+00 : f32
    %222 = vector.shape_cast %220 : vector<128x1xi1> to vector<128x1xi1>
    %223 = vector.broadcast %222 : vector<128x1xi1> to vector<128x48xi1>
    %224 = vector.broadcast %cst_130 : f32 to vector<128x48xf32>
    %225 = arith.select %223, %224, %221 : vector<128x48xi1>, vector<128x48xf32>
    %c127_i32_131 = arith.constant 127 : i32
    %226 = vector.broadcast %c127_i32_131 : i32 to vector<128x1xi32>
    %227 = arith.cmpi eq, %218, %226 : vector<128x1xi32>
    %c127_i32_132 = arith.constant 127 : i32
    %228 = tpu.dynamic_rotate %209 by %c127_i32_132 dim 0 : vector<128x48xf32>, i32 -> vector<128x48xf32>
    %cst_133 = arith.constant 0.000000e+00 : f32
    %229 = vector.shape_cast %227 : vector<128x1xi1> to vector<128x1xi1>
    %230 = vector.broadcast %229 : vector<128x1xi1> to vector<128x48xi1>
    %231 = vector.broadcast %cst_133 : f32 to vector<128x48xf32>
    %232 = arith.select %230, %231, %228 : vector<128x48xi1>, vector<128x48xf32>
    %233 = tpu.concatenate %225, %209, %232 in 1 : vector<128x48xf32>, vector<128x48xf32>, vector<128x48xf32> -> vector<128x144xf32>
    %234 = arith.truncf %233 : vector<128x144xf32> to vector<128x144xbf16>
    %c0_134 = arith.constant 0 : index
    %c0_135 = arith.constant 0 : index
    %235 = vector.load %arg32[%c0_134, %c0_135] : memref<144x192xbf16, #tpu.memory_space<vmem>>, vector<144x192xbf16>
    %cst_136 = arith.constant dense<0.000000e+00> : vector<128x192xf32>
    %236 = tpu.matmul %234, %235, %cst_136 {dimension_numbers = #tpu.dot_dimension_numbers<[1], [0], [0], [1], [0, 0, 1, 1], [], []>} : vector<128x144xbf16>, vector<144x192xbf16>, vector<128x192xf32> -> vector<128x192xf32>
    %c0_137 = arith.constant 0 : index
    %c0_138 = arith.constant 0 : index
    %237 = vector.load %arg33[%c0_137, %c0_138] : memref<1x192xf32, #tpu.memory_space<vmem>>, vector<1x192xf32>
    %238 = vector.broadcast %237 : vector<1x192xf32> to vector<128x192xf32>
    %239 = arith.addf %236, %238 : vector<128x192xf32>
    %cst_139 = arith.constant 0.000000e+00 : f32
    %240 = vector.broadcast %cst_139 : f32 to vector<128x192xf32>
    %241 = arith.maximumf %239, %240 : vector<128x192xf32>
    %242 = arith.truncf %217 : vector<128x192xf32> to vector<128x192xbf16>
    %c0_140 = arith.constant 0 : index
    %c0_141 = arith.constant 0 : index
    %243 = vector.load %arg34[%c0_140, %c0_141] : memref<384x48xbf16, #tpu.memory_space<vmem>>, vector<192x48xbf16>
    %cst_142 = arith.constant dense<0.000000e+00> : vector<128x48xf32>
    %244 = tpu.matmul %242, %243, %cst_142 {dimension_numbers = #tpu.dot_dimension_numbers<[1], [0], [0], [1], [0, 0, 1, 1], [], []>} : vector<128x192xbf16>, vector<192x48xbf16>, vector<128x48xf32> -> vector<128x48xf32>
    %245 = arith.truncf %241 : vector<128x192xf32> to vector<128x192xbf16>
    %c192 = arith.constant 192 : index
    %c0_143 = arith.constant 0 : index
    %246 = vector.load %arg34[%c192, %c0_143] : memref<384x48xbf16, #tpu.memory_space<vmem>>, vector<192x48xbf16>
    %cst_144 = arith.constant dense<0.000000e+00> : vector<128x48xf32>
    %247 = tpu.matmul %245, %246, %cst_144 {dimension_numbers = #tpu.dot_dimension_numbers<[1], [0], [0], [1], [0, 0, 1, 1], [], []>} : vector<128x192xbf16>, vector<192x48xbf16>, vector<128x48xf32> -> vector<128x48xf32>
    %248 = arith.addf %244, %247 : vector<128x48xf32>
    %c0_145 = arith.constant 0 : index
    %c0_146 = arith.constant 0 : index
    %249 = vector.load %arg35[%c0_145, %c0_146] : memref<1x48xf32, #tpu.memory_space<vmem>>, vector<1x48xf32>
    %250 = vector.broadcast %249 : vector<1x48xf32> to vector<128x48xf32>
    %251 = arith.addf %248, %250 : vector<128x48xf32>
    %cst_147 = arith.constant 0.000000e+00 : f32
    %252 = vector.broadcast %cst_147 : f32 to vector<128x48xf32>
    %253 = arith.maximumf %251, %252 : vector<128x48xf32>
    %254 = arith.truncf %253 : vector<128x48xf32> to vector<128x48xbf16>
    %c0_148 = arith.constant 0 : index
    %c0_149 = arith.constant 0 : index
    %255 = vector.load %arg36[%c0_148, %c0_149] : memref<48x192xbf16, #tpu.memory_space<vmem>>, vector<48x192xbf16>
    %cst_150 = arith.constant dense<0.000000e+00> : vector<128x192xf32>
    %256 = tpu.matmul %254, %255, %cst_150 {dimension_numbers = #tpu.dot_dimension_numbers<[1], [0], [0], [1], [0, 0, 1, 1], [], []>} : vector<128x48xbf16>, vector<48x192xbf16>, vector<128x192xf32> -> vector<128x192xf32>
    %c0_151 = arith.constant 0 : index
    %c0_152 = arith.constant 0 : index
    %257 = vector.load %arg37[%c0_151, %c0_152] : memref<1x192xf32, #tpu.memory_space<vmem>>, vector<1x192xf32>
    %258 = vector.broadcast %257 : vector<1x192xf32> to vector<128x192xf32>
    %259 = arith.addf %256, %258 : vector<128x192xf32>
    %cst_153 = arith.constant 0.000000e+00 : f32
    %260 = vector.broadcast %cst_153 : f32 to vector<128x192xf32>
    %261 = arith.maximumf %259, %260 : vector<128x192xf32>
    %262 = tpu.iota {dimensions = array<i32: 0>} : vector<128x1xi32>
    %c0_i32_154 = arith.constant 0 : i32
    %263 = vector.broadcast %c0_i32_154 : i32 to vector<128x1xi32>
    %264 = arith.cmpi eq, %262, %263 : vector<128x1xi32>
    %c1_i32_155 = arith.constant 1 : i32
    %265 = tpu.dynamic_rotate %253 by %c1_i32_155 dim 0 : vector<128x48xf32>, i32 -> vector<128x48xf32>
    %cst_156 = arith.constant 0.000000e+00 : f32
    %266 = vector.shape_cast %264 : vector<128x1xi1> to vector<128x1xi1>
    %267 = vector.broadcast %266 : vector<128x1xi1> to vector<128x48xi1>
    %268 = vector.broadcast %cst_156 : f32 to vector<128x48xf32>
    %269 = arith.select %267, %268, %265 : vector<128x48xi1>, vector<128x48xf32>
    %c127_i32_157 = arith.constant 127 : i32
    %270 = vector.broadcast %c127_i32_157 : i32 to vector<128x1xi32>
    %271 = arith.cmpi eq, %262, %270 : vector<128x1xi32>
    %c127_i32_158 = arith.constant 127 : i32
    %272 = tpu.dynamic_rotate %253 by %c127_i32_158 dim 0 : vector<128x48xf32>, i32 -> vector<128x48xf32>
    %cst_159 = arith.constant 0.000000e+00 : f32
    %273 = vector.shape_cast %271 : vector<128x1xi1> to vector<128x1xi1>
    %274 = vector.broadcast %273 : vector<128x1xi1> to vector<128x48xi1>
    %275 = vector.broadcast %cst_159 : f32 to vector<128x48xf32>
    %276 = arith.select %274, %275, %272 : vector<128x48xi1>, vector<128x48xf32>
    %277 = tpu.concatenate %269, %253, %276 in 1 : vector<128x48xf32>, vector<128x48xf32>, vector<128x48xf32> -> vector<128x144xf32>
    %278 = arith.truncf %277 : vector<128x144xf32> to vector<128x144xbf16>
    %c0_160 = arith.constant 0 : index
    %c0_161 = arith.constant 0 : index
    %279 = vector.load %arg38[%c0_160, %c0_161] : memref<144x192xbf16, #tpu.memory_space<vmem>>, vector<144x192xbf16>
    %cst_162 = arith.constant dense<0.000000e+00> : vector<128x192xf32>
    %280 = tpu.matmul %278, %279, %cst_162 {dimension_numbers = #tpu.dot_dimension_numbers<[1], [0], [0], [1], [0, 0, 1, 1], [], []>} : vector<128x144xbf16>, vector<144x192xbf16>, vector<128x192xf32> -> vector<128x192xf32>
    %c0_163 = arith.constant 0 : index
    %c0_164 = arith.constant 0 : index
    %281 = vector.load %arg39[%c0_163, %c0_164] : memref<1x192xf32, #tpu.memory_space<vmem>>, vector<1x192xf32>
    %282 = vector.broadcast %281 : vector<1x192xf32> to vector<128x192xf32>
    %283 = arith.addf %280, %282 : vector<128x192xf32>
    %cst_165 = arith.constant 0.000000e+00 : f32
    %284 = vector.broadcast %cst_165 : f32 to vector<128x192xf32>
    %285 = arith.maximumf %283, %284 : vector<128x192xf32>
    %286 = arith.truncf %261 : vector<128x192xf32> to vector<128x192xbf16>
    %c0_166 = arith.constant 0 : index
    %c0_167 = arith.constant 0 : index
    %287 = vector.load %arg40[%c0_166, %c0_167] : memref<384x512xbf16, #tpu.memory_space<vmem>>, vector<192x512xbf16>
    %cst_168 = arith.constant dense<0.000000e+00> : vector<128x512xf32>
    %288 = tpu.matmul %286, %287, %cst_168 {dimension_numbers = #tpu.dot_dimension_numbers<[1], [0], [0], [1], [0, 0, 1, 1], [], []>} : vector<128x192xbf16>, vector<192x512xbf16>, vector<128x512xf32> -> vector<128x512xf32>
    %289 = arith.truncf %285 : vector<128x192xf32> to vector<128x192xbf16>
    %c192_169 = arith.constant 192 : index
    %c0_170 = arith.constant 0 : index
    %290 = vector.load %arg40[%c192_169, %c0_170] : memref<384x512xbf16, #tpu.memory_space<vmem>>, vector<192x512xbf16>
    %cst_171 = arith.constant dense<0.000000e+00> : vector<128x512xf32>
    %291 = tpu.matmul %289, %290, %cst_171 {dimension_numbers = #tpu.dot_dimension_numbers<[1], [0], [0], [1], [0, 0, 1, 1], [], []>} : vector<128x192xbf16>, vector<192x512xbf16>, vector<128x512xf32> -> vector<128x512xf32>
    %292 = arith.addf %288, %291 : vector<128x512xf32>
    %c0_172 = arith.constant 0 : index
    %c0_173 = arith.constant 0 : index
    %293 = vector.load %arg41[%c0_172, %c0_173] : memref<1x512xf32, #tpu.memory_space<vmem>>, vector<1x512xf32>
    %294 = vector.broadcast %293 : vector<1x512xf32> to vector<128x512xf32>
    %295 = arith.addf %292, %294 : vector<128x512xf32>
    %cst_174 = arith.constant 0.000000e+00 : f32
    %296 = vector.broadcast %cst_174 : f32 to vector<128x512xf32>
    %297 = arith.maximumf %295, %296 : vector<128x512xf32>
    %cst_175 = arith.constant dense<0.000000e+00> : vector<512xf32>
    %298 = vector.multi_reduction <add>, %297, %cst_175 [0] : vector<128x512xf32> to vector<512xf32>
    %299 = vector.shape_cast %298 : vector<512xf32> to vector<1x512xf32>
    %cst_176 = arith.constant 1.280000e+02 : f32
    %300 = vector.broadcast %cst_176 : f32 to vector<1x512xf32>
    %301 = arith.divf %299, %300 : vector<1x512xf32>
    %302 = arith.truncf %301 : vector<1x512xf32> to vector<1x512xbf16>
    %c0_177 = arith.constant 0 : index
    %c0_178 = arith.constant 0 : index
    %303 = vector.load %arg42[%c0_177, %c0_178] : memref<512x256xbf16, #tpu.memory_space<vmem>>, vector<512x256xbf16>
    %cst_179 = arith.constant dense<0.000000e+00> : vector<1x256xf32>
    %304 = tpu.matmul %302, %303, %cst_179 {dimension_numbers = #tpu.dot_dimension_numbers<[1], [0], [0], [1], [0, 0, 1, 1], [], []>} : vector<1x512xbf16>, vector<512x256xbf16>, vector<1x256xf32> -> vector<1x256xf32>
    %c0_180 = arith.constant 0 : index
    %c0_181 = arith.constant 0 : index
    %305 = vector.load %arg43[%c0_180, %c0_181] : memref<1x256xf32, #tpu.memory_space<vmem>>, vector<1x256xf32>
    %306 = arith.addf %304, %305 : vector<1x256xf32>
    %cst_182 = arith.constant 0.000000e+00 : f32
    %307 = vector.broadcast %cst_182 : f32 to vector<1x256xf32>
    %308 = arith.maximumf %306, %307 : vector<1x256xf32>
    %309 = arith.truncf %308 : vector<1x256xf32> to vector<1x256xbf16>
    %c0_183 = arith.constant 0 : index
    %c0_184 = arith.constant 0 : index
    %310 = vector.load %arg44[%c0_183, %c0_184] : memref<256x8xbf16, #tpu.memory_space<vmem>>, vector<256x8xbf16>
    %cst_185 = arith.constant dense<0.000000e+00> : vector<1x8xf32>
    %311 = tpu.matmul %309, %310, %cst_185 {dimension_numbers = #tpu.dot_dimension_numbers<[1], [0], [0], [1], [0, 0, 1, 1], [], []>} : vector<1x256xbf16>, vector<256x8xbf16>, vector<1x8xf32> -> vector<1x8xf32>
    %c0_186 = arith.constant 0 : index
    %c0_187 = arith.constant 0 : index
    %312 = vector.load %arg45[%c0_186, %c0_187] : memref<1x8xf32, #tpu.memory_space<vmem>>, vector<1x8xf32>
    %313 = arith.addf %311, %312 : vector<1x8xf32>
    %cst_188 = arith.constant 0.000000e+00 : f32
    %314 = vector.broadcast %cst_188 : f32 to vector<1x8xf32>
    %315 = arith.subf %314, %313 : vector<1x8xf32>
    %316 = math.exp %315 : vector<1x8xf32>
    %cst_189 = arith.constant 1.000000e+00 : f32
    %317 = vector.broadcast %cst_189 : f32 to vector<1x8xf32>
    %318 = arith.addf %317, %316 : vector<1x8xf32>
    %cst_190 = arith.constant 1.000000e+00 : f32
    %319 = vector.broadcast %cst_190 : f32 to vector<1x8xf32>
    %320 = arith.divf %319, %318 : vector<1x8xf32>
    %c0_191 = arith.constant 0 : index
    %c0_192 = arith.constant 0 : index
    %c0_193 = arith.constant 0 : index
    %321 = vector.load %arg46[%c0_191, %c0_192, %c0_193] : memref<1x1x8xf32, #tpu.memory_space<vmem>>, vector<1x1x8xf32>
    %322 = vector.shape_cast %321 : vector<1x1x8xf32> to vector<1x8xf32>
    %323 = vector.shape_cast %320 : vector<1x8xf32> to vector<1x1x8xf32>
    tpu.vector_store %arg46[%c0_191, %c0_192, %c0_193], %323 {strides = array<i32>} : memref<1x1x8xf32, #tpu.memory_space<vmem>>, vector<1x1x8xf32>,
    return
  }
  func.func @transform_0(%arg0: i32) -> (i32, i32, i32) {
    %c0_i32 = arith.constant 0 : i32
    %c0_i32_0 = arith.constant 0 : i32
    %c0_i32_1 = arith.constant 0 : i32
    return %arg0, %c0_i32, %c0_i32_0 : i32, i32, i32
  }
  func.func @transform_1(%arg0: i32) -> (i32, i32) {
    %c0_i32 = arith.constant 0 : i32
    %c0_i32_0 = arith.constant 0 : i32
    %c0_i32_1 = arith.constant 0 : i32
    return %c0_i32, %c0_i32_0 : i32, i32
  }
  func.func @transform_2(%arg0: i32) -> (i32, i32) {
    %c0_i32 = arith.constant 0 : i32
    %c0_i32_0 = arith.constant 0 : i32
    %c0_i32_1 = arith.constant 0 : i32
    return %c0_i32, %c0_i32_0 : i32, i32
  }
  func.func @transform_3(%arg0: i32) -> (i32, i32) {
    %c0_i32 = arith.constant 0 : i32
    %c0_i32_0 = arith.constant 0 : i32
    %c0_i32_1 = arith.constant 0 : i32
    return %c0_i32, %c0_i32_0 : i32, i32
  }
  func.func @transform_4(%arg0: i32) -> (i32, i32) {
    %c0_i32 = arith.constant 0 : i32
    %c0_i32_0 = arith.constant 0 : i32
    %c0_i32_1 = arith.constant 0 : i32
    return %c0_i32, %c0_i32_0 : i32, i32
  }
  func.func @transform_5(%arg0: i32) -> (i32, i32) {
    %c0_i32 = arith.constant 0 : i32
    %c0_i32_0 = arith.constant 0 : i32
    %c0_i32_1 = arith.constant 0 : i32
    return %c0_i32, %c0_i32_0 : i32, i32
  }
  func.func @transform_6(%arg0: i32) -> (i32, i32) {
    %c0_i32 = arith.constant 0 : i32
    %c0_i32_0 = arith.constant 0 : i32
    %c0_i32_1 = arith.constant 0 : i32
    return %c0_i32, %c0_i32_0 : i32, i32
  }
  func.func @transform_7(%arg0: i32) -> (i32, i32) {
    %c0_i32 = arith.constant 0 : i32
    %c0_i32_0 = arith.constant 0 : i32
    %c0_i32_1 = arith.constant 0 : i32
    return %c0_i32, %c0_i32_0 : i32, i32
  }
  func.func @transform_8(%arg0: i32) -> (i32, i32) {
    %c0_i32 = arith.constant 0 : i32
    %c0_i32_0 = arith.constant 0 : i32
    %c0_i32_1 = arith.constant 0 : i32
    return %c0_i32, %c0_i32_0 : i32, i32
  }
  func.func @transform_9(%arg0: i32) -> (i32, i32) {
    %c0_i32 = arith.constant 0 : i32
    %c0_i32_0 = arith.constant 0 : i32
    %c0_i32_1 = arith.constant 0 : i32
    return %c0_i32, %c0_i32_0 : i32, i32
  }
  func.func @transform_10(%arg0: i32) -> (i32, i32) {
    %c0_i32 = arith.constant 0 : i32
    %c0_i32_0 = arith.constant 0 : i32
    %c0_i32_1 = arith.constant 0 : i32
    return %c0_i32, %c0_i32_0 : i32, i32
  }
  func.func @transform_11(%arg0: i32) -> (i32, i32) {
    %c0_i32 = arith.constant 0 : i32
    %c0_i32_0 = arith.constant 0 : i32
    %c0_i32_1 = arith.constant 0 : i32
    return %c0_i32, %c0_i32_0 : i32, i32
  }
  func.func @transform_12(%arg0: i32) -> (i32, i32) {
    %c0_i32 = arith.constant 0 : i32
    %c0_i32_0 = arith.constant 0 : i32
    %c0_i32_1 = arith.constant 0 : i32
    return %c0_i32, %c0_i32_0 : i32, i32
  }
  func.func @transform_13(%arg0: i32) -> (i32, i32) {
    %c0_i32 = arith.constant 0 : i32
    %c0_i32_0 = arith.constant 0 : i32
    %c0_i32_1 = arith.constant 0 : i32
    return %c0_i32, %c0_i32_0 : i32, i32
  }
  func.func @transform_14(%arg0: i32) -> (i32, i32) {
    %c0_i32 = arith.constant 0 : i32
    %c0_i32_0 = arith.constant 0 : i32
    %c0_i32_1 = arith.constant 0 : i32
    return %c0_i32, %c0_i32_0 : i32, i32
  }
  func.func @transform_15(%arg0: i32) -> (i32, i32) {
    %c0_i32 = arith.constant 0 : i32
    %c0_i32_0 = arith.constant 0 : i32
    %c0_i32_1 = arith.constant 0 : i32
    return %c0_i32, %c0_i32_0 : i32, i32
  }
  func.func @transform_16(%arg0: i32) -> (i32, i32) {
    %c0_i32 = arith.constant 0 : i32
    %c0_i32_0 = arith.constant 0 : i32
    %c0_i32_1 = arith.constant 0 : i32
    return %c0_i32, %c0_i32_0 : i32, i32
  }
  func.func @transform_17(%arg0: i32) -> (i32, i32) {
    %c0_i32 = arith.constant 0 : i32
    %c0_i32_0 = arith.constant 0 : i32
    %c0_i32_1 = arith.constant 0 : i32
    return %c0_i32, %c0_i32_0 : i32, i32
  }
  func.func @transform_18(%arg0: i32) -> (i32, i32) {
    %c0_i32 = arith.constant 0 : i32
    %c0_i32_0 = arith.constant 0 : i32
    %c0_i32_1 = arith.constant 0 : i32
    return %c0_i32, %c0_i32_0 : i32, i32
  }
  func.func @transform_19(%arg0: i32) -> (i32, i32) {
    %c0_i32 = arith.constant 0 : i32
    %c0_i32_0 = arith.constant 0 : i32
    %c0_i32_1 = arith.constant 0 : i32
    return %c0_i32, %c0_i32_0 : i32, i32
  }
  func.func @transform_20(%arg0: i32) -> (i32, i32) {
    %c0_i32 = arith.constant 0 : i32
    %c0_i32_0 = arith.constant 0 : i32
    %c0_i32_1 = arith.constant 0 : i32
    return %c0_i32, %c0_i32_0 : i32, i32
  }
  func.func @transform_21(%arg0: i32) -> (i32, i32) {
    %c0_i32 = arith.constant 0 : i32
    %c0_i32_0 = arith.constant 0 : i32
    %c0_i32_1 = arith.constant 0 : i32
    return %c0_i32, %c0_i32_0 : i32, i32
  }
  func.func @transform_22(%arg0: i32) -> (i32, i32) {
    %c0_i32 = arith.constant 0 : i32
    %c0_i32_0 = arith.constant 0 : i32
    %c0_i32_1 = arith.constant 0 : i32
    return %c0_i32, %c0_i32_0 : i32, i32
  }
  func.func @transform_23(%arg0: i32) -> (i32, i32) {
    %c0_i32 = arith.constant 0 : i32
    %c0_i32_0 = arith.constant 0 : i32
    %c0_i32_1 = arith.constant 0 : i32
    return %c0_i32, %c0_i32_0 : i32, i32
  }
  func.func @transform_24(%arg0: i32) -> (i32, i32) {
    %c0_i32 = arith.constant 0 : i32
    %c0_i32_0 = arith.constant 0 : i32
    %c0_i32_1 = arith.constant 0 : i32
    return %c0_i32, %c0_i32_0 : i32, i32
  }
  func.func @transform_25(%arg0: i32) -> (i32, i32) {
    %c0_i32 = arith.constant 0 : i32
    %c0_i32_0 = arith.constant 0 : i32
    %c0_i32_1 = arith.constant 0 : i32
    return %c0_i32, %c0_i32_0 : i32, i32
  }
  func.func @transform_26(%arg0: i32) -> (i32, i32) {
    %c0_i32 = arith.constant 0 : i32
    %c0_i32_0 = arith.constant 0 : i32
    %c0_i32_1 = arith.constant 0 : i32
    return %c0_i32, %c0_i32_0 : i32, i32
  }
  func.func @transform_27(%arg0: i32) -> (i32, i32) {
    %c0_i32 = arith.constant 0 : i32
    %c0_i32_0 = arith.constant 0 : i32
    %c0_i32_1 = arith.constant 0 : i32
    return %c0_i32, %c0_i32_0 : i32, i32
  }
  func.func @transform_28(%arg0: i32) -> (i32, i32) {
    %c0_i32 = arith.constant 0 : i32
    %c0_i32_0 = arith.constant 0 : i32
    %c0_i32_1 = arith.constant 0 : i32
    return %c0_i32, %c0_i32_0 : i32, i32
  }
  func.func @transform_29(%arg0: i32) -> (i32, i32) {
    %c0_i32 = arith.constant 0 : i32
    %c0_i32_0 = arith.constant 0 : i32
    %c0_i32_1 = arith.constant 0 : i32
    return %c0_i32, %c0_i32_0 : i32, i32
  }
  func.func @transform_30(%arg0: i32) -> (i32, i32) {
    %c0_i32 = arith.constant 0 : i32
    %c0_i32_0 = arith.constant 0 : i32
    %c0_i32_1 = arith.constant 0 : i32
    return %c0_i32, %c0_i32_0 : i32, i32
  }
  func.func @transform_31(%arg0: i32) -> (i32, i32) {
    %c0_i32 = arith.constant 0 : i32
    %c0_i32_0 = arith.constant 0 : i32
    %c0_i32_1 = arith.constant 0 : i32
    return %c0_i32, %c0_i32_0 : i32, i32
  }
  func.func @transform_32(%arg0: i32) -> (i32, i32) {
    %c0_i32 = arith.constant 0 : i32
    %c0_i32_0 = arith.constant 0 : i32
    %c0_i32_1 = arith.constant 0 : i32
    return %c0_i32, %c0_i32_0 : i32, i32
  }
  func.func @transform_33(%arg0: i32) -> (i32, i32) {
    %c0_i32 = arith.constant 0 : i32
    %c0_i32_0 = arith.constant 0 : i32
    %c0_i32_1 = arith.constant 0 : i32
    return %c0_i32, %c0_i32_0 : i32, i32
  }
  func.func @transform_34(%arg0: i32) -> (i32, i32) {
    %c0_i32 = arith.constant 0 : i32
    %c0_i32_0 = arith.constant 0 : i32
    %c0_i32_1 = arith.constant 0 : i32
    return %c0_i32, %c0_i32_0 : i32, i32
  }
  func.func @transform_35(%arg0: i32) -> (i32, i32) {
    %c0_i32 = arith.constant 0 : i32
    %c0_i32_0 = arith.constant 0 : i32
    %c0_i32_1 = arith.constant 0 : i32
    return %c0_i32, %c0_i32_0 : i32, i32
  }
  func.func @transform_36(%arg0: i32) -> (i32, i32) {
    %c0_i32 = arith.constant 0 : i32
    %c0_i32_0 = arith.constant 0 : i32
    %c0_i32_1 = arith.constant 0 : i32
    return %c0_i32, %c0_i32_0 : i32, i32
  }
  func.func @transform_37(%arg0: i32) -> (i32, i32) {
    %c0_i32 = arith.constant 0 : i32
    %c0_i32_0 = arith.constant 0 : i32
    %c0_i32_1 = arith.constant 0 : i32
    return %c0_i32, %c0_i32_0 : i32, i32
  }
  func.func @transform_38(%arg0: i32) -> (i32, i32) {
    %c0_i32 = arith.constant 0 : i32
    %c0_i32_0 = arith.constant 0 : i32
    %c0_i32_1 = arith.constant 0 : i32
    return %c0_i32, %c0_i32_0 : i32, i32
  }
  func.func @transform_39(%arg0: i32) -> (i32, i32) {
    %c0_i32 = arith.constant 0 : i32
    %c0_i32_0 = arith.constant 0 : i32
    %c0_i32_1 = arith.constant 0 : i32
    return %c0_i32, %c0_i32_0 : i32, i32
  }
  func.func @transform_40(%arg0: i32) -> (i32, i32) {
    %c0_i32 = arith.constant 0 : i32
    %c0_i32_0 = arith.constant 0 : i32
    %c0_i32_1 = arith.constant 0 : i32
    return %c0_i32, %c0_i32_0 : i32, i32
  }
  func.func @transform_41(%arg0: i32) -> (i32, i32) {
    %c0_i32 = arith.constant 0 : i32
    %c0_i32_0 = arith.constant 0 : i32
    %c0_i32_1 = arith.constant 0 : i32
    return %c0_i32, %c0_i32_0 : i32, i32
  }
  func.func @transform_42(%arg0: i32) -> (i32, i32) {
    %c0_i32 = arith.constant 0 : i32
    %c0_i32_0 = arith.constant 0 : i32
    %c0_i32_1 = arith.constant 0 : i32
    return %c0_i32, %c0_i32_0 : i32, i32
  }
  func.func @transform_43(%arg0: i32) -> (i32, i32) {
    %c0_i32 = arith.constant 0 : i32
    %c0_i32_0 = arith.constant 0 : i32
    %c0_i32_1 = arith.constant 0 : i32
    return %c0_i32, %c0_i32_0 : i32, i32
  }
  func.func @transform_44(%arg0: i32) -> (i32, i32) {
    %c0_i32 = arith.constant 0 : i32
    %c0_i32_0 = arith.constant 0 : i32
    %c0_i32_1 = arith.constant 0 : i32
    return %c0_i32, %c0_i32_0 : i32, i32
  }
  func.func @transform_45(%arg0: i32) -> (i32, i32, i32) {
    %c0_i32 = arith.constant 0 : i32
    %c0_i32_0 = arith.constant 0 : i32
    %c0_i32_1 = arith.constant 0 : i32
    return %arg0, %c0_i32, %c0_i32_0 : i32, i32, i32
  }
}

</mosaic_0001>

<bundles_post_ra>
// kernel: squeezenet_forward.1
= control target key start
LH: loop header
LB: loop body
LE: loop exit
PB: predicated region body
PF: predicated region fallthrough
CT: control target
= control target key end

     0   :  { %s12702_s6 = smov 1   ;;  %s12703_s10 = smov 2   ;;  %s15808_s0 = inlined_call_operand.smem [shape: u32[46], index: -1, kind: input, shape index: {}] }
   0x1   :  { %s12764_s5 = sld [smem:[%s15808_s0]]   ;;  %s12704_s14 = smov 3  }
   0x2   :  { %s12769_s9 = sld [smem:[%s15808_s0 + %s12702_s6]]   ;;  %s12705_s18 = smov 4  }
   0x3   :  { %s12774_s13 = sld [smem:[%s15808_s0 + %s12703_s10]]   ;;  %s12706_s22 = smov 5  }
   0x4   :  { %s12779_s17 = sld [smem:[%s15808_s0 + %s12704_s14]]   ;;  %s12707_s26 = smov 6  }
   0x5   :  { %s12784_s21 = sld [smem:[%s15808_s0 + %s12705_s18]]   ;;  %s12708_s30 = smov 7  }
   0x6   :  { %s12789_s25 = sld [smem:[%s15808_s0 + %s12706_s22]]   ;;  %s12709_s4 = smov 8  }
   0x7   :  { %15843 = sst [smem:[#allocation5_spill]] %s12764_s5  ;;  %s12710_s10 = smov 9  }
   0x8   :  { %15844 = sst [smem:[#allocation6_spill]] %s12769_s9  ;;  %s12711_s15 = smov 10  }
   0x9   :  { %15845 = sst [smem:[#allocation7_spill]] %s12774_s13  ;;  %s12712_s20 = smov 11  }
   0xa   :  { %s12794_s29 = sld [smem:[%s15808_s0 + %s12707_s26]]   ;;  %s12713_s26 = smov 12  }
   0xb   :  { %s12799_s3 = sld [smem:[%s15808_s0 + %s12708_s30]]   ;;  %s12714_s1 = smov 13  }
   0xc   :  { %s12804_s8 = sld [smem:[%s15808_s0 + %s12709_s4]]   ;;  %s12715_s7 = smov 14  }
   0xd   :  { %s12809_s14 = sld [smem:[%s15808_s0 + %s12710_s10]]   ;;  %s12717_s22 = smov 16  }
   0xe   :  { %s12814_s19 = sld [smem:[%s15808_s0 + %s12711_s15]]   ;;  %s12716_s15 = smov 15  }
   0xf   :  { %s12819_s24 = sld [smem:[%s15808_s0 + %s12712_s20]]   ;;  %s12718_s28 = smov 17  }
  0x10   :  { %s12824_s30 = sld [smem:[%s15808_s0 + %s12713_s26]]  }
  0x11   :  { %15846 = sst [smem:[#allocation8_spill]] %s12799_s3 }
  0x12   :  { %15847 = sst [smem:[#allocation9_spill]] %s12804_s8 }
  0x13   :  { %15848 = sst [smem:[#allocation10_spill]] %s12809_s14 }
  0x14   :  { %s12829_s6 = sld [smem:[%s15808_s0 + %s12714_s1]]  }
  0x15   :  { %s12834_s12 = sld [smem:[%s15808_s0 + %s12715_s7]]   ;;  %s12719_s7 = smov 18  }
  0x16   :  { %15849 = sst [smem:[#allocation11_spill]] %s12824_s30 }
  0x17   :  { %s12839_s20 = sld [smem:[%s15808_s0 + %s12716_s15]]   ;;  %s12720_s15 = smov 19  }
  0x18   :  { %s12844_s27 = sld [smem:[%s15808_s0 + %s12717_s22]]   ;;  %s12721_s22 = smov 20  }
  0x19   :  { %s12849_s4 = sld [smem:[%s15808_s0 + %s12718_s28]]   ;;  %s12722_s28 = smov 21  }
  0x1a   :  { %15850 = sst [smem:[#allocation12_spill]] %s12829_s6 }
  0x1b   :  { %15851 = sst [smem:[#allocation13_spill]] %s12834_s12 }
  0x1c   :  { %s12854_s12 = sld [smem:[%s15808_s0 + %s12719_s7]]   ;;  %s12723_s7 = smov 22  }
  0x1d   :  { %s12859_s30 = sld [smem:[%s15808_s0 + %s12720_s15]]   ;;  %s12724_s15 = smov 23  }
  0x1e   :  { %15852 = sst [smem:[#allocation14_spill]] %s12844_s27 }
  0x1f   :  { %15853 = sst [smem:[#allocation15_spill]] %s12849_s4 }
  0x20   :  { %s12864_s27 = sld [smem:[%s15808_s0 + %s12721_s22]]   ;;  %s12725_s22 = smov 24  }
  0x21   :  { %s12869_s4 = sld [smem:[%s15808_s0 + %s12722_s28]]   ;;  %s12726_s28 = smov 25  }
  0x22   :  { %15854 = sst [smem:[#allocation16_spill]] %s12854_s12 }
  0x23   :  { %15855 = sst [smem:[#allocation17_spill]] %s12859_s30 }
  0x24   :  { %s12874_s12 = sld [smem:[%s15808_s0 + %s12723_s7]]   ;;  %s12727_s7 = smov 26  }
  0x25   :  { %s12879_s30 = sld [smem:[%s15808_s0 + %s12724_s15]]   ;;  %s12728_s15 = smov 27  }
  0x26   :  { %15856 = sst [smem:[#allocation18_spill]] %s12864_s27 }
  0x27   :  { %15857 = sst [smem:[#allocation19_spill]] %s12869_s4 }
  0x28   :  { %s12884_s27 = sld [smem:[%s15808_s0 + %s12725_s22]]   ;;  %s12729_s22 = smov 28  }
  0x29   :  { %s12889_s4 = sld [smem:[%s15808_s0 + %s12726_s28]]   ;;  %s12730_s28 = smov 29  }
  0x2a   :  { %15858 = sst [smem:[#allocation20_spill]] %s12874_s12 }
  0x2b   :  { %15859 = sst [smem:[#allocation21_spill]] %s12879_s30 }
  0x2c   :  { %s12894_s12 = sld [smem:[%s15808_s0 + %s12727_s7]]   ;;  %s12731_s7 = smov 30  }
  0x2d   :  { %s12899_s30 = sld [smem:[%s15808_s0 + %s12728_s15]]   ;;  %s12732_s15 = smov 31  }
  0x2e   :  { %15860 = sst [smem:[#allocation22_spill]] %s12884_s27 }
  0x2f   :  { %15861 = sst [smem:[#allocation23_spill]] %s12889_s4 }
  0x30   :  { %s12904_s27 = sld [smem:[%s15808_s0 + %s12729_s22]]   ;;  %s12733_s22 = smov 32  }
  0x31   :  { %s12909_s4 = sld [smem:[%s15808_s0 + %s12730_s28]]   ;;  %s12734_s28 = smov 33  }
  0x32   :  { %15862 = sst [smem:[#allocation24_spill]] %s12894_s12 }
  0x33   :  { %15863 = sst [smem:[#allocation25_spill]] %s12899_s30 }
  0x34   :  { %s12914_s12 = sld [smem:[%s15808_s0 + %s12731_s7]]   ;;  %s12735_s7 = smov 34  }
  0x35   :  { %s12919_s30 = sld [smem:[%s15808_s0 + %s12732_s15]]   ;;  %s12736_s15 = smov 35  }
  0x36   :  { %15864 = sst [smem:[#allocation26_spill]] %s12904_s27 }
  0x37   :  { %15865 = sst [smem:[#allocation27_spill]] %s12909_s4 }
  0x38   :  { %s12924_s27 = sld [smem:[%s15808_s0 + %s12733_s22]]   ;;  %s12737_s22 = smov 36  }
  0x39   :  { %s12929_s4 = sld [smem:[%s15808_s0 + %s12734_s28]]   ;;  %s12738_s28 = smov 37  }
  0x3a   :  { %15866 = sst [smem:[#allocation28_spill]] %s12914_s12 }
  0x3b   :  { %15867 = sst [smem:[#allocation29_spill]] %s12919_s30 }
  0x3c   :  { %s12934_s12 = sld [smem:[%s15808_s0 + %s12735_s7]]   ;;  %s12739_s7 = smov 38  }
  0x3d   :  { %s12939_s30 = sld [smem:[%s15808_s0 + %s12736_s15]]   ;;  %s12740_s15 = smov 39  }
  0x3e   :  { %15868 = sst [smem:[#allocation30_spill]] %s12924_s27 }
  0x3f   :  { %15869 = sst [smem:[#allocation31_spill]] %s12929_s4 }
  0x40   :  { %s12944_s27 = sld [smem:[%s15808_s0 + %s12737_s22]]   ;;  %s12741_s22 = smov 40  }
  0x41   :  { %s12949_s4 = sld [smem:[%s15808_s0 + %s12738_s28]]   ;;  %s12742_s28 = smov 41  }
  0x42   :  { %15870 = sst [smem:[#allocation32_spill]] %s12934_s12 }
  0x43   :  { %15871 = sst [smem:[#allocation33_spill]] %s12939_s30 }
  0x44   :  { %s12954_s12 = sld [smem:[%s15808_s0 + %s12739_s7]]   ;;  %s12743_s7 = smov 42  }
  0x45   :  { %s12959_s30 = sld [smem:[%s15808_s0 + %s12740_s15]]   ;;  %s12744_s15 = smov 43  }
  0x46   :  { %15872 = sst [smem:[#allocation34_spill]] %s12944_s27 }
  0x47   :  { %15873 = sst [smem:[#allocation35_spill]] %s12949_s4 }
  0x48   :  { %s12964_s27 = sld [smem:[%s15808_s0 + %s12741_s22]]   ;;  %s12745_s22 = smov 44  }
  0x49   :  { %s12969_s4 = sld [smem:[%s15808_s0 + %s12742_s28]]   ;;  %s12746_s28 = smov 45  }
  0x4a   :  { %15874 = sst [smem:[#allocation36_spill]] %s12954_s12 }
  0x4b   :  { %15875 = sst [smem:[#allocation37_spill]] %s12959_s30 }
  0x4c   :  { %s12974_s12 = sld [smem:[%s15808_s0 + %s12743_s7]]  }
  0x4d   :  { %s12979_s30 = sld [smem:[%s15808_s0 + %s12744_s15]]  }
  0x4e   :  { %15876 = sst [smem:[#allocation38_spill]] %s12964_s27 }
  0x4f   :  { %15877 = sst [smem:[#allocation39_spill]] %s12969_s4 }
  0x50   :  { %s12984_s27 = sld [smem:[%s15808_s0 + %s12745_s22]]  }
  0x51   :  { %s12989_s4 = sld [smem:[%s15808_s0 + %s12746_s28]]  }
  0x52   :  { %15878 = sst [smem:[#allocation40_spill]] %s12974_s12 }
  0x53   :  { %96 = vsyncpa [#allocation3], 0 }
  0x54   :  { %98 = vsyncpa [#allocation3 + $0x1], 0  ;;  %s12991_s7 = smov 0   ;;  %s12993_s10 = smov 0  }
  0x55   :  { %s12995_s11 = smov 0   ;;  %s12997_s15 = smov 0  }
  0x56 LB: > { %s15879_s14 = sld [smem:[#allocation10_spill]]  ;;  %s15880_s6 = sld [smem:[#allocation12_spill]]  ;;  %s12696_s11 = sphi %s12995_s11, %s15923_s11   ;;  %s12692_s10 = sphi %s12993_s10, %s15922_s10   ;;  %s12688_s7 = sphi %s12991_s7, %s15921_s7   ;;  %s12700_s15 = sphi %s12997_s15, %s15924_s15  }
  0x57   : > { %s15881_s3 = sld [smem:[#allocation8_spill]]  ;;  %s13012_s0 = sadd.s32 4294967295, %s12700_s15  }
  0x58   : > { %s10193_s16 = sadd.s32 4294967294, %s12700_s15   ;;  %s13016_s18 = sadd.s32 1, %s12700_s15  }
  0x59   : > { %s1061_s22 = sadd.s32 1, %s12696_s11  ;;  %s1058_s23 = ssub.s32 %s12700_s15, %s13016_s18 }
  0x5a   : > { %p1071_p0 = scmp.ne.s32.totalorder %s12696_s11, %s12692_s10  ;;  %p1059_p1 = scmp.eq.s32.totalorder %s1058_s23, 0 }
  0x5b   : > { %p1072_p2 = scmp.eq.s32.totalorder %s13012_s0, 1  ;;  %p1077_p3 = scmp.ne.s32.totalorder %s12692_s10, %s12688_s7 }
  0x5c   : > { %p1078_p4 = scmp.eq.s32.totalorder %s10193_s16, 1  ;;  %p10196_p7 = scmp.ge.s32.totalorder %s12700_s15, 1 }
  0x5d   : > { %s13027_s26 = scalar_select %p1059_p1, %s12696_s11, %s1061_s22  }
  0x5e   : > { %p13029_p5 = por %p1072_p2, %p1071_p0  ;;  %p13033_p6 = por %p1078_p4, %p1077_p3 }
  0x5f   : > { %p1236_p8 = scmp.lt.s32.totalorder %s12700_s15, 3 }
  0x61   : > { %p1237_p9 = pnand %p10196_p7, %p1236_p8 }
  0x62   : > { %s15884_s9 = sld [smem:[#allocation6_spill]] (!%p1237_p9)  ;;  %s15885_s5 = sld [smem:[#allocation5_spill]] (!%p1237_p9)  ;;  %v1365_v0 = vlaneseq (!%p1237_p9)  ;;  %vm1779_vm0 = vcmask (!%p1237_p9), 1042432   ;;  %vm1704_vm5 = vcmask (!%p1237_p9), 15360   ;;  %vm1721_vm6 = vcmask (!%p1237_p9), 31744  }
  0x63   : > { %1240 = sbr.rel (%p1237_p9) target bundleno = 4924 (0x133c), region = 200  ;;  %p1343_p10 = scmp.lt.s32.totalorder (!%p1237_p9), %s13012_s0, 1  ;;  %vm1754_vm7 = vcmask (!%p1237_p9), 48128   ;;  %vm1943_vm8 = vcmask (!%p1237_p9), 523264   ;;  %vm2104_vm9 = vcmask (!%p1237_p9), 130048   ;;  %vm2482_vm10 = vcmask (!%p1237_p9), 261120  }
  0x64   : > { %v13041_v1 = vshrl.u32 (!%p1237_p9), %v1365_v0, 7  ;;  %s12747_s23 = smov (!%p1237_p9), 2   ;;  %s15886_s13 = sld [smem:[#allocation7_spill]] (!%p1237_p9)  ;;  %vm2538_vm11 = vcmask (!%p1237_p9), 392192   ;;  %vm4477_vm12 = vcmask (!%p1237_p9), 785408   ;;  %vm10078_vm13 = vcmask (!%p1237_p9), 57344  }
  0x65   : > { %s15887_s8 = sld [smem:[#allocation9_spill]] (!%p1237_p9)  ;;  %s15920_s12 = sld [smem:[#allocation40_spill]] (!%p1237_p9) }
  0x66   : > { %vm1511_vm1 = vcmp.lt.s32.totalorder (!%p1237_p9), %v13041_v1, 7  ;;  %v13070_v12 = vadd.s32 (!%p1237_p9), 120, %v13041_v1  ;;  %vm1414_vm2 = vcmp.lt.s32.totalorder (!%p1237_p9), %v13041_v1, 1  ;;  %vm1382_vm4 = vcmp.eq.s32.totalorder (!%p1237_p9), %v13041_v1, 0 }
  0x68   : > { %v1746_v2 = vld [vmem:[%s15884_s9] sm:$0x7] (!%p1237_p9)  ;;  %vm1494_vm3 = vcmp.eq.s32.totalorder (!%p1237_p9), %v13070_v12, 127 }
  0x69   : > { %11553 = vmatprep.subr.msk.bf16.mxu0 (!%p1237_p9), %vm1779_vm0, %v1746_v2  ;;  %v1781_v6 = vsel (!%p1237_p9), %vm1779_vm0, %v1746_v2, 0 }
  0x6a   : > { %s1344_s2 = scalar_select %p1343_p10, %s13012_s0, 1  ;;  %10978 = vmatpush3.bf16.msra.mxu0 %v1781_v6 }
  0x6c   : > { %s10733_s16 = sshll.u32 %s1344_s2, 7  ;;  %s12748_s2 = smov 4  }
  0x6d   : > { %s13045_s22 = scalar_lea.vmem %s15885_s5, %s10733_s16  ;;  %s12749_s16 = smov 16  }
  0x6e   : > { %v13048_v3 = vld [vmem:[%s13045_s22] sm:$0xff]  ;;  %v13051_v4 = vld [vmem:[%s13045_s22 + $0x8] sm:$0xff]  ;;  %v13054_v5 = vld [vmem:[%s13045_s22 + $0x10] sm:$0xff]  ;;  %s15896_s5 = sld [smem:[#allocation16_spill]] }
  0x6f   : > { %v1496_v7 = vrot.slane %v13051_v4, 1  ;;  %v11646_v8 = vpack.i.bf16 %v13051_v4, %v13048_v3  ;;  %v13061_v9 = vld [vmem:[%s13045_s22 + $0x18] sm:$0xff]  ;;  %v13064_v10 = vld [vmem:[%s13045_s22 + $0x20] sm:$0xff]  ;;  %v13067_v11 = vld [vmem:[%s13045_s22 + $0x28] sm:$0xff]  ;;  %v1399_v13 = vrot.slane %v13051_v4, 7  ;;  %v1398_v14 = vrot.slane %v13048_v3, 7 }
  0x70   : > { %v1495_v15 = vrot.slane %v13048_v3, 1  ;;  %v1497_v16 = vrot.slane %v13054_v5, 1  ;;  %v1400_v17 = vrot.slane %v13054_v5, 7  ;;  %v1498_v18 = vrot.slane %v13061_v9, 1  ;;  %v13083_v21 = vld [vmem:[%s13045_s22 + $0x38] sm:$0xff]  ;;  %v13094_v26 = vld [vmem:[%s13045_s22 + $0x30] sm:$0xff] }
  0x71   : > { %11647 = vrot.lane.b32.xlu0 %v11646_v8, %s12747_s23  ;;  %v11651_v19 = vpack.i.bf16 %v13061_v9, %v13054_v5  ;;  %v1499_v20 = vrot.slane %v13064_v10, 1  ;;  %v1401_v24 = vrot.slane %v13061_v9, 7  ;;  %v1500_v25 = vrot.slane %v13067_v11, 1  ;;  %v13102_v31 = vld [vmem:[%s13045_s22 + $0x40] sm:$0xff]  ;;  %v13105_v32 = vld [vmem:[%s13045_s22 + $0x48] sm:$0xff]  ;;  %v13109_v34 = vld [vmem:[%s13045_s22 + $0x50] sm:$0xff] }
  0x72   : > { %v1525_v22 = vsel %vm1511_vm1, %v1496_v7, %v1497_v16  ;;  %v1526_v23 = vsel %vm1511_vm1, %v1495_v15, %v1496_v7  ;;  %v1402_v28 = vrot.slane %v13064_v10, 7  ;;  %v1524_v30 = vsel %vm1511_vm1, %v1497_v16, %v1498_v18  ;;  %v1360_v39 = vld [vmem:[%s13045_s22 + $0x58] sm:$0xff]  ;;  %v13125_v44 = vld [vmem:[%s13045_s22 + $0x60] sm:$0xff]  ;;  %v1362_v51 = vld [vmem:[%s13045_s22 + $0x68] sm:$0xff] }
  0x73   : > { %v11661_v27 = vpack.i.bf16 %v1525_v22, %v1526_v23  ;;  %v1523_v29 = vsel %vm1511_vm1, %v1498_v18, %v1499_v20  ;;  %v1502_v33 = vrot.slane %v13083_v21, 1  ;;  %v1403_v36 = vrot.slane %v13067_v11, 7  ;;  %v13138_v52 = vld [vmem:[%s13045_s22 + $0x78] sm:$0xff]  ;;  %v1363_v62 = vld [vmem:[%s13045_s22 + $0x70] sm:$0xff]  ;;  %s15824_s22 = smov 32  }
  0x74   : > { %v11666_v35 = vpack.i.bf16 %v1523_v29, %v1524_v30  ;;  %v11656_v37 = vpack.i.bf16 %v13067_v11, %v13064_v10  ;;  %v1501_v38 = vrot.slane %v13094_v26, 1  ;;  %v1405_v40 = vrot.slane %v13083_v21, 7 }
  0x75   : > { %11662 = vrot.lane.b32.xlu1 %v11661_v27, %s12748_s2  ;;  %11652 = vrot.lane.b32.xlu0 %v11651_v19, %s12747_s23  ;;  %v1404_v41 = vrot.slane %v13094_v26, 7  ;;  %v1522_v42 = vsel %vm1511_vm1, %v1499_v20, %v1500_v25  ;;  %v1503_v43 = vrot.slane %v13102_v31, 1  ;;  %v1406_v46 = vrot.slane %v13102_v31, 7 }
  0x76   : > { %v1521_v45 = vsel %vm1511_vm1, %v1500_v25, %v1501_v38  ;;  %v1407_v47 = vrot.slane %v13105_v32, 7  ;;  %v11671_v48 = vpack.i.bf16 %v13083_v21, %v13094_v26  ;;  %v1520_v49 = vsel %vm1511_vm1, %v1501_v38, %v1502_v33 }
  0x77   : > { %v1504_v50 = vrot.slane %v13105_v32, 1  ;;  %v11676_v53 = vpack.i.bf16 %v1521_v45, %v1522_v42  ;;  %v1519_v54 = vsel %vm1511_vm1, %v1502_v33, %v1503_v43  ;;  %v1409_v55 = vrot.slane %v1360_v39, 7 }
  0x78   : > { %v1505_v56 = vrot.slane %v13109_v34, 1  ;;  %v1506_v57 = vrot.slane %v1360_v39, 1  ;;  %v1408_v58 = vrot.slane %v13109_v34, 7  ;;  %v1410_v59 = vrot.slane %v13125_v44, 7 }
  0x79   : > { %11667 = vrot.lane.b32.xlu1 %v11666_v35, %s12748_s2  ;;  %11657 = vrot.lane.b32.xlu0 %v11656_v37, %s12747_s23  ;;  %v1507_v60 = vrot.slane %v13125_v44, 1  ;;  %v1411_v61 = vrot.slane %v1362_v51, 7  ;;  %v11681_v63 = vpack.i.bf16 %v1519_v54, %v1520_v49  ;;  %v11686_v0 = vpack.i.bf16 %v13105_v32, %v13102_v31 }
  0x7a   : > { %v1413_v2 = vrot.slane %v13138_v52, 7  ;;  %v1517_v6 = vsel %vm1511_vm1, %v1504_v50, %v1505_v56  ;;  %v1518_v7 = vsel %vm1511_vm1, %v1503_v43, %v1504_v50  ;;  %v1508_v8 = vrot.slane %v1362_v51, 1 }
  0x7b   : > { %v1510_v9 = vrot.slane %v13138_v52, 1  ;;  %v1412_v10 = vrot.slane %v1363_v62, 7  ;;  %v13163_v11 = vsel %vm1414_vm2, %v1400_v17, %v1401_v24  ;;  %v13171_v16 = vsel %vm1414_vm2, %v1399_v13, %v1400_v17 }
  0x7c   : > { %v13175_v18 = vsel %vm1414_vm2, %v1402_v28, %v1403_v36  ;;  %v11691_v19 = vpack.i.bf16 %v1360_v39, %v13109_v34  ;;  %v1516_v20 = vsel %vm1511_vm1, %v1505_v56, %v1506_v57  ;;  %v13182_v21 = vsel %vm1414_vm2, %v1401_v24, %v1402_v28 }
  0x7d   : > { %11672 = vrot.lane.b32.xlu1 %v11671_v48, %s12747_s23  ;;  %11677 = vrot.lane.b32.xlu0 %v11676_v53, %s12748_s2  ;;  %v1429_v5 = vsel %vm1414_vm2, %v1398_v14, %v1399_v13  ;;  %v11696_v17 = vpack.i.bf16 %v1517_v6, %v1518_v7  ;;  %v1515_v22 = vsel %vm1511_vm1, %v1506_v57, %v1507_v60  ;;  %v1509_v4 = vrot.slane %v1363_v62, 1 }
  0x7e   : > { %v1430_v23 = vsel %vm1414_vm2, %v1413_v2, %v1398_v14  ;;  %v13198_v24 = vsel %vm1414_vm2, %v1404_v41, %v1405_v40  ;;  %v13204_v13 = vsel %vm1414_vm2, %v1403_v36, %v1404_v41  ;;  %v13208_v25 = vsel %vm1414_vm2, %v1406_v46, %v1407_v47  ;;  %v12207_v41 = vld [vmem:[%s12779_s17 + $0x8] sm:$0xff]  }
  0x7f   : > { %v13212_v14 = vsel %vm1414_vm2, %v1405_v40, %v1406_v46  ;;  %v13216_v26 = vsel %vm1414_vm2, %v1408_v58, %v1409_v55  ;;  %v13220_v27 = vsel %vm1414_vm2, %v1407_v47, %v1408_v58  ;;  %v13224_v28 = vsel %vm1414_vm2, %v1410_v59, %v1411_v61  ;;  %v12206_v40 = vld [vmem:[%s12779_s17] sm:$0xff]  }
  0x80   : > { %v13228_v29 = vsel %vm1414_vm2, %v1409_v55, %v1410_v59  ;;  %v13232_v30 = vsel %vm1414_vm2, %v1412_v10, %v1413_v2  ;;  %v13236_v31 = vsel %vm1414_vm2, %v1411_v61, %v1412_v10  ;;  %v11701_v32 = vpack.i.bf16 %v1515_v22, %v1516_v20  ;;  %10995 = vmatprep.subr.bf16.mxu1 %v12206_v40 }
  0x81   : > { %11682 = vrot.lane.b32.xlu1 %v11681_v63, %s12748_s2  ;;  %11687 = vrot.lane.b32.xlu0 %v11686_v0, %s12747_s23  ;;  %v11706_v33 = vpack.i.bf16 %v1362_v51, %v13125_v44  ;;  %v1513_v34 = vsel %vm1511_vm1, %v1508_v8, %v1509_v4  ;;  %v1514_v35 = vsel %vm1511_vm1, %v1507_v60, %v1508_v8  ;;  %v1463_v45 = vsel %vm1382_vm4, 0.0, %v1430_v23 }
  0x82   : > { %v1527_v36 = vsel %vm1511_vm1, %v1510_v9, %v1495_v15  ;;  %v11711_v37 = vpack.i.bf16 %v13138_v52, %v1363_v62  ;;  %v11716_v38 = vpack.i.bf16 %v1513_v34, %v1514_v35  ;;  %v1512_v42 = vsel %vm1511_vm1, %v1509_v4, %v1510_v9  ;;  %10996 = vmatpush3.bf16.msra.mxu1 %v12206_v40 }
  0x83   : > { %v1575_v39 = vsel %vm1494_vm3, 0.0, %v1527_v36  ;;  %10997 = vmatprep.subr.bf16.mxu1 %v12207_v41 }
  0x84   : > { %v11721_v3 = vpack.i.bf16 %v1575_v39, %v1512_v42 }
  0x85   : > { %11692 = vrot.lane.b32.xlu1 %v11691_v19, %s12747_s23  ;;  %11697 = vrot.lane.b32.xlu0 %v11696_v17, %s12748_s2 }
  0x86   : > { %10998 = vmatpush3.bf16.msra.mxu1 %v12207_v41 }
  0x89   : > { %11702 = vrot.lane.b32.xlu1 %v11701_v32, %s12748_s2  ;;  %11707 = vrot.lane.b32.xlu0 %v11706_v33, %s12747_s23 }
  0x8d   : > { %11712 = vrot.lane.b32.xlu1 %v11711_v37, %s12747_s23  ;;  %11717 = vrot.lane.b32.xlu0 %v11716_v38, %s12748_s2  ;;  %s15888_s23 = sld [smem:[#allocation11_spill]] }
  0x91   : > { %11722 = vrot.lane.b32.xlu1 %v11721_v3, %s12748_s2  ;;  %s15889_s2 = sld [smem:[#allocation13_spill]] }
  0xe3   : > { %v11648_v15 = vpop.permute.xlu0 %11647 }
  0xe4   : > { %v11650_v43 = vunpack.i.h.bf16 %v11648_v15  ;;  %v11649_v44 = vunpack.i.l.bf16 %v11648_v15 }
  0xe6   : > { %v1705_v48 = vsel %vm1704_vm5, %v1463_v45, %v11649_v44  ;;  %v1706_v49 = vsel %vm1704_vm5, %v1429_v5, %v11650_v43 }
  0xe7   : > { %v11663_v46 = vpop.permute.xlu1 %11662  ;;  %v11653_v47 = vpop.permute.xlu0 %11652 }
  0xe8   : > { %v11665_v50 = vunpack.i.h.bf16 %v11663_v46  ;;  %v11664_v51 = vunpack.i.l.bf16 %v11663_v46  ;;  %v11655_v52 = vunpack.i.h.bf16 %v11653_v47  ;;  %v11654_v53 = vunpack.i.l.bf16 %v11653_v47 }
  0xea   : > { %v1722_v54 = vsel %vm1721_vm6, %v1705_v48, %v11664_v51  ;;  %v1723_v55 = vsel %vm1721_vm6, %v1706_v49, %v11665_v50  ;;  %v1708_v56 = vsel %vm1704_vm5, %v13163_v11, %v11655_v52  ;;  %v1707_v57 = vsel %vm1704_vm5, %v13171_v16, %v11654_v53 }
  0xeb   : > { %v11668_v58 = vpop.permute.xlu1 %11667  ;;  %v11658_v59 = vpop.permute.xlu0 %11657  ;;  %v1738_v60 = vpack.c.bf16 %v1723_v55, %v1722_v54 }
  0xec   : > { %v11670_v61 = vunpack.i.h.bf16 %v11668_v58  ;;  %v11669_v62 = vunpack.i.l.bf16 %v11668_v58  ;;  %v11660_v63 = vunpack.i.h.bf16 %v11658_v59  ;;  %v11659_v0 = vunpack.i.l.bf16 %v11658_v59 }
  0xed   : > { %10979 = vmatprep.mubr.msk.bf16.mxu0 %vm1754_vm7, %v1738_v60 }
  0xee   : > { %v1725_v2 = vsel %vm1721_vm6, %v1708_v56, %v11670_v61  ;;  %v1724_v6 = vsel %vm1721_vm6, %v1707_v57, %v11669_v62  ;;  %v1710_v7 = vsel %vm1704_vm5, %v13175_v18, %v11660_v63  ;;  %v1709_v8 = vsel %vm1704_vm5, %v13182_v21, %v11659_v0 }
  0xef   : > { %v11673_v9 = vpop.permute.xlu1 %11672  ;;  %v11678_v10 = vpop.permute.xlu0 %11677  ;;  %v1739_v11 = vpack.c.bf16 %v1725_v2, %v1724_v6 }
  0xf0   : > { %v11680_v16 = vunpack.i.h.bf16 %v11678_v10  ;;  %v11679_v19 = vunpack.i.l.bf16 %v11678_v10  ;;  %v11675_v20 = vunpack.i.h.bf16 %v11673_v9  ;;  %v11674_v5 = vunpack.i.l.bf16 %v11673_v9 }
  0xf1   : > { %10980 = vmatmul.mubr.msk.bf16.vlgmr.msra.gmra.mrb[0].mxu0 %vm1754_vm7, %v1739_v11  ;;  %v12208_v11 = vld [vmem:[%s12779_s17 + $0x10] sm:$0xff]  }
  0xf2   : > { %v1726_v17 = vsel %vm1721_vm6, %v1709_v8, %v11679_v19  ;;  %v1727_v22 = vsel %vm1721_vm6, %v1710_v7, %v11680_v16  ;;  %v1712_v35 = vsel %vm1704_vm5, %v13198_v24, %v11675_v20  ;;  %v1711_v36 = vsel %vm1704_vm5, %v13204_v13, %v11674_v5  ;;  %10999 = vmatprep.subr.bf16.mxu1 %v12208_v11  ;;  %v12209_v16 = vld [vmem:[%s12779_s17 + $0x18] sm:$0xff]   ;;  %v10199_v19 = vld [vmem:[%s15886_s13] ss:$0 sm:$0xff]  ;;  %s12755_s13 = smov [#allocation2]  }
  0xf3   : > { %v11683_v23 = vpop.permute.xlu1 %11682  ;;  %v11688_v4 = vpop.permute.xlu0 %11687  ;;  %v1740_v32 = vpack.c.bf16 %v1727_v22, %v1726_v17  ;;  %11000 = vmatpush3.bf16.msra.mxu1 %v12208_v11  ;;  %v13334_v11 = vld [vmem:[%s12784_s21] ss:$0 sm:$0xff] }
  0xf4   : > { %v11685_v18 = vunpack.i.h.bf16 %v11683_v23  ;;  %v11684_v33 = vunpack.i.l.bf16 %v11683_v23  ;;  %v11690_v34 = vunpack.i.h.bf16 %v11688_v4  ;;  %v11689_v21 = vunpack.i.l.bf16 %v11688_v4  ;;  %11001 = vmatprep.subr.bf16.mxu1 %v12209_v16 }
  0xf5   : > { %10983 = vmatprep.mubr.msk.bf16.mxu0 %vm1754_vm7, %v1740_v32 }
  0xf6   : > { %v1728_v37 = vsel %vm1721_vm6, %v1711_v36, %v11684_v33  ;;  %v1729_v38 = vsel %vm1721_vm6, %v1712_v35, %v11685_v18  ;;  %v1714_v39 = vsel %vm1704_vm5, %v13208_v25, %v11690_v34  ;;  %v1713_v40 = vsel %vm1704_vm5, %v13212_v14, %v11689_v21 }
  0xf7   : > { %v11693_v41 = vpop.permute.xlu1 %11692  ;;  %v11698_v42 = vpop.permute.xlu0 %11697  ;;  %v1741_v3 = vpack.c.bf16 %v1729_v38, %v1728_v37  ;;  %11002 = vmatpush3.bf16.msra.mxu1 %v12209_v16  ;;  %v12213_v16 = vld [vmem:[%s15881_s3 + $0x10] sm:$0xff]  }
  0xf8   : > { %v11700_v15 = vunpack.i.h.bf16 %v11698_v42  ;;  %v11699_v24 = vunpack.i.l.bf16 %v11698_v42  ;;  %v11695_v43 = vunpack.i.h.bf16 %v11693_v41  ;;  %v11694_v44 = vunpack.i.l.bf16 %v11693_v41 }
  0xf9   : > { %10984 = vmatmul.mubr.msk.bf16.gmra.mrb[4].mxu0 %vm1754_vm7, %v1741_v3 }
  0xfa   : > { %v1730_v13 = vsel %vm1721_vm6, %v1713_v40, %v11699_v24  ;;  %v1731_v45 = vsel %vm1721_vm6, %v1714_v39, %v11700_v15  ;;  %v1716_v51 = vsel %vm1704_vm5, %v13216_v26, %v11695_v43  ;;  %v1715_v52 = vsel %vm1704_vm5, %v13220_v27, %v11694_v44 }
  0xfb   : > { %v11703_v46 = vpop.permute.xlu1 %11702  ;;  %v11708_v47 = vpop.permute.xlu0 %11707  ;;  %v1742_v48 = vpack.c.bf16 %v1731_v45, %v1730_v13 }
  0xfc   : > { %v11705_v25 = vunpack.i.h.bf16 %v11703_v46  ;;  %v11704_v49 = vunpack.i.l.bf16 %v11703_v46  ;;  %v11710_v50 = vunpack.i.h.bf16 %v11708_v47  ;;  %v11709_v14 = vunpack.i.l.bf16 %v11708_v47 }
  0xfd   : > { %10987 = vmatprep.mubr.msk.bf16.mxu0 %vm1754_vm7, %v1742_v48 }
  0xfe   : > { %v1732_v53 = vsel %vm1721_vm6, %v1715_v52, %v11704_v49  ;;  %v1733_v54 = vsel %vm1721_vm6, %v1716_v51, %v11705_v25  ;;  %v1718_v55 = vsel %vm1704_vm5, %v13224_v28, %v11710_v50  ;;  %v1717_v56 = vsel %vm1704_vm5, %v13228_v29, %v11709_v14 }
  0xff   : > { %v11713_v57 = vpop.permute.xlu1 %11712  ;;  %v11718_v58 = vpop.permute.xlu0 %11717  ;;  %v1743_v59 = vpack.c.bf16 %v1733_v54, %v1732_v53 }
 0x100   : > { %v11720_v60 = vunpack.i.h.bf16 %v11718_v58  ;;  %v11719_v26 = vunpack.i.l.bf16 %v11718_v58  ;;  %v11715_v61 = vunpack.i.h.bf16 %v11713_v57  ;;  %v11714_v27 = vunpack.i.l.bf16 %v11713_v57 }
 0x101   : > { %10988 = vmatmul.mubr.msk.bf16.gmra.mrb[8].mxu0 %vm1754_vm7, %v1743_v59 }
 0x102   : > { %v1734_v62 = vsel %vm1721_vm6, %v1717_v56, %v11719_v26  ;;  %v1735_v63 = vsel %vm1721_vm6, %v1718_v55, %v11720_v60  ;;  %v1720_v6 = vsel %vm1704_vm5, %v13232_v30, %v11715_v61  ;;  %v1719_v7 = vsel %vm1704_vm5, %v13236_v31, %v11714_v27 }
 0x103   : > { %v1744_v0 = vpack.c.bf16 %v1735_v63, %v1734_v62  ;;  %v11723_v28 = vpop.permute.xlu1 %11722 }
 0x104   : > { %v11725_v2 = vunpack.i.h.bf16 %v11723_v28  ;;  %v11724_v29 = vunpack.i.l.bf16 %v11723_v28 }
 0x105   : > { %10991 = vmatprep.mubr.msk.bf16.mxu0 %vm1754_vm7, %v1744_v0 }
 0x106   : > { %v1736_v8 = vsel %vm1721_vm6, %v1719_v7, %v11724_v29  ;;  %v1737_v9 = vsel %vm1721_vm6, %v1720_v6, %v11725_v2 }
 0x107   : > { %v1745_v10 = vpack.c.bf16 %v1737_v9, %v1736_v8  ;;  %v12210_v8 = vld [vmem:[%s12789_s25] sm:$0xff]  }
 0x108   : > { %11019 = vmatprep.subr.bf16.mxu0 %v12210_v8  ;;  %v12211_v9 = vld [vmem:[%s15881_s3] sm:$0xff]  }
 0x109   : > { %10992 = vmatmul.mubr.msk.bf16.gmra.mrb[12].mxu0 %vm1754_vm7, %v1745_v10  ;;  %v12212_v10 = vld [vmem:[%s15881_s3 + $0x8] sm:$0xff]   ;;  %11037 = vmatprep.subr.bf16.mxu1 %v12211_v9  ;;  %s15895_s3 = smov 32  }
 0x10a   : > { %11020 = vmatpush3.bf16.msra.mxu0 %v12210_v8 }
 0x1c4   : > { %v10981_v30 = vpop.f32.mrb[0].mxu0 }
 0x1c5   : > { %v1826_v20 = vadd.f32 %v10981_v30, %v10199_v19  ;;  %v1817_v5 = vpop.f32.mrb[1].mxu0 }
 0x1c6   : > { %v1818_v31 = vadd.f32 %v10199_v19, %v1817_v5  ;;  %v10982_v17 = vpop.f32.mrb[2].mxu0 }
 0x1c7   : > { %v1829_v22 = vadd.f32 %v10982_v17, %v10199_v19  ;;  %v1820_v23 = vpop.f32.mrb[3].mxu0  ;;  %v1882_v32 = vmax.f32 %v1826_v20, 0.0 }
 0x1c8   : > { %v1821_v4 = vadd.f32 %v10199_v19, %v1820_v23  ;;  %v1880_v33 = vmax.f32 %v1818_v31, 0.0 }
 0x1c9   : > { %v1883_v18 = vmax.f32 %v1829_v22, 0.0 }
 0x1ca   : > { %v1881_v34 = vmax.f32 %v1821_v4, 0.0 }
 0x1cb   : > { %v1897_v21 = vpack.c.bf16 %v1883_v18, %v1882_v32 }
 0x1cc   : > { %v10985_v35 = vpop.f32.mrb[4].mxu0  ;;  %v1896_v36 = vpack.c.bf16 %v1881_v34, %v1880_v33 }
 0x1cd   : > { %v1842_v37 = vadd.f32 %v10985_v35, %v10199_v19  ;;  %v1833_v38 = vpop.f32.mrb[5].mxu0 }
 0x1ce   : > { %v1834_v39 = vadd.f32 %v10199_v19, %v1833_v38  ;;  %v10986_v40 = vpop.f32.mrb[6].mxu0  ;;  %11003 = vmatprep.mubr.msk.bf16.mxu1 %vm1943_vm8, %v1896_v36 }
 0x1cf   : > { %v1845_v41 = vadd.f32 %v10986_v40, %v10199_v19  ;;  %v1836_v42 = vpop.f32.mrb[7].mxu0  ;;  %11004 = vmatmul.mubr.msk.bf16.vlgmr.msra.gmra.mrb[0].mxu1 %vm1943_vm8, %v1897_v21  ;;  %v1886_v15 = vmax.f32 %v1842_v37, 0.0 }
 0x1d0   : > { %v1837_v3 = vadd.f32 %v10199_v19, %v1836_v42  ;;  %v1884_v43 = vmax.f32 %v1834_v39, 0.0  ;;  %11038 = vmatpush3.bf16.msra.mxu1 %v12211_v9 }
 0x1d1   : > { %v1887_v24 = vmax.f32 %v1845_v41, 0.0  ;;  %11039 = vmatprep.subr.bf16.mxu1 %v12212_v10 }
 0x1d2   : > { %v1885_v44 = vmax.f32 %v1837_v3, 0.0 }
 0x1d3   : > { %v1899_v13 = vpack.c.bf16 %v1887_v24, %v1886_v15 }
 0x1d4   : > { %v1898_v45 = vpack.c.bf16 %v1885_v44, %v1884_v43  ;;  %v10989_v46 = vpop.f32.mrb[8].mxu0  ;;  %11040 = vmatpush3.bf16.msra.mxu1 %v12212_v10 }
 0x1d5   : > { %v1858_v47 = vadd.f32 %v10989_v46, %v10199_v19  ;;  %v1849_v48 = vpop.f32.mrb[9].mxu0  ;;  %11041 = vmatprep.subr.bf16.mxu1 %v12213_v16 }
 0x1d6   : > { %v1850_v25 = vadd.f32 %v10199_v19, %v1849_v48  ;;  %v10990_v49 = vpop.f32.mrb[10].mxu0  ;;  %11007 = vmatprep.mubr.msk.bf16.mxu1 %vm1943_vm8, %v1898_v45 }
 0x1d7   : > { %v1861_v50 = vadd.f32 %v10990_v49, %v10199_v19  ;;  %v1852_v14 = vpop.f32.mrb[11].mxu0  ;;  %11008 = vmatmul.mubr.msk.bf16.gmra.mrb[4].mxu1 %vm1943_vm8, %v1899_v13  ;;  %v1890_v52 = vmax.f32 %v1858_v47, 0.0 }
 0x1d8   : > { %v1853_v51 = vadd.f32 %v10199_v19, %v1852_v14  ;;  %v1888_v54 = vmax.f32 %v1850_v25, 0.0  ;;  %11042 = vmatpush3.bf16.msra.mxu1 %v12213_v16 }
 0x1d9   : > { %v1891_v53 = vmax.f32 %v1861_v50, 0.0 }
 0x1da   : > { %v1889_v55 = vmax.f32 %v1853_v51, 0.0 }
 0x1db   : > { %v1901_v56 = vpack.c.bf16 %v1891_v53, %v1890_v52 }
 0x1dc   : > { %v1900_v57 = vpack.c.bf16 %v1889_v55, %v1888_v54  ;;  %v10993_v58 = vpop.f32.mrb[12].mxu0 }
 0x1dd   : > { %v1874_v59 = vadd.f32 %v10993_v58, %v10199_v19  ;;  %v1865_v60 = vpop.f32.mrb[13].mxu0 }
 0x1de   : > { %v1866_v26 = vadd.f32 %v10199_v19, %v1865_v60  ;;  %v10994_v61 = vpop.f32.mrb[14].mxu0  ;;  %11011 = vmatprep.mubr.msk.bf16.mxu1 %vm1943_vm8, %v1900_v57 }
 0x1df   : > { %v1877_v27 = vadd.f32 %v10994_v61, %v10199_v19  ;;  %v1868_v62 = vpop.f32.mrb[15].mxu0  ;;  %11012 = vmatmul.mubr.msk.bf16.gmra.mrb[8].mxu1 %vm1943_vm8, %v1901_v56  ;;  %v1894_v0 = vmax.f32 %v1874_v59, 0.0 }
 0x1e0   : > { %v1869_v63 = vadd.f32 %v10199_v19, %v1868_v62  ;;  %v1892_v2 = vmax.f32 %v1866_v26, 0.0 }
 0x1e1   : > { %v1895_v28 = vmax.f32 %v1877_v27, 0.0 }
 0x1e2   : > { %v1893_v29 = vmax.f32 %v1869_v63, 0.0 }
 0x1e3   : > { %v1903_v6 = vpack.c.bf16 %v1895_v28, %v1894_v0 }
 0x1e4   : > { %v1902_v7 = vpack.c.bf16 %v1893_v29, %v1892_v2 }
 0x1e6   : > { %11015 = vmatprep.mubr.msk.bf16.mxu1 %vm1943_vm8, %v1902_v7 }
 0x1e7   : > { %11016 = vmatmul.mubr.msk.bf16.gmra.mrb[12].mxu1 %vm1943_vm8, %v1903_v6 }
 0x2a2   : > { %v11005_v19 = vpop.f32.mrb[0].mxu1 }
 0x2a3   : > { %v2011_v30 = vadd.f32 %v11005_v19, %v13334_v11  ;;  %v2002_v20 = vpop.f32.mrb[1].mxu1 }
 0x2a4   : > { %v2003_v5 = vadd.f32 %v13334_v11, %v2002_v20  ;;  %v11006_v31 = vpop.f32.mrb[2].mxu1 }
 0x2a5   : > { %v2067_v17 = vmax.f32 %v2011_v30, 0.0  ;;  %v2014_v22 = vadd.f32 %v11006_v31, %v13334_v11  ;;  %v2005_v23 = vpop.f32.mrb[3].mxu1 }
 0x2a6   : > { %v13340_v4 = vmax.f32 %v2003_v5, 0.0  ;;  %v2006_v32 = vadd.f32 %v13334_v11, %v2005_v23 }
 0x2a7   : > { %v2068_v18 = vmax.f32 %v2014_v22, 0.0  ;;  %v2292_v21 = vrot.slane %v2067_v17, 1  ;;  %v2244_v35 = vrot.slane %v2067_v17, 7 }
 0x2a8   : > { %v2066_v33 = vmax.f32 %v2006_v32, 0.0  ;;  %v2290_v34 = vrot.slane %v13340_v4, 1  ;;  %v2242_v25 = vrot.slane %v13340_v4, 7 }
 0x2a9   : > { %v2082_v36 = vpack.c.bf16 %v2068_v18, %v2067_v17  ;;  %v11726_v37 = vpack.i.bf16 %v2068_v18, %v2067_v17  ;;  %v2293_v38 = vrot.slane %v2068_v18, 1  ;;  %v2245_v39 = vrot.slane %v2068_v18, 7 }
 0x2aa   : > { %v11009_v40 = vpop.f32.mrb[4].mxu1  ;;  %v11731_v41 = vpack.i.bf16 %v2066_v33, %v13340_v4  ;;  %v2081_v42 = vpack.c.bf16 %v2066_v33, %v13340_v4  ;;  %v2291_v3 = vrot.slane %v2066_v33, 1  ;;  %v2243_v15 = vrot.slane %v2066_v33, 7 }
 0x2ab   : > { %v2027_v24 = vadd.f32 %v11009_v40, %v13334_v11  ;;  %11727 = vrot.lane.b32.xlu1 %v11726_v37, %s12749_s16  ;;  %v2018_v43 = vpop.f32.mrb[5].mxu1  ;;  %v2318_v44 = vsel %vm1511_vm1, %v2292_v21, %v2293_v38  ;;  %v13352_v13 = vsel %vm1414_vm2, %v2244_v35, %v2245_v39 }
 0x2ac   : > { %v2019_v45 = vadd.f32 %v13334_v11, %v2018_v43  ;;  %v11010_v46 = vpop.f32.mrb[6].mxu1  ;;  %11732 = vrot.lane.b32.xlu0 %v11731_v41, %s12749_s16  ;;  %11021 = vmatprep.mubr.msk.bf16.mxu0 %vm2104_vm9, %v2081_v42  ;;  %v2319_v47 = vsel %vm1511_vm1, %v2291_v3, %v2292_v21  ;;  %v2320_v48 = vsel %vm1511_vm1, %v2290_v34, %v2291_v3 }
 0x2ad   : > { %v2071_v49 = vmax.f32 %v2027_v24, 0.0  ;;  %v2030_v50 = vadd.f32 %v11010_v46, %v13334_v11  ;;  %v2021_v14 = vpop.f32.mrb[7].mxu1  ;;  %11022 = vmatmul.mubr.msk.bf16.vlgmr.msra.gmra.mrb[16].mxu0 %vm2104_vm9, %v2082_v36  ;;  %v11736_v51 = vpack.i.bf16 %v2319_v47, %v2320_v48  ;;  %v13368_v52 = vsel %vm1414_vm2, %v2243_v15, %v2244_v35 }
 0x2ae   : > { %v2069_v53 = vmax.f32 %v2019_v45, 0.0  ;;  %v2022_v54 = vadd.f32 %v13334_v11, %v2021_v14  ;;  %v13375_v55 = vsel %vm1414_vm2, %v2242_v25, %v2243_v15 }
 0x2af   : > { %v2072_v56 = vmax.f32 %v2030_v50, 0.0  ;;  %v2296_v57 = vrot.slane %v2071_v49, 1  ;;  %v2248_v16 = vrot.slane %v2071_v49, 7 }
 0x2b0   : > { %v2246_v58 = vrot.slane %v2069_v53, 7  ;;  %v2294_v59 = vrot.slane %v2069_v53, 1  ;;  %v2070_v60 = vmax.f32 %v2022_v54, 0.0  ;;  %11737 = vrot.lane.b32.xlu0 %v11736_v51, %s15824_s22 }
 0x2b1   : > { %v2249_v26 = vrot.slane %v2072_v56, 7  ;;  %v2297_v61 = vrot.slane %v2072_v56, 1  ;;  %v2084_v27 = vpack.c.bf16 %v2072_v56, %v2071_v49  ;;  %v11751_v62 = vpack.i.bf16 %v2072_v56, %v2071_v49 }
 0x2b2   : > { %v2247_v63 = vrot.slane %v2070_v60, 7  ;;  %v2295_v0 = vrot.slane %v2070_v60, 1  ;;  %v11013_v28 = vpop.f32.mrb[8].mxu1  ;;  %v11741_v2 = vpack.i.bf16 %v2070_v60, %v2069_v53  ;;  %v2083_v29 = vpack.c.bf16 %v2070_v60, %v2069_v53 }
 0x2b3   : > { %v2043_v6 = vadd.f32 %v11013_v28, %v13334_v11  ;;  %v2034_v7 = vpop.f32.mrb[9].mxu1  ;;  %v2317_v8 = vsel %vm1511_vm1, %v2293_v38, %v2294_v59  ;;  %v2314_v9 = vsel %vm1511_vm1, %v2296_v57, %v2297_v61  ;;  %v13385_v10 = vsel %vm1414_vm2, %v2245_v39, %v2246_v58 }
 0x2b4   : > { %v2035_v19 = vadd.f32 %v13334_v11, %v2034_v7  ;;  %v11014_v30 = vpop.f32.mrb[10].mxu1  ;;  %11742 = vrot.lane.b32.xlu0 %v11741_v2, %s12749_s16  ;;  %11025 = vmatprep.mubr.msk.bf16.mxu0 %vm2104_vm9, %v2083_v29  ;;  %v11746_v20 = vpack.i.bf16 %v2317_v8, %v2318_v44  ;;  %v2315_v5 = vsel %vm1511_vm1, %v2295_v0, %v2296_v57 }
 0x2b5   : > { %v13392_v31 = vmax.f32 %v2043_v6, 0.0  ;;  %v2046_v17 = vadd.f32 %v11014_v30, %v13334_v11  ;;  %v2037_v22 = vpop.f32.mrb[11].mxu1  ;;  %11026 = vmatmul.mubr.msk.bf16.gmra.mrb[20].mxu0 %vm2104_vm9, %v2084_v27  ;;  %v2316_v23 = vsel %vm1511_vm1, %v2294_v59, %v2295_v0  ;;  %v13400_v32 = vsel %vm1414_vm2, %v2246_v58, %v2247_v63 }
 0x2b6   : > { %v2073_v18 = vmax.f32 %v2035_v19, 0.0  ;;  %v2038_v33 = vadd.f32 %v13334_v11, %v2037_v22  ;;  %11747 = vrot.lane.b32.xlu1 %v11746_v20, %s15824_s22  ;;  %v11756_v21 = vpack.i.bf16 %v2315_v5, %v2316_v23  ;;  %v13406_v35 = vsel %vm1414_vm2, %v2248_v16, %v2249_v26 }
 0x2b7   : > { %v13408_v36 = vmax.f32 %v2046_v17, 0.0  ;;  %v13412_v37 = vsel %vm1414_vm2, %v2247_v63, %v2248_v16  ;;  %v2300_v38 = vrot.slane %v13392_v31, 1  ;;  %v2252_v53 = vrot.slane %v13392_v31, 7 }
 0x2b8   : > { %v2250_v39 = vrot.slane %v2073_v18, 7  ;;  %v2298_v40 = vrot.slane %v2073_v18, 1  ;;  %v2074_v41 = vmax.f32 %v2038_v33, 0.0  ;;  %11757 = vrot.lane.b32.xlu0 %v11756_v21, %s15824_s22 }
 0x2b9   : > { %v2253_v42 = vrot.slane %v13408_v36, 7  ;;  %v2301_v3 = vrot.slane %v13408_v36, 1  ;;  %v2086_v15 = vpack.c.bf16 %v13408_v36, %v13392_v31  ;;  %v11771_v24 = vpack.i.bf16 %v13408_v36, %v13392_v31 }
 0x2ba   : > { %v2251_v43 = vrot.slane %v2074_v41, 7  ;;  %v2299_v44 = vrot.slane %v2074_v41, 1  ;;  %11752 = vrot.lane.b32.xlu1 %v11751_v62, %s12749_s16  ;;  %v11017_v45 = vpop.f32.mrb[12].mxu1  ;;  %v11761_v46 = vpack.i.bf16 %v2074_v41, %v2073_v18  ;;  %v2085_v47 = vpack.c.bf16 %v2074_v41, %v2073_v18 }
 0x2bb   : > { %v2059_v48 = vadd.f32 %v11017_v45, %v13334_v11  ;;  %v2050_v49 = vpop.f32.mrb[13].mxu1  ;;  %v2313_v50 = vsel %vm1511_vm1, %v2297_v61, %v2298_v40  ;;  %v2310_v14 = vsel %vm1511_vm1, %v2300_v38, %v2301_v3  ;;  %v13430_v51 = vsel %vm1414_vm2, %v2249_v26, %v2250_v39  ;;  %v12215_v45 = vld [vmem:[%s15879_s14 + $0x28] sm:$0xff]  }
 0x2bc   : > { %v2051_v54 = vadd.f32 %v13334_v11, %v2050_v49  ;;  %v11018_v56 = vpop.f32.mrb[14].mxu1  ;;  %11762 = vrot.lane.b32.xlu0 %v11761_v46, %s12749_s16  ;;  %11029 = vmatprep.mubr.msk.bf16.mxu0 %vm2104_vm9, %v2085_v47  ;;  %v11766_v57 = vpack.i.bf16 %v2313_v50, %v2314_v9  ;;  %v2311_v58 = vsel %vm1511_vm1, %v2299_v44, %v2300_v38 }
 0x2bd   : > { %v2079_v59 = vmax.f32 %v2059_v48, 0.0  ;;  %v2062_v60 = vadd.f32 %v11018_v56, %v13334_v11  ;;  %v2053_v61 = vpop.f32.mrb[15].mxu1  ;;  %11030 = vmatmul.mubr.msk.bf16.gmra.mrb[24].mxu0 %vm2104_vm9, %v2086_v15  ;;  %v2312_v26 = vsel %vm1511_vm1, %v2298_v40, %v2299_v44  ;;  %v13444_v27 = vsel %vm1414_vm2, %v2250_v39, %v2251_v43 }
 0x2be   : > { %v2077_v62 = vmax.f32 %v2051_v54, 0.0  ;;  %v2054_v63 = vadd.f32 %v13334_v11, %v2053_v61  ;;  %11767 = vrot.lane.b32.xlu1 %v11766_v57, %s15824_s22  ;;  %v11776_v0 = vpack.i.bf16 %v2311_v58, %v2312_v26  ;;  %v13452_v28 = vsel %vm1414_vm2, %v2252_v53, %v2253_v42  ;;  %v12216_v54 = vld [vmem:[%s15879_s14 + $0x30] sm:$0xff]  }
 0x2bf   : > { %v2256_v2 = vrot.slane %v2079_v59, 7  ;;  %v2080_v29 = vmax.f32 %v2062_v60, 0.0  ;;  %v13456_v6 = vsel %vm1414_vm2, %v2251_v43, %v2252_v53  ;;  %v2304_v7 = vrot.slane %v2079_v59, 1 }
 0x2c0   : > { %v2254_v8 = vrot.slane %v2077_v62, 7  ;;  %v2302_v9 = vrot.slane %v2077_v62, 1  ;;  %v2078_v16 = vmax.f32 %v2054_v63, 0.0  ;;  %11777 = vrot.lane.b32.xlu0 %v11776_v0, %s15824_s22 }
 0x2c1   : > { %v2257_v11 = vrot.slane %v2080_v29, 7  ;;  %v2305_v19 = vrot.slane %v2080_v29, 1  ;;  %v2088_v30 = vpack.c.bf16 %v2080_v29, %v2079_v59  ;;  %v11791_v20 = vpack.i.bf16 %v2080_v29, %v2079_v59 }
 0x2c2   : > { %v2255_v5 = vrot.slane %v2078_v16, 7  ;;  %v2303_v31 = vrot.slane %v2078_v16, 1  ;;  %11772 = vrot.lane.b32.xlu1 %v11771_v24, %s12749_s16  ;;  %v11781_v17 = vpack.i.bf16 %v2078_v16, %v2077_v62  ;;  %v2087_v22 = vpack.c.bf16 %v2078_v16, %v2077_v62 }
 0x2c3   : > { %v2309_v23 = vsel %vm1511_vm1, %v2301_v3, %v2302_v9  ;;  %v2306_v18 = vsel %vm1511_vm1, %v2304_v7, %v2305_v19  ;;  %v2321_v33 = vsel %vm1511_vm1, %v2305_v19, %v2290_v34  ;;  %v2273_v21 = vsel %vm1414_vm2, %v2257_v11, %v2242_v25 }
 0x2c4   : > { %11782 = vrot.lane.b32.xlu0 %v11781_v17, %s12749_s16  ;;  %11033 = vmatprep.mubr.msk.bf16.mxu0 %vm2104_vm9, %v2087_v22  ;;  %v11786_v38 = vpack.i.bf16 %v2309_v23, %v2310_v14  ;;  %v2307_v39 = vsel %vm1511_vm1, %v2303_v31, %v2304_v7  ;;  %v2308_v40 = vsel %vm1511_vm1, %v2302_v9, %v2303_v31  ;;  %v2337_v34 = vsel %vm1494_vm3, 0.0, %v2321_v33 }
 0x2c5   : > { %11034 = vmatmul.mubr.msk.bf16.gmra.mrb[28].mxu0 %vm2104_vm9, %v2088_v30  ;;  %v11796_v4 = vpack.i.bf16 %v2307_v39, %v2308_v40  ;;  %v11801_v25 = vpack.i.bf16 %v2337_v34, %v2306_v18  ;;  %v13483_v41 = vsel %vm1414_vm2, %v2254_v8, %v2255_v5  ;;  %v13490_v3 = vsel %vm1414_vm2, %v2253_v42, %v2254_v8  ;;  %v12214_v42 = vld [vmem:[%s15879_s14 + $0x20] sm:$0xff]  }
 0x2c6   : > { %11787 = vrot.lane.b32.xlu1 %v11786_v38, %s15824_s22  ;;  %v13494_v15 = vsel %vm1414_vm2, %v2256_v2, %v2257_v11  ;;  %v13498_v24 = vsel %vm1414_vm2, %v2255_v5, %v2256_v2  ;;  %11059 = vmatprep.subr.bf16.mxu0 %v12214_v42  ;;  %v2274_v48 = vsel %vm1382_vm4, 0.0, %v2273_v21 }
 0x2c7   : > { %11060 = vmatpush3.bf16.msra.mxu0 %v12214_v42 }
 0x2c8   : > { %11797 = vrot.lane.b32.xlu0 %v11796_v4, %s15824_s22  ;;  %11061 = vmatprep.subr.bf16.mxu0 %v12215_v45 }
 0x2ca   : > { %11792 = vrot.lane.b32.xlu1 %v11791_v20, %s12749_s16 }
 0x2cb   : > { %11062 = vmatpush3.bf16.msra.mxu0 %v12215_v45 }
 0x2cc   : > { %11063 = vmatprep.subr.bf16.mxu0 %v12216_v54 }
 0x2ce   : > { %11802 = vrot.lane.b32.xlu1 %v11801_v25, %s15824_s22 }
 0x2cf   : > { %11064 = vmatpush3.bf16.msra.mxu0 %v12216_v54 }
 0x31d   : > { %v11728_v47 = vpop.permute.xlu1 %11727 }
 0x31e   : > { %v11733_v43 = vpop.permute.xlu0 %11732  ;;  %v11730_v58 = vunpack.i.h.bf16 %v11728_v47  ;;  %v11729_v59 = vunpack.i.l.bf16 %v11728_v47 }
 0x31f   : > { %v11735_v36 = vunpack.i.h.bf16 %v11733_v43  ;;  %v11734_v44 = vunpack.i.l.bf16 %v11733_v43 }
 0x320   : > { %v2468_v2 = vsel %vm2104_vm9, %v13368_v52, %v11729_v59  ;;  %v2469_v29 = vsel %vm2104_vm9, %v13352_v13, %v11730_v58 }
 0x321   : > { %v2466_v14 = vsel %vm2104_vm9, %v2274_v48, %v11734_v44  ;;  %v2467_v53 = vsel %vm2104_vm9, %v13375_v55, %v11735_v36 }
 0x322   : > { %v11738_v46 = vpop.permute.xlu0 %11737 }
 0x323   : > { %v11740_v49 = vunpack.i.h.bf16 %v11738_v46  ;;  %v11739_v50 = vunpack.i.l.bf16 %v11738_v46 }
 0x325   : > { %v2483_v56 = vsel %vm2482_vm10, %v2466_v14, %v11739_v50  ;;  %v2484_v57 = vsel %vm2482_vm10, %v2467_v53, %v11740_v49 }
 0x326   : > { %v2499_v60 = vpack.c.bf16 %v2484_v57, %v2483_v56  ;;  %v11743_v61 = vpop.permute.xlu0 %11742 }
 0x327   : > { %v11745_v26 = vunpack.i.h.bf16 %v11743_v61  ;;  %v11744_v62 = vunpack.i.l.bf16 %v11743_v61 }
 0x328   : > { %v11748_v63 = vpop.permute.xlu1 %11747  ;;  %11043 = vmatprep.mubr.msk.bf16.mxu1 %vm2538_vm11, %v2499_v60 }
 0x329   : > { %v11750_v0 = vunpack.i.h.bf16 %v11748_v63  ;;  %v11749_v55 = vunpack.i.l.bf16 %v11748_v63  ;;  %v2471_v19 = vsel %vm2104_vm9, %v13400_v32, %v11745_v26  ;;  %v2470_v30 = vsel %vm2104_vm9, %v13385_v10, %v11744_v62 }
 0x32a   : > { %v11758_v7 = vpop.permute.xlu0 %11757 }
 0x32b   : > { %v2486_v8 = vsel %vm2482_vm10, %v2469_v29, %v11750_v0  ;;  %v2485_v9 = vsel %vm2482_vm10, %v2468_v2, %v11749_v55  ;;  %v11760_v16 = vunpack.i.h.bf16 %v11758_v7  ;;  %v11759_v11 = vunpack.i.l.bf16 %v11758_v7 }
 0x32c   : > { %v2500_v20 = vpack.c.bf16 %v2486_v8, %v2485_v9  ;;  %v11753_v5 = vpop.permute.xlu1 %11752 }
 0x32d   : > { %v2487_v52 = vsel %vm2482_vm10, %v2470_v30, %v11759_v11  ;;  %v2488_v13 = vsel %vm2482_vm10, %v2471_v19, %v11760_v16  ;;  %v11755_v17 = vunpack.i.h.bf16 %v11753_v5  ;;  %v11754_v22 = vunpack.i.l.bf16 %v11753_v5  ;;  %v10221_v30 = vld [vmem:[%s12794_s29] ss:$0 sm:$0xff] }
 0x32e   : > { %v2501_v31 = vpack.c.bf16 %v2488_v13, %v2487_v52  ;;  %11044 = vmatmul.mubr.msk.bf16.vlgmr.msra.gmra.mrb[16].mxu1 %vm2538_vm11, %v2500_v20  ;;  %v11763_v23 = vpop.permute.xlu0 %11762 }
 0x32f   : > { %v11765_v18 = vunpack.i.h.bf16 %v11763_v23  ;;  %v11764_v33 = vunpack.i.l.bf16 %v11763_v23  ;;  %v2473_v10 = vsel %vm2104_vm9, %v13406_v35, %v11755_v17  ;;  %v2472_v39 = vsel %vm2104_vm9, %v13412_v37, %v11754_v22 }
 0x330   : > { %v11768_v21 = vpop.permute.xlu1 %11767  ;;  %11047 = vmatprep.mubr.msk.bf16.mxu1 %vm2538_vm11, %v2501_v31 }
 0x331   : > { %v11770_v32 = vunpack.i.h.bf16 %v11768_v21  ;;  %v11769_v38 = vunpack.i.l.bf16 %v11768_v21  ;;  %v2475_v36 = vsel %vm2104_vm9, %v13444_v27, %v11765_v18  ;;  %v2474_v44 = vsel %vm2104_vm9, %v13430_v51, %v11764_v33 }
 0x332   : > { %v11778_v40 = vpop.permute.xlu0 %11777 }
 0x333   : > { %v2489_v34 = vsel %vm2482_vm10, %v2472_v39, %v11769_v38  ;;  %v2490_v4 = vsel %vm2482_vm10, %v2473_v10, %v11770_v32  ;;  %v11780_v25 = vunpack.i.h.bf16 %v11778_v40  ;;  %v11779_v43 = vunpack.i.l.bf16 %v11778_v40  ;;  %v12217_v10 = vld [vmem:[%s15879_s14 + $0x38] sm:$0xff]  }
 0x334   : > { %v2502_v42 = vpack.c.bf16 %v2490_v4, %v2489_v34  ;;  %v11773_v45 = vpop.permute.xlu1 %11772  ;;  %11065 = vmatprep.subr.bf16.mxu0 %v12217_v10 }
 0x335   : > { %v2491_v35 = vsel %vm2482_vm10, %v2474_v44, %v11779_v43  ;;  %v2492_v46 = vsel %vm2482_vm10, %v2475_v36, %v11780_v25  ;;  %v11775_v47 = vunpack.i.h.bf16 %v11773_v45  ;;  %v11774_v48 = vunpack.i.l.bf16 %v11773_v45  ;;  %11066 = vmatpush3.bf16.msra.mxu0 %v12217_v10 }
 0x336   : > { %v2503_v37 = vpack.c.bf16 %v2492_v46, %v2491_v35  ;;  %11048 = vmatmul.mubr.msk.bf16.gmra.mrb[20].mxu1 %vm2538_vm11, %v2502_v42  ;;  %v11783_v49 = vpop.permute.xlu0 %11782 }
 0x337   : > { %v11785_v50 = vunpack.i.h.bf16 %v11783_v49  ;;  %v11784_v14 = vunpack.i.l.bf16 %v11783_v49  ;;  %v2477_v51 = vsel %vm2104_vm9, %v13452_v28, %v11775_v47  ;;  %v2476_v56 = vsel %vm2104_vm9, %v13456_v6, %v11774_v48  ;;  %v12218_v48 = vld [vmem:[%s15879_s14] sm:$0xff]  }
 0x338   : > { %v11788_v53 = vpop.permute.xlu1 %11787  ;;  %11051 = vmatprep.mubr.msk.bf16.mxu1 %vm2538_vm11, %v2503_v37  ;;  %11083 = vmatprep.subr.bf16.mxu0 %v12218_v48 }
 0x339   : > { %v11790_v27 = vunpack.i.h.bf16 %v11788_v53  ;;  %v11789_v54 = vunpack.i.l.bf16 %v11788_v53  ;;  %v2479_v26 = vsel %vm2104_vm9, %v13483_v41, %v11785_v50  ;;  %v2478_v62 = vsel %vm2104_vm9, %v13490_v3, %v11784_v14 }
 0x33a   : > { %v11798_v57 = vpop.permute.xlu0 %11797 }
 0x33b   : > { %v2493_v58 = vsel %vm2482_vm10, %v2476_v56, %v11789_v54  ;;  %v2494_v59 = vsel %vm2482_vm10, %v2477_v51, %v11790_v27  ;;  %v11800_v60 = vunpack.i.h.bf16 %v11798_v57  ;;  %v11799_v61 = vunpack.i.l.bf16 %v11798_v57 }
 0x33c   : > { %v2504_v63 = vpack.c.bf16 %v2494_v59, %v2493_v58  ;;  %v11793_v0 = vpop.permute.xlu1 %11792 }
 0x33d   : > { %v2495_v28 = vsel %vm2482_vm10, %v2478_v62, %v11799_v61  ;;  %v2496_v6 = vsel %vm2482_vm10, %v2479_v26, %v11800_v60  ;;  %v11795_v2 = vunpack.i.h.bf16 %v11793_v0  ;;  %v11794_v29 = vunpack.i.l.bf16 %v11793_v0 }
 0x33e   : > { %v2505_v55 = vpack.c.bf16 %v2496_v6, %v2495_v28  ;;  %11052 = vmatmul.mubr.msk.bf16.gmra.mrb[24].mxu1 %vm2538_vm11, %v2504_v63 }
 0x33f   : > { %v2481_v3 = vsel %vm2104_vm9, %v13494_v15, %v11795_v2  ;;  %v2480_v9 = vsel %vm2104_vm9, %v13498_v24, %v11794_v29 }
 0x340   : > { %v11803_v7 = vpop.permute.xlu1 %11802  ;;  %11055 = vmatprep.mubr.msk.bf16.mxu1 %vm2538_vm11, %v2505_v55 }
 0x341   : > { %v11805_v8 = vunpack.i.h.bf16 %v11803_v7  ;;  %v11804_v41 = vunpack.i.l.bf16 %v11803_v7 }
 0x343   : > { %v2498_v16 = vsel %vm2482_vm10, %v2481_v3, %v11805_v8  ;;  %v2497_v11 = vsel %vm2482_vm10, %v2480_v9, %v11804_v41 }
 0x344   : > { %v2506_v19 = vpack.c.bf16 %v2498_v16, %v2497_v11  ;;  %v13583_v16 = vld [vmem:[%s15887_s8] ss:$0 sm:$0xff]  ;;  %s15900_s8 = sld [smem:[#allocation20_spill]] }
 0x346   : > { %11056 = vmatmul.mubr.msk.bf16.gmra.mrb[28].mxu1 %vm2538_vm11, %v2506_v19 }
 0x380   : > { %v11023_v20 = vpop.f32.mrb[16].mxu0 }
 0x381   : > { %v2172_v5 = vadd.f32 %v11023_v20, %v10221_v30  ;;  %v2163_v52 = vpop.f32.mrb[17].mxu0 }
 0x382   : > { %v2164_v13 = vadd.f32 %v10221_v30, %v2163_v52  ;;  %v11024_v31 = vpop.f32.mrb[18].mxu0 }
 0x383   : > { %v2175_v17 = vadd.f32 %v11024_v31, %v10221_v30  ;;  %v2166_v22 = vpop.f32.mrb[19].mxu0  ;;  %v2228_v23 = vmax.f32 %v2172_v5, 0.0 }
 0x384   : > { %v2167_v15 = vadd.f32 %v10221_v30, %v2166_v22  ;;  %v2226_v24 = vmax.f32 %v2164_v13, 0.0 }
 0x385   : > { %v2229_v18 = vmax.f32 %v2175_v17, 0.0 }
 0x386   : > { %v2227_v33 = vmax.f32 %v2167_v15, 0.0 }
 0x387   : > { %v13564_v21 = vpack.c.bf16 %v2229_v18, %v2228_v23 }
 0x388   : > { %v13566_v32 = vpack.c.bf16 %v2227_v33, %v2226_v24  ;;  %v11027_v38 = vpop.f32.mrb[20].mxu0 }
 0x389   : > { %v2188_v39 = vadd.f32 %v11027_v38, %v10221_v30  ;;  %v2179_v40 = vpop.f32.mrb[21].mxu0 }
 0x38a   : > { %v2180_v34 = vadd.f32 %v10221_v30, %v2179_v40  ;;  %v11028_v4 = vpop.f32.mrb[22].mxu0 }
 0x38b   : > { %v2191_v25 = vadd.f32 %v11028_v4, %v10221_v30  ;;  %v2182_v43 = vpop.f32.mrb[23].mxu0  ;;  %v2232_v44 = vmax.f32 %v2188_v39, 0.0  ;;  %v12219_v39 = vld [vmem:[%s15879_s14 + $0x8] sm:$0xff]  }
 0x38c   : > { %v2183_v36 = vadd.f32 %v10221_v30, %v2182_v43  ;;  %v2230_v45 = vmax.f32 %v2180_v34, 0.0 }
 0x38d   : > { %v2233_v42 = vmax.f32 %v2191_v25, 0.0 }
 0x38e   : > { %v2231_v35 = vmax.f32 %v2183_v36, 0.0 }
 0x38f   : > { %v13569_v46 = vpack.c.bf16 %v2233_v42, %v2232_v44  ;;  %v12220_v42 = vld [vmem:[%s15879_s14 + $0x10] sm:$0xff]  }
 0x390   : > { %v13571_v37 = vpack.c.bf16 %v2231_v35, %v2230_v45  ;;  %v11031_v47 = vpop.f32.mrb[24].mxu0 }
 0x391   : > { %v2204_v49 = vadd.f32 %v11031_v47, %v10221_v30  ;;  %v2195_v50 = vpop.f32.mrb[25].mxu0 }
 0x392   : > { %v2196_v14 = vadd.f32 %v10221_v30, %v2195_v50  ;;  %v11032_v53 = vpop.f32.mrb[26].mxu0 }
 0x393   : > { %v2207_v27 = vadd.f32 %v11032_v53, %v10221_v30  ;;  %v2198_v54 = vpop.f32.mrb[27].mxu0  ;;  %v2236_v56 = vmax.f32 %v2204_v49, 0.0 }
 0x394   : > { %v2199_v51 = vadd.f32 %v10221_v30, %v2198_v54  ;;  %v2234_v58 = vmax.f32 %v2196_v14, 0.0 }
 0x395   : > { %v2237_v57 = vmax.f32 %v2207_v27, 0.0  ;;  %v12221_v27 = vld [vmem:[%s15879_s14 + $0x18] sm:$0xff]  }
 0x396   : > { %v2235_v59 = vmax.f32 %v2199_v51, 0.0 }
 0x397   : > { %v13574_v60 = vpack.c.bf16 %v2237_v57, %v2236_v56 }
 0x398   : > { %v13576_v61 = vpack.c.bf16 %v2235_v59, %v2234_v58  ;;  %v11035_v26 = vpop.f32.mrb[28].mxu0 }
 0x399   : > { %v2220_v62 = vadd.f32 %v11035_v26, %v10221_v30  ;;  %v2211_v63 = vpop.f32.mrb[29].mxu0 }
 0x39a   : > { %v2212_v0 = vadd.f32 %v10221_v30, %v2211_v63  ;;  %v11036_v28 = vpop.f32.mrb[30].mxu0 }
 0x39b   : > { %v2223_v6 = vadd.f32 %v11036_v28, %v10221_v30  ;;  %v2214_v55 = vpop.f32.mrb[31].mxu0  ;;  %v2240_v29 = vmax.f32 %v2220_v62, 0.0 }
 0x39c   : > { %v2215_v2 = vadd.f32 %v10221_v30, %v2214_v55  ;;  %v2238_v8 = vmax.f32 %v2212_v0, 0.0 }
 0x39d   : > { %v2241_v7 = vmax.f32 %v2223_v6, 0.0 }
 0x39e   : > { %v2239_v41 = vmax.f32 %v2215_v2, 0.0 }
 0x39f   : > { %v13578_v3 = vpack.c.bf16 %v2241_v7, %v2240_v29 }
 0x3a0   : > { %v13580_v9 = vpack.c.bf16 %v2239_v41, %v2238_v8 }
 0x401   : > { %v11045_v11 = vpop.f32.mrb[16].mxu1 }
 0x402   : > { %v2606_v19 = vadd.f32 %v11045_v11, %v13583_v16  ;;  %v2597_v20 = vpop.f32.mrb[17].mxu1 }
 0x403   : > { %v2598_v5 = vadd.f32 %v13583_v16, %v2597_v20  ;;  %v11046_v52 = vpop.f32.mrb[18].mxu1 }
 0x404   : > { %v2609_v30 = vadd.f32 %v11046_v52, %v13583_v16  ;;  %v2600_v13 = vpop.f32.mrb[19].mxu1  ;;  %v2662_v17 = vmax.f32 %v2606_v19, 0.0 }
 0x405   : > { %v2601_v31 = vadd.f32 %v13583_v16, %v2600_v13  ;;  %v2660_v15 = vmax.f32 %v2598_v5, 0.0 }
 0x406   : > { %v2663_v22 = vmax.f32 %v2609_v30, 0.0 }
 0x407   : > { %v2661_v23 = vmax.f32 %v2601_v31, 0.0 }
 0x408   : > { %v2693_v18 = vpack.c.bf16 %v2663_v22, %v2662_v17 }
 0x409   : > { %v2692_v24 = vpack.c.bf16 %v2661_v23, %v2660_v15  ;;  %v11049_v33 = vpop.f32.mrb[20].mxu1 }
 0x40a   : > { %v2622_v38 = vadd.f32 %v11049_v33, %v13583_v16  ;;  %v2613_v10 = vpop.f32.mrb[21].mxu1 }
 0x40b   : > { %v2614_v40 = vadd.f32 %v13583_v16, %v2613_v10  ;;  %v11050_v34 = vpop.f32.mrb[22].mxu1  ;;  %11067 = vmatprep.mubr.msk.bf16.mxu0 %vm1943_vm8, %v2692_v24 }
 0x40c   : > { %v2625_v4 = vadd.f32 %v11050_v34, %v13583_v16  ;;  %v2616_v25 = vpop.f32.mrb[23].mxu1  ;;  %11068 = vmatmul.mubr.msk.bf16.vlgmr.msra.gmra.mrb[32].mxu0 %vm1943_vm8, %v2693_v18  ;;  %v2666_v36 = vmax.f32 %v2622_v38, 0.0 }
 0x40d   : > { %v2617_v43 = vadd.f32 %v13583_v16, %v2616_v25  ;;  %11084 = vmatpush3.bf16.msra.mxu0 %v12218_v48  ;;  %v2664_v45 = vmax.f32 %v2614_v40, 0.0 }
 0x40e   : > { %v2667_v44 = vmax.f32 %v2625_v4, 0.0  ;;  %11085 = vmatprep.subr.bf16.mxu0 %v12219_v39 }
 0x40f   : > { %v2665_v35 = vmax.f32 %v2617_v43, 0.0 }
 0x410   : > { %v2695_v47 = vpack.c.bf16 %v2667_v44, %v2666_v36 }
 0x411   : > { %v2694_v49 = vpack.c.bf16 %v2665_v35, %v2664_v45  ;;  %v11053_v50 = vpop.f32.mrb[24].mxu1  ;;  %11086 = vmatpush3.bf16.msra.mxu0 %v12219_v39  ;;  %v12224_v35 = vld [vmem:[%s15880_s6 + $0x8] sm:$0xff]  }
 0x412   : > { %v2638_v14 = vadd.f32 %v11053_v50, %v13583_v16  ;;  %v2629_v53 = vpop.f32.mrb[25].mxu1  ;;  %11087 = vmatprep.subr.bf16.mxu0 %v12220_v42 }
 0x413   : > { %v2630_v54 = vadd.f32 %v13583_v16, %v2629_v53  ;;  %v11054_v51 = vpop.f32.mrb[26].mxu1  ;;  %11071 = vmatprep.mubr.msk.bf16.mxu0 %vm1943_vm8, %v2694_v49 }
 0x414   : > { %v2641_v48 = vadd.f32 %v11054_v51, %v13583_v16  ;;  %v2632_v56 = vpop.f32.mrb[27].mxu1  ;;  %11072 = vmatmul.mubr.msk.bf16.gmra.mrb[36].mxu0 %vm1943_vm8, %v2695_v47  ;;  %v2670_v58 = vmax.f32 %v2638_v14, 0.0 }
 0x415   : > { %v2633_v57 = vadd.f32 %v13583_v16, %v2632_v56  ;;  %11088 = vmatpush3.bf16.msra.mxu0 %v12220_v42  ;;  %v2668_v26 = vmax.f32 %v2630_v54, 0.0 }
 0x416   : > { %v2671_v59 = vmax.f32 %v2641_v48, 0.0  ;;  %11089 = vmatprep.subr.bf16.mxu0 %v12221_v27 }
 0x417   : > { %v2669_v62 = vmax.f32 %v2633_v57, 0.0 }
 0x418   : > { %v2697_v63 = vpack.c.bf16 %v2671_v59, %v2670_v58 }
 0x419   : > { %v2696_v0 = vpack.c.bf16 %v2669_v62, %v2668_v26  ;;  %v11057_v28 = vpop.f32.mrb[28].mxu1  ;;  %11090 = vmatpush3.bf16.msra.mxu0 %v12221_v27 }
 0x41a   : > { %v2654_v6 = vadd.f32 %v11057_v28, %v13583_v16  ;;  %v2645_v55 = vpop.f32.mrb[29].mxu1 }
 0x41b   : > { %v2646_v2 = vadd.f32 %v13583_v16, %v2645_v55  ;;  %v11058_v29 = vpop.f32.mrb[30].mxu1  ;;  %11075 = vmatprep.mubr.msk.bf16.mxu0 %vm1943_vm8, %v2696_v0 }
 0x41c   : > { %v2657_v7 = vadd.f32 %v11058_v29, %v13583_v16  ;;  %v2648_v8 = vpop.f32.mrb[31].mxu1  ;;  %11076 = vmatmul.mubr.msk.bf16.gmra.mrb[40].mxu0 %vm1943_vm8, %v2697_v63  ;;  %v2674_v11 = vmax.f32 %v2654_v6, 0.0  ;;  %v12225_v63 = vld [vmem:[%s15880_s6 + $0x10] sm:$0xff]  }
 0x41d   : > { %v2649_v41 = vadd.f32 %v13583_v16, %v2648_v8  ;;  %v2672_v20 = vmax.f32 %v2646_v2, 0.0 }
 0x41e   : > { %v2675_v19 = vmax.f32 %v2657_v7, 0.0 }
 0x41f   : > { %v2673_v5 = vmax.f32 %v2649_v41, 0.0 }
 0x420   : > { %v2699_v52 = vpack.c.bf16 %v2675_v19, %v2674_v11 }
 0x421   : > { %v2698_v30 = vpack.c.bf16 %v2673_v5, %v2672_v20 }
 0x423   : > { %11079 = vmatprep.mubr.msk.bf16.mxu0 %vm1943_vm8, %v2698_v30 }
 0x424   : > { %11080 = vmatmul.mubr.msk.bf16.gmra.mrb[44].mxu0 %vm1943_vm8, %v2699_v52 }
 0x425   : > { %11091 = vmatprep.mubr.msk.bf16.mxu0 %vm1943_vm8, %v13566_v32  ;;  %v12222_v32 = vld [vmem:[%s12819_s24] sm:$0xff]  }
 0x426   : > { %11107 = vmatprep.subr.bf16.mxu1 %v12222_v32 }
 0x427   : > { %11108 = vmatpush3.bf16.msra.mxu1 %v12222_v32 }
 0x42c   : > { %11092 = vmatmul.mubr.msk.bf16.vlgmr.msra.gmra.mrb[32].mxu0 %vm1943_vm8, %v13564_v21  ;;  %v12223_v21 = vld [vmem:[%s15880_s6] sm:$0xff]   ;;  %s15899_s6 = sld [smem:[#allocation23_spill]] }
 0x42d   : > { %11095 = vmatprep.mubr.msk.bf16.mxu0 %vm1943_vm8, %v13571_v37  ;;  %11125 = vmatprep.subr.bf16.mxu1 %v12223_v21  ;;  %v13631_v37 = vld [vmem:[%s12814_s19] ss:$0 sm:$0xff] }
 0x434   : > { %11096 = vmatmul.mubr.msk.bf16.gmra.mrb[36].mxu0 %vm1943_vm8, %v13569_v46 }
 0x435   : > { %11099 = vmatprep.mubr.msk.bf16.mxu0 %vm1943_vm8, %v13576_v61 }
 0x43c   : > { %11100 = vmatmul.mubr.msk.bf16.gmra.mrb[40].mxu0 %vm1943_vm8, %v13574_v60 }
 0x43d   : > { %11103 = vmatprep.mubr.msk.bf16.mxu0 %vm1943_vm8, %v13580_v9 }
 0x444   : > { %11104 = vmatmul.mubr.msk.bf16.gmra.mrb[44].mxu0 %vm1943_vm8, %v13578_v3 }
 0x4ff   : > { %v11093_v46 = vpop.f32.mrb[32].mxu0 }
 0x500   : > { %v3007_v16 = vadd.f32 %v11093_v46, %v13631_v37  ;;  %v2935_v61 = vpop.f32.mrb[33].mxu0 }
 0x501   : > { %v3005_v13 = vadd.f32 %v13631_v37, %v2935_v61  ;;  %v11094_v60 = vpop.f32.mrb[34].mxu0 }
 0x502   : > { %v3023_v31 = vmax.f32 %v3007_v16, 0.0  ;;  %v3008_v9 = vadd.f32 %v11094_v60, %v13631_v37  ;;  %v2938_v17 = vpop.f32.mrb[35].mxu0 }
 0x503   : > { %v13636_v22 = vmax.f32 %v3005_v13, 0.0  ;;  %v3006_v3 = vadd.f32 %v13631_v37, %v2938_v17 }
 0x504   : > { %v3024_v15 = vmax.f32 %v3008_v9, 0.0  ;;  %v3199_v23 = vrot.slane %v3023_v31, 7  ;;  %v3247_v18 = vrot.slane %v3023_v31, 1 }
 0x505   : > { %v3245_v24 = vrot.slane %v13636_v22, 1  ;;  %v3022_v33 = vmax.f32 %v3006_v3, 0.0  ;;  %v3197_v49 = vrot.slane %v13636_v22, 7 }
 0x506   : > { %v3038_v38 = vpack.c.bf16 %v3024_v15, %v3023_v31  ;;  %v3200_v10 = vrot.slane %v3024_v15, 7  ;;  %v3248_v39 = vrot.slane %v3024_v15, 1  ;;  %v11806_v40 = vpack.i.bf16 %v3024_v15, %v3023_v31 }
 0x507   : > { %v3198_v34 = vrot.slane %v3022_v33, 7  ;;  %v3246_v4 = vrot.slane %v3022_v33, 1  ;;  %v11097_v25 = vpop.f32.mrb[36].mxu0  ;;  %v11811_v43 = vpack.i.bf16 %v3022_v33, %v13636_v22  ;;  %v3037_v36 = vpack.c.bf16 %v3022_v33, %v13636_v22 }
 0x508   : > { %v3011_v44 = vadd.f32 %v11097_v25, %v13631_v37  ;;  %11807 = vrot.lane.b32.xlu1 %v11806_v40, %s12749_s16  ;;  %v2951_v42 = vpop.f32.mrb[37].mxu0  ;;  %v3273_v45 = vsel %vm1511_vm1, %v3247_v18, %v3248_v39  ;;  %v13649_v47 = vsel %vm1414_vm2, %v3199_v23, %v3200_v10 }
 0x509   : > { %v3009_v50 = vadd.f32 %v13631_v37, %v2951_v42  ;;  %11812 = vrot.lane.b32.xlu0 %v11811_v43, %s12749_s16  ;;  %v11098_v14 = vpop.f32.mrb[38].mxu0  ;;  %11109 = vmatprep.mubr.msk.bf16.mxu1 %vm2104_vm9, %v3037_v36  ;;  %v3274_v53 = vsel %vm1511_vm1, %v3246_v4, %v3247_v18  ;;  %v3275_v27 = vsel %vm1511_vm1, %v3245_v24, %v3246_v4 }
 0x50a   : > { %v13661_v54 = vmax.f32 %v3011_v44, 0.0  ;;  %v3012_v51 = vadd.f32 %v11098_v14, %v13631_v37  ;;  %v2954_v48 = vpop.f32.mrb[39].mxu0  ;;  %11110 = vmatmul.mubr.msk.bf16.vlgmr.msra.gmra.mrb[32].mxu1 %vm2104_vm9, %v3038_v38  ;;  %v11816_v56 = vpack.i.bf16 %v3274_v53, %v3275_v27  ;;  %v13667_v57 = vsel %vm1414_vm2, %v3198_v34, %v3199_v23 }
 0x50b   : > { %v3025_v58 = vmax.f32 %v3009_v50, 0.0  ;;  %v3010_v59 = vadd.f32 %v13631_v37, %v2954_v48  ;;  %11126 = vmatpush3.bf16.msra.mxu1 %v12223_v21  ;;  %v13674_v26 = vsel %vm1414_vm2, %v3197_v49, %v3198_v34 }
 0x50c   : > { %v13676_v62 = vmax.f32 %v3012_v51, 0.0  ;;  %11127 = vmatprep.subr.bf16.mxu1 %v12224_v35  ;;  %v3251_v0 = vrot.slane %v13661_v54, 1  ;;  %v3203_v16 = vrot.slane %v13661_v54, 7 }
 0x50d   : > { %v3201_v28 = vrot.slane %v3025_v58, 7  ;;  %v3249_v6 = vrot.slane %v3025_v58, 1  ;;  %v3026_v55 = vmax.f32 %v3010_v59, 0.0  ;;  %11817 = vrot.lane.b32.xlu0 %v11816_v56, %s15824_s22 }
 0x50e   : > { %v3204_v2 = vrot.slane %v13676_v62, 7  ;;  %v3252_v29 = vrot.slane %v13676_v62, 1  ;;  %v3040_v7 = vpack.c.bf16 %v13676_v62, %v13661_v54  ;;  %v11831_v8 = vpack.i.bf16 %v13676_v62, %v13661_v54 }
 0x50f   : > { %v3202_v41 = vrot.slane %v3026_v55, 7  ;;  %v3250_v11 = vrot.slane %v3026_v55, 1  ;;  %v11101_v19 = vpop.f32.mrb[40].mxu0  ;;  %v11821_v20 = vpack.i.bf16 %v3026_v55, %v3025_v58  ;;  %v3039_v5 = vpack.c.bf16 %v3026_v55, %v3025_v58  ;;  %11128 = vmatpush3.bf16.msra.mxu1 %v12224_v35 }
 0x510   : > { %v3015_v52 = vadd.f32 %v11101_v19, %v13631_v37  ;;  %v2967_v30 = vpop.f32.mrb[41].mxu0  ;;  %v3272_v32 = vsel %vm1511_vm1, %v3248_v39, %v3249_v6  ;;  %v3269_v21 = vsel %vm1511_vm1, %v3251_v0, %v3252_v29  ;;  %11129 = vmatprep.subr.bf16.mxu1 %v12225_v63  ;;  %v13694_v46 = vsel %vm1414_vm2, %v3200_v10, %v3201_v28 }
 0x511   : > { %v3013_v61 = vadd.f32 %v13631_v37, %v2967_v30  ;;  %11822 = vrot.lane.b32.xlu0 %v11821_v20, %s12749_s16  ;;  %v11102_v13 = vpop.f32.mrb[42].mxu0  ;;  %11113 = vmatprep.mubr.msk.bf16.mxu1 %vm2104_vm9, %v3039_v5  ;;  %v11826_v60 = vpack.i.bf16 %v3272_v32, %v3273_v45  ;;  %v3270_v31 = vsel %vm1511_vm1, %v3250_v11, %v3251_v0 }
 0x512   : > { %v13702_v9 = vmax.f32 %v3015_v52, 0.0  ;;  %v3016_v17 = vadd.f32 %v11102_v13, %v13631_v37  ;;  %v2970_v3 = vpop.f32.mrb[43].mxu0  ;;  %11114 = vmatmul.mubr.msk.bf16.gmra.mrb[36].mxu1 %vm2104_vm9, %v3040_v7  ;;  %v3271_v15 = vsel %vm1511_vm1, %v3249_v6, %v3250_v11  ;;  %v13710_v23 = vsel %vm1414_vm2, %v3201_v28, %v3202_v41 }
 0x513   : > { %v3029_v18 = vmax.f32 %v3013_v61, 0.0  ;;  %11827 = vrot.lane.b32.xlu1 %v11826_v60, %s15824_s22  ;;  %v3014_v33 = vadd.f32 %v13631_v37, %v2970_v3  ;;  %v11836_v38 = vpack.i.bf16 %v3270_v31, %v3271_v15  ;;  %11130 = vmatpush3.bf16.msra.mxu1 %v12225_v63  ;;  %v13716_v10 = vsel %vm1414_vm2, %v3203_v16, %v3204_v2 }
 0x514   : > { %v13718_v39 = vmax.f32 %v3016_v17, 0.0  ;;  %v13722_v40 = vsel %vm1414_vm2, %v3202_v41, %v3203_v16  ;;  %v3255_v34 = vrot.slane %v13702_v9, 1  ;;  %v3207_v59 = vrot.slane %v13702_v9, 7 }
 0x515   : > { %v3205_v4 = vrot.slane %v3029_v18, 7  ;;  %v3253_v25 = vrot.slane %v3029_v18, 1  ;;  %v3030_v43 = vmax.f32 %v3014_v33, 0.0  ;;  %11837 = vrot.lane.b32.xlu0 %v11836_v38, %s15824_s22 }
 0x516   : > { %v3208_v36 = vrot.slane %v13718_v39, 7  ;;  %v3256_v44 = vrot.slane %v13718_v39, 1  ;;  %v3042_v42 = vpack.c.bf16 %v13718_v39, %v13702_v9  ;;  %v11851_v45 = vpack.i.bf16 %v13718_v39, %v13702_v9 }
 0x517   : > { %v3206_v35 = vrot.slane %v3030_v43, 7  ;;  %v3254_v50 = vrot.slane %v3030_v43, 1  ;;  %11832 = vrot.lane.b32.xlu1 %v11831_v8, %s12749_s16  ;;  %v11105_v14 = vpop.f32.mrb[44].mxu0  ;;  %v11841_v53 = vpack.i.bf16 %v3030_v43, %v3029_v18  ;;  %v3041_v27 = vpack.c.bf16 %v3030_v43, %v3029_v18 }
 0x518   : > { %v3019_v54 = vadd.f32 %v11105_v14, %v13631_v37  ;;  %v2983_v51 = vpop.f32.mrb[45].mxu0  ;;  %v3268_v48 = vsel %vm1511_vm1, %v3252_v29, %v3253_v25  ;;  %v3265_v56 = vsel %vm1511_vm1, %v3255_v34, %v3256_v44  ;;  %v13740_v58 = vsel %vm1414_vm2, %v3204_v2, %v3205_v4  ;;  %v12227_v14 = vld [vmem:[%s12839_s20 + $0x28] sm:$0xff]  }
 0x519   : > { %v3017_v62 = vadd.f32 %v13631_v37, %v2983_v51  ;;  %11842 = vrot.lane.b32.xlu0 %v11841_v53, %s12749_s16  ;;  %v11106_v63 = vpop.f32.mrb[46].mxu0  ;;  %11117 = vmatprep.mubr.msk.bf16.mxu1 %vm2104_vm9, %v3041_v27  ;;  %v11846_v0 = vpack.i.bf16 %v3268_v48, %v3269_v21  ;;  %v3266_v28 = vsel %vm1511_vm1, %v3254_v50, %v3255_v34 }
 0x51a   : > { %v3035_v6 = vmax.f32 %v3019_v54, 0.0  ;;  %v3020_v55 = vadd.f32 %v11106_v63, %v13631_v37  ;;  %v2986_v29 = vpop.f32.mrb[47].mxu0  ;;  %11118 = vmatmul.mubr.msk.bf16.gmra.mrb[40].mxu1 %vm2104_vm9, %v3042_v42  ;;  %v3267_v2 = vsel %vm1511_vm1, %v3253_v25, %v3254_v50  ;;  %v13754_v7 = vsel %vm1414_vm2, %v3205_v4, %v3206_v35  ;;  %v12226_v50 = vld [vmem:[%s12839_s20 + $0x20] sm:$0xff]  }
 0x51b   : > { %v3033_v8 = vmax.f32 %v3017_v62, 0.0  ;;  %11847 = vrot.lane.b32.xlu1 %v11846_v0, %s15824_s22  ;;  %v3018_v41 = vadd.f32 %v13631_v37, %v2986_v29  ;;  %v11856_v11 = vpack.i.bf16 %v3266_v28, %v3267_v2  ;;  %v13762_v19 = vsel %vm1414_vm2, %v3207_v59, %v3208_v36  ;;  %11147 = vmatprep.subr.bf16.mxu0 %v12226_v50  ;;  %v12228_v62 = vld [vmem:[%s12839_s20 + $0x30] sm:$0xff]  }
 0x51c   : > { %v3211_v20 = vrot.slane %v3035_v6, 7  ;;  %v3036_v5 = vmax.f32 %v3020_v55, 0.0  ;;  %v13766_v52 = vsel %vm1414_vm2, %v3206_v35, %v3207_v59  ;;  %v3259_v30 = vrot.slane %v3035_v6, 1  ;;  %11148 = vmatpush3.bf16.msra.mxu0 %v12226_v50 }
 0x51d   : > { %v3209_v32 = vrot.slane %v3033_v8, 7  ;;  %v3257_v21 = vrot.slane %v3033_v8, 1  ;;  %v3034_v16 = vmax.f32 %v3018_v41, 0.0  ;;  %11857 = vrot.lane.b32.xlu0 %v11856_v11, %s15824_s22  ;;  %11149 = vmatprep.subr.bf16.mxu0 %v12227_v14 }
 0x51e   : > { %v3212_v37 = vrot.slane %v3036_v5, 7  ;;  %v3260_v61 = vrot.slane %v3036_v5, 1  ;;  %v3044_v13 = vpack.c.bf16 %v3036_v5, %v3035_v6  ;;  %v11871_v60 = vpack.i.bf16 %v3036_v5, %v3035_v6 }
 0x51f   : > { %v3210_v31 = vrot.slane %v3034_v16, 7  ;;  %v3258_v9 = vrot.slane %v3034_v16, 1  ;;  %11852 = vrot.lane.b32.xlu1 %v11851_v45, %s12749_s16  ;;  %v11861_v17 = vpack.i.bf16 %v3034_v16, %v3033_v8  ;;  %v3043_v3 = vpack.c.bf16 %v3034_v16, %v3033_v8 }
 0x520   : > { %v3264_v15 = vsel %vm1511_vm1, %v3256_v44, %v3257_v21  ;;  %v3261_v18 = vsel %vm1511_vm1, %v3259_v30, %v3260_v61  ;;  %v3276_v33 = vsel %vm1511_vm1, %v3260_v61, %v3245_v24  ;;  %v3228_v38 = vsel %vm1414_vm2, %v3212_v37, %v3197_v49  ;;  %11150 = vmatpush3.bf16.msra.mxu0 %v12227_v14 }
 0x521   : > { %11862 = vrot.lane.b32.xlu0 %v11861_v17, %s12749_s16  ;;  %11121 = vmatprep.mubr.msk.bf16.mxu1 %vm2104_vm9, %v3043_v3  ;;  %v11866_v34 = vpack.i.bf16 %v3264_v15, %v3265_v56  ;;  %v3262_v4 = vsel %vm1511_vm1, %v3258_v9, %v3259_v30  ;;  %v3263_v25 = vsel %vm1511_vm1, %v3257_v21, %v3258_v9  ;;  %v3292_v24 = vsel %vm1494_vm3, 0.0, %v3276_v33 }
 0x522   : > { %11122 = vmatmul.mubr.msk.bf16.gmra.mrb[44].mxu1 %vm2104_vm9, %v3044_v13  ;;  %v11876_v22 = vpack.i.bf16 %v3262_v4, %v3263_v25  ;;  %v11881_v49 = vpack.i.bf16 %v3292_v24, %v3261_v18  ;;  %v13795_v43 = vsel %vm1414_vm2, %v3208_v36, %v3209_v32  ;;  %v13800_v44 = vsel %vm1414_vm2, %v3209_v32, %v3210_v31 }
 0x523   : > { %11867 = vrot.lane.b32.xlu1 %v11866_v34, %s15824_s22  ;;  %v13804_v42 = vsel %vm1414_vm2, %v3211_v20, %v3212_v37  ;;  %v13808_v45 = vsel %vm1414_vm2, %v3210_v31, %v3211_v20  ;;  %v3229_v54 = vsel %vm1382_vm4, 0.0, %v3228_v38  ;;  %11151 = vmatprep.subr.bf16.mxu0 %v12228_v62 }
 0x524   : > { %11152 = vmatpush3.bf16.msra.mxu0 %v12228_v62 }
 0x525   : > { %11877 = vrot.lane.b32.xlu0 %v11876_v22, %s15824_s22 }
 0x527   : > { %11872 = vrot.lane.b32.xlu1 %v11871_v60, %s12749_s16  ;;  %s15890_s16 = sld [smem:[#allocation15_spill]] }
 0x52b   : > { %11882 = vrot.lane.b32.xlu1 %v11881_v49, %s15824_s22 }
 0x57a   : > { %v11808_v27 = vpop.permute.xlu1 %11807 }
 0x57b   : > { %v11813_v39 = vpop.permute.xlu0 %11812  ;;  %v11810_v28 = vunpack.i.h.bf16 %v11808_v27  ;;  %v11809_v6 = vunpack.i.l.bf16 %v11808_v27 }
 0x57c   : > { %v11815_v36 = vunpack.i.h.bf16 %v11813_v39  ;;  %v11814_v35 = vunpack.i.l.bf16 %v11813_v39 }
 0x57d   : > { %v3424_v5 = vsel %vm2104_vm9, %v13649_v47, %v11810_v28 }
 0x57e   : > { %v3421_v56 = vsel %vm2104_vm9, %v3229_v54, %v11814_v35  ;;  %v3422_v59 = vsel %vm2104_vm9, %v13674_v26, %v11815_v36  ;;  %v3423_v26 = vsel %vm2104_vm9, %v13667_v57, %v11809_v6 }
 0x57f   : > { %v11818_v53 = vpop.permute.xlu0 %11817 }
 0x580   : > { %v11820_v51 = vunpack.i.h.bf16 %v11818_v53  ;;  %v11819_v48 = vunpack.i.l.bf16 %v11818_v53 }
 0x582   : > { %v3437_v63 = vsel %vm2482_vm10, %v3421_v56, %v11819_v48  ;;  %v3438_v0 = vsel %vm2482_vm10, %v3422_v59, %v11820_v51 }
 0x583   : > { %v3453_v55 = vpack.c.bf16 %v3438_v0, %v3437_v63  ;;  %v11823_v29 = vpop.permute.xlu0 %11822 }
 0x584   : > { %v11825_v2 = vunpack.i.h.bf16 %v11823_v29  ;;  %v11824_v8 = vunpack.i.l.bf16 %v11823_v29 }
 0x585   : > { %v11828_v41 = vpop.permute.xlu1 %11827  ;;  %11131 = vmatprep.mubr.msk.bf16.mxu1 %vm2538_vm11, %v3453_v55 }
 0x586   : > { %v11830_v11 = vunpack.i.h.bf16 %v11828_v41  ;;  %v11829_v20 = vunpack.i.l.bf16 %v11828_v41  ;;  %v3425_v61 = vsel %vm2104_vm9, %v13694_v46, %v11824_v8  ;;  %v3426_v13 = vsel %vm2104_vm9, %v13710_v23, %v11825_v2 }
 0x587   : > { %v11838_v30 = vpop.permute.xlu0 %11837 }
 0x588   : > { %v3440_v32 = vsel %vm2482_vm10, %v3424_v5, %v11830_v11  ;;  %v3439_v21 = vsel %vm2482_vm10, %v3423_v26, %v11829_v20  ;;  %v11840_v16 = vunpack.i.h.bf16 %v11838_v30  ;;  %v11839_v37 = vunpack.i.l.bf16 %v11838_v30 }
 0x589   : > { %v3454_v60 = vpack.c.bf16 %v3440_v32, %v3439_v21  ;;  %v11833_v31 = vpop.permute.xlu1 %11832 }
 0x58a   : > { %v3441_v57 = vsel %vm2482_vm10, %v3425_v61, %v11839_v37  ;;  %v3442_v47 = vsel %vm2482_vm10, %v3426_v13, %v11840_v16  ;;  %v11835_v17 = vunpack.i.h.bf16 %v11833_v31  ;;  %v11834_v3 = vunpack.i.l.bf16 %v11833_v31  ;;  %v10268_v13 = vld [vmem:[%s15888_s23] ss:$0 sm:$0xff]  ;;  %s15891_s23 = sld [smem:[#allocation17_spill]] }
 0x58b   : > { %v3455_v9 = vpack.c.bf16 %v3442_v47, %v3441_v57  ;;  %11132 = vmatmul.mubr.msk.bf16.vlgmr.msra.gmra.mrb[48].mxu1 %vm2538_vm11, %v3454_v60  ;;  %v11843_v15 = vpop.permute.xlu0 %11842 }
 0x58c   : > { %v11845_v18 = vunpack.i.h.bf16 %v11843_v15  ;;  %v11844_v33 = vunpack.i.l.bf16 %v11843_v15  ;;  %v3427_v23 = vsel %vm2104_vm9, %v13722_v40, %v11834_v3  ;;  %v3428_v4 = vsel %vm2104_vm9, %v13716_v10, %v11835_v17 }
 0x58d   : > { %v11848_v38 = vpop.permute.xlu1 %11847  ;;  %11135 = vmatprep.mubr.msk.bf16.mxu1 %vm2538_vm11, %v3455_v9 }
 0x58e   : > { %v11850_v46 = vunpack.i.h.bf16 %v11848_v38  ;;  %v11849_v34 = vunpack.i.l.bf16 %v11848_v38  ;;  %v3429_v36 = vsel %vm2104_vm9, %v13740_v58, %v11844_v33  ;;  %v3430_v35 = vsel %vm2104_vm9, %v13754_v7, %v11845_v18 }
 0x58f   : > { %v11858_v25 = vpop.permute.xlu0 %11857 }
 0x590   : > { %v3444_v24 = vsel %vm2482_vm10, %v3428_v4, %v11850_v46  ;;  %v3443_v22 = vsel %vm2482_vm10, %v3427_v23, %v11849_v34  ;;  %v11860_v49 = vunpack.i.h.bf16 %v11858_v25  ;;  %v11859_v39 = vunpack.i.l.bf16 %v11858_v25  ;;  %v12229_v23 = vld [vmem:[%s12839_s20 + $0x38] sm:$0xff]  }
 0x591   : > { %v3456_v50 = vpack.c.bf16 %v3444_v24, %v3443_v22  ;;  %v11853_v14 = vpop.permute.xlu1 %11852  ;;  %11153 = vmatprep.subr.bf16.mxu0 %v12229_v23 }
 0x592   : > { %v3445_v40 = vsel %vm2482_vm10, %v3429_v36, %v11859_v39  ;;  %v3446_v53 = vsel %vm2482_vm10, %v3430_v35, %v11860_v49  ;;  %v11855_v27 = vunpack.i.h.bf16 %v11853_v14  ;;  %v11854_v54 = vunpack.i.l.bf16 %v11853_v14  ;;  %11154 = vmatpush3.bf16.msra.mxu0 %v12229_v23 }
 0x593   : > { %v3457_v10 = vpack.c.bf16 %v3446_v53, %v3445_v40  ;;  %11136 = vmatmul.mubr.msk.bf16.gmra.mrb[52].mxu1 %vm2538_vm11, %v3456_v50  ;;  %v11863_v51 = vpop.permute.xlu0 %11862 }
 0x594   : > { %v11865_v48 = vunpack.i.h.bf16 %v11863_v51  ;;  %v11864_v56 = vunpack.i.l.bf16 %v11863_v51  ;;  %v3431_v7 = vsel %vm2104_vm9, %v13766_v52, %v11854_v54  ;;  %v3432_v63 = vsel %vm2104_vm9, %v13762_v19, %v11855_v27  ;;  %v12230_v54 = vld [vmem:[%s12839_s20] sm:$0xff]  }
 0x595   : > { %v11868_v59 = vpop.permute.xlu1 %11867  ;;  %11139 = vmatprep.mubr.msk.bf16.mxu1 %vm2538_vm11, %v3457_v10  ;;  %11171 = vmatprep.subr.bf16.mxu0 %v12230_v54 }
 0x596   : > { %v11870_v58 = vunpack.i.h.bf16 %v11868_v59  ;;  %v11869_v62 = vunpack.i.l.bf16 %v11868_v59  ;;  %v3433_v2 = vsel %vm2104_vm9, %v13795_v43, %v11864_v56  ;;  %v3434_v8 = vsel %vm2104_vm9, %v13800_v44, %v11865_v48 }
 0x597   : > { %v11878_v0 = vpop.permute.xlu0 %11877 }
 0x598   : > { %v3448_v28 = vsel %vm2482_vm10, %v3432_v63, %v11870_v58  ;;  %v3447_v6 = vsel %vm2482_vm10, %v3431_v7, %v11869_v62  ;;  %v11880_v55 = vunpack.i.h.bf16 %v11878_v0  ;;  %v11879_v29 = vunpack.i.l.bf16 %v11878_v0 }
 0x599   : > { %v3458_v41 = vpack.c.bf16 %v3448_v28, %v3447_v6  ;;  %v11873_v11 = vpop.permute.xlu1 %11872 }
 0x59a   : > { %v3449_v52 = vsel %vm2482_vm10, %v3433_v2, %v11879_v29  ;;  %v3450_v19 = vsel %vm2482_vm10, %v3434_v8, %v11880_v55  ;;  %v11875_v26 = vunpack.i.h.bf16 %v11873_v11  ;;  %v11874_v5 = vunpack.i.l.bf16 %v11873_v11 }
 0x59b   : > { %v3459_v20 = vpack.c.bf16 %v3450_v19, %v3449_v52  ;;  %11140 = vmatmul.mubr.msk.bf16.gmra.mrb[56].mxu1 %vm2538_vm11, %v3458_v41 }
 0x59c   : > { %v3435_v44 = vsel %vm2104_vm9, %v13808_v45, %v11874_v5  ;;  %v3436_v21 = vsel %vm2104_vm9, %v13804_v42, %v11875_v26 }
 0x59d   : > { %v11883_v30 = vpop.permute.xlu1 %11882  ;;  %11143 = vmatprep.mubr.msk.bf16.mxu1 %vm2538_vm11, %v3459_v20 }
 0x59e   : > { %v11885_v32 = vunpack.i.h.bf16 %v11883_v30  ;;  %v11884_v43 = vunpack.i.l.bf16 %v11883_v30 }
 0x5a0   : > { %v3451_v16 = vsel %vm2482_vm10, %v3435_v44, %v11884_v43  ;;  %v3452_v37 = vsel %vm2482_vm10, %v3436_v21, %v11885_v32 }
 0x5a1   : > { %v3460_v61 = vpack.c.bf16 %v3452_v37, %v3451_v16  ;;  %v13893_v16 = vld [vmem:[%s15889_s2] ss:$0 sm:$0xff]  ;;  %s15892_s2 = sld [smem:[#allocation14_spill]] }
 0x5a3   : > { %11144 = vmatmul.mubr.msk.bf16.gmra.mrb[60].mxu1 %vm2538_vm11, %v3460_v61 }
 0x5dd   : > { %v11111_v60 = vpop.f32.mrb[32].mxu1 }
 0x5de   : > { %v3127_v31 = vadd.f32 %v11111_v60, %v10268_v13  ;;  %v3118_v57 = vpop.f32.mrb[33].mxu1 }
 0x5df   : > { %v3119_v47 = vadd.f32 %v10268_v13, %v3118_v57  ;;  %v11112_v9 = vpop.f32.mrb[34].mxu1 }
 0x5e0   : > { %v3130_v17 = vadd.f32 %v11112_v9, %v10268_v13  ;;  %v3121_v3 = vpop.f32.mrb[35].mxu1  ;;  %v3183_v15 = vmax.f32 %v3127_v31, 0.0 }
 0x5e1   : > { %v3122_v45 = vadd.f32 %v10268_v13, %v3121_v3  ;;  %v3181_v42 = vmax.f32 %v3119_v47, 0.0 }
 0x5e2   : > { %v3184_v18 = vmax.f32 %v3130_v17, 0.0 }
 0x5e3   : > { %v3182_v33 = vmax.f32 %v3122_v45, 0.0 }
 0x5e4   : > { %v13874_v38 = vpack.c.bf16 %v3184_v18, %v3183_v15 }
 0x5e5   : > { %v13876_v46 = vpack.c.bf16 %v3182_v33, %v3181_v42  ;;  %v11115_v34 = vpop.f32.mrb[36].mxu1 }
 0x5e6   : > { %v3143_v4 = vadd.f32 %v11115_v34, %v10268_v13  ;;  %v3134_v25 = vpop.f32.mrb[37].mxu1 }
 0x5e7   : > { %v3135_v24 = vadd.f32 %v10268_v13, %v3134_v25  ;;  %v11116_v22 = vpop.f32.mrb[38].mxu1 }
 0x5e8   : > { %v3146_v49 = vadd.f32 %v11116_v22, %v10268_v13  ;;  %v3137_v39 = vpop.f32.mrb[39].mxu1  ;;  %v3187_v35 = vmax.f32 %v3143_v4, 0.0  ;;  %v12231_v4 = vld [vmem:[%s12839_s20 + $0x8] sm:$0xff]  }
 0x5e9   : > { %v3138_v36 = vadd.f32 %v10268_v13, %v3137_v39  ;;  %v3185_v14 = vmax.f32 %v3135_v24, 0.0 }
 0x5ea   : > { %v3188_v50 = vmax.f32 %v3146_v49, 0.0 }
 0x5eb   : > { %v3186_v40 = vmax.f32 %v3138_v36, 0.0 }
 0x5ec   : > { %v13879_v53 = vpack.c.bf16 %v3188_v50, %v3187_v35  ;;  %v12232_v50 = vld [vmem:[%s12839_s20 + $0x10] sm:$0xff]  }
 0x5ed   : > { %v13881_v10 = vpack.c.bf16 %v3186_v40, %v3185_v14  ;;  %v11119_v27 = vpop.f32.mrb[40].mxu1 }
 0x5ee   : > { %v3159_v51 = vadd.f32 %v11119_v27, %v10268_v13  ;;  %v3150_v48 = vpop.f32.mrb[41].mxu1 }
 0x5ef   : > { %v3151_v56 = vadd.f32 %v10268_v13, %v3150_v48  ;;  %v11120_v59 = vpop.f32.mrb[42].mxu1 }
 0x5f0   : > { %v3162_v58 = vadd.f32 %v11120_v59, %v10268_v13  ;;  %v3153_v62 = vpop.f32.mrb[43].mxu1  ;;  %v3191_v63 = vmax.f32 %v3159_v51, 0.0 }
 0x5f1   : > { %v3154_v7 = vadd.f32 %v10268_v13, %v3153_v62  ;;  %v3189_v28 = vmax.f32 %v3151_v56, 0.0 }
 0x5f2   : > { %v3192_v0 = vmax.f32 %v3162_v58, 0.0  ;;  %v12233_v58 = vld [vmem:[%s12839_s20 + $0x18] sm:$0xff]  }
 0x5f3   : > { %v3190_v6 = vmax.f32 %v3154_v7, 0.0 }
 0x5f4   : > { %v13884_v55 = vpack.c.bf16 %v3192_v0, %v3191_v63 }
 0x5f5   : > { %v13886_v29 = vpack.c.bf16 %v3190_v6, %v3189_v28  ;;  %v11123_v2 = vpop.f32.mrb[44].mxu1 }
 0x5f6   : > { %v3175_v8 = vadd.f32 %v11123_v2, %v10268_v13  ;;  %v3166_v41 = vpop.f32.mrb[45].mxu1 }
 0x5f7   : > { %v3167_v11 = vadd.f32 %v10268_v13, %v3166_v41  ;;  %v11124_v52 = vpop.f32.mrb[46].mxu1 }
 0x5f8   : > { %v3178_v19 = vadd.f32 %v11124_v52, %v10268_v13  ;;  %v3169_v20 = vpop.f32.mrb[47].mxu1  ;;  %v3195_v5 = vmax.f32 %v3175_v8, 0.0 }
 0x5f9   : > { %v3170_v26 = vadd.f32 %v10268_v13, %v3169_v20  ;;  %v3193_v32 = vmax.f32 %v3167_v11, 0.0 }
 0x5fa   : > { %v3196_v30 = vmax.f32 %v3178_v19, 0.0 }
 0x5fb   : > { %v3194_v43 = vmax.f32 %v3170_v26, 0.0 }
 0x5fc   : > { %v13888_v44 = vpack.c.bf16 %v3196_v30, %v3195_v5 }
 0x5fd   : > { %v13890_v21 = vpack.c.bf16 %v3194_v43, %v3193_v32 }
 0x65e   : > { %v11133_v37 = vpop.f32.mrb[48].mxu1 }
 0x65f   : > { %v3559_v61 = vadd.f32 %v11133_v37, %v13893_v16  ;;  %v3550_v60 = vpop.f32.mrb[49].mxu1 }
 0x660   : > { %v3551_v31 = vadd.f32 %v13893_v16, %v3550_v60  ;;  %v11134_v57 = vpop.f32.mrb[50].mxu1 }
 0x661   : > { %v3562_v13 = vadd.f32 %v11134_v57, %v13893_v16  ;;  %v3553_v47 = vpop.f32.mrb[51].mxu1  ;;  %v3615_v17 = vmax.f32 %v3559_v61, 0.0 }
 0x662   : > { %v3554_v9 = vadd.f32 %v13893_v16, %v3553_v47  ;;  %v3613_v45 = vmax.f32 %v3551_v31, 0.0 }
 0x663   : > { %v3616_v3 = vmax.f32 %v3562_v13, 0.0 }
 0x664   : > { %v3614_v15 = vmax.f32 %v3554_v9, 0.0 }
 0x665   : > { %v3646_v18 = vpack.c.bf16 %v3616_v3, %v3615_v17 }
 0x666   : > { %v3645_v42 = vpack.c.bf16 %v3614_v15, %v3613_v45  ;;  %v11137_v33 = vpop.f32.mrb[52].mxu1 }
 0x667   : > { %v3575_v34 = vadd.f32 %v11137_v33, %v13893_v16  ;;  %v3566_v23 = vpop.f32.mrb[53].mxu1 }
 0x668   : > { %v3567_v25 = vadd.f32 %v13893_v16, %v3566_v23  ;;  %v11138_v24 = vpop.f32.mrb[54].mxu1  ;;  %11155 = vmatprep.mubr.msk.bf16.mxu0 %vm1943_vm8, %v3645_v42 }
 0x669   : > { %v3578_v22 = vadd.f32 %v11138_v24, %v13893_v16  ;;  %v3569_v49 = vpop.f32.mrb[55].mxu1  ;;  %11156 = vmatmul.mubr.msk.bf16.vlgmr.msra.gmra.mrb[48].mxu0 %vm1943_vm8, %v3646_v18  ;;  %v3619_v36 = vmax.f32 %v3575_v34, 0.0 }
 0x66a   : > { %v3570_v39 = vadd.f32 %v13893_v16, %v3569_v49  ;;  %11172 = vmatpush3.bf16.msra.mxu0 %v12230_v54  ;;  %v3617_v14 = vmax.f32 %v3567_v25, 0.0 }
 0x66b   : > { %v3620_v35 = vmax.f32 %v3578_v22, 0.0  ;;  %11173 = vmatprep.subr.bf16.mxu0 %v12231_v4 }
 0x66c   : > { %v3618_v40 = vmax.f32 %v3570_v39, 0.0 }
 0x66d   : > { %v3648_v27 = vpack.c.bf16 %v3620_v35, %v3619_v36 }
 0x66e   : > { %v3647_v51 = vpack.c.bf16 %v3618_v40, %v3617_v14  ;;  %v11141_v48 = vpop.f32.mrb[56].mxu1  ;;  %11174 = vmatpush3.bf16.msra.mxu0 %v12231_v4 }
 0x66f   : > { %v3591_v56 = vadd.f32 %v11141_v48, %v13893_v16  ;;  %v3582_v59 = vpop.f32.mrb[57].mxu1  ;;  %11175 = vmatprep.subr.bf16.mxu0 %v12232_v50 }
 0x670   : > { %v3583_v62 = vadd.f32 %v13893_v16, %v3582_v59  ;;  %v11142_v7 = vpop.f32.mrb[58].mxu1  ;;  %11159 = vmatprep.mubr.msk.bf16.mxu0 %vm1943_vm8, %v3647_v51 }
 0x671   : > { %v3594_v54 = vadd.f32 %v11142_v7, %v13893_v16  ;;  %v3585_v63 = vpop.f32.mrb[59].mxu1  ;;  %11160 = vmatmul.mubr.msk.bf16.gmra.mrb[52].mxu0 %vm1943_vm8, %v3648_v27  ;;  %v3623_v28 = vmax.f32 %v3591_v56, 0.0  ;;  %v12237_v27 = vld [vmem:[%s15891_s23 + $0x8] sm:$0xff]  }
 0x672   : > { %v3586_v0 = vadd.f32 %v13893_v16, %v3585_v63  ;;  %11176 = vmatpush3.bf16.msra.mxu0 %v12232_v50  ;;  %v3621_v2 = vmax.f32 %v3583_v62, 0.0 }
 0x673   : > { %v3624_v6 = vmax.f32 %v3594_v54, 0.0  ;;  %11177 = vmatprep.subr.bf16.mxu0 %v12233_v58 }
 0x674   : > { %v3622_v8 = vmax.f32 %v3586_v0, 0.0 }
 0x675   : > { %v3650_v41 = vpack.c.bf16 %v3624_v6, %v3623_v28 }
 0x676   : > { %v3649_v11 = vpack.c.bf16 %v3622_v8, %v3621_v2  ;;  %v11145_v52 = vpop.f32.mrb[60].mxu1  ;;  %11178 = vmatpush3.bf16.msra.mxu0 %v12233_v58 }
 0x677   : > { %v3607_v19 = vadd.f32 %v11145_v52, %v13893_v16  ;;  %v3598_v20 = vpop.f32.mrb[61].mxu1 }
 0x678   : > { %v3599_v26 = vadd.f32 %v13893_v16, %v3598_v20  ;;  %v11146_v5 = vpop.f32.mrb[62].mxu1  ;;  %11163 = vmatprep.mubr.msk.bf16.mxu0 %vm1943_vm8, %v3649_v11  ;;  %v12238_v11 = vld [vmem:[%s15891_s23 + $0x10] sm:$0xff]  }
 0x679   : > { %v3610_v30 = vadd.f32 %v11146_v5, %v13893_v16  ;;  %v3601_v32 = vpop.f32.mrb[63].mxu1  ;;  %11164 = vmatmul.mubr.msk.bf16.gmra.mrb[56].mxu0 %vm1943_vm8, %v3650_v41  ;;  %v3627_v37 = vmax.f32 %v3607_v19, 0.0 }
 0x67a   : > { %v3602_v43 = vadd.f32 %v13893_v16, %v3601_v32  ;;  %v3625_v60 = vmax.f32 %v3599_v26, 0.0 }
 0x67b   : > { %v3628_v61 = vmax.f32 %v3610_v30, 0.0 }
 0x67c   : > { %v3626_v31 = vmax.f32 %v3602_v43, 0.0 }
 0x67d   : > { %v3652_v57 = vpack.c.bf16 %v3628_v61, %v3627_v37 }
 0x67e   : > { %v3651_v13 = vpack.c.bf16 %v3626_v31, %v3625_v60 }
 0x680   : > { %11167 = vmatprep.mubr.msk.bf16.mxu0 %vm1943_vm8, %v3651_v13 }
 0x681   : > { %11168 = vmatmul.mubr.msk.bf16.gmra.mrb[60].mxu0 %vm1943_vm8, %v3652_v57 }
 0x682   : > { %11179 = vmatprep.mubr.msk.bf16.mxu0 %vm1943_vm8, %v13876_v46  ;;  %v12234_v46 = vld [vmem:[%s15890_s16] sm:$0xff]  }
 0x683   : > { %11195 = vmatprep.subr.bf16.mxu1 %v12234_v46 }
 0x684   : > { %11196 = vmatpush3.bf16.msra.mxu1 %v12234_v46 }
 0x689   : > { %11180 = vmatmul.mubr.msk.bf16.vlgmr.msra.gmra.mrb[48].mxu0 %vm1943_vm8, %v13874_v38  ;;  %v12235_v38 = vld [vmem:[%s15890_s16 + $0x8] sm:$0xff]  }
 0x68a   : > { %11183 = vmatprep.mubr.msk.bf16.mxu0 %vm1943_vm8, %v13881_v10  ;;  %11197 = vmatprep.subr.bf16.mxu1 %v12235_v38  ;;  %v12236_v10 = vld [vmem:[%s15891_s23] sm:$0xff]  }
 0x68b   : > { %11198 = vmatpush3.bf16.msra.mxu1 %v12235_v38 }
 0x68c   : > { %11215 = vmatprep.subr.bf16.mxu1 %v12236_v10 }
 0x691   : > { %11184 = vmatmul.mubr.msk.bf16.gmra.mrb[52].mxu0 %vm1943_vm8, %v13879_v53  ;;  %v13942_v53 = vld [vmem:[%s15892_s2] ss:$0 sm:$0xff]  ;;  %s15822_s2 = smov 64  }
 0x692   : > { %11187 = vmatprep.mubr.msk.bf16.mxu0 %vm1943_vm8, %v13886_v29 }
 0x699   : > { %11188 = vmatmul.mubr.msk.bf16.gmra.mrb[56].mxu0 %vm1943_vm8, %v13884_v55 }
 0x69a   : > { %11191 = vmatprep.mubr.msk.bf16.mxu0 %vm1943_vm8, %v13890_v21 }
 0x6a1   : > { %11192 = vmatmul.mubr.msk.bf16.gmra.mrb[60].mxu0 %vm1943_vm8, %v13888_v44 }
 0x75c   : > { %v11181_v29 = vpop.f32.mrb[48].mxu0 }
 0x75d   : > { %v3960_v16 = vadd.f32 %v11181_v29, %v13942_v53  ;;  %v3888_v55 = vpop.f32.mrb[49].mxu0  ;;  %v12239_v29 = vld [vmem:[%s15891_s23 + $0x18] sm:$0xff]  }
 0x75e   : > { %v3958_v47 = vadd.f32 %v13942_v53, %v3888_v55  ;;  %v11182_v21 = vpop.f32.mrb[50].mxu0 }
 0x75f   : > { %v3976_v9 = vmax.f32 %v3960_v16, 0.0  ;;  %v3961_v44 = vadd.f32 %v11182_v21, %v13942_v53  ;;  %v3891_v17 = vpop.f32.mrb[51].mxu0 }
 0x760   : > { %v13947_v3 = vmax.f32 %v3958_v47, 0.0  ;;  %v3959_v45 = vadd.f32 %v13942_v53, %v3891_v17 }
 0x761   : > { %v13950_v15 = vmax.f32 %v3961_v44, 0.0  ;;  %v4160_v18 = vrot.slane %v3976_v9, 7  ;;  %v4208_v42 = vrot.slane %v3976_v9, 1 }
 0x762   : > { %v4206_v33 = vrot.slane %v13947_v3, 1  ;;  %v3975_v34 = vmax.f32 %v3959_v45, 0.0  ;;  %v4158_v48 = vrot.slane %v13947_v3, 7 }
 0x763   : > { %v3991_v23 = vpack.c.bf16 %v13950_v15, %v3976_v9  ;;  %v4161_v4 = vrot.slane %v13950_v15, 7  ;;  %v4209_v25 = vrot.slane %v13950_v15, 1  ;;  %v11886_v24 = vpack.i.bf16 %v13950_v15, %v3976_v9 }
 0x764   : > { %v4159_v22 = vrot.slane %v3975_v34, 7  ;;  %v4207_v49 = vrot.slane %v3975_v34, 1  ;;  %v11185_v39 = vpop.f32.mrb[52].mxu0  ;;  %v11891_v36 = vpack.i.bf16 %v3975_v34, %v13947_v3  ;;  %v3990_v35 = vpack.c.bf16 %v3975_v34, %v13947_v3 }
 0x765   : > { %v3964_v50 = vadd.f32 %v11185_v39, %v13942_v53  ;;  %11887 = vrot.lane.b32.xlu1 %v11886_v24, %s15824_s22  ;;  %v3904_v14 = vpop.f32.mrb[53].mxu0  ;;  %v4234_v40 = vsel %vm1511_vm1, %v4208_v42, %v4209_v25  ;;  %v13966_v51 = vsel %vm1414_vm2, %v4160_v18, %v4161_v4 }
 0x766   : > { %v3962_v56 = vadd.f32 %v13942_v53, %v3904_v14  ;;  %11892 = vrot.lane.b32.xlu0 %v11891_v36, %s15824_s22  ;;  %v11186_v59 = vpop.f32.mrb[54].mxu0  ;;  %11199 = vmatprep.mubr.msk.bf16.mxu1 %vm2482_vm10, %v3990_v35  ;;  %v4235_v58 = vsel %vm1511_vm1, %v4207_v49, %v4208_v42  ;;  %v4236_v62 = vsel %vm1511_vm1, %v4206_v33, %v4207_v49 }
 0x767   : > { %v13978_v7 = vmax.f32 %v3964_v50, 0.0  ;;  %v3965_v54 = vadd.f32 %v11186_v59, %v13942_v53  ;;  %v3907_v63 = vpop.f32.mrb[55].mxu0  ;;  %11200 = vmatmul.mubr.msk.bf16.vlgmr.msra.gmra.mrb[64].mxu1 %vm2482_vm10, %v3991_v23  ;;  %v11896_v0 = vpack.i.bf16 %v4235_v58, %v4236_v62  ;;  %v13984_v28 = vsel %vm1414_vm2, %v4159_v22, %v4160_v18 }
 0x768   : > { %v3978_v6 = vmax.f32 %v3962_v56, 0.0  ;;  %v3963_v2 = vadd.f32 %v13942_v53, %v3907_v63  ;;  %11216 = vmatpush3.bf16.msra.mxu1 %v12236_v10  ;;  %v13991_v8 = vsel %vm1414_vm2, %v4158_v48, %v4159_v22  ;;  %v12240_v22 = vld [vmem:[%s15891_s23 + $0x20] sm:$0xff]  }
 0x769   : > { %v13993_v41 = vmax.f32 %v3965_v54, 0.0  ;;  %11217 = vmatprep.subr.bf16.mxu1 %v12237_v27  ;;  %v4212_v52 = vrot.slane %v13978_v7, 1  ;;  %v4164_v55 = vrot.slane %v13978_v7, 7 }
 0x76a   : > { %v4162_v19 = vrot.slane %v3978_v6, 7  ;;  %v4210_v20 = vrot.slane %v3978_v6, 1  ;;  %v3979_v26 = vmax.f32 %v3963_v2, 0.0  ;;  %11897 = vrot.lane.b32.xlu0 %v11896_v0, %s15822_s2 }
 0x76b   : > { %v4165_v5 = vrot.slane %v13993_v41, 7  ;;  %v4213_v30 = vrot.slane %v13993_v41, 1  ;;  %v3993_v32 = vpack.c.bf16 %v13993_v41, %v13978_v7  ;;  %v11911_v43 = vpack.i.bf16 %v13993_v41, %v13978_v7 }
 0x76c   : > { %v4163_v37 = vrot.slane %v3979_v26, 7  ;;  %v4211_v61 = vrot.slane %v3979_v26, 1  ;;  %v11189_v60 = vpop.f32.mrb[56].mxu0  ;;  %v11901_v31 = vpack.i.bf16 %v3979_v26, %v3978_v6  ;;  %v3992_v57 = vpack.c.bf16 %v3979_v26, %v3978_v6  ;;  %11218 = vmatpush3.bf16.msra.mxu1 %v12237_v27 }
 0x76d   : > { %v3968_v13 = vadd.f32 %v11189_v60, %v13942_v53  ;;  %v3920_v46 = vpop.f32.mrb[57].mxu0  ;;  %v4233_v38 = vsel %vm1511_vm1, %v4209_v25, %v4210_v20  ;;  %v14009_v10 = vsel %vm1511_vm1, %v4212_v52, %v4213_v30  ;;  %11219 = vmatprep.subr.bf16.mxu1 %v12238_v11  ;;  %v14014_v16 = vsel %vm1414_vm2, %v4161_v4, %v4162_v19 }
 0x76e   : > { %v3966_v47 = vadd.f32 %v13942_v53, %v3920_v46  ;;  %11902 = vrot.lane.b32.xlu0 %v11901_v31, %s15824_s22  ;;  %v11190_v21 = vpop.f32.mrb[58].mxu0  ;;  %11203 = vmatprep.mubr.msk.bf16.mxu1 %vm2482_vm10, %v3992_v57  ;;  %v11906_v9 = vpack.i.bf16 %v4233_v38, %v4234_v40  ;;  %v4231_v44 = vsel %vm1511_vm1, %v4211_v61, %v4212_v52 }
 0x76f   : > { %v14022_v17 = vmax.f32 %v3968_v13, 0.0  ;;  %v3969_v45 = vadd.f32 %v11190_v21, %v13942_v53  ;;  %v3923_v15 = vpop.f32.mrb[59].mxu0  ;;  %11204 = vmatmul.mubr.msk.bf16.gmra.mrb[68].mxu1 %vm2482_vm10, %v3993_v32  ;;  %v4232_v18 = vsel %vm1511_vm1, %v4210_v20, %v4211_v61  ;;  %v14030_v42 = vsel %vm1414_vm2, %v4162_v19, %v4163_v37 }
 0x770   : > { %v3982_v34 = vmax.f32 %v3966_v47, 0.0  ;;  %11907 = vrot.lane.b32.xlu1 %v11906_v9, %s15822_s2  ;;  %v3967_v23 = vadd.f32 %v13942_v53, %v3923_v15  ;;  %v11916_v4 = vpack.i.bf16 %v4231_v44, %v4232_v18  ;;  %11220 = vmatpush3.bf16.msra.mxu1 %v12238_v11  ;;  %v14038_v25 = vsel %vm1414_vm2, %v4164_v55, %v4165_v5  ;;  %v12241_v11 = vld [vmem:[%s15891_s23 + $0x28] sm:$0xff]  }
 0x771   : > { %v14040_v24 = vmax.f32 %v3969_v45, 0.0  ;;  %11221 = vmatprep.subr.bf16.mxu1 %v12239_v29  ;;  %v14045_v49 = vsel %vm1414_vm2, %v4163_v37, %v4164_v55  ;;  %v4216_v39 = vrot.slane %v14022_v17, 1  ;;  %v4168_v19 = vrot.slane %v14022_v17, 7 }
 0x772   : > { %v4166_v36 = vrot.slane %v3982_v34, 7  ;;  %v4214_v35 = vrot.slane %v3982_v34, 1  ;;  %v3983_v50 = vmax.f32 %v3967_v23, 0.0  ;;  %11917 = vrot.lane.b32.xlu0 %v11916_v4, %s15822_s2 }
 0x773   : > { %v4169_v14 = vrot.slane %v14040_v24, 7  ;;  %v4217_v40 = vrot.slane %v14040_v24, 1  ;;  %v3995_v27 = vpack.c.bf16 %v14040_v24, %v14022_v17  ;;  %v11931_v56 = vpack.i.bf16 %v14040_v24, %v14022_v17 }
 0x774   : > { %v4167_v59 = vrot.slane %v3983_v50, 7  ;;  %v4215_v58 = vrot.slane %v3983_v50, 1  ;;  %11912 = vrot.lane.b32.xlu1 %v11911_v43, %s15824_s22  ;;  %v11193_v62 = vpop.f32.mrb[60].mxu0  ;;  %v11921_v7 = vpack.i.bf16 %v3983_v50, %v3982_v34  ;;  %v3994_v54 = vpack.c.bf16 %v3983_v50, %v3982_v34  ;;  %11222 = vmatpush3.bf16.msra.mxu1 %v12239_v29 }
 0x775   : > { %v3972_v63 = vadd.f32 %v11193_v62, %v13942_v53  ;;  %v3936_v0 = vpop.f32.mrb[61].mxu0  ;;  %v4229_v6 = vsel %vm1511_vm1, %v4213_v30, %v4214_v35  ;;  %v4226_v2 = vsel %vm1511_vm1, %v4216_v39, %v4217_v40  ;;  %11223 = vmatprep.subr.bf16.mxu1 %v12240_v22  ;;  %v14066_v52 = vsel %vm1414_vm2, %v4165_v5, %v4166_v36 }
 0x776   : > { %v3970_v20 = vadd.f32 %v13942_v53, %v3936_v0  ;;  %11922 = vrot.lane.b32.xlu0 %v11921_v7, %s15824_s22  ;;  %v11194_v26 = vpop.f32.mrb[62].mxu0  ;;  %11207 = vmatprep.mubr.msk.bf16.mxu1 %vm2482_vm10, %v3994_v54  ;;  %v11926_v30 = vpack.i.bf16 %v4229_v6, %v14009_v10  ;;  %v4227_v32 = vsel %vm1511_vm1, %v4215_v58, %v4216_v39 }
 0x777   : > { %v3988_v43 = vmax.f32 %v3972_v63, 0.0  ;;  %v3973_v41 = vadd.f32 %v11194_v26, %v13942_v53  ;;  %v3939_v37 = vpop.f32.mrb[63].mxu0  ;;  %11208 = vmatmul.mubr.msk.bf16.gmra.mrb[72].mxu1 %vm2482_vm10, %v3995_v27  ;;  %v4228_v5 = vsel %vm1511_vm1, %v4214_v35, %v4215_v58  ;;  %v14081_v61 = vsel %vm1414_vm2, %v4166_v36, %v4167_v59 }
 0x778   : > { %v3986_v60 = vmax.f32 %v3970_v20, 0.0  ;;  %11927 = vrot.lane.b32.xlu1 %v11926_v30, %s15822_s2  ;;  %v3971_v31 = vadd.f32 %v13942_v53, %v3939_v37  ;;  %v11936_v57 = vpack.i.bf16 %v4227_v32, %v4228_v5  ;;  %11224 = vmatpush3.bf16.msra.mxu1 %v12240_v22  ;;  %v14089_v13 = vsel %vm1414_vm2, %v4168_v19, %v4169_v14 }
 0x779   : > { %v4172_v46 = vrot.slane %v3988_v43, 7  ;;  %v3989_v38 = vmax.f32 %v3973_v41, 0.0  ;;  %11225 = vmatprep.subr.bf16.mxu1 %v12241_v11  ;;  %v14093_v10 = vsel %vm1414_vm2, %v4167_v59, %v4168_v19  ;;  %v4220_v29 = vrot.slane %v3988_v43, 1 }
 0x77a   : > { %v4170_v55 = vrot.slane %v3986_v60, 7  ;;  %v4218_v47 = vrot.slane %v3986_v60, 1  ;;  %v3987_v21 = vmax.f32 %v3971_v31, 0.0  ;;  %11937 = vrot.lane.b32.xlu0 %v11936_v57, %s15822_s2  ;;  %s15893_s2 = sld [smem:[#allocation19_spill]] }
 0x77b   : > { %v4173_v53 = vrot.slane %v3989_v38, 7  ;;  %v4221_v9 = vrot.slane %v3989_v38, 1  ;;  %v3997_v44 = vpack.c.bf16 %v3989_v38, %v3988_v43  ;;  %v11951_v17 = vpack.i.bf16 %v3989_v38, %v3988_v43 }
 0x77c   : > { %v4171_v45 = vrot.slane %v3987_v21, 7  ;;  %v4219_v15 = vrot.slane %v3987_v21, 1  ;;  %11932 = vrot.lane.b32.xlu1 %v11931_v56, %s15824_s22  ;;  %v11941_v18 = vpack.i.bf16 %v3987_v21, %v3986_v60  ;;  %v3996_v34 = vpack.c.bf16 %v3987_v21, %v3986_v60  ;;  %11226 = vmatpush3.bf16.msra.mxu1 %v12241_v11 }
 0x77d   : > { %v4225_v23 = vsel %vm1511_vm1, %v4217_v40, %v4218_v47  ;;  %v4222_v4 = vsel %vm1511_vm1, %v4220_v29, %v4221_v9  ;;  %v4237_v22 = vsel %vm1511_vm1, %v4221_v9, %v4206_v33  ;;  %v4189_v39 = vsel %vm1414_vm2, %v4173_v53, %v4158_v48 }
 0x77e   : > { %11942 = vrot.lane.b32.xlu0 %v11941_v18, %s15824_s22  ;;  %11211 = vmatprep.mubr.msk.bf16.mxu1 %vm2482_vm10, %v3996_v34  ;;  %v11946_v36 = vpack.i.bf16 %v4225_v23, %v4226_v2  ;;  %v4223_v35 = vsel %vm1511_vm1, %v4219_v15, %v4220_v29  ;;  %v4224_v50 = vsel %vm1511_vm1, %v4218_v47, %v4219_v15  ;;  %v4253_v33 = vsel %vm1494_vm3, 0.0, %v4237_v22  ;;  %s15894_s22 = smov 64  }
 0x77f   : > { %11212 = vmatmul.mubr.msk.bf16.gmra.mrb[76].mxu1 %vm2482_vm10, %v3997_v44  ;;  %v11956_v3 = vpack.i.bf16 %v4223_v35, %v4224_v50  ;;  %v11961_v48 = vpack.i.bf16 %v4253_v33, %v4222_v4  ;;  %v14122_v40 = vsel %vm1414_vm2, %v4169_v14, %v4170_v55  ;;  %v14127_v27 = vsel %vm1414_vm2, %v4170_v55, %v4171_v45 }
 0x780   : > { %11947 = vrot.lane.b32.xlu1 %v11946_v36, %s15894_s22  ;;  %v14131_v56 = vsel %vm1414_vm2, %v4172_v46, %v4173_v53  ;;  %v14135_v59 = vsel %vm1414_vm2, %v4171_v45, %v4172_v46  ;;  %v12242_v62 = vld [vmem:[%s15893_s2 + $0x40] sm:$0xff]   ;;  %v12243_v7 = vld [vmem:[%s15893_s2 + $0x48] sm:$0xff]   ;;  %v4190_v0 = vsel %vm1382_vm4, 0.0, %v4189_v39  ;;  %v12244_v20 = vld [vmem:[%s15893_s2 + $0x50] sm:$0xff]  }
 0x781   : > { %11243 = vmatprep.subr.bf16.mxu0 %v12242_v62 }
 0x782   : > { %11957 = vrot.lane.b32.xlu0 %v11956_v3, %s15894_s22  ;;  %11244 = vmatpush3.bf16.msra.mxu0 %v12242_v62 }
 0x783   : > { %11245 = vmatprep.subr.bf16.mxu0 %v12243_v7 }
 0x784   : > { %11952 = vrot.lane.b32.xlu1 %v11951_v17, %s15895_s3 }
 0x786   : > { %11246 = vmatpush3.bf16.msra.mxu0 %v12243_v7 }
 0x787   : > { %11247 = vmatprep.subr.bf16.mxu0 %v12244_v20 }
 0x788   : > { %11962 = vrot.lane.b32.xlu1 %v11961_v48, %s15894_s22 }
 0x78a   : > { %11248 = vmatpush3.bf16.msra.mxu0 %v12244_v20 }
 0x7d7   : > { %v11888_v63 = vpop.permute.xlu1 %11887 }
 0x7d8   : > { %v11893_v24 = vpop.permute.xlu0 %11892  ;;  %v11890_v32 = vunpack.i.h.bf16 %v11888_v63  ;;  %v11889_v43 = vunpack.i.l.bf16 %v11888_v63 }
 0x7d9   : > { %v11895_v14 = vunpack.i.h.bf16 %v11893_v24  ;;  %v11894_v58 = vunpack.i.l.bf16 %v11893_v24 }
 0x7da   : > { %v4384_v38 = vsel %vm2482_vm10, %v13984_v28, %v11889_v43  ;;  %v4385_v29 = vsel %vm2482_vm10, %v13966_v51, %v11890_v32  ;;  %v12246_v28 = vld [vmem:[%s15893_s2 + $0x60] sm:$0xff]  }
 0x7db   : > { %v4382_v11 = vsel %vm2482_vm10, %v4190_v0, %v11894_v58  ;;  %v4383_v19 = vsel %vm2482_vm10, %v13991_v8, %v11895_v14  ;;  %v12245_v8 = vld [vmem:[%s15893_s2 + $0x58] sm:$0xff]  }
 0x7dc   : > { %v11898_v54 = vpop.permute.xlu0 %11897  ;;  %11249 = vmatprep.subr.bf16.mxu0 %v12245_v8 }
 0x7dd   : > { %v11900_v6 = vunpack.i.h.bf16 %v11898_v54  ;;  %v11899_v2 = vunpack.i.l.bf16 %v11898_v54  ;;  %11250 = vmatpush3.bf16.msra.mxu0 %v12245_v8 }
 0x7de   : > { %11251 = vmatprep.subr.bf16.mxu0 %v12246_v28 }
 0x7df   : > { %v4398_v26 = vsel %vm1943_vm8, %v4382_v11, %v11899_v2  ;;  %v4399_v30 = vsel %vm1943_vm8, %v4383_v19, %v11900_v6 }
 0x7e0   : > { %v4414_v41 = vpack.c.bf16 %v4399_v30, %v4398_v26  ;;  %v11903_v37 = vpop.permute.xlu0 %11902 }
 0x7e1   : > { %v11905_v5 = vunpack.i.h.bf16 %v11903_v37  ;;  %v11904_v60 = vunpack.i.l.bf16 %v11903_v37  ;;  %11252 = vmatpush3.bf16.msra.mxu0 %v12246_v28 }
 0x7e2   : > { %v11908_v31 = vpop.permute.xlu1 %11907  ;;  %11227 = vmatprep.mubr.msk.bf16.mxu1 %vm4477_vm12, %v4414_v41 }
 0x7e3   : > { %v11910_v57 = vunpack.i.h.bf16 %v11908_v31  ;;  %v11909_v46 = vunpack.i.l.bf16 %v11908_v31  ;;  %v4386_v44 = vsel %vm2482_vm10, %v14014_v16, %v11904_v60  ;;  %v4387_v17 = vsel %vm2482_vm10, %v14030_v42, %v11905_v5  ;;  %v12247_v42 = vld [vmem:[%s15893_s2 + $0x68] sm:$0xff]  }
 0x7e4   : > { %v11918_v55 = vpop.permute.xlu0 %11917  ;;  %11253 = vmatprep.subr.bf16.mxu0 %v12247_v42 }
 0x7e5   : > { %v4401_v47 = vsel %vm1943_vm8, %v4385_v29, %v11910_v57  ;;  %v4400_v21 = vsel %vm1943_vm8, %v4384_v38, %v11909_v46  ;;  %v11920_v53 = vunpack.i.h.bf16 %v11918_v55  ;;  %v11919_v9 = vunpack.i.l.bf16 %v11918_v55  ;;  %11254 = vmatpush3.bf16.msra.mxu0 %v12247_v42 }
 0x7e6   : > { %v4415_v45 = vpack.c.bf16 %v4401_v47, %v4400_v21  ;;  %v11913_v15 = vpop.permute.xlu1 %11912 }
 0x7e7   : > { %v4402_v51 = vsel %vm1943_vm8, %v4386_v44, %v11919_v9  ;;  %v4403_v18 = vsel %vm1943_vm8, %v4387_v17, %v11920_v53  ;;  %v11915_v23 = vunpack.i.h.bf16 %v11913_v15  ;;  %v11914_v4 = vunpack.i.l.bf16 %v11913_v15  ;;  %v10315_v15 = vld [vmem:[%s15896_s5] ss:$0 sm:$0xff]  ;;  %s15897_s5 = sld [smem:[#allocation18_spill]] }
 0x7e8   : > { %v4416_v34 = vpack.c.bf16 %v4403_v18, %v4402_v51  ;;  %11228 = vmatmul.mubr.msk.bf16.vlgmr.msra.gmra.mrb[80].mxu1 %vm4477_vm12, %v4415_v45  ;;  %v11923_v22 = vpop.permute.xlu0 %11922 }
 0x7e9   : > { %v11925_v16 = vunpack.i.h.bf16 %v11923_v22  ;;  %v11924_v39 = vunpack.i.l.bf16 %v11923_v22  ;;  %v4388_v33 = vsel %vm2482_vm10, %v14045_v49, %v11914_v4  ;;  %v4389_v3 = vsel %vm2482_vm10, %v14038_v25, %v11915_v23 }
 0x7ea   : > { %v11928_v36 = vpop.permute.xlu1 %11927  ;;  %11231 = vmatprep.mubr.msk.bf16.mxu1 %vm4477_vm12, %v4416_v34 }
 0x7eb   : > { %v11930_v35 = vunpack.i.h.bf16 %v11928_v36  ;;  %v11929_v50 = vunpack.i.l.bf16 %v11928_v36  ;;  %v4390_v7 = vsel %vm2482_vm10, %v14066_v52, %v11924_v39  ;;  %v4391_v54 = vsel %vm2482_vm10, %v14081_v61, %v11925_v16  ;;  %v12248_v16 = vld [vmem:[%s15893_s2 + $0x70] sm:$0xff]  }
 0x7ec   : > { %v11938_v48 = vpop.permute.xlu0 %11937  ;;  %11255 = vmatprep.subr.bf16.mxu0 %v12248_v16 }
 0x7ed   : > { %v4405_v24 = vsel %vm1943_vm8, %v4389_v3, %v11930_v35  ;;  %v4404_v14 = vsel %vm1943_vm8, %v4388_v33, %v11929_v50  ;;  %v11940_v58 = vunpack.i.h.bf16 %v11938_v48  ;;  %v11939_v62 = vunpack.i.l.bf16 %v11938_v48  ;;  %11256 = vmatpush3.bf16.msra.mxu0 %v12248_v16  ;;  %v12249_v3 = vld [vmem:[%s15893_s2 + $0x78] sm:$0xff]  }
 0x7ee   : > { %v4417_v63 = vpack.c.bf16 %v4405_v24, %v4404_v14  ;;  %v11933_v0 = vpop.permute.xlu1 %11932  ;;  %11257 = vmatprep.subr.bf16.mxu0 %v12249_v3 }
 0x7ef   : > { %v4406_v49 = vsel %vm1943_vm8, %v4390_v7, %v11939_v62  ;;  %v4407_v25 = vsel %vm1943_vm8, %v4391_v54, %v11940_v58  ;;  %v11935_v2 = vunpack.i.h.bf16 %v11933_v0  ;;  %v11934_v11 = vunpack.i.l.bf16 %v11933_v0 }
 0x7f0   : > { %v4418_v6 = vpack.c.bf16 %v4407_v25, %v4406_v49  ;;  %11232 = vmatmul.mubr.msk.bf16.gmra.mrb[84].mxu1 %vm4477_vm12, %v4417_v63  ;;  %v11943_v19 = vpop.permute.xlu0 %11942  ;;  %v12250_v63 = vld [vmem:[%s15893_s2] sm:$0xff]  }
 0x7f1   : > { %v11945_v20 = vunpack.i.h.bf16 %v11943_v19  ;;  %v11944_v26 = vunpack.i.l.bf16 %v11943_v19  ;;  %v4392_v32 = vsel %vm2482_vm10, %v14093_v10, %v11934_v11  ;;  %v4393_v43 = vsel %vm2482_vm10, %v14089_v13, %v11935_v2  ;;  %11258 = vmatpush3.bf16.msra.mxu0 %v12249_v3 }
 0x7f2   : > { %v11948_v52 = vpop.permute.xlu1 %11947  ;;  %11235 = vmatprep.mubr.msk.bf16.mxu1 %vm4477_vm12, %v4418_v6  ;;  %11275 = vmatprep.subr.bf16.mxu0 %v12250_v63 }
 0x7f3   : > { %v11950_v61 = vunpack.i.h.bf16 %v11948_v52  ;;  %v11949_v30 = vunpack.i.l.bf16 %v11948_v52  ;;  %v4394_v8 = vsel %vm2482_vm10, %v14122_v40, %v11944_v26  ;;  %v4395_v57 = vsel %vm2482_vm10, %v14127_v27, %v11945_v20 }
 0x7f4   : > { %v11958_v41 = vpop.permute.xlu0 %11957 }
 0x7f5   : > { %v4409_v37 = vsel %vm1943_vm8, %v4393_v43, %v11950_v61  ;;  %v4408_v5 = vsel %vm1943_vm8, %v4392_v32, %v11949_v30  ;;  %v11960_v60 = vunpack.i.h.bf16 %v11958_v41  ;;  %v11959_v31 = vunpack.i.l.bf16 %v11958_v41 }
 0x7f6   : > { %v4419_v46 = vpack.c.bf16 %v4409_v37, %v4408_v5  ;;  %v11953_v38 = vpop.permute.xlu1 %11952 }
 0x7f7   : > { %v4410_v10 = vsel %vm1943_vm8, %v4394_v8, %v11959_v31  ;;  %v4411_v13 = vsel %vm1943_vm8, %v4395_v57, %v11960_v60  ;;  %v11955_v55 = vunpack.i.h.bf16 %v11953_v38  ;;  %v11954_v47 = vunpack.i.l.bf16 %v11953_v38 }
 0x7f8   : > { %v4420_v29 = vpack.c.bf16 %v4411_v13, %v4410_v10  ;;  %11236 = vmatmul.mubr.msk.bf16.gmra.mrb[88].mxu1 %vm4477_vm12, %v4419_v46 }
 0x7f9   : > { %v4396_v27 = vsel %vm2482_vm10, %v14135_v59, %v11954_v47  ;;  %v4397_v9 = vsel %vm2482_vm10, %v14131_v56, %v11955_v55 }
 0x7fa   : > { %v11963_v21 = vpop.permute.xlu1 %11962  ;;  %11239 = vmatprep.mubr.msk.bf16.mxu1 %vm4477_vm12, %v4420_v29 }
 0x7fb   : > { %v11965_v53 = vunpack.i.h.bf16 %v11963_v21  ;;  %v11964_v40 = vunpack.i.l.bf16 %v11963_v21 }
 0x7fd   : > { %v4412_v44 = vsel %vm1943_vm8, %v4396_v27, %v11964_v40  ;;  %v4413_v17 = vsel %vm1943_vm8, %v4397_v9, %v11965_v53 }
 0x7fe   : > { %v4421_v45 = vpack.c.bf16 %v4413_v17, %v4412_v44  ;;  %v14224_v17 = vld [vmem:[%s15897_s5] ss:$0 sm:$0xff]  ;;  %s15898_s5 = sld [smem:[#allocation21_spill]] }
 0x800   : > { %11240 = vmatmul.mubr.msk.bf16.gmra.mrb[92].mxu1 %vm4477_vm12, %v4421_v45 }
 0x83a   : > { %v11201_v28 = vpop.f32.mrb[64].mxu1 }
 0x83b   : > { %v4088_v51 = vadd.f32 %v11201_v28, %v10315_v15  ;;  %v4079_v18 = vpop.f32.mrb[65].mxu1 }
 0x83c   : > { %v4080_v34 = vadd.f32 %v10315_v15, %v4079_v18  ;;  %v11202_v23 = vpop.f32.mrb[66].mxu1 }
 0x83d   : > { %v4091_v4 = vadd.f32 %v11202_v23, %v10315_v15  ;;  %v4082_v22 = vpop.f32.mrb[67].mxu1  ;;  %v4144_v39 = vmax.f32 %v4088_v51, 0.0 }
 0x83e   : > { %v4083_v59 = vadd.f32 %v10315_v15, %v4082_v22  ;;  %v4142_v36 = vmax.f32 %v4080_v34, 0.0 }
 0x83f   : > { %v4145_v56 = vmax.f32 %v4091_v4, 0.0 }
 0x840   : > { %v4143_v42 = vmax.f32 %v4083_v59, 0.0 }
 0x841   : > { %v14205_v35 = vpack.c.bf16 %v4145_v56, %v4144_v39 }
 0x842   : > { %v14207_v50 = vpack.c.bf16 %v4143_v42, %v4142_v36  ;;  %v11205_v33 = vpop.f32.mrb[68].mxu1 }
 0x843   : > { %v4104_v48 = vadd.f32 %v11205_v33, %v10315_v15  ;;  %v4095_v24 = vpop.f32.mrb[69].mxu1 }
 0x844   : > { %v4096_v14 = vadd.f32 %v10315_v15, %v4095_v24  ;;  %v11206_v58 = vpop.f32.mrb[70].mxu1 }
 0x845   : > { %v4107_v62 = vadd.f32 %v11206_v58, %v10315_v15  ;;  %v4098_v7 = vpop.f32.mrb[71].mxu1  ;;  %v4148_v0 = vmax.f32 %v4104_v48, 0.0  ;;  %v12251_v48 = vld [vmem:[%s15893_s2 + $0x8] sm:$0xff]  }
 0x846   : > { %v4099_v54 = vadd.f32 %v10315_v15, %v4098_v7  ;;  %v4146_v25 = vmax.f32 %v4096_v14, 0.0 }
 0x847   : > { %v4149_v49 = vmax.f32 %v4107_v62, 0.0 }
 0x848   : > { %v4147_v6 = vmax.f32 %v4099_v54, 0.0 }
 0x849   : > { %v14211_v2 = vpack.c.bf16 %v4149_v49, %v4148_v0  ;;  %v12252_v49 = vld [vmem:[%s15893_s2 + $0x10] sm:$0xff]  }
 0x84a   : > { %v14213_v11 = vpack.c.bf16 %v4147_v6, %v4146_v25  ;;  %v11209_v19 = vpop.f32.mrb[72].mxu1 }
 0x84b   : > { %v4120_v20 = vadd.f32 %v11209_v19, %v10315_v15  ;;  %v4111_v26 = vpop.f32.mrb[73].mxu1 }
 0x84c   : > { %v4112_v52 = vadd.f32 %v10315_v15, %v4111_v26  ;;  %v11210_v61 = vpop.f32.mrb[74].mxu1 }
 0x84d   : > { %v4123_v30 = vadd.f32 %v11210_v61, %v10315_v15  ;;  %v4114_v32 = vpop.f32.mrb[75].mxu1  ;;  %v4152_v41 = vmax.f32 %v4120_v20, 0.0 }
 0x84e   : > { %v4115_v43 = vadd.f32 %v10315_v15, %v4114_v32  ;;  %v4150_v5 = vmax.f32 %v4112_v52, 0.0 }
 0x84f   : > { %v4153_v37 = vmax.f32 %v4123_v30, 0.0  ;;  %v12253_v30 = vld [vmem:[%s15893_s2 + $0x18] sm:$0xff]  }
 0x850   : > { %v4151_v60 = vmax.f32 %v4115_v43, 0.0 }
 0x851   : > { %v14215_v31 = vpack.c.bf16 %v4153_v37, %v4152_v41 }
 0x852   : > { %v14217_v8 = vpack.c.bf16 %v4151_v60, %v4150_v5  ;;  %v11213_v57 = vpop.f32.mrb[76].mxu1 }
 0x853   : > { %v4136_v46 = vadd.f32 %v11213_v57, %v10315_v15  ;;  %v4127_v38 = vpop.f32.mrb[77].mxu1  ;;  %v12254_v57 = vld [vmem:[%s15893_s2 + $0x20] sm:$0xff]  }
 0x854   : > { %v4128_v10 = vadd.f32 %v10315_v15, %v4127_v38  ;;  %v11214_v13 = vpop.f32.mrb[78].mxu1 }
 0x855   : > { %v4139_v29 = vadd.f32 %v11214_v13, %v10315_v15  ;;  %v4130_v55 = vpop.f32.mrb[79].mxu1  ;;  %v4156_v21 = vmax.f32 %v4136_v46, 0.0 }
 0x856   : > { %v4131_v47 = vadd.f32 %v10315_v15, %v4130_v55  ;;  %v4154_v40 = vmax.f32 %v4128_v10, 0.0 }
 0x857   : > { %v4157_v53 = vmax.f32 %v4139_v29, 0.0 }
 0x858   : > { %v4155_v27 = vmax.f32 %v4131_v47, 0.0 }
 0x859   : > { %v14219_v9 = vpack.c.bf16 %v4157_v53, %v4156_v21  ;;  %v12255_v21 = vld [vmem:[%s15893_s2 + $0x28] sm:$0xff]  }
 0x85a   : > { %v14221_v44 = vpack.c.bf16 %v4155_v27, %v4154_v40 }
 0x8bb   : > { %v11229_v45 = vpop.f32.mrb[80].mxu1 }
 0x8bc   : > { %v4545_v28 = vadd.f32 %v11229_v45, %v14224_v17  ;;  %v4536_v51 = vpop.f32.mrb[81].mxu1 }
 0x8bd   : > { %v4537_v18 = vadd.f32 %v14224_v17, %v4536_v51  ;;  %v11230_v34 = vpop.f32.mrb[82].mxu1 }
 0x8be   : > { %v4548_v15 = vadd.f32 %v11230_v34, %v14224_v17  ;;  %v4539_v23 = vpop.f32.mrb[83].mxu1  ;;  %v4601_v22 = vmax.f32 %v4545_v28, 0.0  ;;  %v12256_v34 = vld [vmem:[%s15893_s2 + $0x30] sm:$0xff]  }
 0x8bf   : > { %v4540_v4 = vadd.f32 %v14224_v17, %v4539_v23  ;;  %v4599_v16 = vmax.f32 %v4537_v18, 0.0 }
 0x8c0   : > { %v4602_v59 = vmax.f32 %v4548_v15, 0.0 }
 0x8c1   : > { %v4600_v39 = vmax.f32 %v4540_v4, 0.0 }
 0x8c2   : > { %v4640_v56 = vpack.c.bf16 %v4602_v59, %v4601_v22  ;;  %v12257_v59 = vld [vmem:[%s15893_s2 + $0x38] sm:$0xff]   ;;  %s15906_s2 = sld [smem:[#allocation26_spill]] }
 0x8c3   : > { %v4639_v36 = vpack.c.bf16 %v4600_v39, %v4599_v16  ;;  %v11233_v42 = vpop.f32.mrb[84].mxu1  ;;  %v12260_v16 = vld [vmem:[%s15899_s6] sm:$0xff]  }
 0x8c4   : > { %v4561_v33 = vadd.f32 %v11233_v42, %v14224_v17  ;;  %v4552_v3 = vpop.f32.mrb[85].mxu1 }
 0x8c5   : > { %v4553_v24 = vadd.f32 %v14224_v17, %v4552_v3  ;;  %v11234_v14 = vpop.f32.mrb[86].mxu1  ;;  %11259 = vmatprep.mubr.bf16.mxu0 %v4639_v36 }
 0x8c6   : > { %v4564_v58 = vadd.f32 %v11234_v14, %v14224_v17  ;;  %v4555_v62 = vpop.f32.mrb[87].mxu1  ;;  %11260 = vmatmul.mubr.bf16.vlgmr.msra.gmra.mrb[64].mxu0 %v4640_v56  ;;  %v4605_v54 = vmax.f32 %v4561_v33, 0.0 }
 0x8c7   : > { %v4556_v7 = vadd.f32 %v14224_v17, %v4555_v62  ;;  %11276 = vmatpush3.bf16.msra.mxu0 %v12250_v63  ;;  %v4603_v25 = vmax.f32 %v4553_v24, 0.0 }
 0x8c8   : > { %v4606_v0 = vmax.f32 %v4564_v58, 0.0  ;;  %11277 = vmatprep.subr.bf16.mxu0 %v12251_v48 }
 0x8c9   : > { %v4604_v6 = vmax.f32 %v4556_v7, 0.0 }
 0x8ca   : > { %v4642_v19 = vpack.c.bf16 %v4606_v0, %v4605_v54 }
 0x8cb   : > { %v4641_v20 = vpack.c.bf16 %v4604_v6, %v4603_v25  ;;  %11278 = vmatpush3.bf16.msra.mxu0 %v12251_v48  ;;  %v11237_v26 = vpop.f32.mrb[88].mxu1 }
 0x8cc   : > { %v4577_v52 = vadd.f32 %v11237_v26, %v14224_v17  ;;  %v4568_v61 = vpop.f32.mrb[89].mxu1  ;;  %11279 = vmatprep.subr.bf16.mxu0 %v12252_v49 }
 0x8cd   : > { %v4569_v32 = vadd.f32 %v14224_v17, %v4568_v61  ;;  %v11238_v43 = vpop.f32.mrb[90].mxu1  ;;  %11263 = vmatprep.mubr.bf16.mxu0 %v4641_v20  ;;  %v12261_v61 = vld [vmem:[%s15899_s6 + $0x8] sm:$0xff]  }
 0x8ce   : > { %v4580_v63 = vadd.f32 %v11238_v43, %v14224_v17  ;;  %v4571_v41 = vpop.f32.mrb[91].mxu1  ;;  %11264 = vmatmul.mubr.bf16.gmra.mrb[68].mxu0 %v4642_v19  ;;  %v4609_v5 = vmax.f32 %v4577_v52, 0.0 }
 0x8cf   : > { %v4572_v37 = vadd.f32 %v14224_v17, %v4571_v41  ;;  %11280 = vmatpush3.bf16.msra.mxu0 %v12252_v49  ;;  %v4607_v46 = vmax.f32 %v4569_v32, 0.0 }
 0x8d0   : > { %v4610_v60 = vmax.f32 %v4580_v63, 0.0  ;;  %11281 = vmatprep.subr.bf16.mxu0 %v12253_v30 }
 0x8d1   : > { %v4608_v38 = vmax.f32 %v4572_v37, 0.0 }
 0x8d2   : > { %v4644_v10 = vpack.c.bf16 %v4610_v60, %v4609_v5 }
 0x8d3   : > { %v4643_v13 = vpack.c.bf16 %v4608_v38, %v4607_v46  ;;  %11282 = vmatpush3.bf16.msra.mxu0 %v12253_v30  ;;  %v11241_v29 = vpop.f32.mrb[92].mxu1 }
 0x8d4   : > { %v4593_v55 = vadd.f32 %v11241_v29, %v14224_v17  ;;  %v4584_v47 = vpop.f32.mrb[93].mxu1  ;;  %11283 = vmatprep.subr.bf16.mxu0 %v12254_v57 }
 0x8d5   : > { %v4585_v53 = vadd.f32 %v14224_v17, %v4584_v47  ;;  %v11242_v40 = vpop.f32.mrb[94].mxu1  ;;  %11267 = vmatprep.mubr.bf16.mxu0 %v4643_v13  ;;  %v12262_v47 = vld [vmem:[%s15899_s6 + $0x10] sm:$0xff]  }
 0x8d6   : > { %v4596_v27 = vadd.f32 %v11242_v40, %v14224_v17  ;;  %v4587_v45 = vpop.f32.mrb[95].mxu1  ;;  %11268 = vmatmul.mubr.bf16.gmra.mrb[72].mxu0 %v4644_v10  ;;  %v4613_v51 = vmax.f32 %v4593_v55, 0.0 }
 0x8d7   : > { %v4588_v28 = vadd.f32 %v14224_v17, %v4587_v45  ;;  %11284 = vmatpush3.bf16.msra.mxu0 %v12254_v57  ;;  %v4611_v15 = vmax.f32 %v4585_v53, 0.0  ;;  %v12258_v17 = vld [vmem:[%s15898_s5] sm:$0xff]  }
 0x8d8   : > { %v4614_v18 = vmax.f32 %v4596_v27, 0.0  ;;  %11285 = vmatprep.subr.bf16.mxu0 %v12255_v21  ;;  %11307 = vmatprep.subr.bf16.mxu1 %v12258_v17 }
 0x8d9   : > { %v4612_v23 = vmax.f32 %v4588_v28, 0.0  ;;  %11308 = vmatpush3.bf16.msra.mxu1 %v12258_v17 }
 0x8da   : > { %v4646_v4 = vpack.c.bf16 %v4614_v18, %v4613_v51 }
 0x8db   : > { %v4645_v22 = vpack.c.bf16 %v4612_v23, %v4611_v15  ;;  %11286 = vmatpush3.bf16.msra.mxu0 %v12255_v21 }
 0x8dc   : > { %11287 = vmatprep.subr.bf16.mxu0 %v12256_v34 }
 0x8dd   : > { %11271 = vmatprep.mubr.bf16.mxu0 %v4645_v22 }
 0x8de   : > { %11272 = vmatmul.mubr.bf16.gmra.mrb[76].mxu0 %v4646_v4 }
 0x8df   : > { %11288 = vmatpush3.bf16.msra.mxu0 %v12256_v34  ;;  %11291 = vmatprep.mubr.bf16.mxu0 %v14207_v50  ;;  %v12259_v50 = vld [vmem:[%s15898_s5 + $0x8] sm:$0xff]   ;;  %s15908_s5 = sld [smem:[#allocation31_spill]] }
 0x8e0   : > { %11289 = vmatprep.subr.bf16.mxu0 %v12257_v59  ;;  %11309 = vmatprep.subr.bf16.mxu1 %v12259_v50 }
 0x8e1   : > { %11310 = vmatpush3.bf16.msra.mxu1 %v12259_v50 }
 0x8e2   : > { %11327 = vmatprep.subr.bf16.mxu1 %v12260_v16 }
 0x8e3   : > { %11290 = vmatpush3.bf16.msra.mxu0 %v12257_v59 }
 0x8e6   : > { %11292 = vmatmul.mubr.bf16.vlgmr.msra.gmra.mrb[64].mxu0 %v14205_v35  ;;  %v14261_v35 = vld [vmem:[%s15900_s8] ss:$0 sm:$0xff]  ;;  %s15901_s8 = sld [smem:[#allocation25_spill]] }
 0x8e7   : > { %11295 = vmatprep.mubr.bf16.mxu0 %v14213_v11 }
 0x8ee   : > { %11296 = vmatmul.mubr.bf16.gmra.mrb[68].mxu0 %v14211_v2 }
 0x8ef   : > { %11299 = vmatprep.mubr.bf16.mxu0 %v14217_v8 }
 0x8f6   : > { %11300 = vmatmul.mubr.bf16.gmra.mrb[72].mxu0 %v14215_v31 }
 0x8f7   : > { %11303 = vmatprep.mubr.bf16.mxu0 %v14221_v44 }
 0x8fe   : > { %11304 = vmatmul.mubr.bf16.gmra.mrb[76].mxu0 %v14219_v9 }
 0x9b9   : > { %v11293_v11 = vpop.f32.mrb[64].mxu0 }
 0x9ba   : > { %v4962_v2 = vadd.f32 %v11293_v11, %v14261_v35  ;;  %v4890_v8 = vpop.f32.mrb[65].mxu0  ;;  %v12263_v11 = vld [vmem:[%s15899_s6 + $0x18] sm:$0xff]  }
 0x9bb   : > { %v4960_v31 = vadd.f32 %v14261_v35, %v4890_v8  ;;  %v11294_v39 = vpop.f32.mrb[66].mxu0 }
 0x9bc   : > { %v4978_v44 = vmax.f32 %v4962_v2, 0.0  ;;  %v4963_v9 = vadd.f32 %v11294_v39, %v14261_v35  ;;  %v4893_v56 = vpop.f32.mrb[67].mxu0 }
 0x9bd   : > { %v14266_v36 = vmax.f32 %v4960_v31, 0.0  ;;  %v4961_v42 = vadd.f32 %v14261_v35, %v4893_v56 }
 0x9be   : > { %v14269_v33 = vmax.f32 %v4963_v9, 0.0  ;;  %v5162_v3 = vrot.slane %v4978_v44, 7  ;;  %v5210_v48 = vrot.slane %v4978_v44, 1 }
 0x9bf   : > { %v5208_v24 = vrot.slane %v14266_v36, 1  ;;  %v4977_v14 = vmax.f32 %v4961_v42, 0.0  ;;  %v5160_v32 = vrot.slane %v14266_v36, 7 }
 0x9c0   : > { %v4993_v58 = vpack.c.bf16 %v14269_v33, %v4978_v44  ;;  %v5163_v62 = vrot.slane %v14269_v33, 7  ;;  %v5211_v7 = vrot.slane %v14269_v33, 1  ;;  %v11966_v54 = vpack.i.bf16 %v14269_v33, %v4978_v44 }
 0x9c1   : > { %v5161_v0 = vrot.slane %v4977_v14, 7  ;;  %v5209_v49 = vrot.slane %v4977_v14, 1  ;;  %v11297_v25 = vpop.f32.mrb[68].mxu0  ;;  %v11971_v6 = vpack.i.bf16 %v4977_v14, %v14266_v36  ;;  %v4992_v19 = vpack.c.bf16 %v4977_v14, %v14266_v36 }
 0x9c2   : > { %v4966_v20 = vadd.f32 %v11297_v25, %v14261_v35  ;;  %11967 = vrot.lane.b32.xlu1 %v11966_v54, %s15895_s3  ;;  %v4906_v26 = vpop.f32.mrb[69].mxu0  ;;  %v5236_v52 = vsel %vm1511_vm1, %v5210_v48, %v5211_v7  ;;  %v14285_v30 = vsel %vm1414_vm2, %v5162_v3, %v5163_v62 }
 0x9c3   : > { %v4964_v43 = vadd.f32 %v14261_v35, %v4906_v26  ;;  %11972 = vrot.lane.b32.xlu0 %v11971_v6, %s15895_s3  ;;  %v11298_v63 = vpop.f32.mrb[70].mxu0  ;;  %11311 = vmatprep.mubr.msk.bf16.mxu1 %vm2482_vm10, %v4992_v19  ;;  %v5237_v41 = vsel %vm1511_vm1, %v5209_v49, %v5210_v48  ;;  %v5238_v37 = vsel %vm1511_vm1, %v5208_v24, %v5209_v49 }
 0x9c4   : > { %v14297_v5 = vmax.f32 %v4966_v20, 0.0  ;;  %v4967_v60 = vadd.f32 %v11298_v63, %v14261_v35  ;;  %v4909_v57 = vpop.f32.mrb[71].mxu0  ;;  %11312 = vmatmul.mubr.msk.bf16.vlgmr.msra.gmra.mrb[96].mxu1 %vm2482_vm10, %v4993_v58  ;;  %v11976_v46 = vpack.i.bf16 %v5237_v41, %v5238_v37  ;;  %v14303_v38 = vsel %vm1414_vm2, %v5161_v0, %v5162_v3 }
 0x9c5   : > { %v4980_v10 = vmax.f32 %v4964_v43, 0.0  ;;  %v4965_v13 = vadd.f32 %v14261_v35, %v4909_v57  ;;  %11328 = vmatpush3.bf16.msra.mxu1 %v12260_v16  ;;  %v14310_v29 = vsel %vm1414_vm2, %v5160_v32, %v5161_v0  ;;  %v12264_v0 = vld [vmem:[%s15899_s6 + $0x20] sm:$0xff]  }
 0x9c6   : > { %v14312_v55 = vmax.f32 %v4967_v60, 0.0  ;;  %11329 = vmatprep.subr.bf16.mxu1 %v12261_v61  ;;  %v5214_v21 = vrot.slane %v14297_v5, 1  ;;  %v5166_v8 = vrot.slane %v14297_v5, 7 }
 0x9c7   : > { %v5164_v53 = vrot.slane %v4980_v10, 7  ;;  %v5212_v40 = vrot.slane %v4980_v10, 1  ;;  %v4981_v27 = vmax.f32 %v4965_v13, 0.0  ;;  %11977 = vrot.lane.b32.xlu0 %v11976_v46, %s15894_s22 }
 0x9c8   : > { %v5167_v45 = vrot.slane %v14312_v55, 7  ;;  %v5215_v28 = vrot.slane %v14312_v55, 1  ;;  %v4995_v51 = vpack.c.bf16 %v14312_v55, %v14297_v5  ;;  %v11991_v18 = vpack.i.bf16 %v14312_v55, %v14297_v5 }
 0x9c9   : > { %v5165_v34 = vrot.slane %v4981_v27, 7  ;;  %v5213_v15 = vrot.slane %v4981_v27, 1  ;;  %v11301_v23 = vpop.f32.mrb[72].mxu0  ;;  %v11981_v4 = vpack.i.bf16 %v4981_v27, %v4980_v10  ;;  %v4994_v22 = vpack.c.bf16 %v4981_v27, %v4980_v10  ;;  %11330 = vmatpush3.bf16.msra.mxu1 %v12261_v61 }
 0x9ca   : > { %v4970_v59 = vadd.f32 %v11301_v23, %v14261_v35  ;;  %v4922_v17 = vpop.f32.mrb[73].mxu0  ;;  %v5235_v50 = vsel %vm1511_vm1, %v5211_v7, %v5212_v40  ;;  %v14328_v16 = vsel %vm1511_vm1, %v5214_v21, %v5215_v28  ;;  %11331 = vmatprep.subr.bf16.mxu1 %v12262_v47  ;;  %v14333_v2 = vsel %vm1414_vm2, %v5163_v62, %v5164_v53 }
 0x9cb   : > { %v4968_v31 = vadd.f32 %v14261_v35, %v4922_v17  ;;  %11982 = vrot.lane.b32.xlu0 %v11981_v4, %s15895_s3  ;;  %v11302_v39 = vpop.f32.mrb[74].mxu0  ;;  %11315 = vmatprep.mubr.msk.bf16.mxu1 %vm2482_vm10, %v4994_v22  ;;  %v11986_v44 = vpack.i.bf16 %v5235_v50, %v5236_v52  ;;  %v5233_v9 = vsel %vm1511_vm1, %v5213_v15, %v5214_v21 }
 0x9cc   : > { %v14341_v56 = vmax.f32 %v4970_v59, 0.0  ;;  %v4971_v42 = vadd.f32 %v11302_v39, %v14261_v35  ;;  %v4925_v33 = vpop.f32.mrb[75].mxu0  ;;  %11316 = vmatmul.mubr.msk.bf16.gmra.mrb[100].mxu1 %vm2482_vm10, %v4995_v51  ;;  %v5234_v3 = vsel %vm1511_vm1, %v5212_v40, %v5213_v15  ;;  %v14349_v48 = vsel %vm1414_vm2, %v5164_v53, %v5165_v34 }
 0x9cd   : > { %v4984_v14 = vmax.f32 %v4968_v31, 0.0  ;;  %11987 = vrot.lane.b32.xlu1 %v11986_v44, %s15894_s22  ;;  %v4969_v58 = vadd.f32 %v14261_v35, %v4925_v33  ;;  %v11996_v62 = vpack.i.bf16 %v5233_v9, %v5234_v3  ;;  %11332 = vmatpush3.bf16.msra.mxu1 %v12262_v47  ;;  %v14357_v7 = vsel %vm1414_vm2, %v5166_v8, %v5167_v45  ;;  %v12265_v47 = vld [vmem:[%s15899_s6 + $0x28] sm:$0xff]  }
 0x9ce   : > { %v14359_v54 = vmax.f32 %v4971_v42, 0.0  ;;  %11333 = vmatprep.subr.bf16.mxu1 %v12263_v11  ;;  %v14364_v49 = vsel %vm1414_vm2, %v5165_v34, %v5166_v8  ;;  %v5218_v25 = vrot.slane %v14341_v56, 1  ;;  %v5170_v53 = vrot.slane %v14341_v56, 7 }
 0x9cf   : > { %v5168_v6 = vrot.slane %v4984_v14, 7  ;;  %v5216_v19 = vrot.slane %v4984_v14, 1  ;;  %v4985_v20 = vmax.f32 %v4969_v58, 0.0  ;;  %11997 = vrot.lane.b32.xlu0 %v11996_v62, %s15894_s22 }
 0x9d0   : > { %v5171_v26 = vrot.slane %v14359_v54, 7  ;;  %v5219_v52 = vrot.slane %v14359_v54, 1  ;;  %v4997_v61 = vpack.c.bf16 %v14359_v54, %v14341_v56  ;;  %v12011_v43 = vpack.i.bf16 %v14359_v54, %v14341_v56 }
 0x9d1   : > { %v5169_v63 = vrot.slane %v4985_v20, 7  ;;  %v5217_v41 = vrot.slane %v4985_v20, 1  ;;  %11992 = vrot.lane.b32.xlu1 %v11991_v18, %s15895_s3  ;;  %v11305_v37 = vpop.f32.mrb[76].mxu0  ;;  %v12001_v5 = vpack.i.bf16 %v4985_v20, %v4984_v14  ;;  %v4996_v60 = vpack.c.bf16 %v4985_v20, %v4984_v14  ;;  %11334 = vmatpush3.bf16.msra.mxu1 %v12263_v11 }
 0x9d2   : > { %v4974_v57 = vadd.f32 %v11305_v37, %v14261_v35  ;;  %v4938_v46 = vpop.f32.mrb[77].mxu0  ;;  %v5231_v10 = vsel %vm1511_vm1, %v5215_v28, %v5216_v19  ;;  %v5228_v13 = vsel %vm1511_vm1, %v5218_v25, %v5219_v52  ;;  %11335 = vmatprep.subr.bf16.mxu1 %v12264_v0  ;;  %v14385_v21 = vsel %vm1414_vm2, %v5167_v45, %v5168_v6  ;;  %v12266_v37 = vld [vmem:[%s15901_s8 + $0x40] sm:$0xff]  }
 0x9d3   : > { %v4972_v40 = vadd.f32 %v14261_v35, %v4938_v46  ;;  %12002 = vrot.lane.b32.xlu0 %v12001_v5, %s15895_s3  ;;  %v11306_v27 = vpop.f32.mrb[78].mxu0  ;;  %11319 = vmatprep.mubr.msk.bf16.mxu1 %vm2482_vm10, %v4996_v60  ;;  %v12006_v28 = vpack.i.bf16 %v5231_v10, %v14328_v16  ;;  %v5229_v51 = vsel %vm1511_vm1, %v5217_v41, %v5218_v25  ;;  %v12267_v5 = vld [vmem:[%s15901_s8 + $0x48] sm:$0xff]  }
 0x9d4   : > { %v4990_v18 = vmax.f32 %v4974_v57, 0.0  ;;  %v4975_v55 = vadd.f32 %v11306_v27, %v14261_v35  ;;  %v4941_v34 = vpop.f32.mrb[79].mxu0  ;;  %11320 = vmatmul.mubr.msk.bf16.gmra.mrb[104].mxu1 %vm2482_vm10, %v4997_v61  ;;  %v5230_v45 = vsel %vm1511_vm1, %v5216_v19, %v5217_v41  ;;  %v14400_v15 = vsel %vm1414_vm2, %v5168_v6, %v5169_v63  ;;  %11355 = vmatprep.subr.bf16.mxu0 %v12266_v37 }
 0x9d5   : > { %v4988_v23 = vmax.f32 %v4972_v40, 0.0  ;;  %12007 = vrot.lane.b32.xlu1 %v12006_v28, %s15894_s22  ;;  %v4973_v4 = vadd.f32 %v14261_v35, %v4941_v34  ;;  %v12016_v22 = vpack.i.bf16 %v5229_v51, %v5230_v45  ;;  %11336 = vmatpush3.bf16.msra.mxu1 %v12264_v0  ;;  %v14408_v59 = vsel %vm1414_vm2, %v5170_v53, %v5171_v26  ;;  %v12268_v40 = vld [vmem:[%s15901_s8 + $0x50] sm:$0xff]  }
 0x9d6   : > { %v5174_v17 = vrot.slane %v4990_v18, 7  ;;  %v4991_v50 = vmax.f32 %v4975_v55, 0.0  ;;  %11337 = vmatprep.subr.bf16.mxu1 %v12265_v47  ;;  %v14412_v16 = vsel %vm1414_vm2, %v5169_v63, %v5170_v53  ;;  %v5222_v11 = vrot.slane %v4990_v18, 1  ;;  %11356 = vmatpush3.bf16.msra.mxu0 %v12266_v37 }
 0x9d7   : > { %v5172_v8 = vrot.slane %v4988_v23, 7  ;;  %v5220_v31 = vrot.slane %v4988_v23, 1  ;;  %v4989_v39 = vmax.f32 %v4973_v4, 0.0  ;;  %12017 = vrot.lane.b32.xlu0 %v12016_v22, %s15894_s22  ;;  %11357 = vmatprep.subr.bf16.mxu0 %v12267_v5  ;;  %v12269_v22 = vld [vmem:[%s15901_s8 + $0x58] sm:$0xff]  }
 0x9d8   : > { %v5175_v35 = vrot.slane %v4991_v50, 7  ;;  %v5223_v44 = vrot.slane %v4991_v50, 1  ;;  %v4999_v9 = vpack.c.bf16 %v4991_v50, %v4990_v18  ;;  %v12031_v56 = vpack.i.bf16 %v4991_v50, %v4990_v18 }
 0x9d9   : > { %v5173_v42 = vrot.slane %v4989_v39, 7  ;;  %v5221_v33 = vrot.slane %v4989_v39, 1  ;;  %12012 = vrot.lane.b32.xlu1 %v12011_v43, %s15895_s3  ;;  %v12021_v3 = vpack.i.bf16 %v4989_v39, %v4988_v23  ;;  %v4998_v14 = vpack.c.bf16 %v4989_v39, %v4988_v23  ;;  %11338 = vmatpush3.bf16.msra.mxu1 %v12265_v47 }
 0x9da   : > { %v5227_v58 = vsel %vm1511_vm1, %v5219_v52, %v5220_v31  ;;  %v5224_v62 = vsel %vm1511_vm1, %v5222_v11, %v5223_v44  ;;  %v5239_v0 = vsel %vm1511_vm1, %v5223_v44, %v5208_v24  ;;  %v5191_v25 = vsel %vm1414_vm2, %v5175_v35, %v5160_v32  ;;  %11358 = vmatpush3.bf16.msra.mxu0 %v12267_v5 }
 0x9db   : > { %12022 = vrot.lane.b32.xlu0 %v12021_v3, %s15895_s3  ;;  %11323 = vmatprep.mubr.msk.bf16.mxu1 %vm2482_vm10, %v4998_v14  ;;  %v12026_v6 = vpack.i.bf16 %v5227_v58, %v5228_v13  ;;  %v5225_v19 = vsel %vm1511_vm1, %v5221_v33, %v5222_v11  ;;  %v5226_v20 = vsel %vm1511_vm1, %v5220_v31, %v5221_v33  ;;  %v5255_v24 = vsel %vm1494_vm3, 0.0, %v5239_v0 }
 0x9dc   : > { %11324 = vmatmul.mubr.msk.bf16.gmra.mrb[108].mxu1 %vm2482_vm10, %v4999_v9  ;;  %v12036_v36 = vpack.i.bf16 %v5225_v19, %v5226_v20  ;;  %v12041_v32 = vpack.i.bf16 %v5255_v24, %v5224_v62  ;;  %v14441_v52 = vsel %vm1414_vm2, %v5171_v26, %v5172_v8  ;;  %v14446_v61 = vsel %vm1414_vm2, %v5172_v8, %v5173_v42 }
 0x9dd   : > { %12027 = vrot.lane.b32.xlu1 %v12026_v6, %s15894_s22  ;;  %v14450_v43 = vsel %vm1414_vm2, %v5174_v17, %v5175_v35  ;;  %v14454_v63 = vsel %vm1414_vm2, %v5173_v42, %v5174_v17  ;;  %v5192_v46 = vsel %vm1382_vm4, 0.0, %v5191_v25  ;;  %11359 = vmatprep.subr.bf16.mxu0 %v12268_v40 }
 0x9de   : > { %11360 = vmatpush3.bf16.msra.mxu0 %v12268_v40 }
 0x9df   : > { %12037 = vrot.lane.b32.xlu0 %v12036_v36, %s15894_s22  ;;  %11361 = vmatprep.subr.bf16.mxu0 %v12269_v22 }
 0x9e1   : > { %12032 = vrot.lane.b32.xlu1 %v12031_v56, %s15895_s3  ;;  %s15902_s3 = sld [smem:[#allocation22_spill]] }
 0x9e2   : > { %11362 = vmatpush3.bf16.msra.mxu0 %v12269_v22 }
 0x9e5   : > { %12042 = vrot.lane.b32.xlu1 %v12041_v32, %s15894_s22  ;;  %s15903_s22 = sld [smem:[#allocation27_spill]] }
 0xa34   : > { %v11968_v57 = vpop.permute.xlu1 %11967 }
 0xa35   : > { %v11973_v54 = vpop.permute.xlu0 %11972  ;;  %v11970_v51 = vunpack.i.h.bf16 %v11968_v57  ;;  %v11969_v18 = vunpack.i.l.bf16 %v11968_v57 }
 0xa36   : > { %v11975_v26 = vunpack.i.h.bf16 %v11973_v54  ;;  %v11974_v41 = vunpack.i.l.bf16 %v11973_v54 }
 0xa37   : > { %v5386_v50 = vsel %vm2482_vm10, %v14303_v38, %v11969_v18  ;;  %v5387_v11 = vsel %vm2482_vm10, %v14285_v30, %v11970_v51  ;;  %v12270_v38 = vld [vmem:[%s15901_s8 + $0x60] sm:$0xff]  }
 0xa38   : > { %v5384_v47 = vsel %vm2482_vm10, %v5192_v46, %v11974_v41  ;;  %v5385_v53 = vsel %vm2482_vm10, %v14310_v29, %v11975_v26  ;;  %11363 = vmatprep.subr.bf16.mxu0 %v12270_v38 }
 0xa39   : > { %v11978_v60 = vpop.permute.xlu0 %11977  ;;  %11364 = vmatpush3.bf16.msra.mxu0 %v12270_v38 }
 0xa3a   : > { %v11980_v10 = vunpack.i.h.bf16 %v11978_v60  ;;  %v11979_v13 = vunpack.i.l.bf16 %v11978_v60 }
 0xa3c   : > { %v5400_v27 = vsel %vm1943_vm8, %v5384_v47, %v11979_v13  ;;  %v5401_v28 = vsel %vm1943_vm8, %v5385_v53, %v11980_v10 }
 0xa3d   : > { %v5416_v55 = vpack.c.bf16 %v5401_v28, %v5400_v27  ;;  %v11983_v34 = vpop.permute.xlu0 %11982 }
 0xa3e   : > { %v11985_v45 = vunpack.i.h.bf16 %v11983_v34  ;;  %v11984_v23 = vunpack.i.l.bf16 %v11983_v34 }
 0xa3f   : > { %v11988_v4 = vpop.permute.xlu1 %11987  ;;  %11339 = vmatprep.mubr.msk.bf16.mxu1 %vm4477_vm12, %v5416_v55 }
 0xa40   : > { %v11990_v29 = vunpack.i.h.bf16 %v11988_v4  ;;  %v11989_v17 = vunpack.i.l.bf16 %v11988_v4  ;;  %v5388_v9 = vsel %vm2482_vm10, %v14333_v2, %v11984_v23  ;;  %v5389_v56 = vsel %vm2482_vm10, %v14349_v48, %v11985_v45  ;;  %v12271_v48 = vld [vmem:[%s15901_s8 + $0x68] sm:$0xff]  }
 0xa41   : > { %v11998_v8 = vpop.permute.xlu0 %11997  ;;  %11365 = vmatprep.subr.bf16.mxu0 %v12271_v48 }
 0xa42   : > { %v5403_v31 = vsel %vm1943_vm8, %v5387_v11, %v11990_v29  ;;  %v5402_v39 = vsel %vm1943_vm8, %v5386_v50, %v11989_v17  ;;  %v12000_v35 = vunpack.i.h.bf16 %v11998_v8  ;;  %v11999_v44 = vunpack.i.l.bf16 %v11998_v8  ;;  %11366 = vmatpush3.bf16.msra.mxu0 %v12271_v48 }
 0xa43   : > { %v5417_v42 = vpack.c.bf16 %v5403_v31, %v5402_v39  ;;  %v11993_v33 = vpop.permute.xlu1 %11992 }
 0xa44   : > { %v5404_v30 = vsel %vm1943_vm8, %v5388_v9, %v11999_v44  ;;  %v5405_v3 = vsel %vm1943_vm8, %v5389_v56, %v12000_v35  ;;  %v11995_v58 = vunpack.i.h.bf16 %v11993_v33  ;;  %v11994_v62 = vunpack.i.l.bf16 %v11993_v33  ;;  %v10358_v33 = vld [vmem:[%s15902_s3] ss:$0 sm:$0xff]  ;;  %s15904_s3 = sld [smem:[#allocation24_spill]] }
 0xa45   : > { %v5418_v14 = vpack.c.bf16 %v5405_v3, %v5404_v30  ;;  %11340 = vmatmul.mubr.msk.bf16.vlgmr.msra.gmra.mrb[112].mxu1 %vm4477_vm12, %v5417_v42  ;;  %v12003_v0 = vpop.permute.xlu0 %12002 }
 0xa46   : > { %v12005_v2 = vunpack.i.h.bf16 %v12003_v0  ;;  %v12004_v25 = vunpack.i.l.bf16 %v12003_v0  ;;  %v5390_v24 = vsel %vm2482_vm10, %v14364_v49, %v11994_v62  ;;  %v5391_v36 = vsel %vm2482_vm10, %v14357_v7, %v11995_v58 }
 0xa47   : > { %v12008_v6 = vpop.permute.xlu1 %12007  ;;  %11343 = vmatprep.mubr.msk.bf16.mxu1 %vm4477_vm12, %v5418_v14 }
 0xa48   : > { %v12010_v19 = vunpack.i.h.bf16 %v12008_v6  ;;  %v12009_v20 = vunpack.i.l.bf16 %v12008_v6  ;;  %v5392_v5 = vsel %vm2482_vm10, %v14385_v21, %v12004_v25  ;;  %v5393_v60 = vsel %vm2482_vm10, %v14400_v15, %v12005_v2  ;;  %v12272_v2 = vld [vmem:[%s15901_s8 + $0x70] sm:$0xff]  }
 0xa49   : > { %v12018_v32 = vpop.permute.xlu0 %12017  ;;  %11367 = vmatprep.subr.bf16.mxu0 %v12272_v2 }
 0xa4a   : > { %v5407_v54 = vsel %vm1943_vm8, %v5391_v36, %v12010_v19  ;;  %v5406_v26 = vsel %vm1943_vm8, %v5390_v24, %v12009_v20  ;;  %v12020_v41 = vunpack.i.h.bf16 %v12018_v32  ;;  %v12019_v37 = vunpack.i.l.bf16 %v12018_v32  ;;  %11368 = vmatpush3.bf16.msra.mxu0 %v12272_v2  ;;  %v12273_v36 = vld [vmem:[%s15901_s8 + $0x78] sm:$0xff]  }
 0xa4b   : > { %v5419_v57 = vpack.c.bf16 %v5407_v54, %v5406_v26  ;;  %v12013_v46 = vpop.permute.xlu1 %12012  ;;  %11369 = vmatprep.subr.bf16.mxu0 %v12273_v36 }
 0xa4c   : > { %v5408_v49 = vsel %vm1943_vm8, %v5392_v5, %v12019_v37  ;;  %v5409_v7 = vsel %vm1943_vm8, %v5393_v60, %v12020_v41  ;;  %v12015_v13 = vunpack.i.h.bf16 %v12013_v46  ;;  %v12014_v47 = vunpack.i.l.bf16 %v12013_v46 }
 0xa4d   : > { %v5420_v10 = vpack.c.bf16 %v5409_v7, %v5408_v49  ;;  %11344 = vmatmul.mubr.msk.bf16.gmra.mrb[116].mxu1 %vm4477_vm12, %v5419_v57  ;;  %v12023_v53 = vpop.permute.xlu0 %12022  ;;  %v14530_v57 = vld [vmem:[%s15901_s8] sm:$0xff]  }
 0xa4e   : > { %v12025_v40 = vunpack.i.h.bf16 %v12023_v53  ;;  %v12024_v27 = vunpack.i.l.bf16 %v12023_v53  ;;  %v5394_v51 = vsel %vm2482_vm10, %v14412_v16, %v12014_v47  ;;  %v5395_v18 = vsel %vm2482_vm10, %v14408_v59, %v12015_v13  ;;  %11370 = vmatpush3.bf16.msra.mxu0 %v12273_v36 }
 0xa4f   : > { %v12028_v21 = vpop.permute.xlu1 %12027  ;;  %11347 = vmatprep.mubr.msk.bf16.mxu1 %vm4477_vm12, %v5420_v10  ;;  %11387 = vmatprep.subr.bf16.mxu0 %v14530_v57 }
 0xa50   : > { %v12030_v15 = vunpack.i.h.bf16 %v12028_v21  ;;  %v12029_v28 = vunpack.i.l.bf16 %v12028_v21  ;;  %v5396_v22 = vsel %vm2482_vm10, %v14441_v52, %v12024_v27  ;;  %v5397_v29 = vsel %vm2482_vm10, %v14446_v61, %v12025_v40 }
 0xa51   : > { %v12038_v55 = vpop.permute.xlu0 %12037 }
 0xa52   : > { %v5411_v34 = vsel %vm1943_vm8, %v5395_v18, %v12030_v15  ;;  %v5410_v45 = vsel %vm1943_vm8, %v5394_v51, %v12029_v28  ;;  %v12040_v23 = vunpack.i.h.bf16 %v12038_v55  ;;  %v12039_v4 = vunpack.i.l.bf16 %v12038_v55 }
 0xa53   : > { %v5421_v17 = vpack.c.bf16 %v5411_v34, %v5410_v45  ;;  %v12033_v50 = vpop.permute.xlu1 %12032 }
 0xa54   : > { %v5412_v16 = vsel %vm1943_vm8, %v5396_v22, %v12039_v4  ;;  %v5413_v59 = vsel %vm1943_vm8, %v5397_v29, %v12040_v23  ;;  %v12035_v8 = vunpack.i.h.bf16 %v12033_v50  ;;  %v12034_v31 = vunpack.i.l.bf16 %v12033_v50 }
 0xa55   : > { %v5422_v11 = vpack.c.bf16 %v5413_v59, %v5412_v16  ;;  %11348 = vmatmul.mubr.msk.bf16.gmra.mrb[120].mxu1 %vm4477_vm12, %v5421_v17 }
 0xa56   : > { %v5398_v61 = vsel %vm2482_vm10, %v14454_v63, %v12034_v31  ;;  %v5399_v44 = vsel %vm2482_vm10, %v14450_v43, %v12035_v8 }
 0xa57   : > { %v12043_v39 = vpop.permute.xlu1 %12042  ;;  %11351 = vmatprep.mubr.msk.bf16.mxu1 %vm4477_vm12, %v5422_v11 }
 0xa58   : > { %v12045_v35 = vunpack.i.h.bf16 %v12043_v39  ;;  %v12044_v52 = vunpack.i.l.bf16 %v12043_v39 }
 0xa5a   : > { %v5414_v9 = vsel %vm1943_vm8, %v5398_v61, %v12044_v52  ;;  %v5415_v56 = vsel %vm1943_vm8, %v5399_v44, %v12045_v35 }
 0xa5b   : > { %v5423_v42 = vpack.c.bf16 %v5415_v56, %v5414_v9  ;;  %v12282_v56 = vld [vmem:[%s15903_s22] ss:$8 sps:$4 sm:$0xff]  }
 0xa5d   : > { %11352 = vmatmul.mubr.msk.bf16.gmra.mrb[124].mxu1 %vm4477_vm12, %v5423_v42  ;;  %v12284_v42 = vld [vmem:[%s15903_s22 + $0x4] ss:$8 sps:$4 sm:$0xff]  }
 0xa5e   : > { %6073 = vmatprep.subr.bf16.mxu1 %v12284_v42 }
 0xa5f   : > { %6074 = vmatpush1.bf16.msra.mxu1 %v12282_v56 }
 0xa97   : > { %v11313_v38 = vpop.f32.mrb[96].mxu1 }
 0xa98   : > { %v5090_v30 = vadd.f32 %v11313_v38, %v10358_v33  ;;  %v5081_v3 = vpop.f32.mrb[97].mxu1  ;;  %v14548_v38 = vld [vmem:[%s15904_s3] ss:$0 sm:$0xff]  ;;  %s15905_s3 = sld [smem:[#allocation29_spill]] }
 0xa99   : > { %v5082_v14 = vadd.f32 %v10358_v33, %v5081_v3  ;;  %v11314_v58 = vpop.f32.mrb[98].mxu1 }
 0xa9a   : > { %v5093_v62 = vadd.f32 %v11314_v58, %v10358_v33  ;;  %v5084_v0 = vpop.f32.mrb[99].mxu1  ;;  %v5146_v25 = vmax.f32 %v5090_v30, 0.0 }
 0xa9b   : > { %v5085_v63 = vadd.f32 %v10358_v33, %v5084_v0  ;;  %v5144_v6 = vmax.f32 %v5082_v14, 0.0 }
 0xa9c   : > { %v5147_v43 = vmax.f32 %v5093_v62, 0.0 }
 0xa9d   : > { %v5145_v48 = vmax.f32 %v5085_v63, 0.0 }
 0xa9e   : > { %v14524_v19 = vpack.c.bf16 %v5147_v43, %v5146_v25 }
 0xa9f   : > { %v14526_v20 = vpack.c.bf16 %v5145_v48, %v5144_v6  ;;  %v11317_v24 = vpop.f32.mrb[100].mxu1 }
 0xaa0   : > { %v5106_v32 = vadd.f32 %v11317_v24, %v10358_v33  ;;  %v5097_v54 = vpop.f32.mrb[101].mxu1 }
 0xaa1   : > { %v5098_v26 = vadd.f32 %v10358_v33, %v5097_v54  ;;  %v11318_v41 = vpop.f32.mrb[102].mxu1 }
 0xaa2   : > { %v5109_v37 = vadd.f32 %v11318_v41, %v10358_v33  ;;  %v5100_v5 = vpop.f32.mrb[103].mxu1  ;;  %v5150_v46 = vmax.f32 %v5106_v32, 0.0 }
 0xaa3   : > { %v5101_v60 = vadd.f32 %v10358_v33, %v5100_v5  ;;  %v5148_v7 = vmax.f32 %v5098_v26, 0.0  ;;  %v12275_v26 = vld [vmem:[%s15901_s8 + $0x8] sm:$0xff]  }
 0xaa4   : > { %v5151_v49 = vmax.f32 %v5109_v37, 0.0 }
 0xaa5   : > { %v5149_v10 = vmax.f32 %v5101_v60, 0.0 }
 0xaa6   : > { %v14533_v13 = vpack.c.bf16 %v5151_v49, %v5150_v46 }
 0xaa7   : > { %v14535_v47 = vpack.c.bf16 %v5149_v10, %v5148_v7  ;;  %v11321_v53 = vpop.f32.mrb[104].mxu1  ;;  %v12276_v10 = vld [vmem:[%s15901_s8 + $0x10] sm:$0xff]  }
 0xaa8   : > { %v5122_v40 = vadd.f32 %v11321_v53, %v10358_v33  ;;  %v5113_v27 = vpop.f32.mrb[105].mxu1 }
 0xaa9   : > { %v5114_v21 = vadd.f32 %v10358_v33, %v5113_v27  ;;  %v11322_v15 = vpop.f32.mrb[106].mxu1 }
 0xaaa   : > { %v5125_v28 = vadd.f32 %v11322_v15, %v10358_v33  ;;  %v5116_v51 = vpop.f32.mrb[107].mxu1  ;;  %v5154_v55 = vmax.f32 %v5122_v40, 0.0 }
 0xaab   : > { %v5117_v18 = vadd.f32 %v10358_v33, %v5116_v51  ;;  %v5152_v45 = vmax.f32 %v5114_v21, 0.0 }
 0xaac   : > { %v5155_v34 = vmax.f32 %v5125_v28, 0.0 }
 0xaad   : > { %v5153_v23 = vmax.f32 %v5117_v18, 0.0  ;;  %v12277_v18 = vld [vmem:[%s15901_s8 + $0x18] sm:$0xff]  }
 0xaae   : > { %v14537_v4 = vpack.c.bf16 %v5155_v34, %v5154_v55 }
 0xaaf   : > { %v14539_v22 = vpack.c.bf16 %v5153_v23, %v5152_v45  ;;  %v11325_v29 = vpop.f32.mrb[108].mxu1 }
 0xab0   : > { %v5138_v17 = vadd.f32 %v11325_v29, %v10358_v33  ;;  %v5129_v50 = vpop.f32.mrb[109].mxu1 }
 0xab1   : > { %v5130_v16 = vadd.f32 %v10358_v33, %v5129_v50  ;;  %v11326_v59 = vpop.f32.mrb[110].mxu1  ;;  %v12278_v50 = vld [vmem:[%s15901_s8 + $0x20] sm:$0xff]  }
 0xab2   : > { %v5141_v11 = vadd.f32 %v11326_v59, %v10358_v33  ;;  %v5132_v8 = vpop.f32.mrb[111].mxu1  ;;  %v5158_v39 = vmax.f32 %v5138_v17, 0.0 }
 0xab3   : > { %v5133_v31 = vadd.f32 %v10358_v33, %v5132_v8  ;;  %v5156_v52 = vmax.f32 %v5130_v16, 0.0 }
 0xab4   : > { %v5159_v35 = vmax.f32 %v5141_v11, 0.0 }
 0xab5   : > { %v5157_v61 = vmax.f32 %v5133_v31, 0.0 }
 0xab6   : > { %v14541_v44 = vpack.c.bf16 %v5159_v35, %v5158_v39 }
 0xab7   : > { %v14543_v9 = vpack.c.bf16 %v5157_v61, %v5156_v52  ;;  %v12279_v52 = vld [vmem:[%s15901_s8 + $0x28] sm:$0xff]  }
 0xb18   : > { %v11341_v30 = vpop.f32.mrb[112].mxu1 }
 0xb19   : > { %v5546_v3 = vadd.f32 %v11341_v30, %v14548_v38  ;;  %v5537_v14 = vpop.f32.mrb[113].mxu1 }
 0xb1a   : > { %v5538_v33 = vadd.f32 %v14548_v38, %v5537_v14  ;;  %v11342_v58 = vpop.f32.mrb[114].mxu1 }
 0xb1b   : > { %v5549_v62 = vadd.f32 %v11342_v58, %v14548_v38  ;;  %v5540_v0 = vpop.f32.mrb[115].mxu1  ;;  %v5602_v2 = vmax.f32 %v5546_v3, 0.0  ;;  %v12280_v58 = vld [vmem:[%s15901_s8 + $0x30] sm:$0xff]  }
 0xb1c   : > { %v5541_v63 = vadd.f32 %v14548_v38, %v5540_v0  ;;  %v5600_v43 = vmax.f32 %v5538_v33, 0.0 }
 0xb1d   : > { %v5603_v25 = vmax.f32 %v5549_v62, 0.0 }
 0xb1e   : > { %v5601_v6 = vmax.f32 %v5541_v63, 0.0 }
 0xb1f   : > { %v5641_v48 = vpack.c.bf16 %v5603_v25, %v5602_v2  ;;  %v12281_v25 = vld [vmem:[%s15901_s8 + $0x38] sm:$0xff]  }
 0xb20   : > { %v5640_v24 = vpack.c.bf16 %v5601_v6, %v5600_v43  ;;  %v11345_v36 = vpop.f32.mrb[116].mxu1  ;;  %v12299_v43 = vld [vmem:[%s15905_s3 + $0x24] ss:$8 sps:$4 sm:$0xff]   ;;  %v12297_v6 = vld [vmem:[%s15905_s3 + $0x20] ss:$8 sps:$4 sm:$0xff]  }
 0xb21   : > { %v5562_v32 = vadd.f32 %v11345_v36, %v14548_v38  ;;  %v5553_v54 = vpop.f32.mrb[117].mxu1  ;;  %v12305_v36 = vld [vmem:[%s15905_s3 + $0x44] ss:$8 sps:$4 sm:$0xff]  }
 0xb22   : > { %v5554_v41 = vadd.f32 %v14548_v38, %v5553_v54  ;;  %v11346_v37 = vpop.f32.mrb[118].mxu1  ;;  %11371 = vmatprep.mubr.bf16.mxu0 %v5640_v24  ;;  %v12300_v24 = vld [vmem:[%s15905_s3 + $0x30] ss:$8 sps:$4 sm:$0xff]   ;;  %v12308_v54 = vld [vmem:[%s15905_s3 + $0x54] ss:$8 sps:$4 sm:$0xff]  }
 0xb23   : > { %v5565_v5 = vadd.f32 %v11346_v37, %v14548_v38  ;;  %v5556_v60 = vpop.f32.mrb[119].mxu1  ;;  %11372 = vmatmul.mubr.bf16.vlgmr.msra.gmra.mrb[80].mxu0 %v5641_v48  ;;  %v5606_v49 = vmax.f32 %v5562_v32, 0.0  ;;  %v12302_v48 = vld [vmem:[%s15905_s3 + $0x34] ss:$8 sps:$4 sm:$0xff]   ;;  %v12303_v32 = vld [vmem:[%s15905_s3 + $0x40] ss:$8 sps:$4 sm:$0xff]  }
 0xb24   : > { %v5557_v46 = vadd.f32 %v14548_v38, %v5556_v60  ;;  %11388 = vmatpush3.bf16.msra.mxu0 %v14530_v57  ;;  %v5604_v53 = vmax.f32 %v5554_v41, 0.0  ;;  %v12311_v41 = vld [vmem:[%s15905_s3 + $0x64] ss:$8 sps:$4 sm:$0xff]   ;;  %v12309_v37 = vld [vmem:[%s15905_s3 + $0x60] ss:$8 sps:$4 sm:$0xff]  }
 0xb25   : > { %v5607_v7 = vmax.f32 %v5565_v5, 0.0  ;;  %11389 = vmatprep.subr.bf16.mxu0 %v12275_v26  ;;  %v12314_v5 = vld [vmem:[%s15905_s3 + $0x74] ss:$8 sps:$4 sm:$0xff]   ;;  %v14604_v60 = vld [vmem:[%s15906_s2] ss:$0 sm:$0xff]  ;;  %s15829_s2 = smov 48  }
 0xb26   : > { %v5605_v40 = vmax.f32 %v5557_v46, 0.0  ;;  %v12312_v46 = vld [vmem:[%s15905_s3 + $0x70] ss:$8 sps:$4 sm:$0xff]  }
 0xb27   : > { %v5643_v27 = vpack.c.bf16 %v5607_v7, %v5606_v49 }
 0xb28   : > { %v5642_v21 = vpack.c.bf16 %v5605_v40, %v5604_v53  ;;  %11390 = vmatpush3.bf16.msra.mxu0 %v12275_v26  ;;  %v11349_v15 = vpop.f32.mrb[120].mxu1  ;;  %v12306_v26 = vld [vmem:[%s15905_s3 + $0x50] ss:$8 sps:$4 sm:$0xff]   ;;  %v12317_v53 = vld [vmem:[%s15905_s3 + $0x84] ss:$8 sps:$4 sm:$0xff]  }
 0xb29   : > { %v5578_v28 = vadd.f32 %v11349_v15, %v14548_v38  ;;  %v5569_v51 = vpop.f32.mrb[121].mxu1  ;;  %11391 = vmatprep.subr.bf16.mxu0 %v12276_v10 }
 0xb2a   : > { %v5570_v55 = vadd.f32 %v14548_v38, %v5569_v51  ;;  %v11350_v34 = vpop.f32.mrb[122].mxu1  ;;  %11375 = vmatprep.mubr.bf16.mxu0 %v5642_v21  ;;  %v12315_v21 = vld [vmem:[%s15905_s3 + $0x80] ss:$8 sps:$4 sm:$0xff]  }
 0xb2b   : > { %v5581_v57 = vadd.f32 %v11350_v34, %v14548_v38  ;;  %v5572_v45 = vpop.f32.mrb[123].mxu1  ;;  %11376 = vmatmul.mubr.bf16.gmra.mrb[84].mxu0 %v5643_v27  ;;  %v5610_v29 = vmax.f32 %v5578_v28, 0.0 }
 0xb2c   : > { %v5573_v23 = vadd.f32 %v14548_v38, %v5572_v45  ;;  %11392 = vmatpush3.bf16.msra.mxu0 %v12276_v10  ;;  %v5608_v16 = vmax.f32 %v5570_v55, 0.0 }
 0xb2d   : > { %v5611_v17 = vmax.f32 %v5581_v57, 0.0  ;;  %11393 = vmatprep.subr.bf16.mxu0 %v12277_v18 }
 0xb2e   : > { %v5609_v59 = vmax.f32 %v5573_v23, 0.0 }
 0xb2f   : > { %v5645_v11 = vpack.c.bf16 %v5611_v17, %v5610_v29 }
 0xb30   : > { %v5644_v8 = vpack.c.bf16 %v5609_v59, %v5608_v16  ;;  %11394 = vmatpush3.bf16.msra.mxu0 %v12277_v18  ;;  %v11353_v31 = vpop.f32.mrb[124].mxu1 }
 0xb31   : > { %v5594_v39 = vadd.f32 %v11353_v31, %v14548_v38  ;;  %v5585_v35 = vpop.f32.mrb[125].mxu1  ;;  %11395 = vmatprep.subr.bf16.mxu0 %v12278_v50 }
 0xb32   : > { %v5586_v61 = vadd.f32 %v14548_v38, %v5585_v35  ;;  %v11354_v56 = vpop.f32.mrb[126].mxu1  ;;  %11379 = vmatprep.mubr.bf16.mxu0 %v5644_v8 }
 0xb33   : > { %v5597_v42 = vadd.f32 %v11354_v56, %v14548_v38  ;;  %v5588_v30 = vpop.f32.mrb[127].mxu1  ;;  %11380 = vmatmul.mubr.bf16.gmra.mrb[88].mxu0 %v5645_v11  ;;  %v5614_v14 = vmax.f32 %v5594_v39, 0.0 }
 0xb34   : > { %v5589_v3 = vadd.f32 %v14548_v38, %v5588_v30  ;;  %11396 = vmatpush3.bf16.msra.mxu0 %v12278_v50  ;;  %v5612_v62 = vmax.f32 %v5586_v61, 0.0  ;;  %v12285_v38 = vld [vmem:[%s15903_s22 + $0x10] ss:$8 sps:$4 sm:$0xff]  }
 0xb35   : > { %v5615_v33 = vmax.f32 %v5597_v42, 0.0  ;;  %11397 = vmatprep.subr.bf16.mxu0 %v12279_v52 }
 0xb36   : > { %v5613_v0 = vmax.f32 %v5589_v3, 0.0 }
 0xb37   : > { %v5647_v63 = vpack.c.bf16 %v5615_v33, %v5614_v14 }
 0xb38   : > { %v5646_v2 = vpack.c.bf16 %v5613_v0, %v5612_v62  ;;  %11398 = vmatpush3.bf16.msra.mxu0 %v12279_v52 }
 0xb39   : > { %11399 = vmatprep.subr.bf16.mxu0 %v12280_v58 }
 0xb3a   : > { %11383 = vmatprep.mubr.bf16.mxu0 %v5646_v2 }
 0xb3b   : > { %11384 = vmatmul.mubr.bf16.gmra.mrb[92].mxu0 %v5647_v63 }
 0xb3c   : > { %11400 = vmatpush3.bf16.msra.mxu0 %v12280_v58  ;;  %11403 = vmatprep.mubr.bf16.mxu0 %v14526_v20  ;;  %v12287_v20 = vld [vmem:[%s15903_s22 + $0x14] ss:$8 sps:$4 sm:$0xff]  }
 0xb3d   : > { %11401 = vmatprep.subr.bf16.mxu0 %v12281_v25  ;;  %6075 = vmatprep.subr.bf16.mxu1 %v12287_v20 }
 0xb3e   : > { %6076 = vmatpush1.bf16.msra.mxu1 %v12285_v38 }
 0xb40   : > { %11402 = vmatpush3.bf16.msra.mxu0 %v12281_v25 }
 0xb43   : > { %11404 = vmatmul.mubr.bf16.vlgmr.msra.gmra.mrb[80].mxu0 %v14524_v19  ;;  %v12290_v19 = vld [vmem:[%s15903_s22 + $0x24] ss:$8 sps:$4 sm:$0xff]  }
 0xb44   : > { %11407 = vmatprep.mubr.bf16.mxu0 %v14535_v47  ;;  %6077 = vmatprep.subr.bf16.mxu1 %v12290_v19  ;;  %v12752_v47 = vmov 0  }
 0xb45   : > { %6105 = vmatprep.mubr.bf16.mxu1 %v12752_v47 }
 0xb4b   : > { %11408 = vmatmul.mubr.bf16.gmra.mrb[84].mxu0 %v14533_v13  ;;  %v12288_v13 = vld [vmem:[%s15903_s22 + $0x20] ss:$8 sps:$4 sm:$0xff]  }
 0xb4c   : > { %11411 = vmatprep.mubr.bf16.mxu0 %v14539_v22  ;;  %6078 = vmatpush1.bf16.msra.mxu1 %v12288_v13  ;;  %v12293_v22 = vld [vmem:[%s15905_s3 + $0x4] ss:$8 sps:$4 sm:$0xff]  }
 0xb4d   : > { %6955 = vmatprep.subr.bf16.mxu1 %v12752_v47  ;;  %6634 = vmatprep.subr.bf16.mxu0 %v12293_v22 }
 0xb53   : > { %11412 = vmatmul.mubr.bf16.gmra.mrb[88].mxu0 %v14537_v4  ;;  %v12291_v4 = vld [vmem:[%s15905_s3] ss:$8 sps:$4 sm:$0xff]  }
 0xb54   : > { %11415 = vmatprep.mubr.bf16.mxu0 %v14543_v9  ;;  %6635 = vmatpush1.bf16.msra.mxu0 %v12291_v4  ;;  %v12294_v9 = vld [vmem:[%s15905_s3 + $0x10] ss:$8 sps:$4 sm:$0xff]  }
 0xb5b   : > { %11416 = vmatmul.mubr.bf16.gmra.mrb[92].mxu0 %v14541_v44  ;;  %v12296_v44 = vld [vmem:[%s15905_s3 + $0x14] ss:$8 sps:$4 sm:$0xff]   ;;  %s15907_s3 = smov 48  }
 0xb5c   : > { %6636 = vmatprep.subr.bf16.mxu0 %v12296_v44 }
 0xb5d   : > { %6637 = vmatpush1.bf16.msra.mxu0 %v12294_v9 }
 0xb5e   : > { %6638 = vmatprep.subr.bf16.mxu0 %v12299_v43 }
 0xb61   : > { %6639 = vmatpush1.bf16.msra.mxu0 %v12297_v6 }
 0xb62   : > { %6640 = vmatprep.subr.bf16.mxu0 %v12302_v48 }
 0xb65   : > { %6641 = vmatpush1.bf16.msra.mxu0 %v12300_v24 }
 0xb66   : > { %6642 = vmatprep.subr.bf16.mxu0 %v12305_v36 }
 0xb69   : > { %6643 = vmatpush1.bf16.msra.mxu0 %v12303_v32 }
 0xb6a   : > { %6644 = vmatprep.subr.bf16.mxu0 %v12308_v54 }
 0xb6d   : > { %6645 = vmatpush1.bf16.msra.mxu0 %v12306_v26 }
 0xb6e   : > { %6646 = vmatprep.subr.bf16.mxu0 %v12311_v41 }
 0xb71   : > { %6647 = vmatpush1.bf16.msra.mxu0 %v12309_v37 }
 0xb72   : > { %6648 = vmatprep.subr.bf16.mxu0 %v12314_v5 }
 0xb75   : > { %6649 = vmatpush1.bf16.msra.mxu0 %v12312_v46 }
 0xb76   : > { %6650 = vmatprep.subr.bf16.mxu0 %v12317_v53 }
 0xb79   : > { %6651 = vmatpush1.bf16.msra.mxu0 %v12315_v21 }
 0xb7a   : > { %7148 = vmatprep.subr.bf16.mxu0 %v12752_v47 }
 0xc16   : > { %v11405_v49 = vpop.f32.mrb[80].mxu0 }
 0xc17   : > { %v5963_v7 = vadd.f32 %v11405_v49, %v14604_v60  ;;  %v5891_v10 = vpop.f32.mrb[81].mxu0 }
 0xc18   : > { %v5961_v40 = vadd.f32 %v14604_v60, %v5891_v10  ;;  %v11406_v27 = vpop.f32.mrb[82].mxu0 }
 0xc19   : > { %v14611_v15 = vmax.f32 %v5963_v7, 0.0  ;;  %v5964_v28 = vadd.f32 %v11406_v27, %v14604_v60  ;;  %v5894_v51 = vpop.f32.mrb[83].mxu0 }
 0xc1a   : > { %v14614_v18 = vmax.f32 %v5961_v40, 0.0  ;;  %v5962_v55 = vadd.f32 %v14604_v60, %v5894_v51 }
 0xc1b   : > { %v14617_v34 = vmax.f32 %v5964_v28, 0.0  ;;  %v6220_v57 = vrot.slane %v14611_v15, 7  ;;  %v6268_v45 = vrot.slane %v14611_v15, 1 }
 0xc1c   : > { %v6266_v23 = vrot.slane %v14614_v18, 1  ;;  %v5978_v29 = vmax.f32 %v5962_v55, 0.0  ;;  %v6218_v52 = vrot.slane %v14614_v18, 7 }
 0xc1d   : > { %v6221_v17 = vrot.slane %v14617_v34, 7  ;;  %v6269_v50 = vrot.slane %v14617_v34, 1  ;;  %v12056_v16 = vpack.i.bf16 %v14617_v34, %v14611_v15  ;;  %v5994_v59 = vpack.c.bf16 %v14617_v34, %v14611_v15 }
 0xc1e   : > { %v5993_v11 = vpack.c.bf16 %v5978_v29, %v14614_v18  ;;  %v6219_v8 = vrot.slane %v5978_v29, 7  ;;  %v6267_v31 = vrot.slane %v5978_v29, 1  ;;  %v11409_v39 = vpop.f32.mrb[84].mxu0  ;;  %v12046_v35 = vpack.i.bf16 %v5978_v29, %v14614_v18 }
 0xc1f   : > { %v5967_v61 = vadd.f32 %v11409_v39, %v14604_v60  ;;  %v5907_v56 = vpop.f32.mrb[85].mxu0  ;;  %v6294_v42 = vsel %vm1511_vm1, %v6268_v45, %v6269_v50  ;;  %v14639_v30 = vsel %vm1414_vm2, %v6220_v57, %v6221_v17 }
 0xc20   : > { %v5965_v3 = vadd.f32 %v14604_v60, %v5907_v56  ;;  %12047 = vrot.lane.b32.xlu0 %v12046_v35, %s15829_s2  ;;  %v11410_v14 = vpop.f32.mrb[86].mxu0  ;;  %10407 = vmatmul.mubr.msk.bf16.vlgmr.msra.gmra.mrb[128].mxu1 %vm2538_vm11, %v5993_v11  ;;  %v6295_v33 = vsel %vm1511_vm1, %v6267_v31, %v6268_v45  ;;  %v6296_v58 = vsel %vm1511_vm1, %v6266_v23, %v6267_v31  ;;  %s15833_s2 = smov 96  }
 0xc21   : > { %v14650_v62 = vmax.f32 %v5967_v61, 0.0  ;;  %v5968_v0 = vadd.f32 %v11410_v14, %v14604_v60  ;;  %v5910_v63 = vpop.f32.mrb[87].mxu0  ;;  %v12051_v2 = vpack.i.bf16 %v6295_v33, %v6296_v58  ;;  %6115 = vmatprep.mubr.bf16.mxu1 %v12752_v47  ;;  %v14658_v25 = vsel %vm1414_vm2, %v6218_v52, %v6219_v8 }
 0xc22   : > { %v14660_v20 = vmax.f32 %v5965_v3, 0.0  ;;  %v5966_v38 = vadd.f32 %v14604_v60, %v5910_v63  ;;  %v14665_v19 = vsel %vm1414_vm2, %v6219_v8, %v6220_v57 }
 0xc23   : > { %v14667_v13 = vmax.f32 %v5968_v0, 0.0  ;;  %12052 = vrot.lane.b32.xlu1 %v12051_v2, %s15833_s2  ;;  %v6272_v4 = vrot.slane %v14650_v62, 1  ;;  %v6224_v10 = vrot.slane %v14650_v62, 7 }
 0xc24   : > { %v6222_v22 = vrot.slane %v14660_v20, 7  ;;  %v6270_v44 = vrot.slane %v14660_v20, 1  ;;  %v5982_v9 = vmax.f32 %v5966_v38, 0.0  ;;  %12057 = vrot.lane.b32.xlu0 %v12056_v16, %s15907_s3 }
 0xc25   : > { %v6225_v43 = vrot.slane %v14667_v13, 7  ;;  %v6273_v6 = vrot.slane %v14667_v13, 1  ;;  %v12076_v48 = vpack.i.bf16 %v14667_v13, %v14650_v62  ;;  %v5996_v24 = vpack.c.bf16 %v14667_v13, %v14650_v62 }
 0xc26   : > { %v6223_v36 = vrot.slane %v5982_v9, 7  ;;  %v6271_v32 = vrot.slane %v5982_v9, 1  ;;  %v11413_v54 = vpop.f32.mrb[88].mxu0  ;;  %v12066_v26 = vpack.i.bf16 %v5982_v9, %v14660_v20  ;;  %v6293_v41 = vsel %vm1511_vm1, %v6269_v50, %v6270_v44 }
 0xc27   : > { %v5971_v37 = vadd.f32 %v11413_v54, %v14604_v60  ;;  %v5923_v5 = vpop.f32.mrb[89].mxu0  ;;  %v12061_v46 = vpack.i.bf16 %v6293_v41, %v6294_v42  ;;  %v5995_v49 = vpack.c.bf16 %v5982_v9, %v14660_v20  ;;  %v6290_v7 = vsel %vm1511_vm1, %v6272_v4, %v6273_v6 }
 0xc28   : > { %v5969_v53 = vadd.f32 %v14604_v60, %v5923_v5  ;;  %10408 = vmatmul.mubr.msk.bf16.gmra.mrb[132].mxu1 %vm2538_vm11, %v5994_v59  ;;  %12067 = vrot.lane.b32.xlu0 %v12066_v26, %s15907_s3  ;;  %v11414_v40 = vpop.f32.mrb[90].mxu0  ;;  %v6291_v27 = vsel %vm1511_vm1, %v6271_v32, %v6272_v4  ;;  %v6292_v21 = vsel %vm1511_vm1, %v6270_v44, %v6271_v32 }
 0xc29   : > { %v14695_v15 = vmax.f32 %v5971_v37, 0.0  ;;  %v5972_v28 = vadd.f32 %v11414_v40, %v14604_v60  ;;  %12062 = vrot.lane.b32.xlu1 %v12061_v46, %s15833_s2  ;;  %v5926_v51 = vpop.f32.mrb[91].mxu0  ;;  %v12071_v55 = vpack.i.bf16 %v6291_v27, %v6292_v21  ;;  %6125 = vmatprep.mubr.bf16.mxu1 %v12752_v47  ;;  %v14704_v57 = vsel %vm1414_vm2, %v6221_v17, %v6222_v22 }
 0xc2a   : > { %v14706_v45 = vmax.f32 %v5969_v53, 0.0  ;;  %v5970_v29 = vadd.f32 %v14604_v60, %v5926_v51  ;;  %v14711_v50 = vsel %vm1414_vm2, %v6222_v22, %v6223_v36  ;;  %v14717_v16 = vsel %vm1414_vm2, %v6224_v10, %v6225_v43 }
 0xc2b   : > { %v14719_v59 = vmax.f32 %v5972_v28, 0.0  ;;  %v14723_v34 = vsel %vm1414_vm2, %v6223_v36, %v6224_v10  ;;  %v6276_v17 = vrot.slane %v14695_v15, 1  ;;  %v6228_v4 = vrot.slane %v14695_v15, 7 }
 0xc2c   : > { %v6226_v11 = vrot.slane %v14706_v45, 7  ;;  %v6274_v8 = vrot.slane %v14706_v45, 1  ;;  %v14728_v31 = vmax.f32 %v5970_v29, 0.0  ;;  %12077 = vrot.lane.b32.xlu0 %v12076_v48, %s15907_s3 }
 0xc2d   : > { %v6229_v39 = vrot.slane %v14719_v59, 7  ;;  %v6277_v35 = vrot.slane %v14719_v59, 1  ;;  %12072 = vrot.lane.b32.xlu1 %v12071_v55, %s15833_s2  ;;  %v12096_v61 = vpack.i.bf16 %v14719_v59, %v14695_v15  ;;  %v5998_v56 = vpack.c.bf16 %v14719_v59, %v14695_v15 }
 0xc2e   : > { %v6227_v42 = vrot.slane %v14728_v31, 7  ;;  %v6275_v3 = vrot.slane %v14728_v31, 1  ;;  %v11417_v14 = vpop.f32.mrb[92].mxu0  ;;  %v12086_v33 = vpack.i.bf16 %v14728_v31, %v14706_v45  ;;  %v6289_v58 = vsel %vm1511_vm1, %v6273_v6, %v6274_v8 }
 0xc2f   : > { %v5975_v0 = vadd.f32 %v11417_v14, %v14604_v60  ;;  %v5939_v63 = vpop.f32.mrb[93].mxu0  ;;  %v12081_v2 = vpack.i.bf16 %v6289_v58, %v6290_v7  ;;  %v6286_v20 = vsel %vm1511_vm1, %v6276_v17, %v6277_v35  ;;  %v5997_v38 = vpack.c.bf16 %v14728_v31, %v14706_v45 }
 0xc30   : > { %v5973_v22 = vadd.f32 %v14604_v60, %v5939_v63  ;;  %10409 = vmatmul.mubr.msk.bf16.gmra.mrb[136].mxu1 %vm2538_vm11, %v5995_v49  ;;  %12087 = vrot.lane.b32.xlu0 %v12086_v33, %s15907_s3  ;;  %v11418_v44 = vpop.f32.mrb[94].mxu0  ;;  %v6287_v9 = vsel %vm1511_vm1, %v6275_v3, %v6276_v17  ;;  %v6288_v6 = vsel %vm1511_vm1, %v6274_v8, %v6275_v3 }
 0xc31   : > { %v5991_v48 = vmax.f32 %v5975_v0, 0.0  ;;  %v5976_v36 = vadd.f32 %v11418_v44, %v14604_v60  ;;  %12082 = vrot.lane.b32.xlu1 %v12081_v2, %s15833_s2  ;;  %v5942_v32 = vpop.f32.mrb[95].mxu0  ;;  %v12091_v54 = vpack.i.bf16 %v6287_v9, %v6288_v6  ;;  %6135 = vmatprep.mubr.bf16.mxu1 %v12752_v47  ;;  %v14764_v26 = vsel %vm1414_vm2, %v6225_v43, %v6226_v11  ;;  %v12318_v44 = vld [vmem:[%s15908_s5] sm:$0xff]  }
 0xc32   : > { %v5989_v41 = vmax.f32 %v5973_v22, 0.0  ;;  %v5974_v37 = vadd.f32 %v14604_v60, %v5942_v32  ;;  %v14769_v5 = vsel %vm1414_vm2, %v6226_v11, %v6227_v42  ;;  %v14775_v46 = vsel %vm1414_vm2, %v6228_v4, %v6229_v39 }
 0xc33   : > { %v6232_v49 = vrot.slane %v5991_v48, 7  ;;  %v5992_v7 = vmax.f32 %v5976_v36, 0.0  ;;  %v14779_v10 = vsel %vm1414_vm2, %v6227_v42, %v6228_v4  ;;  %v6280_v43 = vrot.slane %v5991_v48, 1 }
 0xc34   : > { %v6230_v53 = vrot.slane %v5989_v41, 7  ;;  %v6278_v40 = vrot.slane %v5989_v41, 1  ;;  %v5990_v60 = vmax.f32 %v5974_v37, 0.0  ;;  %12097 = vrot.lane.b32.xlu0 %v12096_v61, %s15907_s3  ;;  %v12319_v37 = vld [vmem:[%s15908_s5 + $0x8] sm:$0xff]  }
 0xc35   : > { %v6233_v27 = vrot.slane %v5992_v7, 7  ;;  %v6281_v21 = vrot.slane %v5992_v7, 1  ;;  %12092 = vrot.lane.b32.xlu1 %v12091_v54, %s15833_s2  ;;  %v12116_v28 = vpack.i.bf16 %v5992_v7, %v5991_v48  ;;  %v6000_v51 = vpack.c.bf16 %v5992_v7, %v5991_v48 }
 0xc36   : > { %v6231_v55 = vrot.slane %v5990_v60, 7  ;;  %v6279_v45 = vrot.slane %v5990_v60, 1  ;;  %v12106_v29 = vpack.i.bf16 %v5990_v60, %v5989_v41  ;;  %v6285_v17 = vsel %vm1511_vm1, %v6277_v35, %v6278_v40 }
 0xc37   : > { %v12101_v11 = vpack.i.bf16 %v6285_v17, %v6286_v20  ;;  %v6282_v8 = vsel %vm1511_vm1, %v6280_v43, %v6281_v21  ;;  %v6297_v31 = vsel %vm1511_vm1, %v6281_v21, %v6266_v23  ;;  %v5999_v61 = vpack.c.bf16 %v5990_v60, %v5989_v41 }
 0xc38   : > { %10410 = vmatmul.mubr.msk.bf16.gmra.mrb[140].mxu1 %vm2538_vm11, %v5996_v24  ;;  %12107 = vrot.lane.b32.xlu0 %v12106_v29, %s15907_s3  ;;  %v6283_v35 = vsel %vm1511_vm1, %v6279_v45, %v6280_v43  ;;  %v6284_v42 = vsel %vm1511_vm1, %v6278_v40, %v6279_v45  ;;  %v6313_v3 = vsel %vm1494_vm3, 0.0, %v6297_v31  ;;  %v6249_v23 = vsel %vm1414_vm2, %v6233_v27, %v6218_v52 }
 0xc39   : > { %12102 = vrot.lane.b32.xlu1 %v12101_v11, %s15833_s2  ;;  %v12111_v62 = vpack.i.bf16 %v6283_v35, %v6284_v42  ;;  %6145 = vmatprep.mubr.bf16.mxu1 %v12752_v47  ;;  %v12121_v13 = vpack.i.bf16 %v6313_v3, %v6282_v8  ;;  %v14812_v24 = vsel %vm1414_vm2, %v6229_v39, %v6230_v53  ;;  %v6250_v63 = vsel %vm1382_vm4, 0.0, %v6249_v23 }
 0xc3a   : > { %v14816_v14 = vsel %vm1414_vm2, %v6230_v53, %v6231_v55  ;;  %v14820_v18 = vsel %vm1414_vm2, %v6232_v49, %v6233_v27  ;;  %v14824_v52 = vsel %vm1414_vm2, %v6231_v55, %v6232_v49 }
 0xc3c   : > { %12117 = vrot.lane.b32.xlu0 %v12116_v28, %s15907_s3 }
 0xc3d   : > { %12112 = vrot.lane.b32.xlu1 %v12111_v62, %s15833_s2 }
 0xc40   : > { %10411 = vmatmul.mubr.msk.bf16.gmra.mrb[144].mxu1 %vm2538_vm11, %v5997_v38 }
 0xc41   : > { %12122 = vrot.lane.b32.xlu1 %v12121_v13, %s15833_s2  ;;  %6155 = vmatprep.mubr.bf16.mxu1 %v12752_v47  ;;  %s15909_s2 = sld [smem:[#allocation28_spill]] }
 0xc48   : > { %10412 = vmatmul.mubr.msk.bf16.gmra.mrb[148].mxu1 %vm2538_vm11, %v5998_v56 }
 0xc49   : > { %6165 = vmatprep.mubr.bf16.mxu1 %v12752_v47 }
 0xc50   : > { %10413 = vmatmul.mubr.msk.bf16.gmra.mrb[152].mxu1 %vm2538_vm11, %v5999_v61 }
 0xc51   : > { %6175 = vmatprep.mubr.bf16.mxu1 %v12752_v47 }
 0xc58   : > { %10414 = vmatmul.mubr.msk.bf16.gmra.mrb[156].mxu1 %vm2538_vm11, %v6000_v51 }
 0xc92   : > { %v12048_v39 = vpop.permute.xlu0 %12047 }
 0xc93   : > { %v12050_v33 = vunpack.i.h.bf16 %v12048_v39  ;;  %v12049_v58 = vunpack.i.l.bf16 %v12048_v39 }
 0xc95   : > { %v12053_v0 = vpop.permute.xlu1 %12052  ;;  %v6442_v56 = vsel %vm2538_vm11, %v6250_v63, %v12049_v58  ;;  %v6443_v20 = vsel %vm2538_vm11, %v14658_v25, %v12050_v33 }
 0xc96   : > { %v12055_v2 = vunpack.i.h.bf16 %v12053_v0  ;;  %v12054_v15 = vunpack.i.l.bf16 %v12053_v0  ;;  %v12058_v59 = vpop.permute.xlu0 %12057 }
 0xc97   : > { %v12060_v6 = vunpack.i.h.bf16 %v12058_v59  ;;  %v12059_v48 = vunpack.i.l.bf16 %v12058_v59 }
 0xc98   : > { %v6458_v38 = vsel %vm4477_vm12, %v6442_v56, %v12054_v15  ;;  %v6459_v4 = vsel %vm4477_vm12, %v6443_v20, %v12055_v2  ;;  %v6475_v22 = vpack.c.bf16 %v12055_v2, %v12054_v15  ;;  %v12322_v56 = vld [vmem:[%s15908_s5 + $0x20] sm:$0xff]  }
 0xc99   : > { %v6474_v9 = vpack.c.bf16 %v6459_v4, %v6458_v38  ;;  %v6445_v25 = vsel %vm2538_vm11, %v14639_v30, %v12060_v6  ;;  %v6444_v49 = vsel %vm2538_vm11, %v14665_v19, %v12059_v48  ;;  %v12320_v30 = vld [vmem:[%s15908_s5 + $0x10] sm:$0xff]  }
 0xc9a   : > { %v12068_v36 = vpop.permute.xlu0 %12067  ;;  %10433 = vmatprep.mubr.msk.bf16.mxu0 %vm2104_vm9, %v6475_v22 }
 0xc9b   : > { %v12063_v32 = vpop.permute.xlu1 %12062  ;;  %6667 = vmatmul.mubr.bf16.vlgmr.msra.gmra.mrb[96].mxu0 %v6474_v9  ;;  %v12070_v7 = vunpack.i.h.bf16 %v12068_v36  ;;  %v12069_v43 = vunpack.i.l.bf16 %v12068_v36 }
 0xc9c   : > { %v12065_v54 = vunpack.i.h.bf16 %v12063_v32  ;;  %v12064_v41 = vunpack.i.l.bf16 %v12063_v32  ;;  %7149 = vmatpush1.bf16.msra.mxu0 %v12318_v44 }
 0xc9d   : > { %7150 = vmatprep.subr.bf16.mxu0 %v12752_v47  ;;  %v6446_v19 = vsel %vm2538_vm11, %v14704_v57, %v12069_v43  ;;  %v6447_v45 = vsel %vm2538_vm11, %v14711_v50, %v12070_v7  ;;  %v12321_v57 = vld [vmem:[%s15908_s5 + $0x18] sm:$0xff]  }
 0xc9e   : > { %v6477_v53 = vpack.c.bf16 %v12065_v54, %v12064_v41  ;;  %v12078_v40 = vpop.permute.xlu0 %12077  ;;  %v6460_v60 = vsel %vm4477_vm12, %v6444_v49, %v12064_v41  ;;  %v6461_v27 = vsel %vm4477_vm12, %v6445_v25, %v12065_v54 }
 0xc9f   : > { %v12073_v21 = vpop.permute.xlu1 %12072  ;;  %v6476_v28 = vpack.c.bf16 %v6461_v27, %v6460_v60  ;;  %v12080_v29 = vunpack.i.h.bf16 %v12078_v40  ;;  %v12079_v17 = vunpack.i.l.bf16 %v12078_v40  ;;  %v12324_v27 = vld [vmem:[%s15908_s5 + $0x30] sm:$0xff]  }
 0xca0   : > { %v12075_v51 = vunpack.i.h.bf16 %v12073_v21  ;;  %v12074_v55 = vunpack.i.l.bf16 %v12073_v21  ;;  %10434 = vmatprep.mubr.msk.bf16.mxu0 %vm2104_vm9, %v6477_v53  ;;  %7151 = vmatpush1.bf16.msra.mxu0 %v12319_v37 }
 0xca1   : > { %7152 = vmatprep.subr.bf16.mxu0 %v12752_v47  ;;  %v6449_v50 = vsel %vm2538_vm11, %v14717_v16, %v12080_v29  ;;  %v6448_v62 = vsel %vm2538_vm11, %v14723_v34, %v12079_v17 }
 0xca2   : > { %v6479_v11 = vpack.c.bf16 %v12075_v51, %v12074_v55  ;;  %v12088_v8 = vpop.permute.xlu0 %12087  ;;  %v6462_v31 = vsel %vm4477_vm12, %v6446_v19, %v12074_v55  ;;  %v6463_v61 = vsel %vm4477_vm12, %v6447_v45, %v12075_v51 }
 0xca3   : > { %v12083_v35 = vpop.permute.xlu1 %12082  ;;  %6677 = vmatmul.mubr.bf16.gmra.mrb[100].mxu0 %v6476_v28  ;;  %v6478_v42 = vpack.c.bf16 %v6463_v61, %v6462_v31  ;;  %v12090_v13 = vunpack.i.h.bf16 %v12088_v8  ;;  %v12089_v39 = vunpack.i.l.bf16 %v12088_v8  ;;  %v12330_v61 = vld [vmem:[%s15908_s5 + $0x60] sm:$0xff]  }
 0xca4   : > { %v12085_v3 = vunpack.i.h.bf16 %v12083_v35  ;;  %v12084_v23 = vunpack.i.l.bf16 %v12083_v35  ;;  %10435 = vmatprep.mubr.msk.bf16.mxu0 %vm2104_vm9, %v6479_v11  ;;  %7153 = vmatpush1.bf16.msra.mxu0 %v12320_v30 }
 0xca5   : > { %7154 = vmatprep.subr.bf16.mxu0 %v12752_v47  ;;  %v6450_v16 = vsel %vm2538_vm11, %v14764_v26, %v12089_v39  ;;  %v6451_v34 = vsel %vm2538_vm11, %v14769_v5, %v12090_v13  ;;  %v12323_v26 = vld [vmem:[%s15908_s5 + $0x28] sm:$0xff]   ;;  %6956 = vmatpush1.bf16.msra.mxu1 %v12330_v61  ;;  %v12329_v13 = vld [vmem:[%s15908_s5 + $0x58] sm:$0xff]   ;;  %v12334_v39 = vld [vmem:[%s15908_s5 + $0x80] sm:$0xff]  }
 0xca6   : > { %v12098_v33 = vpop.permute.xlu0 %12097  ;;  %v6464_v58 = vsel %vm4477_vm12, %v6448_v62, %v12084_v23  ;;  %v6465_v0 = vsel %vm4477_vm12, %v6449_v50, %v12085_v3  ;;  %v6481_v4 = vpack.c.bf16 %v12085_v3, %v12084_v23  ;;  %6957 = vmatprep.subr.bf16.mxu1 %v12752_v47  ;;  %v12327_v3 = vld [vmem:[%s15908_s5 + $0x48] sm:$0xff]   ;;  %v12332_v23 = vld [vmem:[%s15908_s5 + $0x70] sm:$0xff]   ;;  %v12333_v50 = vld [vmem:[%s15908_s5 + $0x78] sm:$0xff]  }
 0xca7   : > { %v12093_v63 = vpop.permute.xlu1 %12092  ;;  %v6480_v2 = vpack.c.bf16 %v6465_v0, %v6464_v58  ;;  %v12100_v20 = vunpack.i.h.bf16 %v12098_v33  ;;  %v12099_v38 = vunpack.i.l.bf16 %v12098_v33  ;;  %v12335_v33 = vld [vmem:[%s15908_s5 + $0x88] sm:$0xff]   ;;  %v12336_v0 = vld [vmem:[%s15908_s5 + $0x90] sm:$0xff]  }
 0xca8   : > { %v12095_v15 = vunpack.i.h.bf16 %v12093_v63  ;;  %v12094_v59 = vunpack.i.l.bf16 %v12093_v63  ;;  %7155 = vmatpush1.bf16.msra.mxu0 %v12321_v57  ;;  %v12328_v57 = vld [vmem:[%s15908_s5 + $0x50] sm:$0xff]   ;;  %v12337_v63 = vld [vmem:[%s15908_s5 + $0x98] sm:$0xff]  }
 0xca9   : > { %7156 = vmatprep.subr.bf16.mxu0 %v12752_v47  ;;  %v6453_v5 = vsel %vm2538_vm11, %v14775_v46, %v12100_v20  ;;  %v6452_v54 = vsel %vm2538_vm11, %v14779_v10, %v12099_v38  ;;  %v12340_v38 = vld [vmem:[%s15908_s5 + $0xb0] sm:$0xff]  }
 0xcaa   : > { %v12108_v22 = vpop.permute.xlu0 %12107  ;;  %v6466_v44 = vsel %vm4477_vm12, %v6450_v16, %v12094_v59  ;;  %v6467_v9 = vsel %vm4477_vm12, %v6451_v34, %v12095_v15  ;;  %v6483_v51 = vpack.c.bf16 %v12095_v15, %v12094_v59  ;;  %v12339_v15 = vld [vmem:[%s15908_s5 + $0xa8] sm:$0xff]   ;;  %v14940_v59 = vsub.s32 0, %v13041_v1 }
 0xcab   : > { %v12103_v6 = vpop.permute.xlu1 %12102  ;;  %6687 = vmatmul.mubr.bf16.gmra.mrb[104].mxu0 %v6478_v42  ;;  %v6482_v48 = vpack.c.bf16 %v6467_v9, %v6466_v44  ;;  %v12110_v41 = vunpack.i.h.bf16 %v12108_v22  ;;  %v12109_v37 = vunpack.i.l.bf16 %v12108_v22  ;;  %v12326_v42 = vld [vmem:[%s15908_s5 + $0x40] sm:$0xff]   ;;  %v14944_v16 = vsub.s32 1, %v13041_v1 }
 0xcac   : > { %v12105_v36 = vunpack.i.h.bf16 %v12103_v6  ;;  %v12104_v32 = vunpack.i.l.bf16 %v12103_v6  ;;  %10436 = vmatprep.mubr.msk.bf16.mxu0 %vm2104_vm9, %v6481_v4  ;;  %7157 = vmatpush1.bf16.msra.mxu0 %v12322_v56  ;;  %v6007_v56 = vld [vmem:[%s15909_s2] sm:$0x3]  ;;  %s15910_s2 = sld [smem:[#allocation30_spill]] }
 0xcad   : > { %7158 = vmatprep.subr.bf16.mxu0 %v12752_v47  ;;  %v6454_v46 = vsel %vm2538_vm11, %v14812_v24, %v12109_v37  ;;  %v6455_v10 = vsel %vm2538_vm11, %v14816_v14, %v12110_v41  ;;  %v12325_v24 = vld [vmem:[%s15908_s5 + $0x38] sm:$0xff]   ;;  %v14947_v34 = vrot.slane %v6007_v56, %v14940_v59  ;;  %v14950_v20 = vrot.slane %v6007_v56, %v14944_v16 }
 0xcae   : > { %v12118_v25 = vpop.permute.xlu0 %12117  ;;  %v6468_v49 = vsel %vm4477_vm12, %v6452_v54, %v12104_v32  ;;  %v6469_v7 = vsel %vm4477_vm12, %v6453_v5, %v12105_v36 }
 0xcaf   : > { %v12113_v43 = vpop.permute.xlu1 %12112  ;;  %v6484_v53 = vpack.c.bf16 %v6469_v7, %v6468_v49  ;;  %v12120_v21 = vunpack.i.h.bf16 %v12118_v25  ;;  %v12119_v28 = vunpack.i.l.bf16 %v12118_v25 }
 0xcb0   : > { %v12115_v40 = vunpack.i.h.bf16 %v12113_v43  ;;  %v12114_v60 = vunpack.i.l.bf16 %v12113_v43  ;;  %7159 = vmatpush1.bf16.msra.mxu0 %v12323_v26 }
 0xcb1   : > { %7160 = vmatprep.subr.bf16.mxu0 %v12752_v47  ;;  %v6457_v14 = vsel %vm2538_vm11, %v14820_v18, %v12120_v21  ;;  %v6456_v11 = vsel %vm2538_vm11, %v14824_v52, %v12119_v28  ;;  %v12331_v18 = vld [vmem:[%s15908_s5 + $0x68] sm:$0xff]   ;;  %v6485_v52 = vpack.c.bf16 %v12105_v36, %v12104_v32  ;;  %v12341_v32 = vld [vmem:[%s15908_s5 + $0xb8] sm:$0xff]  }
 0xcb2   : > { %v6470_v55 = vsel %vm4477_vm12, %v6454_v46, %v12114_v60  ;;  %v6471_v30 = vsel %vm4477_vm12, %v6455_v10, %v12115_v40  ;;  %6958 = vmatpush1.bf16.msra.mxu1 %v12331_v18  ;;  %v6487_v62 = vpack.c.bf16 %v12115_v40, %v12114_v60 }
 0xcb3   : > { %6697 = vmatmul.mubr.bf16.gmra.mrb[108].mxu0 %v6480_v2  ;;  %v12123_v19 = vpop.permute.xlu1 %12122  ;;  %v6486_v45 = vpack.c.bf16 %v6471_v30, %v6470_v55  ;;  %6959 = vmatprep.subr.bf16.mxu1 %v12752_v47  ;;  %v12338_v2 = vld [vmem:[%s15908_s5 + $0xa0] sm:$0xff]   ;;  %s15913_s5 = sld [smem:[#allocation32_spill]] }
 0xcb4   : > { %v12125_v29 = vunpack.i.h.bf16 %v12123_v19  ;;  %v12124_v17 = vunpack.i.l.bf16 %v12123_v19  ;;  %10437 = vmatprep.mubr.msk.bf16.mxu0 %vm2104_vm9, %v6483_v51  ;;  %7161 = vmatpush1.bf16.msra.mxu0 %v12324_v27 }
 0xcb5   : > { %7162 = vmatprep.subr.bf16.mxu0 %v12752_v47 }
 0xcb6   : > { %v6472_v8 = vsel %vm4477_vm12, %v6456_v11, %v12124_v17  ;;  %v6473_v31 = vsel %vm4477_vm12, %v6457_v14, %v12125_v29  ;;  %6960 = vmatpush1.bf16.msra.mxu1 %v12332_v23  ;;  %v6489_v58 = vpack.c.bf16 %v12125_v29, %v12124_v17 }
 0xcb7   : > { %v6488_v35 = vpack.c.bf16 %v6473_v31, %v6472_v8  ;;  %6961 = vmatprep.subr.bf16.mxu1 %v12752_v47 }
 0xcb8   : > { %7163 = vmatpush1.bf16.msra.mxu0 %v12325_v24 }
 0xcb9   : > { %7164 = vmatprep.subr.bf16.mxu0 %v12752_v47 }
 0xcba   : > { %6962 = vmatpush1.bf16.msra.mxu1 %v12333_v50 }
 0xcbb   : > { %6707 = vmatmul.mubr.bf16.gmra.mrb[112].mxu0 %v6482_v48  ;;  %6963 = vmatprep.subr.bf16.mxu1 %v12752_v47 }
 0xcbc   : > { %10438 = vmatprep.mubr.msk.bf16.mxu0 %vm2104_vm9, %v6485_v52  ;;  %7165 = vmatpush1.bf16.msra.mxu0 %v12326_v42 }
 0xcbd   : > { %7166 = vmatprep.subr.bf16.mxu0 %v12752_v47 }
 0xcbe   : > { %6964 = vmatpush1.bf16.msra.mxu1 %v12334_v39 }
 0xcbf   : > { %6965 = vmatprep.subr.bf16.mxu1 %v12752_v47 }
 0xcc0   : > { %7167 = vmatpush1.bf16.msra.mxu0 %v12327_v3 }
 0xcc1   : > { %7168 = vmatprep.subr.bf16.mxu0 %v12752_v47 }
 0xcc2   : > { %6966 = vmatpush1.bf16.msra.mxu1 %v12335_v33 }
 0xcc3   : > { %6717 = vmatmul.mubr.bf16.gmra.mrb[116].mxu0 %v6484_v53  ;;  %6967 = vmatprep.subr.bf16.mxu1 %v12752_v47 }
 0xcc4   : > { %10439 = vmatprep.mubr.msk.bf16.mxu0 %vm2104_vm9, %v6487_v62  ;;  %7169 = vmatpush1.bf16.msra.mxu0 %v12328_v57 }
 0xcc5   : > { %7170 = vmatprep.subr.bf16.mxu0 %v12752_v47 }
 0xcc6   : > { %6968 = vmatpush1.bf16.msra.mxu1 %v12336_v0 }
 0xcc7   : > { %6969 = vmatprep.subr.bf16.mxu1 %v12752_v47 }
 0xcc8   : > { %7171 = vmatpush1.bf16.msra.mxu0 %v12329_v13 }
 0xcca   : > { %6970 = vmatpush1.bf16.msra.mxu1 %v12337_v63 }
 0xccb   : > { %6727 = vmatmul.mubr.bf16.gmra.mrb[120].mxu0 %v6486_v45  ;;  %6971 = vmatprep.subr.bf16.mxu1 %v12752_v47 }
 0xccc   : > { %10440 = vmatprep.mubr.msk.bf16.mxu0 %vm2104_vm9, %v6489_v58 }
 0xcce   : > { %6972 = vmatpush1.bf16.msra.mxu1 %v12338_v2 }
 0xccf   : > { %6973 = vmatprep.subr.bf16.mxu1 %v12752_v47 }
 0xcd2   : > { %6974 = vmatpush1.bf16.msra.mxu1 %v12339_v15 }
 0xcd3   : > { %6737 = vmatmul.mubr.bf16.gmra.mrb[124].mxu0 %v6488_v35  ;;  %6975 = vmatprep.subr.bf16.mxu1 %v12752_v47 }
 0xcd6   : > { %6976 = vmatpush1.bf16.msra.mxu1 %v12340_v38 }
 0xcd7   : > { %6977 = vmatprep.subr.bf16.mxu1 %v12752_v47 }
 0xcda   : > { %6978 = vmatpush1.bf16.msra.mxu1 %v12341_v32 }
 0xcf3   : > { %v6107_v4 = vpop.f32.mrb[128].mxu1 }
 0xcf4   : > { %v6108_v22 = vadd.f32 %v6107_v4, %v14947_v34  ;;  %v6109_v44 = vpop.f32.mrb[129].mxu1 }
 0xcf5   : > { %v6110_v9 = vadd.f32 %v6109_v44, %v14950_v20  ;;  %v6111_v6 = vpop.f32.mrb[130].mxu1 }
 0xcf6   : > { %v6112_v48 = vadd.f32 %v6111_v6, %v14947_v34  ;;  %v6113_v36 = vpop.f32.mrb[131].mxu1  ;;  %v6186_v5 = vmax.f32 %v6108_v22, 0.0 }
 0xcf7   : > { %v6114_v26 = vadd.f32 %v6113_v36, %v14950_v20  ;;  %v6187_v41 = vmax.f32 %v6110_v9, 0.0 }
 0xcf8   : > { %v6188_v54 = vmax.f32 %v6112_v48, 0.0 }
 0xcf9   : > { %v6189_v37 = vmax.f32 %v6114_v26, 0.0 }
 0xcfa   : > { %v6779_v25 = vpack.c.bf16 %v6188_v54, %v6186_v5 }
 0xcfb   : > { %v6780_v49 = vpack.c.bf16 %v6189_v37, %v6187_v41  ;;  %v6117_v7 = vpop.f32.mrb[132].mxu1 }
 0xcfc   : > { %v6118_v43 = vadd.f32 %v6117_v7, %v14947_v34  ;;  %v6119_v53 = vpop.f32.mrb[133].mxu1 }
 0xcfd   : > { %v6120_v40 = vadd.f32 %v6119_v53, %v14950_v20  ;;  %v6121_v60 = vpop.f32.mrb[134].mxu1  ;;  %10473 = vmatprep.mubr.msk.bf16.mxu0 %vm1943_vm8, %v6780_v49 }
 0xcfe   : > { %v6122_v27 = vadd.f32 %v6121_v60, %v14947_v34  ;;  %v6123_v46 = vpop.f32.mrb[135].mxu1  ;;  %7181 = vmatmul.mubr.bf16.vlgmr.msra.gmra.mrb[128].mxu0 %v6779_v25  ;;  %v6190_v21 = vmax.f32 %v6118_v43, 0.0 }
 0xcff   : > { %v6124_v10 = vadd.f32 %v6123_v46, %v14950_v20  ;;  %v6191_v51 = vmax.f32 %v6120_v40, 0.0 }
 0xd00   : > { %v6192_v28 = vmax.f32 %v6122_v27, 0.0 }
 0xd01   : > { %v6193_v55 = vmax.f32 %v6124_v10, 0.0 }
 0xd02   : > { %v6781_v30 = vpack.c.bf16 %v6192_v28, %v6190_v21 }
 0xd03   : > { %v6782_v19 = vpack.c.bf16 %v6193_v55, %v6191_v51  ;;  %v6127_v45 = vpop.f32.mrb[136].mxu1 }
 0xd04   : > { %v6128_v29 = vadd.f32 %v6127_v45, %v14947_v34  ;;  %v6129_v17 = vpop.f32.mrb[137].mxu1 }
 0xd05   : > { %v6130_v24 = vadd.f32 %v6129_v17, %v14950_v20  ;;  %v6131_v14 = vpop.f32.mrb[138].mxu1  ;;  %10474 = vmatprep.mubr.msk.bf16.mxu0 %vm1943_vm8, %v6782_v19 }
 0xd06   : > { %v6132_v11 = vadd.f32 %v6131_v14, %v14947_v34  ;;  %v6133_v8 = vpop.f32.mrb[139].mxu1  ;;  %7189 = vmatmul.mubr.bf16.gmra.mrb[132].mxu0 %v6781_v30  ;;  %v6194_v61 = vmax.f32 %v6128_v29, 0.0 }
 0xd07   : > { %v6134_v31 = vadd.f32 %v6133_v8, %v14950_v20  ;;  %v6195_v42 = vmax.f32 %v6130_v24, 0.0 }
 0xd08   : > { %v6196_v35 = vmax.f32 %v6132_v11, 0.0 }
 0xd09   : > { %v6197_v18 = vmax.f32 %v6134_v31, 0.0 }
 0xd0a   : > { %v6783_v52 = vpack.c.bf16 %v6196_v35, %v6194_v61 }
 0xd0b   : > { %v6784_v3 = vpack.c.bf16 %v6197_v18, %v6195_v42  ;;  %v6137_v23 = vpop.f32.mrb[140].mxu1 }
 0xd0c   : > { %v6138_v57 = vadd.f32 %v6137_v23, %v14947_v34  ;;  %v6139_v50 = vpop.f32.mrb[141].mxu1 }
 0xd0d   : > { %v6140_v62 = vadd.f32 %v6139_v50, %v14950_v20  ;;  %v6141_v13 = vpop.f32.mrb[142].mxu1  ;;  %10475 = vmatprep.mubr.msk.bf16.mxu0 %vm1943_vm8, %v6784_v3 }
 0xd0e   : > { %v6142_v39 = vadd.f32 %v6141_v13, %v14947_v34  ;;  %v6143_v33 = vpop.f32.mrb[143].mxu1  ;;  %7197 = vmatmul.mubr.bf16.gmra.mrb[136].mxu0 %v6783_v52  ;;  %v6198_v0 = vmax.f32 %v6138_v57, 0.0 }
 0xd0f   : > { %v6144_v58 = vadd.f32 %v6143_v33, %v14950_v20  ;;  %v6199_v2 = vmax.f32 %v6140_v62, 0.0 }
 0xd10   : > { %v6200_v63 = vmax.f32 %v6142_v39, 0.0 }
 0xd11   : > { %v6201_v15 = vmax.f32 %v6144_v58, 0.0 }
 0xd12   : > { %v6785_v56 = vpack.c.bf16 %v6200_v63, %v6198_v0 }
 0xd13   : > { %v6786_v38 = vpack.c.bf16 %v6201_v15, %v6199_v2  ;;  %v6147_v4 = vpop.f32.mrb[144].mxu1 }
 0xd14   : > { %v6148_v22 = vadd.f32 %v6147_v4, %v14947_v34  ;;  %v6149_v44 = vpop.f32.mrb[145].mxu1 }
 0xd15   : > { %v6150_v9 = vadd.f32 %v6149_v44, %v14950_v20  ;;  %v6151_v6 = vpop.f32.mrb[146].mxu1  ;;  %10476 = vmatprep.mubr.msk.bf16.mxu0 %vm1943_vm8, %v6786_v38  ;;  %v6508_v38 = vld [vmem:[%s15910_s2] sm:$0x3]  ;;  %s15911_s2 = sld [smem:[#allocation33_spill]] }
 0xd16   : > { %v6152_v48 = vadd.f32 %v6151_v6, %v14947_v34  ;;  %v6153_v36 = vpop.f32.mrb[147].mxu1  ;;  %7205 = vmatmul.mubr.bf16.gmra.mrb[140].mxu0 %v6785_v56  ;;  %v6202_v26 = vmax.f32 %v6148_v22, 0.0  ;;  %v14997_v4 = vrot.slane %v6508_v38, %v14940_v59  ;;  %v15000_v22 = vrot.slane %v6508_v38, %v14944_v16 }
 0xd17   : > { %v6154_v32 = vadd.f32 %v6153_v36, %v14950_v20  ;;  %v6203_v54 = vmax.f32 %v6150_v9, 0.0 }
 0xd18   : > { %v6204_v5 = vmax.f32 %v6152_v48, 0.0 }
 0xd19   : > { %v6205_v41 = vmax.f32 %v6154_v32, 0.0 }
 0xd1a   : > { %v6787_v37 = vpack.c.bf16 %v6204_v5, %v6202_v26 }
 0xd1b   : > { %v6788_v25 = vpack.c.bf16 %v6205_v41, %v6203_v54  ;;  %v6157_v49 = vpop.f32.mrb[148].mxu1 }
 0xd1c   : > { %v6158_v7 = vadd.f32 %v6157_v49, %v14947_v34  ;;  %v6159_v43 = vpop.f32.mrb[149].mxu1 }
 0xd1d   : > { %v6160_v53 = vadd.f32 %v6159_v43, %v14950_v20  ;;  %v6161_v40 = vpop.f32.mrb[150].mxu1  ;;  %10477 = vmatprep.mubr.msk.bf16.mxu0 %vm1943_vm8, %v6788_v25 }
 0xd1e   : > { %v6162_v60 = vadd.f32 %v6161_v40, %v14947_v34  ;;  %v6163_v27 = vpop.f32.mrb[151].mxu1  ;;  %7213 = vmatmul.mubr.bf16.gmra.mrb[144].mxu0 %v6787_v37  ;;  %v6206_v10 = vmax.f32 %v6158_v7, 0.0 }
 0xd1f   : > { %v6164_v46 = vadd.f32 %v6163_v27, %v14950_v20  ;;  %v6207_v28 = vmax.f32 %v6160_v53, 0.0 }
 0xd20   : > { %v6208_v21 = vmax.f32 %v6162_v60, 0.0 }
 0xd21   : > { %v6209_v51 = vmax.f32 %v6164_v46, 0.0 }
 0xd22   : > { %v6789_v55 = vpack.c.bf16 %v6208_v21, %v6206_v10 }
 0xd23   : > { %v6790_v30 = vpack.c.bf16 %v6209_v51, %v6207_v28  ;;  %v6167_v19 = vpop.f32.mrb[152].mxu1 }
 0xd24   : > { %v6168_v45 = vadd.f32 %v6167_v19, %v14947_v34  ;;  %v6169_v29 = vpop.f32.mrb[153].mxu1 }
 0xd25   : > { %v6170_v17 = vadd.f32 %v6169_v29, %v14950_v20  ;;  %v6171_v24 = vpop.f32.mrb[154].mxu1  ;;  %10478 = vmatprep.mubr.msk.bf16.mxu0 %vm1943_vm8, %v6790_v30 }
 0xd26   : > { %v6172_v14 = vadd.f32 %v6171_v24, %v14947_v34  ;;  %v6173_v11 = vpop.f32.mrb[155].mxu1  ;;  %7221 = vmatmul.mubr.bf16.gmra.mrb[148].mxu0 %v6789_v55  ;;  %v6210_v31 = vmax.f32 %v6168_v45, 0.0 }
 0xd27   : > { %v6174_v8 = vadd.f32 %v6173_v11, %v14950_v20  ;;  %v6211_v35 = vmax.f32 %v6170_v17, 0.0 }
 0xd28   : > { %v6212_v61 = vmax.f32 %v6172_v14, 0.0 }
 0xd29   : > { %v6213_v42 = vmax.f32 %v6174_v8, 0.0 }
 0xd2a   : > { %v6791_v18 = vpack.c.bf16 %v6212_v61, %v6210_v31 }
 0xd2b   : > { %v6792_v52 = vpack.c.bf16 %v6213_v42, %v6211_v35  ;;  %v6177_v3 = vpop.f32.mrb[156].mxu1 }
 0xd2c   : > { %v6178_v23 = vadd.f32 %v6177_v3, %v14947_v34  ;;  %v6179_v57 = vpop.f32.mrb[157].mxu1 }
 0xd2d   : > { %v6180_v50 = vadd.f32 %v6179_v57, %v14950_v20  ;;  %v6181_v62 = vpop.f32.mrb[158].mxu1  ;;  %10479 = vmatprep.mubr.msk.bf16.mxu0 %vm1943_vm8, %v6792_v52 }
 0xd2e   : > { %v6182_v13 = vadd.f32 %v6181_v62, %v14947_v34  ;;  %v6183_v39 = vpop.f32.mrb[159].mxu1  ;;  %7229 = vmatmul.mubr.bf16.gmra.mrb[152].mxu0 %v6791_v18  ;;  %v6214_v58 = vmax.f32 %v6178_v23, 0.0 }
 0xd2f   : > { %v6184_v33 = vadd.f32 %v6183_v39, %v14950_v20  ;;  %v6215_v63 = vmax.f32 %v6180_v50, 0.0 }
 0xd30   : > { %v6216_v0 = vmax.f32 %v6182_v13, 0.0 }
 0xd31   : > { %v6217_v2 = vmax.f32 %v6184_v33, 0.0 }
 0xd32   : > { %v6793_v15 = vpack.c.bf16 %v6216_v0, %v6214_v58 }
 0xd33   : > { %v6794_v56 = vpack.c.bf16 %v6217_v2, %v6215_v63 }
 0xd35   : > { %10480 = vmatprep.mubr.msk.bf16.mxu0 %vm1943_vm8, %v6794_v56  ;;  %v12344_v56 = vld [vmem:[%s15911_s2 + $0x4] ss:$8 sps:$4 sm:$0xff]  }
 0xd36   : > { %7237 = vmatmul.mubr.bf16.gmra.mrb[156].mxu0 %v6793_v15  ;;  %v12342_v15 = vld [vmem:[%s15911_s2] ss:$8 sps:$4 sm:$0xff]   ;;  %7364 = vmatprep.subr.bf16.mxu1 %v12344_v56 }
 0xd6e   : > { %v6668_v34 = vpop.f32.mrb[96].mxu0 }
 0xd6f   : > { %v6669_v44 = vadd.f32 %v6668_v34, %v14997_v4  ;;  %v6670_v20 = vpop.f32.mrb[97].mxu0 }
 0xd70   : > { %v6671_v9 = vadd.f32 %v6670_v20, %v15000_v22  ;;  %v6672_v6 = vpop.f32.mrb[98].mxu0 }
 0xd71   : > { %v6673_v48 = vadd.f32 %v6672_v6, %v14997_v4  ;;  %v6674_v36 = vpop.f32.mrb[99].mxu0  ;;  %v6747_v26 = vmax.f32 %v6669_v44, 0.0 }
 0xd72   : > { %v6675_v32 = vadd.f32 %v6674_v36, %v15000_v22  ;;  %v6748_v54 = vmax.f32 %v6671_v9, 0.0 }
 0xd73   : > { %v6749_v5 = vmax.f32 %v6673_v48, 0.0 }
 0xd74   : > { %v6750_v41 = vmax.f32 %v6675_v32, 0.0 }
 0xd75   : > { %v6819_v37 = vpack.c.bf16 %v6749_v5, %v6747_v26 }
 0xd76   : > { %v6820_v25 = vpack.c.bf16 %v6750_v41, %v6748_v54  ;;  %v6678_v49 = vpop.f32.mrb[100].mxu0 }
 0xd77   : > { %v6679_v7 = vadd.f32 %v6678_v49, %v14997_v4  ;;  %v6680_v43 = vpop.f32.mrb[101].mxu0 }
 0xd78   : > { %v6681_v53 = vadd.f32 %v6680_v43, %v15000_v22  ;;  %v6682_v40 = vpop.f32.mrb[102].mxu0  ;;  %10453 = vmatprep.mubr.msk.bf16.mxu1 %vm1943_vm8, %v6820_v25 }
 0xd79   : > { %v6683_v60 = vadd.f32 %v6682_v40, %v14997_v4  ;;  %v6684_v27 = vpop.f32.mrb[103].mxu0  ;;  %6988 = vmatmul.mubr.bf16.vlgmr.msra.gmra.mrb[160].mxu1 %v6819_v37  ;;  %v6751_v10 = vmax.f32 %v6679_v7, 0.0 }
 0xd7a   : > { %v6685_v46 = vadd.f32 %v6684_v27, %v15000_v22  ;;  %v6752_v28 = vmax.f32 %v6681_v53, 0.0  ;;  %7365 = vmatpush1.bf16.msra.mxu1 %v12342_v15 }
 0xd7b   : > { %v6753_v21 = vmax.f32 %v6683_v60, 0.0 }
 0xd7c   : > { %v6754_v51 = vmax.f32 %v6685_v46, 0.0 }
 0xd7d   : > { %v6821_v55 = vpack.c.bf16 %v6753_v21, %v6751_v10 }
 0xd7e   : > { %v6822_v30 = vpack.c.bf16 %v6754_v51, %v6752_v28  ;;  %v6688_v19 = vpop.f32.mrb[104].mxu0 }
 0xd7f   : > { %v6689_v45 = vadd.f32 %v6688_v19, %v14997_v4  ;;  %v6690_v29 = vpop.f32.mrb[105].mxu0 }
 0xd80   : > { %v6691_v17 = vadd.f32 %v6690_v29, %v15000_v22  ;;  %v6692_v24 = vpop.f32.mrb[106].mxu0  ;;  %10454 = vmatprep.mubr.msk.bf16.mxu1 %vm1943_vm8, %v6822_v30 }
 0xd81   : > { %v6693_v14 = vadd.f32 %v6692_v24, %v14997_v4  ;;  %v6694_v11 = vpop.f32.mrb[107].mxu0  ;;  %6996 = vmatmul.mubr.bf16.gmra.mrb[164].mxu1 %v6821_v55  ;;  %v6755_v31 = vmax.f32 %v6689_v45, 0.0 }
 0xd82   : > { %v6695_v8 = vadd.f32 %v6694_v11, %v15000_v22  ;;  %v6756_v35 = vmax.f32 %v6691_v17, 0.0 }
 0xd83   : > { %v6757_v61 = vmax.f32 %v6693_v14, 0.0 }
 0xd84   : > { %v6758_v42 = vmax.f32 %v6695_v8, 0.0 }
 0xd85   : > { %v6823_v18 = vpack.c.bf16 %v6757_v61, %v6755_v31 }
 0xd86   : > { %v6824_v52 = vpack.c.bf16 %v6758_v42, %v6756_v35  ;;  %v6698_v3 = vpop.f32.mrb[108].mxu0 }
 0xd87   : > { %v6699_v23 = vadd.f32 %v6698_v3, %v14997_v4  ;;  %v6700_v57 = vpop.f32.mrb[109].mxu0 }
 0xd88   : > { %v6701_v50 = vadd.f32 %v6700_v57, %v15000_v22  ;;  %v6702_v62 = vpop.f32.mrb[110].mxu0  ;;  %10455 = vmatprep.mubr.msk.bf16.mxu1 %vm1943_vm8, %v6824_v52 }
 0xd89   : > { %v6703_v13 = vadd.f32 %v6702_v62, %v14997_v4  ;;  %v6704_v39 = vpop.f32.mrb[111].mxu0  ;;  %7004 = vmatmul.mubr.bf16.gmra.mrb[168].mxu1 %v6823_v18  ;;  %v6759_v58 = vmax.f32 %v6699_v23, 0.0 }
 0xd8a   : > { %v6705_v33 = vadd.f32 %v6704_v39, %v15000_v22  ;;  %v6760_v63 = vmax.f32 %v6701_v50, 0.0 }
 0xd8b   : > { %v6761_v0 = vmax.f32 %v6703_v13, 0.0 }
 0xd8c   : > { %v6762_v2 = vmax.f32 %v6705_v33, 0.0 }
 0xd8d   : > { %v6825_v38 = vpack.c.bf16 %v6761_v0, %v6759_v58 }
 0xd8e   : > { %v6826_v34 = vpack.c.bf16 %v6762_v2, %v6760_v63  ;;  %v6708_v44 = vpop.f32.mrb[112].mxu0 }
 0xd8f   : > { %v6709_v20 = vadd.f32 %v6708_v44, %v14997_v4  ;;  %v6710_v9 = vpop.f32.mrb[113].mxu0 }
 0xd90   : > { %v6711_v6 = vadd.f32 %v6710_v9, %v15000_v22  ;;  %v6712_v48 = vpop.f32.mrb[114].mxu0  ;;  %10456 = vmatprep.mubr.msk.bf16.mxu1 %vm1943_vm8, %v6826_v34  ;;  %v12347_v34 = vld [vmem:[%s15911_s2 + $0x14] ss:$8 sps:$4 sm:$0xff]  }
 0xd91   : > { %v6713_v36 = vadd.f32 %v6712_v48, %v14997_v4  ;;  %v6714_v32 = vpop.f32.mrb[115].mxu0  ;;  %7012 = vmatmul.mubr.bf16.gmra.mrb[172].mxu1 %v6825_v38  ;;  %v6763_v5 = vmax.f32 %v6709_v20, 0.0  ;;  %7366 = vmatprep.subr.bf16.mxu1 %v12347_v34  ;;  %v12348_v48 = vld [vmem:[%s15911_s2 + $0x20] ss:$8 sps:$4 sm:$0xff]  }
 0xd92   : > { %v6715_v26 = vadd.f32 %v6714_v32, %v15000_v22  ;;  %v6764_v41 = vmax.f32 %v6711_v6, 0.0  ;;  %v12350_v6 = vld [vmem:[%s15911_s2 + $0x24] ss:$8 sps:$4 sm:$0xff]  }
 0xd93   : > { %v6765_v54 = vmax.f32 %v6713_v36, 0.0 }
 0xd94   : > { %v6766_v37 = vmax.f32 %v6715_v26, 0.0 }
 0xd95   : > { %v6827_v25 = vpack.c.bf16 %v6765_v54, %v6763_v5 }
 0xd96   : > { %v6828_v49 = vpack.c.bf16 %v6766_v37, %v6764_v41  ;;  %v6718_v7 = vpop.f32.mrb[116].mxu0 }
 0xd97   : > { %v6719_v43 = vadd.f32 %v6718_v7, %v14997_v4  ;;  %v6720_v53 = vpop.f32.mrb[117].mxu0 }
 0xd98   : > { %v6721_v40 = vadd.f32 %v6720_v53, %v15000_v22  ;;  %v6722_v60 = vpop.f32.mrb[118].mxu0  ;;  %10457 = vmatprep.mubr.msk.bf16.mxu1 %vm1943_vm8, %v6828_v49 }
 0xd99   : > { %v6723_v27 = vadd.f32 %v6722_v60, %v14997_v4  ;;  %v6724_v46 = vpop.f32.mrb[119].mxu0  ;;  %7020 = vmatmul.mubr.bf16.gmra.mrb[176].mxu1 %v6827_v25  ;;  %v6767_v21 = vmax.f32 %v6719_v43, 0.0 }
 0xd9a   : > { %v6725_v10 = vadd.f32 %v6724_v46, %v15000_v22  ;;  %v6768_v51 = vmax.f32 %v6721_v40, 0.0 }
 0xd9b   : > { %v6769_v28 = vmax.f32 %v6723_v27, 0.0 }
 0xd9c   : > { %v6770_v55 = vmax.f32 %v6725_v10, 0.0 }
 0xd9d   : > { %v6829_v30 = vpack.c.bf16 %v6769_v28, %v6767_v21 }
 0xd9e   : > { %v6830_v19 = vpack.c.bf16 %v6770_v55, %v6768_v51  ;;  %v6728_v45 = vpop.f32.mrb[120].mxu0 }
 0xd9f   : > { %v6729_v29 = vadd.f32 %v6728_v45, %v14997_v4  ;;  %v6730_v17 = vpop.f32.mrb[121].mxu0 }
 0xda0   : > { %v6731_v24 = vadd.f32 %v6730_v17, %v15000_v22  ;;  %v6732_v14 = vpop.f32.mrb[122].mxu0  ;;  %10458 = vmatprep.mubr.msk.bf16.mxu1 %vm1943_vm8, %v6830_v19 }
 0xda1   : > { %v6733_v11 = vadd.f32 %v6732_v14, %v14997_v4  ;;  %v6734_v8 = vpop.f32.mrb[123].mxu0  ;;  %7028 = vmatmul.mubr.bf16.gmra.mrb[180].mxu1 %v6829_v30  ;;  %v6771_v61 = vmax.f32 %v6729_v29, 0.0 }
 0xda2   : > { %v6735_v31 = vadd.f32 %v6734_v8, %v15000_v22  ;;  %v6772_v42 = vmax.f32 %v6731_v24, 0.0 }
 0xda3   : > { %v6773_v35 = vmax.f32 %v6733_v11, 0.0 }
 0xda4   : > { %v6774_v18 = vmax.f32 %v6735_v31, 0.0 }
 0xda5   : > { %v6831_v52 = vpack.c.bf16 %v6773_v35, %v6771_v61 }
 0xda6   : > { %v6832_v3 = vpack.c.bf16 %v6774_v18, %v6772_v42  ;;  %v6738_v23 = vpop.f32.mrb[124].mxu0 }
 0xda7   : > { %v6739_v57 = vadd.f32 %v6738_v23, %v14997_v4  ;;  %v6740_v50 = vpop.f32.mrb[125].mxu0 }
 0xda8   : > { %v6741_v62 = vadd.f32 %v6740_v50, %v15000_v22  ;;  %v6742_v13 = vpop.f32.mrb[126].mxu0  ;;  %10459 = vmatprep.mubr.msk.bf16.mxu1 %vm1943_vm8, %v6832_v3 }
 0xda9   : > { %v6743_v39 = vadd.f32 %v6742_v13, %v14997_v4  ;;  %v6744_v33 = vpop.f32.mrb[127].mxu0  ;;  %7036 = vmatmul.mubr.bf16.gmra.mrb[184].mxu1 %v6831_v52  ;;  %v6775_v0 = vmax.f32 %v6739_v57, 0.0  ;;  %v12345_v4 = vld [vmem:[%s15911_s2 + $0x10] ss:$8 sps:$4 sm:$0xff]   ;;  %s15912_s2 = sld [smem:[#allocation35_spill]] }
 0xdaa   : > { %v6745_v58 = vadd.f32 %v6744_v33, %v15000_v22  ;;  %v6776_v2 = vmax.f32 %v6741_v62, 0.0  ;;  %7367 = vmatpush1.bf16.msra.mxu1 %v12345_v4 }
 0xdab   : > { %v6777_v63 = vmax.f32 %v6743_v39, 0.0  ;;  %7368 = vmatprep.subr.bf16.mxu1 %v12350_v6 }
 0xdac   : > { %v6778_v15 = vmax.f32 %v6745_v58, 0.0  ;;  %v15098_v58 = vld [vmem:[%s15913_s5] ss:$0 sm:$0xff]  ;;  %s15914_s5 = smov 96  }
 0xdad   : > { %v6833_v56 = vpack.c.bf16 %v6777_v63, %v6775_v0 }
 0xdae   : > { %v6834_v38 = vpack.c.bf16 %v6778_v15, %v6776_v2  ;;  %7369 = vmatpush1.bf16.msra.mxu1 %v12348_v48 }
 0xdaf   : > { %v12351_v11 = vld [vmem:[%s15912_s2] ss:$8 sps:$4 sm:$0xff]   ;;  %v12353_v8 = vld [vmem:[%s15912_s2 + $0x4] ss:$8 sps:$4 sm:$0xff]   ;;  %v12356_v31 = vld [vmem:[%s15912_s2 + $0x14] ss:$8 sps:$4 sm:$0xff]  }
 0xdb0   : > { %10460 = vmatprep.mubr.msk.bf16.mxu1 %vm1943_vm8, %v6834_v38  ;;  %7925 = vmatprep.subr.bf16.mxu0 %v12353_v8  ;;  %v12354_v61 = vld [vmem:[%s15912_s2 + $0x10] ss:$8 sps:$4 sm:$0xff]   ;;  %v12359_v35 = vld [vmem:[%s15912_s2 + $0x24] ss:$8 sps:$4 sm:$0xff]   ;;  %v12357_v42 = vld [vmem:[%s15912_s2 + $0x20] ss:$8 sps:$4 sm:$0xff]  }
 0xdb1   : > { %7044 = vmatmul.mubr.bf16.gmra.mrb[188].mxu1 %v6833_v56  ;;  %7926 = vmatpush1.bf16.msra.mxu0 %v12351_v11  ;;  %v12362_v18 = vld [vmem:[%s15912_s2 + $0x34] ss:$8 sps:$4 sm:$0xff]   ;;  %v12360_v52 = vld [vmem:[%s15912_s2 + $0x30] ss:$8 sps:$4 sm:$0xff]   ;;  %v12365_v3 = vld [vmem:[%s15912_s2 + $0x44] ss:$8 sps:$4 sm:$0xff]  }
 0xdb2   : > { %7396 = vmatprep.mubr.bf16.mxu1 %v12752_v47  ;;  %7927 = vmatprep.subr.bf16.mxu0 %v12356_v31  ;;  %v12363_v23 = vld [vmem:[%s15912_s2 + $0x40] ss:$8 sps:$4 sm:$0xff]   ;;  %v12368_v57 = vld [vmem:[%s15912_s2 + $0x54] ss:$8 sps:$4 sm:$0xff]   ;;  %v12366_v50 = vld [vmem:[%s15912_s2 + $0x50] ss:$8 sps:$4 sm:$0xff]  }
 0xdb3   : > { %v12371_v62 = vld [vmem:[%s15912_s2 + $0x64] ss:$8 sps:$4 sm:$0xff]   ;;  %v12369_v13 = vld [vmem:[%s15912_s2 + $0x60] ss:$8 sps:$4 sm:$0xff]   ;;  %v12374_v39 = vld [vmem:[%s15912_s2 + $0x74] ss:$8 sps:$4 sm:$0xff]  }
 0xdb4   : > { %v12372_v33 = vld [vmem:[%s15912_s2 + $0x70] ss:$8 sps:$4 sm:$0xff]   ;;  %v12375_v63 = vld [vmem:[%s15912_s2 + $0x80] ss:$8 sps:$4 sm:$0xff]   ;;  %v12377_v2 = vld [vmem:[%s15912_s2 + $0x84] ss:$8 sps:$4 sm:$0xff]  }
 0xdb5   : > { %7928 = vmatpush1.bf16.msra.mxu0 %v12354_v61  ;;  %s15919_s2 = sld [smem:[#allocation38_spill]] }
 0xdb6   : > { %7929 = vmatprep.subr.bf16.mxu0 %v12359_v35 }
 0xdb9   : > { %7930 = vmatpush1.bf16.msra.mxu0 %v12357_v42 }
 0xdba   : > { %7931 = vmatprep.subr.bf16.mxu0 %v12362_v18 }
 0xdbd   : > { %7932 = vmatpush1.bf16.msra.mxu0 %v12360_v52 }
 0xdbe   : > { %7933 = vmatprep.subr.bf16.mxu0 %v12365_v3 }
 0xdc1   : > { %7934 = vmatpush1.bf16.msra.mxu0 %v12363_v23 }
 0xdc2   : > { %7935 = vmatprep.subr.bf16.mxu0 %v12368_v57 }
 0xdc5   : > { %7936 = vmatpush1.bf16.msra.mxu0 %v12366_v50 }
 0xdc6   : > { %7937 = vmatprep.subr.bf16.mxu0 %v12371_v62 }
 0xdc9   : > { %7938 = vmatpush1.bf16.msra.mxu0 %v12369_v13 }
 0xdca   : > { %7939 = vmatprep.subr.bf16.mxu0 %v12374_v39 }
 0xdcd   : > { %7940 = vmatpush1.bf16.msra.mxu0 %v12372_v33 }
 0xdce   : > { %7941 = vmatprep.subr.bf16.mxu0 %v12377_v2 }
 0xdd1   : > { %v15046_v44 = vpop.f32.mrb[128].mxu0  ;;  %7942 = vmatpush1.bf16.msra.mxu0 %v12375_v63 }
 0xdd2   : > { %v7184_v20 = vpop.f32.mrb[129].mxu0 }
 0xdd3   : > { %v15049_v22 = vpop.f32.mrb[130].mxu0 }
 0xdd4   : > { %v7187_v9 = vpop.f32.mrb[131].mxu0 }
 0xdd9   : > { %v15053_v36 = vpop.f32.mrb[132].mxu0 }
 0xdda   : > { %v7192_v32 = vpop.f32.mrb[133].mxu0 }
 0xddb   : > { %v15055_v26 = vpop.f32.mrb[134].mxu0 }
 0xddc   : > { %v7195_v5 = vpop.f32.mrb[135].mxu0 }
 0xde1   : > { %v15057_v54 = vpop.f32.mrb[136].mxu0 }
 0xde2   : > { %v7200_v41 = vpop.f32.mrb[137].mxu0 }
 0xde3   : > { %v15059_v37 = vpop.f32.mrb[138].mxu0 }
 0xde4   : > { %v7203_v25 = vpop.f32.mrb[139].mxu0 }
 0xde9   : > { %v15061_v49 = vpop.f32.mrb[140].mxu0 }
 0xdea   : > { %v7208_v7 = vpop.f32.mrb[141].mxu0 }
 0xdeb   : > { %v15063_v43 = vpop.f32.mrb[142].mxu0 }
 0xdec   : > { %v7211_v53 = vpop.f32.mrb[143].mxu0 }
 0xdf1   : > { %v15065_v40 = vpop.f32.mrb[144].mxu0 }
 0xdf2   : > { %v7216_v60 = vpop.f32.mrb[145].mxu0 }
 0xdf3   : > { %v15067_v27 = vpop.f32.mrb[146].mxu0 }
 0xdf4   : > { %v7219_v46 = vpop.f32.mrb[147].mxu0 }
 0xdf9   : > { %v15069_v10 = vpop.f32.mrb[148].mxu0 }
 0xdfa   : > { %v7224_v21 = vpop.f32.mrb[149].mxu0 }
 0xdfb   : > { %v15071_v28 = vpop.f32.mrb[150].mxu0 }
 0xdfc   : > { %v7227_v51 = vpop.f32.mrb[151].mxu0 }
 0xe01   : > { %v15073_v55 = vpop.f32.mrb[152].mxu0 }
 0xe02   : > { %v7232_v30 = vpop.f32.mrb[153].mxu0 }
 0xe03   : > { %v15075_v19 = vpop.f32.mrb[154].mxu0 }
 0xe04   : > { %v7235_v45 = vpop.f32.mrb[155].mxu0 }
 0xe09   : > { %v15077_v29 = vpop.f32.mrb[156].mxu0 }
 0xe0a   : > { %v7240_v17 = vpop.f32.mrb[157].mxu0 }
 0xe0b   : > { %v15079_v24 = vpop.f32.mrb[158].mxu0 }
 0xe0c   : > { %v7243_v14 = vpop.f32.mrb[159].mxu0 }
 0xe4c   : > { %v6989_v0 = vpop.f32.mrb[160].mxu1 }
 0xe4d   : > { %v7183_v15 = vadd.f32 %v15046_v44, %v6989_v0  ;;  %v6991_v56 = vpop.f32.mrb[161].mxu1 }
 0xe4e   : > { %v6992_v38 = vpop.f32.mrb[162].mxu1 }
 0xe4f   : > { %v7252_v34 = vadd.f32 %v15098_v58, %v7183_v15  ;;  %v7186_v4 = vadd.f32 %v15049_v22, %v6992_v38  ;;  %v6994_v20 = vpop.f32.mrb[163].mxu1 }
 0xe51   : > { %v15105_v9 = vmax.f32 %v7252_v34, 0.0  ;;  %v7253_v6 = vadd.f32 %v15098_v58, %v7186_v4 }
 0xe53   : > { %v7269_v48 = vmax.f32 %v7253_v6, 0.0  ;;  %v7509_v32 = vrot.slane %v15105_v9, 7  ;;  %v7557_v22 = vrot.slane %v15105_v9, 1 }
 0xe54   : > { %v6997_v5 = vpop.f32.mrb[164].mxu1 }
 0xe55   : > { %v7284_v41 = vpack.c.bf16 %v7269_v48, %v15105_v9  ;;  %v7510_v44 = vrot.slane %v7269_v48, 7  ;;  %v7191_v25 = vadd.f32 %v15053_v36, %v6997_v5  ;;  %v6999_v7 = vpop.f32.mrb[165].mxu1  ;;  %v12126_v53 = vpack.i.bf16 %v7269_v48, %v15105_v9 }
 0xe56   : > { %v7000_v60 = vpop.f32.mrb[166].mxu1  ;;  %v7558_v46 = vrot.slane %v7269_v48, 1 }
 0xe57   : > { %v7254_v21 = vadd.f32 %v15098_v58, %v7191_v25  ;;  %v7194_v51 = vadd.f32 %v15055_v26, %v7000_v60  ;;  %12127 = vrot.lane.b32.xlu0 %v12126_v53, %s15907_s3  ;;  %v7002_v30 = vpop.f32.mrb[167].mxu1  ;;  %10488 = vmatmul.mubr.msk.bf16.vlgmr.msra.gmra.mrb[192].mxu1 %vm2538_vm11, %v7284_v41  ;;  %v15121_v36 = vsel %vm1414_vm2, %v7509_v32, %v7510_v44 }
 0xe58   : > { %7406 = vmatprep.mubr.bf16.mxu1 %v12752_v47  ;;  %v7587_v45 = vsel %vm1511_vm1, %v7557_v22, %v7558_v46 }
 0xe59   : > { %v7270_v17 = vmax.f32 %v7254_v21, 0.0  ;;  %v7255_v26 = vadd.f32 %v15098_v58, %v7194_v51 }
 0xe5b   : > { %v7511_v14 = vrot.slane %v7270_v17, 7  ;;  %v7271_v11 = vmax.f32 %v7255_v26, 0.0  ;;  %v7559_v8 = vrot.slane %v7270_v17, 1 }
 0xe5c   : > { %v7005_v31 = vpop.f32.mrb[168].mxu1 }
 0xe5d   : > { %v7512_v61 = vrot.slane %v7271_v11, 7  ;;  %v7560_v35 = vrot.slane %v7271_v11, 1  ;;  %v7199_v42 = vadd.f32 %v15057_v54, %v7005_v31  ;;  %v7007_v18 = vpop.f32.mrb[169].mxu1  ;;  %v12136_v52 = vpack.i.bf16 %v7271_v11, %v7270_v17 }
 0xe5e   : > { %v7008_v3 = vpop.f32.mrb[170].mxu1  ;;  %v7285_v23 = vpack.c.bf16 %v7271_v11, %v7270_v17  ;;  %v7586_v57 = vsel %vm1511_vm1, %v7558_v46, %v7559_v8  ;;  %v15134_v50 = vsel %vm1414_vm2, %v7510_v44, %v7511_v14 }
 0xe5f   : > { %v7256_v62 = vadd.f32 %v15098_v58, %v7199_v42  ;;  %v7202_v13 = vadd.f32 %v15059_v37, %v7008_v3  ;;  %12137 = vrot.lane.b32.xlu0 %v12136_v52, %s15907_s3  ;;  %v7010_v39 = vpop.f32.mrb[171].mxu1  ;;  %v12131_v33 = vpack.i.bf16 %v7586_v57, %v7587_v45  ;;  %v7585_v54 = vsel %vm1511_vm1, %v7559_v8, %v7560_v35 }
 0xe60   : > { %10489 = vmatmul.mubr.msk.bf16.gmra.mrb[196].mxu1 %vm2538_vm11, %v7285_v23  ;;  %v15144_v0 = vsel %vm1414_vm2, %v7511_v14, %v7512_v61 }
 0xe61   : > { %v7272_v63 = vmax.f32 %v7256_v62, 0.0  ;;  %v7257_v2 = vadd.f32 %v15098_v58, %v7202_v13  ;;  %12132 = vrot.lane.b32.xlu1 %v12131_v33, %s15914_s5  ;;  %7416 = vmatprep.mubr.bf16.mxu1 %v12752_v47 }
 0xe63   : > { %v7513_v37 = vrot.slane %v7272_v63, 7  ;;  %v7561_v15 = vrot.slane %v7272_v63, 1  ;;  %v7273_v56 = vmax.f32 %v7257_v2, 0.0 }
 0xe64   : > { %v7013_v38 = vpop.f32.mrb[172].mxu1 }
 0xe65   : > { %v7514_v34 = vrot.slane %v7273_v56, 7  ;;  %v7562_v4 = vrot.slane %v7273_v56, 1  ;;  %v7207_v20 = vadd.f32 %v15061_v49, %v7013_v38  ;;  %v7015_v6 = vpop.f32.mrb[173].mxu1  ;;  %v12146_v48 = vpack.i.bf16 %v7273_v56, %v7272_v63 }
 0xe66   : > { %v7016_v5 = vpop.f32.mrb[174].mxu1  ;;  %v7286_v41 = vpack.c.bf16 %v7273_v56, %v7272_v63  ;;  %v7584_v44 = vsel %vm1511_vm1, %v7560_v35, %v7561_v15  ;;  %v15154_v25 = vsel %vm1414_vm2, %v7512_v61, %v7513_v37 }
 0xe67   : > { %v7258_v7 = vadd.f32 %v15098_v58, %v7207_v20  ;;  %v7210_v53 = vadd.f32 %v15063_v43, %v7016_v5  ;;  %12147 = vrot.lane.b32.xlu0 %v12146_v48, %s15907_s3  ;;  %v7018_v60 = vpop.f32.mrb[175].mxu1  ;;  %v12141_v46 = vpack.i.bf16 %v7584_v44, %v7585_v54  ;;  %v7583_v49 = vsel %vm1511_vm1, %v7561_v15, %v7562_v4 }
 0xe68   : > { %10490 = vmatmul.mubr.msk.bf16.gmra.mrb[200].mxu1 %vm2538_vm11, %v7286_v41  ;;  %v15164_v21 = vsel %vm1414_vm2, %v7513_v37, %v7514_v34 }
 0xe69   : > { %v7274_v51 = vmax.f32 %v7258_v7, 0.0  ;;  %v7259_v30 = vadd.f32 %v15098_v58, %v7210_v53  ;;  %12142 = vrot.lane.b32.xlu1 %v12141_v46, %s15914_s5  ;;  %7426 = vmatprep.mubr.bf16.mxu1 %v12752_v47 }
 0xe6b   : > { %v7515_v43 = vrot.slane %v7274_v51, 7  ;;  %v7563_v45 = vrot.slane %v7274_v51, 1  ;;  %v7275_v17 = vmax.f32 %v7259_v30, 0.0 }
 0xe6c   : > { %v7021_v26 = vpop.f32.mrb[176].mxu1 }
 0xe6d   : > { %v7516_v14 = vrot.slane %v7275_v17, 7  ;;  %v7564_v11 = vrot.slane %v7275_v17, 1  ;;  %v7215_v8 = vadd.f32 %v15065_v40, %v7021_v26  ;;  %v7023_v31 = vpop.f32.mrb[177].mxu1  ;;  %v12156_v61 = vpack.i.bf16 %v7275_v17, %v7274_v51 }
 0xe6e   : > { %v7024_v35 = vpop.f32.mrb[178].mxu1  ;;  %v7287_v42 = vpack.c.bf16 %v7275_v17, %v7274_v51  ;;  %v7582_v18 = vsel %vm1511_vm1, %v7562_v4, %v7563_v45  ;;  %v15174_v52 = vsel %vm1414_vm2, %v7514_v34, %v7515_v43 }
 0xe6f   : > { %v7260_v3 = vadd.f32 %v15098_v58, %v7215_v8  ;;  %v7218_v23 = vadd.f32 %v15067_v27, %v7024_v35  ;;  %12157 = vrot.lane.b32.xlu0 %v12156_v61, %s15907_s3  ;;  %v7026_v57 = vpop.f32.mrb[179].mxu1  ;;  %v12151_v62 = vpack.i.bf16 %v7582_v18, %v7583_v49  ;;  %v7581_v40 = vsel %vm1511_vm1, %v7563_v45, %v7564_v11 }
 0xe70   : > { %10491 = vmatmul.mubr.msk.bf16.gmra.mrb[204].mxu1 %vm2538_vm11, %v7287_v42  ;;  %v15184_v13 = vsel %vm1414_vm2, %v7515_v43, %v7516_v14 }
 0xe71   : > { %v7276_v39 = vmax.f32 %v7260_v3, 0.0  ;;  %v7261_v33 = vadd.f32 %v15098_v58, %v7218_v23  ;;  %12152 = vrot.lane.b32.xlu1 %v12151_v62, %s15914_s5  ;;  %7436 = vmatprep.mubr.bf16.mxu1 %v12752_v47 }
 0xe73   : > { %v7517_v27 = vrot.slane %v7276_v39, 7  ;;  %v7565_v54 = vrot.slane %v7276_v39, 1  ;;  %v7277_v63 = vmax.f32 %v7261_v33, 0.0 }
 0xe74   : > { %v7029_v2 = vpop.f32.mrb[180].mxu1 }
 0xe75   : > { %v7518_v37 = vrot.slane %v7277_v63, 7  ;;  %v7566_v15 = vrot.slane %v7277_v63, 1  ;;  %v7223_v56 = vadd.f32 %v15069_v10, %v7029_v2  ;;  %v7031_v38 = vpop.f32.mrb[181].mxu1  ;;  %v12166_v34 = vpack.i.bf16 %v7277_v63, %v7276_v39 }
 0xe76   : > { %v7032_v4 = vpop.f32.mrb[182].mxu1  ;;  %v7288_v20 = vpack.c.bf16 %v7277_v63, %v7276_v39  ;;  %v7580_v6 = vsel %vm1511_vm1, %v7564_v11, %v7565_v54  ;;  %v15194_v48 = vsel %vm1414_vm2, %v7516_v14, %v7517_v27 }
 0xe77   : > { %v7262_v5 = vadd.f32 %v15098_v58, %v7223_v56  ;;  %v7226_v41 = vadd.f32 %v15071_v28, %v7032_v4  ;;  %12167 = vrot.lane.b32.xlu0 %v12166_v34, %s15907_s3  ;;  %v7034_v44 = vpop.f32.mrb[183].mxu1  ;;  %v12161_v7 = vpack.i.bf16 %v7580_v6, %v7581_v40  ;;  %v7579_v10 = vsel %vm1511_vm1, %v7565_v54, %v7566_v15 }
 0xe78   : > { %10492 = vmatmul.mubr.msk.bf16.gmra.mrb[208].mxu1 %vm2538_vm11, %v7288_v20  ;;  %v15204_v53 = vsel %vm1414_vm2, %v7517_v27, %v7518_v37 }
 0xe79   : > { %v7278_v60 = vmax.f32 %v7262_v5, 0.0  ;;  %v7263_v46 = vadd.f32 %v15098_v58, %v7226_v41  ;;  %12162 = vrot.lane.b32.xlu1 %v12161_v7, %s15914_s5  ;;  %7446 = vmatprep.mubr.bf16.mxu1 %v12752_v47 }
 0xe7b   : > { %v7519_v28 = vrot.slane %v7278_v60, 7  ;;  %v7567_v49 = vrot.slane %v7278_v60, 1  ;;  %v7279_v51 = vmax.f32 %v7263_v46, 0.0 }
 0xe7c   : > { %v7037_v30 = vpop.f32.mrb[184].mxu1 }
 0xe7d   : > { %v7520_v43 = vrot.slane %v7279_v51, 7  ;;  %v7568_v45 = vrot.slane %v7279_v51, 1  ;;  %v7231_v17 = vadd.f32 %v15073_v55, %v7037_v30  ;;  %v7039_v26 = vpop.f32.mrb[185].mxu1  ;;  %v12176_v14 = vpack.i.bf16 %v7279_v51, %v7278_v60 }
 0xe7e   : > { %v7040_v11 = vpop.f32.mrb[186].mxu1  ;;  %v7289_v8 = vpack.c.bf16 %v7279_v51, %v7278_v60  ;;  %v7578_v31 = vsel %vm1511_vm1, %v7566_v15, %v7567_v49  ;;  %v15214_v61 = vsel %vm1414_vm2, %v7518_v37, %v7519_v28 }
 0xe7f   : > { %v7264_v35 = vadd.f32 %v15098_v58, %v7231_v17  ;;  %v7234_v42 = vadd.f32 %v15075_v19, %v7040_v11  ;;  %12177 = vrot.lane.b32.xlu0 %v12176_v14, %s15907_s3  ;;  %v7042_v18 = vpop.f32.mrb[187].mxu1  ;;  %v12171_v3 = vpack.i.bf16 %v7578_v31, %v7579_v10  ;;  %v7577_v55 = vsel %vm1511_vm1, %v7567_v49, %v7568_v45 }
 0xe80   : > { %10493 = vmatmul.mubr.msk.bf16.gmra.mrb[212].mxu1 %vm2538_vm11, %v7289_v8  ;;  %v15224_v23 = vsel %vm1414_vm2, %v7519_v28, %v7520_v43 }
 0xe81   : > { %v7280_v57 = vmax.f32 %v7264_v35, 0.0  ;;  %v7265_v62 = vadd.f32 %v15098_v58, %v7234_v42  ;;  %12172 = vrot.lane.b32.xlu1 %v12171_v3, %s15914_s5  ;;  %7456 = vmatprep.mubr.bf16.mxu1 %v12752_v47 }
 0xe83   : > { %v7521_v19 = vrot.slane %v7280_v57, 7  ;;  %v7569_v40 = vrot.slane %v7280_v57, 1  ;;  %v7281_v39 = vmax.f32 %v7265_v62, 0.0 }
 0xe84   : > { %v7045_v33 = vpop.f32.mrb[188].mxu1 }
 0xe85   : > { %v7522_v27 = vrot.slane %v7281_v39, 7  ;;  %v7570_v54 = vrot.slane %v7281_v39, 1  ;;  %v7239_v63 = vadd.f32 %v15077_v29, %v7045_v33  ;;  %v7047_v2 = vpop.f32.mrb[189].mxu1  ;;  %v12186_v37 = vpack.i.bf16 %v7281_v39, %v7280_v57 }
 0xe86   : > { %v7048_v15 = vpop.f32.mrb[190].mxu1  ;;  %v7290_v56 = vpack.c.bf16 %v7281_v39, %v7280_v57  ;;  %v7576_v38 = vsel %vm1511_vm1, %v7568_v45, %v7569_v40  ;;  %v15234_v34 = vsel %vm1414_vm2, %v7520_v43, %v7521_v19 }
 0xe87   : > { %v7266_v4 = vadd.f32 %v15098_v58, %v7239_v63  ;;  %v7242_v20 = vadd.f32 %v15079_v24, %v7048_v15  ;;  %v7050_v6 = vpop.f32.mrb[191].mxu1  ;;  %12187 = vrot.lane.b32.xlu0 %v12186_v37, %s15907_s3  ;;  %v12181_v5 = vpack.i.bf16 %v7576_v38, %v7577_v55  ;;  %v7575_v29 = vsel %vm1511_vm1, %v7569_v40, %v7570_v54 }
 0xe88   : > { %10494 = vmatmul.mubr.msk.bf16.gmra.mrb[216].mxu1 %vm2538_vm11, %v7290_v56  ;;  %v15244_v41 = vsel %vm1414_vm2, %v7521_v19, %v7522_v27 }
 0xe89   : > { %v7282_v44 = vmax.f32 %v7266_v4, 0.0  ;;  %v7267_v7 = vadd.f32 %v15098_v58, %v7242_v20  ;;  %12182 = vrot.lane.b32.xlu1 %v12181_v5, %s15914_s5  ;;  %7466 = vmatprep.mubr.bf16.mxu1 %v12752_v47 }
 0xe8b   : > { %v7523_v24 = vrot.slane %v7282_v44, 7  ;;  %v7571_v10 = vrot.slane %v7282_v44, 1  ;;  %v7283_v60 = vmax.f32 %v7267_v7, 0.0 }
 0xe8d   : > { %v7524_v46 = vrot.slane %v7283_v60, 7  ;;  %v7572_v28 = vrot.slane %v7283_v60, 1  ;;  %v12196_v49 = vpack.i.bf16 %v7283_v60, %v7282_v44  ;;  %v7291_v51 = vpack.c.bf16 %v7283_v60, %v7282_v44 }
 0xe8e   : > { %v7574_v30 = vsel %vm1511_vm1, %v7570_v54, %v7571_v10  ;;  %v15253_v43 = vsel %vm1414_vm2, %v7522_v27, %v7523_v24 }
 0xe8f   : > { %12197 = vrot.lane.b32.xlu0 %v12196_v49, %s15907_s3  ;;  %v12191_v58 = vpack.i.bf16 %v7574_v30, %v7575_v29  ;;  %v7573_v47 = vsel %vm1511_vm1, %v7571_v10, %v7572_v28  ;;  %v7588_v45 = vsel %vm1511_vm1, %v7572_v28, %v7557_v22  ;;  %v7540_v17 = vsel %vm1414_vm2, %v7524_v46, %v7509_v32  ;;  %s15915_s3 = sld [smem:[#allocation37_spill]] }
 0xe90   : > { %10495 = vmatmul.mubr.msk.bf16.gmra.mrb[220].mxu1 %vm2538_vm11, %v7291_v51  ;;  %v7604_v26 = vsel %vm1494_vm3, 0.0, %v7588_v45  ;;  %v15271_v14 = vsel %vm1414_vm2, %v7523_v24, %v7524_v46  ;;  %v7541_v32 = vsel %vm1382_vm4, 0.0, %v7540_v17 }
 0xe91   : > { %12192 = vrot.lane.b32.xlu1 %v12191_v58, %s15914_s5  ;;  %v12201_v11 = vpack.i.bf16 %v7604_v26, %v7573_v47 }
 0xe95   : > { %12202 = vrot.lane.b32.xlu1 %v12201_v11, %s15914_s5  ;;  %v12380_v51 = vld [vmem:[%s15915_s3 + $0x184] ss:$16 sps:$4 sm:$0xff]   ;;  %s15916_s5 = sld [smem:[#allocation34_spill]] }
 0xe96   : > { %v12383_v58 = vld [vmem:[%s15915_s3 + $0x1a4] ss:$16 sps:$4 sm:$0xff]   ;;  %8462 = vmatprep.subr.bf16.mxu1 %v12380_v51 }
 0xec9   : > { %v12128_v22 = vpop.permute.xlu0 %12127 }
 0xeca   : > { %v12130_v8 = vunpack.i.h.bf16 %v12128_v22  ;;  %v12129_v9 = vunpack.i.l.bf16 %v12128_v22 }
 0xecc   : > { %v7733_v12 = vsel %vm2538_vm11, %v7541_v32, %v12129_v9  ;;  %v7734_v18 = vsel %vm2538_vm11, %v15121_v36, %v12130_v8  ;;  %v12381_v8 = vld [vmem:[%s15915_s3 + $0x1a0] ss:$16 sps:$4 sm:$0xff]   ;;  %v12390_v9 = vld [vmem:[%s15915_s3 + $0x188] ss:$16 sps:$4 sm:$0xff]  }
 0xed1   : > { %v12138_v3 = vpop.permute.xlu0 %12137 }
 0xed2   : > { %v12140_v40 = vunpack.i.h.bf16 %v12138_v3  ;;  %v12139_v39 = vunpack.i.l.bf16 %v12138_v3 }
 0xed3   : > { %v12133_v31 = vpop.permute.xlu1 %12132 }
 0xed4   : > { %v12135_v35 = vunpack.i.h.bf16 %v12133_v31  ;;  %v12134_v42 = vunpack.i.l.bf16 %v12133_v31  ;;  %v7735_v63 = vsel %vm2538_vm11, %v15134_v50, %v12139_v39  ;;  %v7736_v36 = vsel %vm2538_vm11, %v15144_v0, %v12140_v40  ;;  %v12392_v31 = vld [vmem:[%s15915_s3 + $0x18c] ss:$16 sps:$4 sm:$0xff]  }
 0xed5   : > { %8575 = vmatprep.subr.bf16.mxu0 %v12392_v31 }
 0xed6   : > { %v7750_v55 = vsel %vm4477_vm12, %v7734_v18, %v12135_v35  ;;  %v7749_v57 = vsel %vm4477_vm12, %v7733_v12, %v12134_v42  ;;  %v7766_v62 = vpack.c.bf16 %v12135_v35, %v12134_v42  ;;  %v12395_v35 = vld [vmem:[%s15915_s3 + $0x1ac] ss:$16 sps:$4 sm:$0xff]   ;;  %v12384_v12 = vld [vmem:[%s15915_s3 + $0x1c0] ss:$16 sps:$4 sm:$0xff]   ;;  %v12393_v18 = vld [vmem:[%s15915_s3 + $0x1a8] ss:$16 sps:$4 sm:$0xff]  }
 0xed7   : > { %v7765_v19 = vpack.c.bf16 %v7750_v55, %v7749_v57  ;;  %v12389_v55 = vld [vmem:[%s15915_s3 + $0x1e4] ss:$16 sps:$4 sm:$0xff]   ;;  %v12401_v57 = vld [vmem:[%s15915_s3 + $0x1cc] ss:$16 sps:$4 sm:$0xff]  }
 0xed8   : > { %10514 = vmatprep.mubr.msk.bf16.mxu0 %vm2104_vm9, %v7766_v62 }
 0xed9   : > { %7958 = vmatmul.mubr.bf16.vlgmr.msra.gmra.mrb[160].mxu0 %v7765_v19  ;;  %v12148_v2 = vpop.permute.xlu0 %12147 }
 0xeda   : > { %v12150_v4 = vunpack.i.h.bf16 %v12148_v2  ;;  %v12149_v20 = vunpack.i.l.bf16 %v12148_v2  ;;  %8576 = vmatpush1.bf16.msra.mxu0 %v12390_v9  ;;  %v12399_v2 = vld [vmem:[%s15915_s3 + $0x1c8] ss:$16 sps:$4 sm:$0xff]  }
 0xedb   : > { %v12143_v33 = vpop.permute.xlu1 %12142  ;;  %8577 = vmatprep.subr.bf16.mxu0 %v12395_v35 }
 0xedc   : > { %v12145_v27 = vunpack.i.h.bf16 %v12143_v33  ;;  %v12144_v54 = vunpack.i.l.bf16 %v12143_v33  ;;  %v7737_v0 = vsel %vm2538_vm11, %v15154_v25, %v12149_v20  ;;  %v7738_v29 = vsel %vm2538_vm11, %v15164_v21, %v12150_v4  ;;  %v12378_v25 = vld [vmem:[%s15915_s3 + $0x180] ss:$16 sps:$4 sm:$0xff]   ;;  %v12405_v4 = vld [vmem:[%s15915_s3 + $0x1e8] ss:$16 sps:$4 sm:$0xff]  }
 0xedd   : > { %8463 = vmatpush1.bf16.msra.mxu1 %v12378_v25  ;;  %v12410_v25 = vld [vmem:[%s15915_s3 + $0x244] ss:$16 sps:$4 sm:$0xff]  }
 0xede   : > { %v7768_v37 = vpack.c.bf16 %v12145_v27, %v12144_v54  ;;  %v7751_v15 = vsel %vm4477_vm12, %v7735_v63, %v12144_v54  ;;  %v7752_v56 = vsel %vm4477_vm12, %v7736_v36, %v12145_v27  ;;  %8464 = vmatprep.subr.bf16.mxu1 %v12383_v58  ;;  %v12387_v36 = vld [vmem:[%s15915_s3 + $0x1e0] ss:$16 sps:$4 sm:$0xff]   ;;  %8578 = vmatpush1.bf16.msra.mxu0 %v12393_v18  ;;  %v12414_v58 = vld [vmem:[%s15915_s3 + $0x228] ss:$16 sps:$4 sm:$0xff]  }
 0xedf   : > { %v7767_v38 = vpack.c.bf16 %v7752_v56, %v7751_v15  ;;  %8579 = vmatprep.subr.bf16.mxu0 %v12401_v57  ;;  %v12407_v15 = vld [vmem:[%s15915_s3 + $0x1ec] ss:$16 sps:$4 sm:$0xff]  }
 0xee0   : > { %10515 = vmatprep.mubr.msk.bf16.mxu0 %vm2104_vm9, %v7768_v37 }
 0xee1   : > { %7968 = vmatmul.mubr.bf16.gmra.mrb[164].mxu0 %v7767_v38  ;;  %v12158_v44 = vpop.permute.xlu0 %12157  ;;  %8465 = vmatpush1.bf16.msra.mxu1 %v12381_v8  ;;  %v12396_v38 = vld [vmem:[%s15915_s3 + $0x200] ss:$16 sps:$4 sm:$0xff]  }
 0xee2   : > { %v12160_v46 = vunpack.i.h.bf16 %v12158_v44  ;;  %v12159_v28 = vunpack.i.l.bf16 %v12158_v44  ;;  %8580 = vmatpush1.bf16.msra.mxu0 %v12399_v2  ;;  %v12437_v2 = vld [vmem:[%s15915_s3 + $0x2ac] ss:$16 sps:$4 sm:$0xff]  }
 0xee3   : > { %v12153_v6 = vpop.permute.xlu1 %12152  ;;  %8581 = vmatprep.subr.bf16.mxu0 %v12407_v15 }
 0xee4   : > { %v12155_v5 = vunpack.i.h.bf16 %v12153_v6  ;;  %v12154_v50 = vunpack.i.l.bf16 %v12153_v6  ;;  %v7739_v47 = vsel %vm2538_vm11, %v15174_v52, %v12159_v28  ;;  %v7740_v45 = vsel %vm2538_vm11, %v15184_v13, %v12160_v46  ;;  %v12386_v52 = vld [vmem:[%s15915_s3 + $0x1c4] ss:$16 sps:$4 sm:$0xff]   ;;  %v12402_v46 = vld [vmem:[%s15915_s3 + $0x220] ss:$16 sps:$4 sm:$0xff]   ;;  %v12411_v28 = vld [vmem:[%s15915_s3 + $0x208] ss:$16 sps:$4 sm:$0xff]  }
 0xee5   : > { %8466 = vmatprep.subr.bf16.mxu1 %v12386_v52  ;;  %v12404_v6 = vld [vmem:[%s15915_s3 + $0x224] ss:$16 sps:$4 sm:$0xff]  }
 0xee6   : > { %v7770_v7 = vpack.c.bf16 %v12155_v5, %v12154_v50  ;;  %v7753_v24 = vsel %vm4477_vm12, %v7737_v0, %v12154_v50  ;;  %v7754_v10 = vsel %vm4477_vm12, %v7738_v29, %v12155_v5  ;;  %8467 = vmatpush1.bf16.msra.mxu1 %v12384_v12  ;;  %v12413_v5 = vld [vmem:[%s15915_s3 + $0x20c] ss:$16 sps:$4 sm:$0xff]   ;;  %8582 = vmatpush1.bf16.msra.mxu0 %v12405_v4 }
 0xee7   : > { %v7769_v60 = vpack.c.bf16 %v7754_v10, %v7753_v24  ;;  %8468 = vmatprep.subr.bf16.mxu1 %v12389_v55  ;;  %8583 = vmatprep.subr.bf16.mxu0 %v12413_v5 }
 0xee8   : > { %10516 = vmatprep.mubr.msk.bf16.mxu0 %vm2104_vm9, %v7770_v7 }
 0xee9   : > { %7978 = vmatmul.mubr.bf16.gmra.mrb[168].mxu0 %v7769_v60  ;;  %v12168_v17 = vpop.permute.xlu0 %12167 }
 0xeea   : > { %v12170_v13 = vunpack.i.h.bf16 %v12168_v17  ;;  %v12169_v42 = vunpack.i.l.bf16 %v12168_v17  ;;  %8469 = vmatpush1.bf16.msra.mxu1 %v12387_v36  ;;  %8584 = vmatpush1.bf16.msra.mxu0 %v12411_v28  ;;  %v12422_v17 = vld [vmem:[%s15915_s3 + $0x24c] ss:$16 sps:$4 sm:$0xff]   ;;  %v12432_v36 = vld [vmem:[%s15915_s3 + $0x288] ss:$16 sps:$4 sm:$0xff]  }
 0xeeb   : > { %v12163_v49 = vpop.permute.xlu1 %12162  ;;  %v12443_v28 = vld [vmem:[%s15915_s3 + $0x2cc] ss:$16 sps:$4 sm:$0xff]  }
 0xeec   : > { %v12165_v30 = vunpack.i.h.bf16 %v12163_v49  ;;  %v12164_v21 = vunpack.i.l.bf16 %v12163_v49  ;;  %v7741_v40 = vsel %vm2538_vm11, %v15194_v48, %v12169_v42  ;;  %v7742_v39 = vsel %vm2538_vm11, %v15204_v53, %v12170_v13  ;;  %v12398_v48 = vld [vmem:[%s15915_s3 + $0x204] ss:$16 sps:$4 sm:$0xff]   ;;  %v12417_v13 = vld [vmem:[%s15915_s3 + $0x260] ss:$16 sps:$4 sm:$0xff]   ;;  %v12420_v42 = vld [vmem:[%s15915_s3 + $0x248] ss:$16 sps:$4 sm:$0xff]  }
 0xeed   : > { %8470 = vmatprep.subr.bf16.mxu1 %v12398_v48  ;;  %v7298_v48 = vld [vmem:[%s15916_s5] sm:$0x3]  ;;  %s15917_s5 = sld [smem:[#allocation36_spill]] }
 0xeee   : > { %v7772_v26 = vpack.c.bf16 %v12165_v30, %v12164_v21  ;;  %v7755_v11 = vsel %vm4477_vm12, %v7739_v47, %v12164_v21  ;;  %v7756_v22 = vsel %vm4477_vm12, %v7740_v45, %v12165_v30  ;;  %8471 = vmatpush1.bf16.msra.mxu1 %v12396_v38  ;;  %v12408_v21 = vld [vmem:[%s15915_s3 + $0x240] ss:$16 sps:$4 sm:$0xff]   ;;  %v12419_v45 = vld [vmem:[%s15915_s3 + $0x264] ss:$16 sps:$4 sm:$0xff]   ;;  %v15374_v15 = vrot.slane %v7298_v48, %v14940_v59 }
 0xeef   : > { %v7771_v32 = vpack.c.bf16 %v7756_v22, %v7755_v11  ;;  %8472 = vmatprep.subr.bf16.mxu1 %v12404_v6 }
 0xef0   : > { %10517 = vmatprep.mubr.msk.bf16.mxu0 %vm2104_vm9, %v7772_v26 }
 0xef1   : > { %7988 = vmatmul.mubr.bf16.gmra.mrb[172].mxu0 %v7771_v32  ;;  %v12178_v33 = vpop.permute.xlu0 %12177 }
 0xef2   : > { %v12180_v53 = vunpack.i.h.bf16 %v12178_v33  ;;  %v12179_v56 = vunpack.i.l.bf16 %v12178_v33  ;;  %8473 = vmatpush1.bf16.msra.mxu1 %v12402_v46  ;;  %v12423_v33 = vld [vmem:[%s15915_s3 + $0x280] ss:$16 sps:$4 sm:$0xff]   ;;  %v12441_v46 = vld [vmem:[%s15915_s3 + $0x2c8] ss:$16 sps:$4 sm:$0xff]  }
 0xef3   : > { %v12173_v3 = vpop.permute.xlu1 %12172  ;;  %8474 = vmatprep.subr.bf16.mxu1 %v12410_v25 }
 0xef4   : > { %v12175_v62 = vunpack.i.h.bf16 %v12173_v3  ;;  %v12174_v19 = vunpack.i.l.bf16 %v12173_v3  ;;  %v7743_v29 = vsel %vm2538_vm11, %v15214_v61, %v12179_v56  ;;  %v7744_v44 = vsel %vm2538_vm11, %v15224_v23, %v12180_v53  ;;  %v12416_v61 = vld [vmem:[%s15915_s3 + $0x22c] ss:$16 sps:$4 sm:$0xff]  }
 0xef5   : > { %8585 = vmatprep.subr.bf16.mxu0 %v12416_v61  ;;  %v12428_v3 = vld [vmem:[%s15915_s3 + $0x26c] ss:$16 sps:$4 sm:$0xff]   ;;  %v15377_v53 = vrot.slane %v7298_v48, %v14944_v16 }
 0xef6   : > { %v7774_v27 = vpack.c.bf16 %v12175_v62, %v12174_v19  ;;  %v7757_v54 = vsel %vm4477_vm12, %v7741_v40, %v12174_v19  ;;  %v7758_v63 = vsel %vm4477_vm12, %v7742_v39, %v12175_v62  ;;  %8475 = vmatpush1.bf16.msra.mxu1 %v12408_v21  ;;  %8586 = vmatpush1.bf16.msra.mxu0 %v12414_v58  ;;  %v12444_v58 = vld [vmem:[%s15915_s3 + $0x2e0] ss:$16 sps:$4 sm:$0xff]  }
 0xef7   : > { %v7773_v37 = vpack.c.bf16 %v7758_v63, %v7757_v54  ;;  %8476 = vmatprep.subr.bf16.mxu1 %v12419_v45  ;;  %8587 = vmatprep.subr.bf16.mxu0 %v12422_v17  ;;  %v12429_v63 = vld [vmem:[%s15915_s3 + $0x2a0] ss:$16 sps:$4 sm:$0xff]  }
 0xef8   : > { %10518 = vmatprep.mubr.msk.bf16.mxu0 %vm2104_vm9, %v7774_v27  ;;  %v12426_v27 = vld [vmem:[%s15915_s3 + $0x268] ss:$16 sps:$4 sm:$0xff]  }
 0xef9   : > { %7998 = vmatmul.mubr.bf16.gmra.mrb[176].mxu0 %v7773_v37  ;;  %v12188_v7 = vpop.permute.xlu0 %12187  ;;  %v12435_v37 = vld [vmem:[%s15915_s3 + $0x2a8] ss:$16 sps:$4 sm:$0xff]  }
 0xefa   : > { %v12190_v23 = vunpack.i.h.bf16 %v12188_v7  ;;  %v12189_v51 = vunpack.i.l.bf16 %v12188_v7  ;;  %8477 = vmatpush1.bf16.msra.mxu1 %v12417_v13  ;;  %8588 = vmatpush1.bf16.msra.mxu0 %v12420_v42  ;;  %v12438_v7 = vld [vmem:[%s15915_s3 + $0x2c0] ss:$16 sps:$4 sm:$0xff]   ;;  %v12452_v42 = vld [vmem:[%s15915_s3 + $0x4] ss:$16 sps:$4 sm:$0xff]  }
 0xefb   : > { %v12183_v20 = vpop.permute.xlu1 %12182  ;;  %8589 = vmatprep.subr.bf16.mxu0 %v12428_v3 }
 0xefc   : > { %v12185_v50 = vunpack.i.h.bf16 %v12183_v20  ;;  %v12184_v0 = vunpack.i.l.bf16 %v12183_v20  ;;  %v7745_v22 = vsel %vm2538_vm11, %v15234_v34, %v12189_v51  ;;  %v7746_v8 = vsel %vm2538_vm11, %v15244_v41, %v12190_v23  ;;  %v12425_v34 = vld [vmem:[%s15915_s3 + $0x284] ss:$16 sps:$4 sm:$0xff]   ;;  %v12449_v51 = vld [vmem:[%s15915_s3 + $0x2ec] ss:$16 sps:$4 sm:$0xff]  }
 0xefd   : > { %8478 = vmatprep.subr.bf16.mxu1 %v12425_v34  ;;  %v12446_v23 = vld [vmem:[%s15915_s3 + $0x2e4] ss:$16 sps:$4 sm:$0xff]  }
 0xefe   : > { %v7776_v24 = vpack.c.bf16 %v12185_v50, %v12184_v0  ;;  %v7759_v10 = vsel %vm4477_vm12, %v7743_v29, %v12184_v0  ;;  %v7760_v60 = vsel %vm4477_vm12, %v7744_v44, %v12185_v50  ;;  %8479 = vmatpush1.bf16.msra.mxu1 %v12423_v33  ;;  %8590 = vmatpush1.bf16.msra.mxu0 %v12426_v27 }
 0xeff   : > { %v7775_v49 = vpack.c.bf16 %v7760_v60, %v7759_v10 }
 0xf00   : > { %10519 = vmatprep.mubr.msk.bf16.mxu0 %vm2104_vm9, %v7776_v24  ;;  %v12440_v24 = vld [vmem:[%s15915_s3 + $0x2c4] ss:$16 sps:$4 sm:$0xff]  }
 0xf01   : > { %8008 = vmatmul.mubr.bf16.gmra.mrb[180].mxu0 %v7775_v49  ;;  %v12198_v30 = vpop.permute.xlu0 %12197 }
 0xf02   : > { %v12200_v9 = vunpack.i.h.bf16 %v12198_v30  ;;  %v12199_v31 = vunpack.i.l.bf16 %v12198_v30 }
 0xf03   : > { %v12193_v47 = vpop.permute.xlu1 %12192 }
 0xf04   : > { %v12195_v26 = vunpack.i.h.bf16 %v12193_v47  ;;  %v12194_v11 = vunpack.i.l.bf16 %v12193_v47  ;;  %v7748_v57 = vsel %vm2538_vm11, %v15271_v14, %v12200_v9  ;;  %v7747_v62 = vsel %vm2538_vm11, %v15253_v43, %v12199_v31  ;;  %v12431_v14 = vld [vmem:[%s15915_s3 + $0x2a4] ss:$16 sps:$4 sm:$0xff]   ;;  %v12434_v43 = vld [vmem:[%s15915_s3 + $0x28c] ss:$16 sps:$4 sm:$0xff]   ;;  %v12447_v47 = vld [vmem:[%s15915_s3 + $0x2e8] ss:$16 sps:$4 sm:$0xff]  }
 0xf05   : > { %8480 = vmatprep.subr.bf16.mxu1 %v12431_v14  ;;  %8591 = vmatprep.subr.bf16.mxu0 %v12434_v43 }
 0xf06   : > { %v7778_v32 = vpack.c.bf16 %v12195_v26, %v12194_v11  ;;  %v7761_v52 = vsel %vm4477_vm12, %v7745_v22, %v12194_v11  ;;  %v7762_v35 = vsel %vm4477_vm12, %v7746_v8, %v12195_v26  ;;  %8481 = vmatpush1.bf16.msra.mxu1 %v12429_v63  ;;  %8592 = vmatpush1.bf16.msra.mxu0 %v12432_v36 }
 0xf07   : > { %v12203_v12 = vpop.permute.xlu1 %12202  ;;  %v7777_v18 = vpack.c.bf16 %v7762_v35, %v7761_v52  ;;  %8593 = vmatprep.subr.bf16.mxu0 %v12437_v2  ;;  %8482 = vmatprep.subr.bf16.mxu1 %v12440_v24 }
 0xf08   : > { %v12205_v41 = vunpack.i.h.bf16 %v12203_v12  ;;  %v12204_v55 = vunpack.i.l.bf16 %v12203_v12  ;;  %10520 = vmatprep.mubr.msk.bf16.mxu0 %vm2104_vm9, %v7778_v32 }
 0xf09   : > { %8018 = vmatmul.mubr.bf16.gmra.mrb[184].mxu0 %v7777_v18 }
 0xf0a   : > { %v7780_v19 = vpack.c.bf16 %v12205_v41, %v12204_v55  ;;  %v7763_v40 = vsel %vm4477_vm12, %v7747_v62, %v12204_v55  ;;  %v7764_v39 = vsel %vm4477_vm12, %v7748_v57, %v12205_v41  ;;  %8594 = vmatpush1.bf16.msra.mxu0 %v12435_v37  ;;  %8483 = vmatpush1.bf16.msra.mxu1 %v12438_v7 }
 0xf0b   : > { %v7779_v54 = vpack.c.bf16 %v7764_v39, %v7763_v40  ;;  %8595 = vmatprep.subr.bf16.mxu0 %v12443_v28  ;;  %8484 = vmatprep.subr.bf16.mxu1 %v12446_v23 }
 0xf0c   : > { %10521 = vmatprep.mubr.msk.bf16.mxu0 %vm2104_vm9, %v7780_v19 }
 0xf0e   : > { %8596 = vmatpush1.bf16.msra.mxu0 %v12441_v46  ;;  %8485 = vmatpush1.bf16.msra.mxu1 %v12444_v58 }
 0xf0f   : > { %8597 = vmatprep.subr.bf16.mxu0 %v12449_v51  ;;  %8952 = vmatprep.subr.bf16.mxu1 %v12452_v42 }
 0xf11   : > { %8028 = vmatmul.mubr.bf16.gmra.mrb[188].mxu0 %v7779_v54 }
 0xf12   : > { %8598 = vmatpush1.bf16.msra.mxu0 %v12447_v47 }
 0xf2a   : > { %v7398_v56 = vpop.f32.mrb[192].mxu1 }
 0xf2b   : > { %v7399_v38 = vadd.f32 %v7398_v56, %v15374_v15  ;;  %v7400_v4 = vpop.f32.mrb[193].mxu1  ;;  %v12464_v56 = vld [vmem:[%s15915_s3 + $0xc] ss:$16 sps:$4 sm:$0xff]  }
 0xf2c   : > { %v7401_v20 = vadd.f32 %v7400_v4, %v15377_v53  ;;  %v7402_v6 = vpop.f32.mrb[194].mxu1  ;;  %9065 = vmatprep.subr.bf16.mxu0 %v12464_v56 }
 0xf2d   : > { %v7403_v5 = vadd.f32 %v7402_v6, %v15374_v15  ;;  %v7404_v50 = vpop.f32.mrb[195].mxu1  ;;  %v7477_v29 = vmax.f32 %v7399_v38, 0.0 }
 0xf2e   : > { %v7405_v0 = vadd.f32 %v7404_v50, %v15377_v53  ;;  %v7478_v10 = vmax.f32 %v7401_v20, 0.0 }
 0xf2f   : > { %v7479_v44 = vmax.f32 %v7403_v5, 0.0 }
 0xf30   : > { %v7480_v60 = vmax.f32 %v7405_v0, 0.0 }
 0xf31   : > { %v15387_v49 = vpack.c.bf16 %v7479_v44, %v7477_v29 }
 0xf32   : > { %v15389_v25 = vpack.c.bf16 %v7480_v60, %v7478_v10 }
 0xf33   : > { %v7408_v61 = vpop.f32.mrb[196].mxu1 }
 0xf34   : > { %v7409_v30 = vadd.f32 %v7408_v61, %v15374_v15  ;;  %v7410_v21 = vpop.f32.mrb[197].mxu1 }
 0xf35   : > { %v7411_v45 = vadd.f32 %v7410_v21, %v15377_v53  ;;  %v7412_v17 = vpop.f32.mrb[198].mxu1 }
 0xf36   : > { %v7413_v26 = vadd.f32 %v7412_v17, %v15374_v15  ;;  %v7414_v11 = vpop.f32.mrb[199].mxu1  ;;  %v7481_v8 = vmax.f32 %v7409_v30, 0.0 }
 0xf37   : > { %v7415_v22 = vadd.f32 %v7414_v11, %v15377_v53  ;;  %v7482_v31 = vmax.f32 %v7411_v45, 0.0 }
 0xf38   : > { %v7483_v9 = vmax.f32 %v7413_v26, 0.0 }
 0xf39   : > { %v7484_v32 = vmax.f32 %v7415_v22, 0.0 }
 0xf3a   : > { %v15399_v52 = vpack.c.bf16 %v7483_v9, %v7481_v8 }
 0xf3b   : > { %v15401_v35 = vpack.c.bf16 %v7484_v32, %v7482_v31  ;;  %v7418_v13 = vpop.f32.mrb[200].mxu1 }
 0xf3c   : > { %v7419_v12 = vadd.f32 %v7418_v13, %v15374_v15  ;;  %v7420_v18 = vpop.f32.mrb[201].mxu1 }
 0xf3d   : > { %v7421_v34 = vadd.f32 %v7420_v18, %v15377_v53  ;;  %v7422_v3 = vpop.f32.mrb[202].mxu1 }
 0xf3e   : > { %v7423_v41 = vadd.f32 %v7422_v3, %v15374_v15  ;;  %v7424_v55 = vpop.f32.mrb[203].mxu1  ;;  %v7485_v62 = vmax.f32 %v7419_v12, 0.0 }
 0xf3f   : > { %v7425_v57 = vadd.f32 %v7424_v55, %v15377_v53  ;;  %v7486_v40 = vmax.f32 %v7421_v34, 0.0 }
 0xf40   : > { %v7487_v19 = vmax.f32 %v7423_v41, 0.0 }
 0xf41   : > { %v7488_v39 = vmax.f32 %v7425_v57, 0.0 }
 0xf42   : > { %v15408_v33 = vpack.c.bf16 %v7487_v19, %v7485_v62 }
 0xf43   : > { %v15410_v27 = vpack.c.bf16 %v7488_v39, %v7486_v40  ;;  %v7428_v54 = vpop.f32.mrb[204].mxu1 }
 0xf44   : > { %v7429_v14 = vadd.f32 %v7428_v54, %v15374_v15  ;;  %v7430_v43 = vpop.f32.mrb[205].mxu1 }
 0xf45   : > { %v7431_v63 = vadd.f32 %v7430_v43, %v15377_v53  ;;  %v7432_v36 = vpop.f32.mrb[206].mxu1 }
 0xf46   : > { %v7433_v2 = vadd.f32 %v7432_v36, %v15374_v15  ;;  %v7434_v37 = vpop.f32.mrb[207].mxu1  ;;  %v7489_v38 = vmax.f32 %v7429_v14, 0.0 }
 0xf47   : > { %v7435_v48 = vadd.f32 %v7434_v37, %v15377_v53  ;;  %v7490_v20 = vmax.f32 %v7431_v63, 0.0 }
 0xf48   : > { %v7491_v4 = vmax.f32 %v7433_v2, 0.0 }
 0xf49   : > { %v7492_v6 = vmax.f32 %v7435_v48, 0.0 }
 0xf4a   : > { %v15417_v5 = vpack.c.bf16 %v7491_v4, %v7489_v38 }
 0xf4b   : > { %v15419_v50 = vpack.c.bf16 %v7492_v6, %v7490_v20  ;;  %v7438_v0 = vpop.f32.mrb[208].mxu1 }
 0xf4c   : > { %v7439_v29 = vadd.f32 %v7438_v0, %v15374_v15  ;;  %v7440_v44 = vpop.f32.mrb[209].mxu1 }
 0xf4d   : > { %v7441_v7 = vadd.f32 %v7440_v44, %v15377_v53  ;;  %v7442_v24 = vpop.f32.mrb[210].mxu1 }
 0xf4e   : > { %v7443_v10 = vadd.f32 %v7442_v24, %v15374_v15  ;;  %v7444_v60 = vpop.f32.mrb[211].mxu1  ;;  %v7493_v28 = vmax.f32 %v7439_v29, 0.0 }
 0xf4f   : > { %v7445_v46 = vadd.f32 %v7444_v60, %v15377_v53  ;;  %v7494_v23 = vmax.f32 %v7441_v7, 0.0 }
 0xf50   : > { %v7495_v61 = vmax.f32 %v7443_v10, 0.0  ;;  %v7799_v10 = vld [vmem:[%s15917_s5] sm:$0x3]  ;;  %s15918_s5 = sld [smem:[#allocation39_spill]] }
 0xf51   : > { %v7496_v51 = vmax.f32 %v7445_v46, 0.0  ;;  %v15455_v60 = vrot.slane %v7799_v10, %v14940_v59  ;;  %v15458_v46 = vrot.slane %v7799_v10, %v14944_v16  ;;  %v12479_v10 = vld [vmem:[%s15915_s3 + $0x6c] ss:$16 sps:$4 sm:$0xff]  }
 0xf52   : > { %v15425_v30 = vpack.c.bf16 %v7495_v61, %v7493_v28 }
 0xf53   : > { %v15427_v21 = vpack.c.bf16 %v7496_v51, %v7494_v23  ;;  %v7448_v58 = vpop.f32.mrb[212].mxu1 }
 0xf54   : > { %v7449_v47 = vadd.f32 %v7448_v58, %v15374_v15  ;;  %v7450_v45 = vpop.f32.mrb[213].mxu1 }
 0xf55   : > { %v7451_v17 = vadd.f32 %v7450_v45, %v15377_v53  ;;  %v7452_v26 = vpop.f32.mrb[214].mxu1 }
 0xf56   : > { %v7453_v11 = vadd.f32 %v7452_v26, %v15374_v15  ;;  %v7454_v22 = vpop.f32.mrb[215].mxu1  ;;  %v7497_v9 = vmax.f32 %v7449_v47, 0.0 }
 0xf57   : > { %v7455_v8 = vadd.f32 %v7454_v22, %v15377_v53  ;;  %v7498_v32 = vmax.f32 %v7451_v17, 0.0 }
 0xf58   : > { %v7499_v31 = vmax.f32 %v7453_v11, 0.0 }
 0xf59   : > { %v7500_v13 = vmax.f32 %v7455_v8, 0.0 }
 0xf5a   : > { %v15433_v42 = vpack.c.bf16 %v7499_v31, %v7497_v9  ;;  %v12450_v31 = vld [vmem:[%s15915_s3] ss:$16 sps:$4 sm:$0xff]  }
 0xf5b   : > { %v15435_v12 = vpack.c.bf16 %v7500_v13, %v7498_v32  ;;  %v7458_v18 = vpop.f32.mrb[216].mxu1  ;;  %v12462_v32 = vld [vmem:[%s15915_s3 + $0x8] ss:$16 sps:$4 sm:$0xff]  }
 0xf5c   : > { %v7459_v34 = vadd.f32 %v7458_v18, %v15374_v15  ;;  %v7460_v3 = vpop.f32.mrb[217].mxu1 }
 0xf5d   : > { %v7461_v41 = vadd.f32 %v7460_v3, %v15377_v53  ;;  %v7462_v55 = vpop.f32.mrb[218].mxu1  ;;  %v12467_v3 = vld [vmem:[%s15915_s3 + $0x2c] ss:$16 sps:$4 sm:$0xff]  }
 0xf5e   : > { %v7463_v57 = vadd.f32 %v7462_v55, %v15374_v15  ;;  %v7464_v62 = vpop.f32.mrb[219].mxu1  ;;  %v7501_v40 = vmax.f32 %v7459_v34, 0.0  ;;  %v12455_v34 = vld [vmem:[%s15915_s3 + $0x24] ss:$16 sps:$4 sm:$0xff]  }
 0xf5f   : > { %v7465_v19 = vadd.f32 %v7464_v62, %v15377_v53  ;;  %v7502_v54 = vmax.f32 %v7461_v41, 0.0 }
 0xf60   : > { %v7503_v39 = vmax.f32 %v7463_v57, 0.0 }
 0xf61   : > { %v7504_v14 = vmax.f32 %v7465_v19, 0.0 }
 0xf62   : > { %v15441_v43 = vpack.c.bf16 %v7503_v39, %v7501_v40  ;;  %v12453_v40 = vld [vmem:[%s15915_s3 + $0x20] ss:$16 sps:$4 sm:$0xff]   ;;  %v12465_v39 = vld [vmem:[%s15915_s3 + $0x28] ss:$16 sps:$4 sm:$0xff]  }
 0xf63   : > { %v15443_v63 = vpack.c.bf16 %v7504_v14, %v7502_v54  ;;  %v7468_v36 = vpop.f32.mrb[220].mxu1 }
 0xf64   : > { %v7469_v2 = vadd.f32 %v7468_v36, %v15374_v15  ;;  %v7470_v37 = vpop.f32.mrb[221].mxu1  ;;  %v12458_v36 = vld [vmem:[%s15915_s3 + $0x44] ss:$16 sps:$4 sm:$0xff]  }
 0xf65   : > { %v7471_v48 = vadd.f32 %v7470_v37, %v15377_v53  ;;  %v7472_v56 = vpop.f32.mrb[222].mxu1 }
 0xf66   : > { %v7473_v38 = vadd.f32 %v7472_v56, %v15374_v15  ;;  %v7474_v4 = vpop.f32.mrb[223].mxu1  ;;  %v7505_v6 = vmax.f32 %v7469_v2, 0.0  ;;  %v12473_v2 = vld [vmem:[%s15915_s3 + $0x4c] ss:$16 sps:$4 sm:$0xff]  }
 0xf67   : > { %v7475_v20 = vadd.f32 %v7474_v4, %v15377_v53  ;;  %v7506_v29 = vmax.f32 %v7471_v48, 0.0 }
 0xf68   : > { %v7507_v0 = vmax.f32 %v7473_v38, 0.0 }
 0xf69   : > { %v7508_v44 = vmax.f32 %v7475_v20, 0.0  ;;  %v12456_v20 = vld [vmem:[%s15915_s3 + $0x40] ss:$16 sps:$4 sm:$0xff]  }
 0xf6a   : > { %v15449_v7 = vpack.c.bf16 %v7507_v0, %v7505_v6  ;;  %v12471_v6 = vld [vmem:[%s15915_s3 + $0x48] ss:$16 sps:$4 sm:$0xff]  }
 0xf6b   : > { %v15451_v24 = vpack.c.bf16 %v7508_v44, %v7506_v29  ;;  %v12461_v44 = vld [vmem:[%s15915_s3 + $0x64] ss:$16 sps:$4 sm:$0xff]  }
 0xfac   : > { %v7959_v15 = vpop.f32.mrb[160].mxu0 }
 0xfad   : > { %v7960_v53 = vadd.f32 %v7959_v15, %v15455_v60  ;;  %v7961_v28 = vpop.f32.mrb[161].mxu0 }
 0xfae   : > { %v7962_v61 = vadd.f32 %v7961_v28, %v15458_v46  ;;  %v7963_v23 = vpop.f32.mrb[162].mxu0 }
 0xfaf   : > { %v7964_v51 = vadd.f32 %v7963_v23, %v15455_v60  ;;  %v7965_v58 = vpop.f32.mrb[163].mxu0  ;;  %v8038_v45 = vmax.f32 %v7960_v53, 0.0 }
 0xfb0   : > { %v7966_v47 = vadd.f32 %v7965_v58, %v15458_v46  ;;  %v8039_v26 = vmax.f32 %v7962_v61, 0.0  ;;  %v12477_v58 = vld [vmem:[%s15915_s3 + $0x68] ss:$16 sps:$4 sm:$0xff]  }
 0xfb1   : > { %v8040_v17 = vmax.f32 %v7964_v51, 0.0  ;;  %v12459_v51 = vld [vmem:[%s15915_s3 + $0x60] ss:$16 sps:$4 sm:$0xff]  }
 0xfb2   : > { %v8041_v11 = vmax.f32 %v7966_v47, 0.0 }
 0xfb3   : > { %v8134_v22 = vpack.c.bf16 %v8040_v17, %v8038_v45  ;;  %v12470_v17 = vld [vmem:[%s15915_s3 + $0x84] ss:$16 sps:$4 sm:$0xff]  }
 0xfb4   : > { %v8135_v8 = vpack.c.bf16 %v8041_v11, %v8039_v26  ;;  %v7969_v9 = vpop.f32.mrb[164].mxu0  ;;  %v12485_v26 = vld [vmem:[%s15915_s3 + $0x8c] ss:$16 sps:$4 sm:$0xff]  }
 0xfb5   : > { %v7970_v13 = vadd.f32 %v7969_v9, %v15455_v60  ;;  %v7971_v18 = vpop.f32.mrb[165].mxu0 }
 0xfb6   : > { %v7972_v41 = vadd.f32 %v7971_v18, %v15458_v46  ;;  %v7973_v55 = vpop.f32.mrb[166].mxu0  ;;  %10570 = vmatprep.mubr.msk.bf16.mxu1 %vm1943_vm8, %v8135_v8  ;;  %10578 = vmatprep.mubr.msk.bf16.mxu0 %vm1943_vm8, %v8135_v8 }
 0xfb7   : > { %v7974_v57 = vadd.f32 %v7973_v55, %v15455_v60  ;;  %v7975_v62 = vpop.f32.mrb[167].mxu0  ;;  %8495 = vmatmul.mubr.bf16.vlgmr.msra.gmra.mrb[224].mxu1 %v8134_v22  ;;  %8608 = vmatmul.mubr.bf16.vlgmr.msra.gmra.mrb[192].mxu0 %v8134_v22  ;;  %v8042_v54 = vmax.f32 %v7970_v13, 0.0  ;;  %v12483_v13 = vld [vmem:[%s15915_s3 + $0x88] ss:$16 sps:$4 sm:$0xff]  }
 0xfb8   : > { %v7976_v19 = vadd.f32 %v7975_v62, %v15458_v46  ;;  %8953 = vmatpush1.bf16.msra.mxu1 %v12450_v31  ;;  %9066 = vmatpush1.bf16.msra.mxu0 %v12462_v32  ;;  %v8043_v37 = vmax.f32 %v7972_v41, 0.0  ;;  %v12468_v32 = vld [vmem:[%s15915_s3 + $0x80] ss:$16 sps:$4 sm:$0xff]   ;;  %v12488_v41 = vld [vmem:[%s15915_s3 + $0xac] ss:$16 sps:$4 sm:$0xff]  }
 0xfb9   : > { %v8044_v14 = vmax.f32 %v7974_v57, 0.0  ;;  %8954 = vmatprep.subr.bf16.mxu1 %v12455_v34  ;;  %9067 = vmatprep.subr.bf16.mxu0 %v12467_v3  ;;  %v12476_v3 = vld [vmem:[%s15915_s3 + $0xa4] ss:$16 sps:$4 sm:$0xff]  }
 0xfba   : > { %v8045_v48 = vmax.f32 %v7976_v19, 0.0 }
 0xfbb   : > { %v8136_v56 = vpack.c.bf16 %v8044_v14, %v8042_v54  ;;  %v12486_v54 = vld [vmem:[%s15915_s3 + $0xa8] ss:$16 sps:$4 sm:$0xff]  }
 0xfbc   : > { %v8137_v38 = vpack.c.bf16 %v8045_v48, %v8043_v37  ;;  %v7979_v4 = vpop.f32.mrb[168].mxu0  ;;  %8955 = vmatpush1.bf16.msra.mxu1 %v12453_v40  ;;  %9068 = vmatpush1.bf16.msra.mxu0 %v12465_v39  ;;  %v12474_v39 = vld [vmem:[%s15915_s3 + $0xa0] ss:$16 sps:$4 sm:$0xff]   ;;  %v12494_v37 = vld [vmem:[%s15915_s3 + $0xcc] ss:$16 sps:$4 sm:$0xff]  }
 0xfbd   : > { %v7980_v0 = vadd.f32 %v7979_v4, %v15455_v60  ;;  %v7981_v29 = vpop.f32.mrb[169].mxu0  ;;  %8956 = vmatprep.subr.bf16.mxu1 %v12458_v36  ;;  %9069 = vmatprep.subr.bf16.mxu0 %v12473_v2  ;;  %v12482_v2 = vld [vmem:[%s15915_s3 + $0xc4] ss:$16 sps:$4 sm:$0xff]  }
 0xfbe   : > { %v7982_v15 = vadd.f32 %v7981_v29, %v15458_v46  ;;  %v7983_v53 = vpop.f32.mrb[170].mxu0  ;;  %10571 = vmatprep.mubr.msk.bf16.mxu1 %vm1943_vm8, %v8137_v38  ;;  %10579 = vmatprep.mubr.msk.bf16.mxu0 %vm1943_vm8, %v8137_v38 }
 0xfbf   : > { %v7984_v28 = vadd.f32 %v7983_v53, %v15455_v60  ;;  %v7985_v61 = vpop.f32.mrb[171].mxu0  ;;  %8505 = vmatmul.mubr.bf16.gmra.mrb[228].mxu1 %v8136_v56  ;;  %8618 = vmatmul.mubr.bf16.gmra.mrb[196].mxu0 %v8136_v56  ;;  %v8046_v47 = vmax.f32 %v7980_v0, 0.0  ;;  %v12492_v0 = vld [vmem:[%s15915_s3 + $0xc8] ss:$16 sps:$4 sm:$0xff]  }
 0xfc0   : > { %v7986_v23 = vadd.f32 %v7985_v61, %v15458_v46  ;;  %8957 = vmatpush1.bf16.msra.mxu1 %v12456_v20  ;;  %9070 = vmatpush1.bf16.msra.mxu0 %v12471_v6  ;;  %v8047_v11 = vmax.f32 %v7982_v15, 0.0  ;;  %v12480_v6 = vld [vmem:[%s15915_s3 + $0xc0] ss:$16 sps:$4 sm:$0xff]   ;;  %v12500_v15 = vld [vmem:[%s15915_s3 + $0xec] ss:$16 sps:$4 sm:$0xff]  }
 0xfc1   : > { %v8048_v45 = vmax.f32 %v7984_v28, 0.0  ;;  %8958 = vmatprep.subr.bf16.mxu1 %v12461_v44  ;;  %9071 = vmatprep.subr.bf16.mxu0 %v12479_v10  ;;  %v12491_v10 = vld [vmem:[%s15915_s3 + $0xe4] ss:$16 sps:$4 sm:$0xff]  }
 0xfc2   : > { %v8049_v22 = vmax.f32 %v7986_v23, 0.0 }
 0xfc3   : > { %v8138_v8 = vpack.c.bf16 %v8048_v45, %v8046_v47  ;;  %v12498_v47 = vld [vmem:[%s15915_s3 + $0xe8] ss:$16 sps:$4 sm:$0xff]  }
 0xfc4   : > { %v8139_v9 = vpack.c.bf16 %v8049_v22, %v8047_v11  ;;  %v7989_v31 = vpop.f32.mrb[172].mxu0  ;;  %8959 = vmatpush1.bf16.msra.mxu1 %v12459_v51  ;;  %9072 = vmatpush1.bf16.msra.mxu0 %v12477_v58  ;;  %v12489_v58 = vld [vmem:[%s15915_s3 + $0xe0] ss:$16 sps:$4 sm:$0xff]   ;;  %v12506_v11 = vld [vmem:[%s15915_s3 + $0x10c] ss:$16 sps:$4 sm:$0xff]  }
 0xfc5   : > { %v7990_v18 = vadd.f32 %v7989_v31, %v15455_v60  ;;  %v7991_v34 = vpop.f32.mrb[173].mxu0  ;;  %8960 = vmatprep.subr.bf16.mxu1 %v12470_v17  ;;  %9073 = vmatprep.subr.bf16.mxu0 %v12485_v26  ;;  %v12497_v26 = vld [vmem:[%s15915_s3 + $0x104] ss:$16 sps:$4 sm:$0xff]  }
 0xfc6   : > { %v7992_v55 = vadd.f32 %v7991_v34, %v15458_v46  ;;  %v7993_v57 = vpop.f32.mrb[174].mxu0  ;;  %10572 = vmatprep.mubr.msk.bf16.mxu1 %vm1943_vm8, %v8139_v9  ;;  %10580 = vmatprep.mubr.msk.bf16.mxu0 %vm1943_vm8, %v8139_v9 }
 0xfc7   : > { %v7994_v62 = vadd.f32 %v7993_v57, %v15455_v60  ;;  %v7995_v19 = vpop.f32.mrb[175].mxu0  ;;  %8515 = vmatmul.mubr.bf16.gmra.mrb[232].mxu1 %v8138_v8  ;;  %8628 = vmatmul.mubr.bf16.gmra.mrb[200].mxu0 %v8138_v8  ;;  %v8050_v14 = vmax.f32 %v7990_v18, 0.0  ;;  %v12504_v18 = vld [vmem:[%s15915_s3 + $0x108] ss:$16 sps:$4 sm:$0xff]  }
 0xfc8   : > { %v7996_v40 = vadd.f32 %v7995_v19, %v15458_v46  ;;  %8961 = vmatpush1.bf16.msra.mxu1 %v12468_v32  ;;  %9074 = vmatpush1.bf16.msra.mxu0 %v12483_v13  ;;  %v8051_v48 = vmax.f32 %v7992_v55, 0.0  ;;  %v12495_v13 = vld [vmem:[%s15915_s3 + $0x100] ss:$16 sps:$4 sm:$0xff]   ;;  %v12509_v55 = vld [vmem:[%s15915_s3 + $0x12c] ss:$16 sps:$4 sm:$0xff]  }
 0xfc9   : > { %v8052_v36 = vmax.f32 %v7994_v62, 0.0  ;;  %8962 = vmatprep.subr.bf16.mxu1 %v12476_v3  ;;  %9075 = vmatprep.subr.bf16.mxu0 %v12488_v41  ;;  %v12503_v41 = vld [vmem:[%s15915_s3 + $0x124] ss:$16 sps:$4 sm:$0xff]  }
 0xfca   : > { %v8053_v56 = vmax.f32 %v7996_v40, 0.0 }
 0xfcb   : > { %v8140_v38 = vpack.c.bf16 %v8052_v36, %v8050_v14  ;;  %v12507_v14 = vld [vmem:[%s15915_s3 + $0x128] ss:$16 sps:$4 sm:$0xff]  }
 0xfcc   : > { %v8141_v4 = vpack.c.bf16 %v8053_v56, %v8051_v48  ;;  %v7999_v20 = vpop.f32.mrb[176].mxu0  ;;  %8963 = vmatpush1.bf16.msra.mxu1 %v12474_v39  ;;  %9076 = vmatpush1.bf16.msra.mxu0 %v12486_v54  ;;  %v12501_v54 = vld [vmem:[%s15915_s3 + $0x120] ss:$16 sps:$4 sm:$0xff]   ;;  %v12515_v48 = vld [vmem:[%s15915_s3 + $0x14c] ss:$16 sps:$4 sm:$0xff]  }
 0xfcd   : > { %v8000_v29 = vadd.f32 %v7999_v20, %v15455_v60  ;;  %v8001_v44 = vpop.f32.mrb[177].mxu0  ;;  %8964 = vmatprep.subr.bf16.mxu1 %v12482_v2  ;;  %9077 = vmatprep.subr.bf16.mxu0 %v12494_v37  ;;  %v12512_v37 = vld [vmem:[%s15915_s3 + $0x144] ss:$16 sps:$4 sm:$0xff]  }
 0xfce   : > { %v8002_v53 = vadd.f32 %v8001_v44, %v15458_v46  ;;  %v8003_v28 = vpop.f32.mrb[178].mxu0  ;;  %10573 = vmatprep.mubr.msk.bf16.mxu1 %vm1943_vm8, %v8141_v4  ;;  %10581 = vmatprep.mubr.msk.bf16.mxu0 %vm1943_vm8, %v8141_v4 }
 0xfcf   : > { %v8004_v61 = vadd.f32 %v8003_v28, %v15455_v60  ;;  %v8005_v23 = vpop.f32.mrb[179].mxu0  ;;  %8525 = vmatmul.mubr.bf16.gmra.mrb[236].mxu1 %v8140_v38  ;;  %8638 = vmatmul.mubr.bf16.gmra.mrb[204].mxu0 %v8140_v38  ;;  %v8054_v45 = vmax.f32 %v8000_v29, 0.0  ;;  %v12513_v29 = vld [vmem:[%s15915_s3 + $0x148] ss:$16 sps:$4 sm:$0xff]  }
 0xfd0   : > { %v8006_v51 = vadd.f32 %v8005_v23, %v15458_v46  ;;  %8965 = vmatpush1.bf16.msra.mxu1 %v12480_v6  ;;  %9078 = vmatpush1.bf16.msra.mxu0 %v12492_v0  ;;  %v8055_v22 = vmax.f32 %v8002_v53, 0.0  ;;  %v12510_v0 = vld [vmem:[%s15915_s3 + $0x140] ss:$16 sps:$4 sm:$0xff]   ;;  %v12521_v53 = vld [vmem:[%s15915_s3 + $0x16c] ss:$16 sps:$4 sm:$0xff]  }
 0xfd1   : > { %v8056_v17 = vmax.f32 %v8004_v61, 0.0  ;;  %8966 = vmatprep.subr.bf16.mxu1 %v12491_v10  ;;  %9079 = vmatprep.subr.bf16.mxu0 %v12500_v15  ;;  %v12518_v15 = vld [vmem:[%s15915_s3 + $0x164] ss:$16 sps:$4 sm:$0xff]  }
 0xfd2   : > { %v8057_v8 = vmax.f32 %v8006_v51, 0.0 }
 0xfd3   : > { %v8142_v9 = vpack.c.bf16 %v8056_v17, %v8054_v45  ;;  %v12519_v45 = vld [vmem:[%s15915_s3 + $0x168] ss:$16 sps:$4 sm:$0xff]  }
 0xfd4   : > { %v8143_v31 = vpack.c.bf16 %v8057_v8, %v8055_v22  ;;  %v8009_v32 = vpop.f32.mrb[180].mxu0  ;;  %8967 = vmatpush1.bf16.msra.mxu1 %v12489_v58  ;;  %9080 = vmatpush1.bf16.msra.mxu0 %v12498_v47  ;;  %v12516_v47 = vld [vmem:[%s15915_s3 + $0x160] ss:$16 sps:$4 sm:$0xff]   ;;  %s10730_s3 = sshll.u32 %s13012_s0, 4  ;;  %s12642_s0 = sshll.u32 %s12755_s13, 4  ;;  %s12643_s0 = int_to_ptr.vmem [resolvable:$false] %s12642_s0 }
 0xfd5   : > { %v8010_v34 = vadd.f32 %v8009_v32, %v15455_v60  ;;  %v8011_v3 = vpop.f32.mrb[181].mxu0  ;;  %8968 = vmatprep.subr.bf16.mxu1 %v12497_v26  ;;  %9081 = vmatprep.subr.bf16.mxu0 %v12506_v11  ;;  %s15770_s8 = scalar_lea.hbm %s12989_s4, %s10730_s3  ;;  %s12644_s14 = scalar_lea.vmem %s12643_s0, 32 }
 0xfd6   : > { %v8012_v57 = vadd.f32 %v8011_v3, %v15458_v46  ;;  %v8013_v62 = vpop.f32.mrb[182].mxu0  ;;  %10574 = vmatprep.mubr.msk.bf16.mxu1 %vm1943_vm8, %v8143_v31  ;;  %10582 = vmatprep.mubr.msk.bf16.mxu0 %vm1943_vm8, %v8143_v31 }
 0xfd7   : > { %v8014_v19 = vadd.f32 %v8013_v62, %v15455_v60  ;;  %v8015_v40 = vpop.f32.mrb[183].mxu0  ;;  %8535 = vmatmul.mubr.bf16.gmra.mrb[240].mxu1 %v8142_v9  ;;  %8648 = vmatmul.mubr.bf16.gmra.mrb[208].mxu0 %v8142_v9  ;;  %v8058_v36 = vmax.f32 %v8010_v34, 0.0 }
 0xfd8   : > { %v8016_v39 = vadd.f32 %v8015_v40, %v15458_v46  ;;  %8969 = vmatpush1.bf16.msra.mxu1 %v12495_v13  ;;  %9082 = vmatpush1.bf16.msra.mxu0 %v12504_v18  ;;  %v8059_v56 = vmax.f32 %v8012_v57, 0.0 }
 0xfd9   : > { %v8060_v2 = vmax.f32 %v8014_v19, 0.0  ;;  %8970 = vmatprep.subr.bf16.mxu1 %v12503_v41  ;;  %9083 = vmatprep.subr.bf16.mxu0 %v12509_v55 }
 0xfda   : > { %v8061_v38 = vmax.f32 %v8016_v39, 0.0 }
 0xfdb   : > { %v8144_v4 = vpack.c.bf16 %v8060_v2, %v8058_v36  ;;  %v12549_v36 = vld [vmem:[%s15918_s5 + $0x90] ss:$8 sps:$4 sm:$0xff]   ;;  %v12554_v2 = vld [vmem:[%s15918_s5 + $0xa4] ss:$8 sps:$4 sm:$0xff]  }
 0xfdc   : > { %v8145_v20 = vpack.c.bf16 %v8061_v38, %v8059_v56  ;;  %v8019_v6 = vpop.f32.mrb[184].mxu0  ;;  %8971 = vmatpush1.bf16.msra.mxu1 %v12501_v54  ;;  %9084 = vmatpush1.bf16.msra.mxu0 %v12507_v14  ;;  %v12551_v14 = vld [vmem:[%s15918_s5 + $0x94] ss:$8 sps:$4 sm:$0xff]   ;;  %v12555_v56 = vld [vmem:[%s15918_s5 + $0xb0] ss:$8 sps:$4 sm:$0xff]  }
 0xfdd   : > { %v8020_v44 = vadd.f32 %v8019_v6, %v15455_v60  ;;  %v8021_v10 = vpop.f32.mrb[185].mxu0  ;;  %8972 = vmatprep.subr.bf16.mxu1 %v12512_v37  ;;  %9085 = vmatprep.subr.bf16.mxu0 %v12515_v48  ;;  %v12552_v37 = vld [vmem:[%s15918_s5 + $0xa0] ss:$8 sps:$4 sm:$0xff]   ;;  %v12557_v48 = vld [vmem:[%s15918_s5 + $0xb4] ss:$8 sps:$4 sm:$0xff]  }
 0xfde   : > { %v8022_v28 = vadd.f32 %v8021_v10, %v15458_v46  ;;  %v8023_v61 = vpop.f32.mrb[186].mxu0  ;;  %10575 = vmatprep.mubr.msk.bf16.mxu1 %vm1943_vm8, %v8145_v20  ;;  %10583 = vmatprep.mubr.msk.bf16.mxu0 %vm1943_vm8, %v8145_v20  ;;  %v12560_v38 = vld [vmem:[%s15918_s5 + $0xc4] ss:$8 sps:$4 sm:$0xff]   ;;  %v12563_v20 = vld [vmem:[%s15918_s5 + $0xd4] ss:$8 sps:$4 sm:$0xff]  }
 0xfdf   : > { %v8024_v23 = vadd.f32 %v8023_v61, %v15455_v60  ;;  %v8025_v51 = vpop.f32.mrb[187].mxu0  ;;  %8545 = vmatmul.mubr.bf16.gmra.mrb[244].mxu1 %v8144_v4  ;;  %8658 = vmatmul.mubr.bf16.gmra.mrb[212].mxu0 %v8144_v4  ;;  %v8062_v17 = vmax.f32 %v8020_v44, 0.0  ;;  %v12558_v4 = vld [vmem:[%s15918_s5 + $0xc0] ss:$8 sps:$4 sm:$0xff]   ;;  %v12561_v6 = vld [vmem:[%s15918_s5 + $0xd0] ss:$8 sps:$4 sm:$0xff]  }
 0xfe0   : > { %v8026_v58 = vadd.f32 %v8025_v51, %v15458_v46  ;;  %8973 = vmatpush1.bf16.msra.mxu1 %v12510_v0  ;;  %9086 = vmatpush1.bf16.msra.mxu0 %v12513_v29  ;;  %v8063_v11 = vmax.f32 %v8022_v28, 0.0  ;;  %v12566_v0 = vld [vmem:[%s15918_s5 + $0xe4] ss:$8 sps:$4 sm:$0xff]   ;;  %v12564_v29 = vld [vmem:[%s15918_s5 + $0xe0] ss:$8 sps:$4 sm:$0xff]   ;;  %v9194_v61 = vsub.s32 3, %v13041_v1 }
 0xfe1   : > { %v8064_v26 = vmax.f32 %v8024_v23, 0.0  ;;  %8974 = vmatprep.subr.bf16.mxu1 %v12518_v15  ;;  %9087 = vmatprep.subr.bf16.mxu0 %v12521_v53  ;;  %v12569_v44 = vld [vmem:[%s15918_s5 + $0xf4] ss:$8 sps:$4 sm:$0xff]   ;;  %v12567_v10 = vld [vmem:[%s15918_s5 + $0xf0] ss:$8 sps:$4 sm:$0xff]   ;;  %v9190_v53 = vsub.s32 2, %v13041_v1 }
 0xfe2   : > { %v8065_v22 = vmax.f32 %v8026_v58, 0.0  ;;  %v12572_v15 = vld [vmem:[%s15918_s5 + $0x104] ss:$8 sps:$4 sm:$0xff]   ;;  %v9178_v28 = vld [vmem:[%s15919_s2] sm:$0xf]  ;;  %s1341_s2 = sand.u32 1, %s12692_s10  }
 0xfe3   : > { %v8146_v8 = vpack.c.bf16 %v8064_v26, %v8062_v17  ;;  %v15639_v23 = vrot.slane %v9178_v28, %v14940_v59  ;;  %v15641_v51 = vrot.slane %v9178_v28, %v9190_v53  ;;  %v15644_v58 = vrot.slane %v9178_v28, %v14944_v16  ;;  %s10081_s9 = scalar_lea.sflag [#allocation3], %s1341_s2 }
 0xfe4   : > { %v8147_v9 = vpack.c.bf16 %v8065_v22, %v8063_v11  ;;  %v8029_v31 = vpop.f32.mrb[188].mxu0  ;;  %8975 = vmatpush1.bf16.msra.mxu1 %v12516_v47  ;;  %9088 = vmatpush1.bf16.msra.mxu0 %v12519_v45  ;;  %v15646_v47 = vrot.slane %v9178_v28, %v9194_v61 }
 0xfe5   : > { %v8030_v32 = vadd.f32 %v8029_v31, %v15455_v60  ;;  %v8031_v13 = vpop.f32.mrb[189].mxu0 }
 0xfe6   : > { %v8032_v18 = vadd.f32 %v8031_v13, %v15458_v46  ;;  %v8033_v34 = vpop.f32.mrb[190].mxu0  ;;  %10576 = vmatprep.mubr.msk.bf16.mxu1 %vm1943_vm8, %v8147_v9  ;;  %10584 = vmatprep.mubr.msk.bf16.mxu0 %vm1943_vm8, %v8147_v9 }
 0xfe7   : > { %v8034_v3 = vadd.f32 %v8033_v34, %v15455_v60  ;;  %v8035_v41 = vpop.f32.mrb[191].mxu0  ;;  %8555 = vmatmul.mubr.bf16.gmra.mrb[248].mxu1 %v8146_v8  ;;  %8668 = vmatmul.mubr.bf16.gmra.mrb[216].mxu0 %v8146_v8  ;;  %v8066_v57 = vmax.f32 %v8030_v32, 0.0  ;;  %v12548_v60 = vld [vmem:[%s15918_s5 + $0x84] ss:$8 sps:$4 sm:$0xff]  }
 0xfe8   : > { %v8036_v55 = vadd.f32 %v8035_v41, %v15458_v46  ;;  %v8067_v19 = vmax.f32 %v8032_v18, 0.0  ;;  %v12546_v46 = vld [vmem:[%s15918_s5 + $0x80] ss:$8 sps:$4 sm:$0xff]  }
 0xfe9   : > { %v8068_v62 = vmax.f32 %v8034_v3, 0.0 }
 0xfea   : > { %v8069_v40 = vmax.f32 %v8036_v55, 0.0 }
 0xfeb   : > { %v8148_v39 = vpack.c.bf16 %v8068_v62, %v8066_v57 }
 0xfec   : > { %v8149_v54 = vpack.c.bf16 %v8069_v40, %v8067_v19 }
 0xfee   : > { %10577 = vmatprep.mubr.msk.bf16.mxu1 %vm1943_vm8, %v8149_v54  ;;  %10585 = vmatprep.mubr.msk.bf16.mxu0 %vm1943_vm8, %v8149_v54 }
 0xfef   : > { %8565 = vmatmul.mubr.bf16.gmra.mrb[252].mxu1 %v8148_v39  ;;  %8678 = vmatmul.mubr.bf16.gmra.mrb[220].mxu0 %v8148_v39 }
 0xff0   : > { %10634 = vmatprep.mubr.msk.bf16.mxu1 %vm1943_vm8, %v15389_v25  ;;  %10642 = vmatprep.mubr.msk.bf16.mxu0 %vm1943_vm8, %v15389_v25  ;;  %v12522_v25 = vld [vmem:[%s15918_s5] ss:$8 sps:$4 sm:$0xff]  }
 0xff7   : > { %8985 = vmatmul.mubr.bf16.vlgmr.msra.gmra.mrb[224].mxu1 %v15387_v49  ;;  %9098 = vmatmul.mubr.bf16.vlgmr.msra.gmra.mrb[192].mxu0 %v15387_v49  ;;  %v12524_v49 = vld [vmem:[%s15918_s5 + $0x4] ss:$8 sps:$4 sm:$0xff]  }
 0xff8   : > { %10635 = vmatprep.mubr.msk.bf16.mxu1 %vm1943_vm8, %v15401_v35  ;;  %10643 = vmatprep.mubr.msk.bf16.mxu0 %vm1943_vm8, %v15401_v35  ;;  %v12525_v35 = vld [vmem:[%s15918_s5 + $0x10] ss:$8 sps:$4 sm:$0xff]  }
 0xff9   : > { %9817 = vmatprep.subr.bf16.mxu1 %v12524_v49 }
 0xffa   : > { %9818 = vmatpush1.bf16.msra.mxu1 %v12522_v25 }
 0xfff   : > { %8995 = vmatmul.mubr.bf16.gmra.mrb[228].mxu1 %v15399_v52  ;;  %9108 = vmatmul.mubr.bf16.gmra.mrb[196].mxu0 %v15399_v52  ;;  %v12527_v52 = vld [vmem:[%s15918_s5 + $0x14] ss:$8 sps:$4 sm:$0xff]  }
0x1000   : > { %10636 = vmatprep.mubr.msk.bf16.mxu1 %vm1943_vm8, %v15410_v27  ;;  %10644 = vmatprep.mubr.msk.bf16.mxu0 %vm1943_vm8, %v15410_v27  ;;  %v12528_v27 = vld [vmem:[%s15918_s5 + $0x20] ss:$8 sps:$4 sm:$0xff]  }
0x1001   : > { %9819 = vmatprep.subr.bf16.mxu1 %v12527_v52 }
0x1002   : > { %9820 = vmatpush1.bf16.msra.mxu1 %v12525_v35 }
0x1007   : > { %9005 = vmatmul.mubr.bf16.gmra.mrb[232].mxu1 %v15408_v33  ;;  %9118 = vmatmul.mubr.bf16.gmra.mrb[200].mxu0 %v15408_v33  ;;  %v12530_v33 = vld [vmem:[%s15918_s5 + $0x24] ss:$8 sps:$4 sm:$0xff]  }
0x1008   : > { %10637 = vmatprep.mubr.msk.bf16.mxu1 %vm1943_vm8, %v15419_v50  ;;  %10645 = vmatprep.mubr.msk.bf16.mxu0 %vm1943_vm8, %v15419_v50  ;;  %v12531_v50 = vld [vmem:[%s15918_s5 + $0x30] ss:$8 sps:$4 sm:$0xff]  }
0x1009   : > { %9821 = vmatprep.subr.bf16.mxu1 %v12530_v33 }
0x100a   : > { %9822 = vmatpush1.bf16.msra.mxu1 %v12528_v27 }
0x100f   : > { %9015 = vmatmul.mubr.bf16.gmra.mrb[236].mxu1 %v15417_v5  ;;  %9128 = vmatmul.mubr.bf16.gmra.mrb[204].mxu0 %v15417_v5  ;;  %v12533_v5 = vld [vmem:[%s15918_s5 + $0x34] ss:$8 sps:$4 sm:$0xff]  }
0x1010   : > { %10638 = vmatprep.mubr.msk.bf16.mxu1 %vm1943_vm8, %v15427_v21  ;;  %10646 = vmatprep.mubr.msk.bf16.mxu0 %vm1943_vm8, %v15427_v21  ;;  %v12534_v21 = vld [vmem:[%s15918_s5 + $0x40] ss:$8 sps:$4 sm:$0xff]  }
0x1011   : > { %9823 = vmatprep.subr.bf16.mxu1 %v12533_v5 }
0x1012   : > { %9824 = vmatpush1.bf16.msra.mxu1 %v12531_v50 }
0x1017   : > { %9025 = vmatmul.mubr.bf16.gmra.mrb[240].mxu1 %v15425_v30  ;;  %9138 = vmatmul.mubr.bf16.gmra.mrb[208].mxu0 %v15425_v30  ;;  %v12536_v30 = vld [vmem:[%s15918_s5 + $0x44] ss:$8 sps:$4 sm:$0xff]  }
0x1018   : > { %10639 = vmatprep.mubr.msk.bf16.mxu1 %vm1943_vm8, %v15435_v12  ;;  %10647 = vmatprep.mubr.msk.bf16.mxu0 %vm1943_vm8, %v15435_v12  ;;  %v12537_v12 = vld [vmem:[%s15918_s5 + $0x50] ss:$8 sps:$4 sm:$0xff]  }
0x1019   : > { %9825 = vmatprep.subr.bf16.mxu1 %v12536_v30 }
0x101a   : > { %9826 = vmatpush1.bf16.msra.mxu1 %v12534_v21 }
0x101f   : > { %9035 = vmatmul.mubr.bf16.gmra.mrb[244].mxu1 %v15433_v42  ;;  %9148 = vmatmul.mubr.bf16.gmra.mrb[212].mxu0 %v15433_v42  ;;  %v12539_v42 = vld [vmem:[%s15918_s5 + $0x54] ss:$8 sps:$4 sm:$0xff]  }
0x1020   : > { %10640 = vmatprep.mubr.msk.bf16.mxu1 %vm1943_vm8, %v15443_v63  ;;  %10648 = vmatprep.mubr.msk.bf16.mxu0 %vm1943_vm8, %v15443_v63  ;;  %v12540_v63 = vld [vmem:[%s15918_s5 + $0x60] ss:$8 sps:$4 sm:$0xff]  }
0x1021   : > { %9827 = vmatprep.subr.bf16.mxu1 %v12539_v42 }
0x1022   : > { %9828 = vmatpush1.bf16.msra.mxu1 %v12537_v12 }
0x1027   : > { %9045 = vmatmul.mubr.bf16.gmra.mrb[248].mxu1 %v15441_v43  ;;  %9158 = vmatmul.mubr.bf16.gmra.mrb[216].mxu0 %v15441_v43  ;;  %v12542_v43 = vld [vmem:[%s15918_s5 + $0x64] ss:$8 sps:$4 sm:$0xff]  }
0x1028   : > { %10641 = vmatprep.mubr.msk.bf16.mxu1 %vm1943_vm8, %v15451_v24  ;;  %10649 = vmatprep.mubr.msk.bf16.mxu0 %vm1943_vm8, %v15451_v24  ;;  %v12543_v24 = vld [vmem:[%s15918_s5 + $0x70] ss:$8 sps:$4 sm:$0xff]  }
0x1029   : > { %9829 = vmatprep.subr.bf16.mxu1 %v12542_v43 }
0x102a   : > { %9830 = vmatpush1.bf16.msra.mxu1 %v12540_v63 }
0x102f   : > { %9055 = vmatmul.mubr.bf16.gmra.mrb[252].mxu1 %v15449_v7  ;;  %9168 = vmatmul.mubr.bf16.gmra.mrb[220].mxu0 %v15449_v7  ;;  %v12545_v7 = vld [vmem:[%s15918_s5 + $0x74] ss:$8 sps:$4 sm:$0xff]  }
0x1030   : > { %9831 = vmatprep.subr.bf16.mxu1 %v12545_v7 }
0x1031   : > { %9832 = vmatpush1.bf16.msra.mxu1 %v12543_v24 }
0x1032   : > { %9833 = vmatprep.subr.bf16.mxu1 %v12548_v60 }
0x1035   : > { %9834 = vmatpush1.bf16.msra.mxu1 %v12546_v46 }
0x1036   : > { %9835 = vmatprep.subr.bf16.mxu1 %v12551_v14 }
0x1039   : > { %9836 = vmatpush1.bf16.msra.mxu1 %v12549_v36 }
0x103a   : > { %9837 = vmatprep.subr.bf16.mxu1 %v12554_v2 }
0x103d   : > { %9838 = vmatpush1.bf16.msra.mxu1 %v12552_v37 }
0x103e   : > { %9839 = vmatprep.subr.bf16.mxu1 %v12557_v48 }
0x1041   : > { %9840 = vmatpush1.bf16.msra.mxu1 %v12555_v56 }
0x1042   : > { %9841 = vmatprep.subr.bf16.mxu1 %v12560_v38 }
0x1045   : > { %9842 = vmatpush1.bf16.msra.mxu1 %v12558_v4 }
0x1046   : > { %9843 = vmatprep.subr.bf16.mxu1 %v12563_v20 }
0x1049   : > { %9844 = vmatpush1.bf16.msra.mxu1 %v12561_v6 }
0x104a   : > { %9845 = vmatprep.subr.bf16.mxu1 %v12566_v0 }
0x104d   : > { %9846 = vmatpush1.bf16.msra.mxu1 %v12564_v29 }
0x104e   : > { %9847 = vmatprep.subr.bf16.mxu1 %v12569_v44 }
0x1051   : > { %9848 = vmatpush1.bf16.msra.mxu1 %v12567_v10 }
0x1052   : > { %9858 = vmatprep.subr.bf16.mxu1 %v12572_v15 }
0x10ca   : > { %v8986_v45 = vpop.f32.mrb[224].mxu1  ;;  %v9099_v17 = vpop.f32.mrb[192].mxu0 }
0x10cb   : > { %v9200_v26 = vadd.f32 %v15639_v23, %v8986_v45  ;;  %v9202_v11 = vadd.f32 %v15641_v51, %v9099_v17  ;;  %v8988_v22 = vpop.f32.mrb[225].mxu1  ;;  %v9101_v8 = vpop.f32.mrb[193].mxu0 }
0x10cc   : > { %v9201_v1 = vadd.f32 %v15644_v58, %v8988_v22  ;;  %v9203_v9 = vadd.f32 %v15646_v47, %v9101_v8  ;;  %v8990_v31 = vpop.f32.mrb[226].mxu1  ;;  %v9103_v32 = vpop.f32.mrb[194].mxu0 }
0x10cd   : > { %v9204_v13 = vadd.f32 %v15639_v23, %v8990_v31  ;;  %v9206_v18 = vadd.f32 %v15641_v51, %v9103_v32  ;;  %v8992_v34 = vpop.f32.mrb[227].mxu1  ;;  %v9105_v3 = vpop.f32.mrb[195].mxu0  ;;  %v9264_v57 = vmax.f32 %v9200_v26, 0.0  ;;  %v9266_v62 = vmax.f32 %v9202_v11, 0.0 }
0x10ce   : > { %v9205_v41 = vadd.f32 %v15644_v58, %v8992_v34  ;;  %v9207_v55 = vadd.f32 %v15646_v47, %v9105_v3  ;;  %v9265_v39 = vmax.f32 %v9201_v1, 0.0  ;;  %v9267_v54 = vmax.f32 %v9203_v9, 0.0 }
0x10cf   : > { %v9268_v19 = vmax.f32 %v9204_v13, 0.0  ;;  %v9270_v40 = vmax.f32 %v9206_v18, 0.0 }
0x10d0   : > { %v9269_v49 = vmax.f32 %v9205_v41, 0.0  ;;  %v9271_v25 = vmax.f32 %v9207_v55, 0.0 }
0x10d1   : > { %v9328_v52 = vadd.f32 %v9268_v19, %v9264_v57  ;;  %v9370_v35 = vadd.f32 %v9270_v40, %v9266_v62  ;;  %v12618_v19 = vld [vmem:[%s12979_s30 + $0x40] sm:$0xff]  }
0x10d2   : > { %v9349_v33 = vadd.f32 %v9269_v49, %v9265_v39  ;;  %v9391_v27 = vadd.f32 %v9271_v25, %v9267_v54  ;;  %v8996_v5 = vpop.f32.mrb[228].mxu1  ;;  %v9109_v50 = vpop.f32.mrb[196].mxu0  ;;  %v12619_v40 = vld [vmem:[%s12979_s30] sm:$0xff]   ;;  %10955 = vmatprep.subr.bf16.mxu0 %v12618_v19 }
0x10d3   : > { %v9208_v30 = vadd.f32 %v15639_v23, %v8996_v5  ;;  %v9210_v21 = vadd.f32 %v15641_v51, %v9109_v50  ;;  %v8998_v42 = vpop.f32.mrb[229].mxu1  ;;  %v9111_v12 = vpop.f32.mrb[197].mxu0  ;;  %10956 = vmatpush3.bf16.msra.mxu0 %v12619_v40 }
0x10d4   : > { %v9209_v43 = vadd.f32 %v15644_v58, %v8998_v42  ;;  %v9211_v63 = vadd.f32 %v15646_v47, %v9111_v12  ;;  %v9000_v7 = vpop.f32.mrb[230].mxu1  ;;  %v9113_v24 = vpop.f32.mrb[198].mxu0  ;;  %v12621_v12 = vld [vmem:[%s12979_s30 + $0x8] sm:$0xff]  }
0x10d5   : > { %v9272_v60 = vmax.f32 %v9208_v30, 0.0  ;;  %v9274_v46 = vmax.f32 %v9210_v21, 0.0  ;;  %v9212_v14 = vadd.f32 %v15639_v23, %v9000_v7  ;;  %v9214_v36 = vadd.f32 %v15641_v51, %v9113_v24  ;;  %v9002_v2 = vpop.f32.mrb[231].mxu1  ;;  %v9115_v37 = vpop.f32.mrb[199].mxu0  ;;  %v12622_v7 = vld [vmem:[%s12979_s30 + $0x50] sm:$0xff]  }
0x10d6   : > { %v9273_v48 = vmax.f32 %v9209_v43, 0.0  ;;  %v9275_v56 = vmax.f32 %v9211_v63, 0.0  ;;  %v9213_v38 = vadd.f32 %v15644_v58, %v9002_v2  ;;  %v9215_v4 = vadd.f32 %v15646_v47, %v9115_v37 }
0x10d7   : > { %v9329_v20 = vadd.f32 %v9328_v52, %v9272_v60  ;;  %v9371_v6 = vadd.f32 %v9370_v35, %v9274_v46  ;;  %v9276_v0 = vmax.f32 %v9212_v14, 0.0  ;;  %v9278_v29 = vmax.f32 %v9214_v36, 0.0  ;;  %v12620_v52 = vld [vmem:[%s12979_s30 + $0x48] sm:$0xff]  }
0x10d8   : > { %v9350_v44 = vadd.f32 %v9349_v33, %v9273_v48  ;;  %v9392_v10 = vadd.f32 %v9391_v27, %v9275_v56  ;;  %v9277_v15 = vmax.f32 %v9213_v38, 0.0  ;;  %v9279_v53 = vmax.f32 %v9215_v4, 0.0  ;;  %10957 = vmatprep.subr.bf16.mxu0 %v12620_v52 }
0x10d9   : > { %v9330_v28 = vadd.f32 %v9329_v20, %v9276_v0  ;;  %v9372_v61 = vadd.f32 %v9371_v6, %v9278_v29  ;;  %10958 = vmatpush3.bf16.msra.mxu0 %v12621_v12  ;;  %v12623_v6 = vld [vmem:[%s12979_s30 + $0x10] sm:$0xff]  }
0x10da   : > { %v9351_v45 = vadd.f32 %v9350_v44, %v9277_v15  ;;  %v9393_v17 = vadd.f32 %v9392_v10, %v9279_v53  ;;  %v9006_v26 = vpop.f32.mrb[232].mxu1  ;;  %v9119_v11 = vpop.f32.mrb[200].mxu0  ;;  %10959 = vmatprep.subr.bf16.mxu0 %v12622_v7 }
0x10db   : > { %v9216_v22 = vadd.f32 %v15639_v23, %v9006_v26  ;;  %v9218_v8 = vadd.f32 %v15641_v51, %v9119_v11  ;;  %v9008_v1 = vpop.f32.mrb[233].mxu1  ;;  %v9121_v9 = vpop.f32.mrb[201].mxu0 }
0x10dc   : > { %v9217_v31 = vadd.f32 %v15644_v58, %v9008_v1  ;;  %v9219_v32 = vadd.f32 %v15646_v47, %v9121_v9  ;;  %v9010_v13 = vpop.f32.mrb[234].mxu1  ;;  %v9123_v18 = vpop.f32.mrb[202].mxu0 }
0x10dd   : > { %v9280_v34 = vmax.f32 %v9216_v22, 0.0  ;;  %v9282_v3 = vmax.f32 %v9218_v8, 0.0  ;;  %v9220_v41 = vadd.f32 %v15639_v23, %v9010_v13  ;;  %v9222_v55 = vadd.f32 %v15641_v51, %v9123_v18  ;;  %v9012_v57 = vpop.f32.mrb[235].mxu1  ;;  %v9125_v62 = vpop.f32.mrb[203].mxu0  ;;  %10960 = vmatpush3.bf16.msra.mxu0 %v12623_v6  ;;  %v12625_v18 = vld [vmem:[%s12979_s30 + $0x18] sm:$0xff]  }
0x10de   : > { %v9281_v39 = vmax.f32 %v9217_v31, 0.0  ;;  %v9283_v54 = vmax.f32 %v9219_v32, 0.0  ;;  %v9221_v49 = vadd.f32 %v15644_v58, %v9012_v57  ;;  %v9223_v25 = vadd.f32 %v15646_v47, %v9125_v62 }
0x10df   : > { %v9331_v35 = vadd.f32 %v9330_v28, %v9280_v34  ;;  %v9373_v33 = vadd.f32 %v9372_v61, %v9282_v3  ;;  %v9284_v27 = vmax.f32 %v9220_v41, 0.0  ;;  %v9286_v5 = vmax.f32 %v9222_v55, 0.0  ;;  %v12624_v28 = vld [vmem:[%s12979_s30 + $0x58] sm:$0xff]   ;;  %v12626_v41 = vld [vmem:[%s12979_s30 + $0x60] sm:$0xff]  }
0x10e0   : > { %v9352_v50 = vadd.f32 %v9351_v45, %v9281_v39  ;;  %v9394_v30 = vadd.f32 %v9393_v17, %v9283_v54  ;;  %v9285_v21 = vmax.f32 %v9221_v49, 0.0  ;;  %v9287_v42 = vmax.f32 %v9223_v25, 0.0  ;;  %10961 = vmatprep.subr.bf16.mxu0 %v12624_v28 }
0x10e1   : > { %v9332_v43 = vadd.f32 %v9331_v35, %v9284_v27  ;;  %v9374_v63 = vadd.f32 %v9373_v33, %v9286_v5  ;;  %10962 = vmatpush3.bf16.msra.mxu0 %v12625_v18  ;;  %v12627_v27 = vld [vmem:[%s12979_s30 + $0x20] sm:$0xff]  }
0x10e2   : > { %v9353_v24 = vadd.f32 %v9352_v50, %v9285_v21  ;;  %v9395_v60 = vadd.f32 %v9394_v30, %v9287_v42  ;;  %v9016_v46 = vpop.f32.mrb[236].mxu1  ;;  %v9129_v14 = vpop.f32.mrb[204].mxu0  ;;  %10963 = vmatprep.subr.bf16.mxu0 %v12626_v41 }
0x10e3   : > { %v9224_v36 = vadd.f32 %v15639_v23, %v9016_v46  ;;  %v9226_v2 = vadd.f32 %v15641_v51, %v9129_v14  ;;  %v9018_v37 = vpop.f32.mrb[237].mxu1  ;;  %v9131_v48 = vpop.f32.mrb[205].mxu0 }
0x10e4   : > { %v9225_v56 = vadd.f32 %v15644_v58, %v9018_v37  ;;  %v9227_v38 = vadd.f32 %v15646_v47, %v9131_v48  ;;  %v9020_v4 = vpop.f32.mrb[238].mxu1  ;;  %v9133_v20 = vpop.f32.mrb[206].mxu0 }
0x10e5   : > { %v9288_v0 = vmax.f32 %v9224_v36, 0.0  ;;  %v9290_v29 = vmax.f32 %v9226_v2, 0.0  ;;  %v9228_v44 = vadd.f32 %v15639_v23, %v9020_v4  ;;  %v9230_v10 = vadd.f32 %v15641_v51, %v9133_v20  ;;  %v9022_v15 = vpop.f32.mrb[239].mxu1  ;;  %v9135_v53 = vpop.f32.mrb[207].mxu0  ;;  %10964 = vmatpush3.bf16.msra.mxu0 %v12627_v27  ;;  %v12629_v4 = vld [vmem:[%s12979_s30 + $0x28] sm:$0xff]  }
0x10e6   : > { %v9289_v61 = vmax.f32 %v9225_v56, 0.0  ;;  %v9291_v45 = vmax.f32 %v9227_v38, 0.0  ;;  %v9229_v17 = vadd.f32 %v15644_v58, %v9022_v15  ;;  %v9231_v26 = vadd.f32 %v15646_v47, %v9135_v53 }
0x10e7   : > { %v9333_v11 = vadd.f32 %v9332_v43, %v9288_v0  ;;  %v9375_v22 = vadd.f32 %v9374_v63, %v9290_v29  ;;  %v9292_v8 = vmax.f32 %v9228_v44, 0.0  ;;  %v9294_v1 = vmax.f32 %v9230_v10, 0.0  ;;  %v12628_v43 = vld [vmem:[%s12979_s30 + $0x68] sm:$0xff]   ;;  %v12630_v0 = vld [vmem:[%s12979_s30 + $0x70] sm:$0xff]  }
0x10e8   : > { %v9354_v9 = vadd.f32 %v9353_v24, %v9289_v61  ;;  %v9396_v31 = vadd.f32 %v9395_v60, %v9291_v45  ;;  %v9293_v32 = vmax.f32 %v9229_v17, 0.0  ;;  %v9295_v13 = vmax.f32 %v9231_v26, 0.0  ;;  %10965 = vmatprep.subr.bf16.mxu0 %v12628_v43 }
0x10e9   : > { %v9334_v34 = vadd.f32 %v9333_v11, %v9292_v8  ;;  %v9376_v3 = vadd.f32 %v9375_v22, %v9294_v1  ;;  %10966 = vmatpush3.bf16.msra.mxu0 %v12629_v4  ;;  %v12631_v8 = vld [vmem:[%s12979_s30 + $0x30] sm:$0xff]  }
0x10ea   : > { %v9355_v55 = vadd.f32 %v9354_v9, %v9293_v32  ;;  %v9397_v57 = vadd.f32 %v9396_v31, %v9295_v13  ;;  %v9026_v62 = vpop.f32.mrb[240].mxu1  ;;  %v9139_v19 = vpop.f32.mrb[208].mxu0  ;;  %10967 = vmatprep.subr.bf16.mxu0 %v12630_v0 }
0x10eb   : > { %v9232_v40 = vadd.f32 %v15639_v23, %v9026_v62  ;;  %v9234_v39 = vadd.f32 %v15641_v51, %v9139_v19  ;;  %v9028_v54 = vpop.f32.mrb[241].mxu1  ;;  %v9141_v49 = vpop.f32.mrb[209].mxu0 }
0x10ec   : > { %v9233_v25 = vadd.f32 %v15644_v58, %v9028_v54  ;;  %v9235_v52 = vadd.f32 %v15646_v47, %v9141_v49  ;;  %v9030_v35 = vpop.f32.mrb[242].mxu1  ;;  %v9143_v33 = vpop.f32.mrb[210].mxu0 }
0x10ed   : > { %v9296_v5 = vmax.f32 %v9232_v40, 0.0  ;;  %v9298_v50 = vmax.f32 %v9234_v39, 0.0  ;;  %v9236_v30 = vadd.f32 %v15639_v23, %v9030_v35  ;;  %v9238_v21 = vadd.f32 %v15641_v51, %v9143_v33  ;;  %v9032_v42 = vpop.f32.mrb[243].mxu1  ;;  %v9145_v12 = vpop.f32.mrb[211].mxu0  ;;  %10968 = vmatpush3.bf16.msra.mxu0 %v12631_v8 }
0x10ee   : > { %v9297_v63 = vmax.f32 %v9233_v25, 0.0  ;;  %v9299_v7 = vmax.f32 %v9235_v52, 0.0  ;;  %v9237_v24 = vadd.f32 %v15644_v58, %v9032_v42  ;;  %v9239_v60 = vadd.f32 %v15646_v47, %v9145_v12 }
0x10ef   : > { %v9335_v46 = vadd.f32 %v9334_v34, %v9296_v5  ;;  %v9377_v14 = vadd.f32 %v9376_v3, %v9298_v50  ;;  %v9300_v36 = vmax.f32 %v9236_v30, 0.0  ;;  %v9302_v2 = vmax.f32 %v9238_v21, 0.0 }
0x10f0   : > { %v9356_v37 = vadd.f32 %v9355_v55, %v9297_v63  ;;  %v9398_v48 = vadd.f32 %v9397_v57, %v9299_v7  ;;  %v9301_v56 = vmax.f32 %v9237_v24, 0.0  ;;  %v9303_v38 = vmax.f32 %v9239_v60, 0.0 }
0x10f1   : > { %v9336_v20 = vadd.f32 %v9335_v46, %v9300_v36  ;;  %v9378_v6 = vadd.f32 %v9377_v14, %v9302_v2 }
0x10f2   : > { %v9357_v29 = vadd.f32 %v9356_v37, %v9301_v56  ;;  %v9399_v44 = vadd.f32 %v9398_v48, %v9303_v38  ;;  %v9036_v10 = vpop.f32.mrb[244].mxu1  ;;  %v9149_v15 = vpop.f32.mrb[212].mxu0 }
0x10f3   : > { %v9240_v53 = vadd.f32 %v15639_v23, %v9036_v10  ;;  %v9242_v28 = vadd.f32 %v15641_v51, %v9149_v15  ;;  %v9038_v61 = vpop.f32.mrb[245].mxu1  ;;  %v9151_v45 = vpop.f32.mrb[213].mxu0 }
0x10f4   : > { %v9241_v17 = vadd.f32 %v15644_v58, %v9038_v61  ;;  %v9243_v26 = vadd.f32 %v15646_v47, %v9151_v45  ;;  %v9040_v11 = vpop.f32.mrb[246].mxu1  ;;  %v9153_v22 = vpop.f32.mrb[214].mxu0 }
0x10f5   : > { %v9304_v1 = vmax.f32 %v9240_v53, 0.0  ;;  %v9306_v9 = vmax.f32 %v9242_v28, 0.0  ;;  %v9244_v31 = vadd.f32 %v15639_v23, %v9040_v11  ;;  %v9246_v32 = vadd.f32 %v15641_v51, %v9153_v22  ;;  %v9042_v13 = vpop.f32.mrb[247].mxu1  ;;  %v9155_v18 = vpop.f32.mrb[215].mxu0 }
0x10f6   : > { %v9305_v34 = vmax.f32 %v9241_v17, 0.0  ;;  %v9307_v3 = vmax.f32 %v9243_v26, 0.0  ;;  %v9245_v41 = vadd.f32 %v15644_v58, %v9042_v13  ;;  %v9247_v55 = vadd.f32 %v15646_v47, %v9155_v18 }
0x10f7   : > { %v9337_v57 = vadd.f32 %v9336_v20, %v9304_v1  ;;  %v9379_v62 = vadd.f32 %v9378_v6, %v9306_v9  ;;  %v9308_v19 = vmax.f32 %v9244_v31, 0.0  ;;  %v9310_v40 = vmax.f32 %v9246_v32, 0.0 }
0x10f8   : > { %v9358_v39 = vadd.f32 %v9357_v29, %v9305_v34  ;;  %v9400_v54 = vadd.f32 %v9399_v44, %v9307_v3  ;;  %v9309_v49 = vmax.f32 %v9245_v41, 0.0  ;;  %v9311_v25 = vmax.f32 %v9247_v55, 0.0 }
0x10f9   : > { %v9338_v52 = vadd.f32 %v9337_v57, %v9308_v19  ;;  %v9380_v35 = vadd.f32 %v9379_v62, %v9310_v40 }
0x10fa   : > { %v9359_v33 = vadd.f32 %v9358_v39, %v9309_v49  ;;  %v9401_v27 = vadd.f32 %v9400_v54, %v9311_v25  ;;  %v9046_v5 = vpop.f32.mrb[248].mxu1  ;;  %v9159_v50 = vpop.f32.mrb[216].mxu0 }
0x10fb   : > { %v9248_v30 = vadd.f32 %v15639_v23, %v9046_v5  ;;  %v9250_v21 = vadd.f32 %v15641_v51, %v9159_v50  ;;  %v9048_v42 = vpop.f32.mrb[249].mxu1  ;;  %v9161_v12 = vpop.f32.mrb[217].mxu0 }
0x10fc   : > { %v9249_v43 = vadd.f32 %v15644_v58, %v9048_v42  ;;  %v9251_v63 = vadd.f32 %v15646_v47, %v9161_v12  ;;  %v9050_v7 = vpop.f32.mrb[250].mxu1  ;;  %v9163_v24 = vpop.f32.mrb[218].mxu0 }
0x10fd   : > { %v9312_v60 = vmax.f32 %v9248_v30, 0.0  ;;  %v9314_v46 = vmax.f32 %v9250_v21, 0.0  ;;  %v9252_v14 = vadd.f32 %v15639_v23, %v9050_v7  ;;  %v9254_v36 = vadd.f32 %v15641_v51, %v9163_v24  ;;  %v9052_v2 = vpop.f32.mrb[251].mxu1  ;;  %v9165_v37 = vpop.f32.mrb[219].mxu0 }
0x10fe   : > { %v9313_v48 = vmax.f32 %v9249_v43, 0.0  ;;  %v9315_v56 = vmax.f32 %v9251_v63, 0.0  ;;  %v9253_v38 = vadd.f32 %v15644_v58, %v9052_v2  ;;  %v9255_v4 = vadd.f32 %v15646_v47, %v9165_v37 }
0x10ff   : > { %v9339_v20 = vadd.f32 %v9338_v52, %v9312_v60  ;;  %v9381_v6 = vadd.f32 %v9380_v35, %v9314_v46  ;;  %v9316_v0 = vmax.f32 %v9252_v14, 0.0  ;;  %v9318_v29 = vmax.f32 %v9254_v36, 0.0 }
0x1100   : > { %v9360_v44 = vadd.f32 %v9359_v33, %v9313_v48  ;;  %v9402_v10 = vadd.f32 %v9401_v27, %v9315_v56  ;;  %v9317_v15 = vmax.f32 %v9253_v38, 0.0  ;;  %v9319_v53 = vmax.f32 %v9255_v4, 0.0 }
0x1101   : > { %v9340_v28 = vadd.f32 %v9339_v20, %v9316_v0  ;;  %v9382_v61 = vadd.f32 %v9381_v6, %v9318_v29 }
0x1102   : > { %v9361_v45 = vadd.f32 %v9360_v44, %v9317_v15  ;;  %v9403_v17 = vadd.f32 %v9402_v10, %v9319_v53  ;;  %v9056_v26 = vpop.f32.mrb[252].mxu1  ;;  %v9169_v11 = vpop.f32.mrb[220].mxu0  ;;  %v12570_v44 = vld [vmem:[%s15918_s5 + $0x100] ss:$8 sps:$4 sm:$0xff]   ;;  %v12575_v15 = vld [vmem:[%s15918_s5 + $0x114] ss:$8 sps:$4 sm:$0xff]  }
0x1103   : > { %v9256_v22 = vadd.f32 %v15639_v23, %v9056_v26  ;;  %v9258_v8 = vadd.f32 %v15641_v51, %v9169_v11  ;;  %v9058_v1 = vpop.f32.mrb[253].mxu1  ;;  %v9171_v9 = vpop.f32.mrb[221].mxu0  ;;  %v12579_v26 = vld [vmem:[%s15918_s5 + $0x130] ss:$8 sps:$4 sm:$0xff]   ;;  %v12584_v11 = vld [vmem:[%s15918_s5 + $0x144] ss:$8 sps:$4 sm:$0xff]  }
0x1104   : > { %v9257_v31 = vadd.f32 %v15644_v58, %v9058_v1  ;;  %v9259_v32 = vadd.f32 %v15646_v47, %v9171_v9  ;;  %v9060_v13 = vpop.f32.mrb[254].mxu1  ;;  %v9173_v18 = vpop.f32.mrb[222].mxu0  ;;  %v12585_v1 = vld [vmem:[%s15918_s5 + $0x150] ss:$8 sps:$4 sm:$0xff]   ;;  %v12590_v9 = vld [vmem:[%s15918_s5 + $0x164] ss:$8 sps:$4 sm:$0xff]  }
0x1105   : > { %v9320_v34 = vmax.f32 %v9256_v22, 0.0  ;;  %v9322_v3 = vmax.f32 %v9258_v8, 0.0  ;;  %v9260_v41 = vadd.f32 %v15639_v23, %v9060_v13  ;;  %v9262_v55 = vadd.f32 %v15641_v51, %v9173_v18  ;;  %v9062_v57 = vpop.f32.mrb[255].mxu1  ;;  %v9175_v62 = vpop.f32.mrb[223].mxu0  ;;  %v12582_v22 = vld [vmem:[%s15918_s5 + $0x140] ss:$8 sps:$4 sm:$0xff]  }
0x1106   : > { %v9321_v19 = vmax.f32 %v9257_v31, 0.0  ;;  %v9323_v40 = vmax.f32 %v9259_v32, 0.0  ;;  %v9261_v39 = vadd.f32 %v15644_v58, %v9062_v57  ;;  %v9263_v54 = vadd.f32 %v15646_v47, %v9175_v62  ;;  %v12587_v8 = vld [vmem:[%s15918_s5 + $0x154] ss:$8 sps:$4 sm:$0xff]   ;;  %v12588_v31 = vld [vmem:[%s15918_s5 + $0x160] ss:$8 sps:$4 sm:$0xff]  }
0x1107   : > { %v9341_v49 = vadd.f32 %v9340_v28, %v9320_v34  ;;  %v9383_v25 = vadd.f32 %v9382_v61, %v9322_v3  ;;  %v9324_v52 = vmax.f32 %v9260_v41, 0.0  ;;  %v9326_v35 = vmax.f32 %v9262_v55, 0.0  ;;  %v12573_v28 = vld [vmem:[%s15918_s5 + $0x110] ss:$8 sps:$4 sm:$0xff]   ;;  %v12578_v61 = vld [vmem:[%s15918_s5 + $0x124] ss:$8 sps:$4 sm:$0xff]  }
0x1108   : > { %v9362_v33 = vadd.f32 %v9361_v45, %v9321_v19  ;;  %v9404_v27 = vadd.f32 %v9403_v17, %v9323_v40  ;;  %v9325_v5 = vmax.f32 %v9261_v39, 0.0  ;;  %v9327_v50 = vmax.f32 %v9263_v54, 0.0  ;;  %v12576_v45 = vld [vmem:[%s15918_s5 + $0x120] ss:$8 sps:$4 sm:$0xff]   ;;  %v12581_v17 = vld [vmem:[%s15918_s5 + $0x134] ss:$8 sps:$4 sm:$0xff]  }
0x1109   : > { %v9342_v30 = vadd.f32 %v9341_v49, %v9324_v52  ;;  %v15726_v23 = vadd.f32 %v9383_v25, %v9326_v35  ;;  %v12593_v32 = vld [vmem:[%s15918_s5 + $0x174] ss:$8 sps:$4 sm:$0xff]   ;;  %v12591_v13 = vld [vmem:[%s15918_s5 + $0x170] ss:$8 sps:$4 sm:$0xff]   ;;  %v12596_v18 = vld [vmem:[%s15918_s5 + $0x184] ss:$8 sps:$4 sm:$0xff]  }
0x110a   : > { %v9363_v51 = vadd.f32 %v9362_v33, %v9325_v5  ;;  %v9405_v21 = vadd.f32 %v9404_v27, %v9327_v50  ;;  %v12594_v34 = vld [vmem:[%s15918_s5 + $0x180] ss:$8 sps:$4 sm:$0xff]   ;;  %v12599_v3 = vld [vmem:[%s15918_s5 + $0x194] ss:$8 sps:$4 sm:$0xff]   ;;  %v12597_v41 = vld [vmem:[%s15918_s5 + $0x190] ss:$8 sps:$4 sm:$0xff]  }
0x110b   : > { %v9343_v42 = vrot.slane %v9342_v30, 4  ;;  %v9385_v55 = vrot.slane %v15726_v23, 4  ;;  %v12602_v57 = vld [vmem:[%s15918_s5 + $0x1a4] ss:$8 sps:$4 sm:$0xff]   ;;  %v12600_v62 = vld [vmem:[%s15918_s5 + $0x1a0] ss:$8 sps:$4 sm:$0xff]  }
0x110c   : > { %v9364_v12 = vrot.slane %v9363_v51, 4  ;;  %v9406_v43 = vrot.slane %v9405_v21, 4  ;;  %v12605_v40 = vld [vmem:[%s15918_s5 + $0x1b4] ss:$8 sps:$4 sm:$0xff]   ;;  %v12603_v39 = vld [vmem:[%s15918_s5 + $0x1b0] ss:$8 sps:$4 sm:$0xff]  }
0x110d   : > { %v9344_v63 = vadd.f32 %v9343_v42, %v9342_v30  ;;  %v9386_v19 = vadd.f32 %v9385_v55, %v15726_v23  ;;  %v12608_v49 = vld [vmem:[%s15918_s5 + $0x1c4] ss:$8 sps:$4 sm:$0xff]   ;;  %v12606_v25 = vld [vmem:[%s15918_s5 + $0x1c0] ss:$8 sps:$4 sm:$0xff]   ;;  %v12611_v35 = vld [vmem:[%s15918_s5 + $0x1d4] ss:$8 sps:$4 sm:$0xff]  }
0x110e   : > { %v9365_v58 = vadd.f32 %v9364_v12, %v9363_v51  ;;  %v9407_v7 = vadd.f32 %v9406_v43, %v9405_v21  ;;  %v12609_v33 = vld [vmem:[%s15918_s5 + $0x1d0] ss:$8 sps:$4 sm:$0xff]   ;;  %v12614_v5 = vld [vmem:[%s15918_s5 + $0x1e4] ss:$8 sps:$4 sm:$0xff]   ;;  %v12612_v50 = vld [vmem:[%s15918_s5 + $0x1e0] ss:$8 sps:$4 sm:$0xff]  }
0x110f   : > { %v9345_v47 = vrot.slane %v9344_v63, 2  ;;  %v9387_v54 = vrot.slane %v9386_v19, 2  ;;  %v12617_v23 = vld [vmem:[%s15918_s5 + $0x1f4] ss:$8 sps:$4 sm:$0xff]   ;;  %v12615_v51 = vld [vmem:[%s15918_s5 + $0x1f0] ss:$8 sps:$4 sm:$0xff]  }
0x1110   : > { %v9366_v24 = vrot.slane %v9365_v58, 2  ;;  %v9408_v60 = vrot.slane %v9407_v7, 2  ;;  %v12632_v12 = vld [vmem:[%s12979_s30 + $0x78] sm:$0xff]   ;;  %s1342_s5 = scalar_lea.vmem [#allocation2], %s1341_s2 }
0x1111   : > { %v9346_v46 = vadd.f32 %v9345_v47, %v9344_v63  ;;  %v9388_v52 = vadd.f32 %v9387_v54, %v9386_v19  ;;  %v12633_v43 = vld [vmem:[%s12979_s30 + $0x38] sm:$0xff]   ;;  %10969 = vmatprep.subr.bf16.mxu0 %v12632_v12  ;;  %v9485_v63 = vld [vmem:[%s15920_s12] sm:$0x3]  ;;  %s10093_s6 = sshll.u32 %s1342_s5, 4  ;;  %s15772_s6 = int_to_ptr.vmem [resolvable:$true] %s10093_s6 }
0x1112   : > { %v9367_v14 = vadd.f32 %v9366_v24, %v9365_v58  ;;  %v9409_v36 = vadd.f32 %v9408_v60, %v9407_v7  ;;  %10970 = vmatpush3.bf16.msra.mxu0 %v12633_v43  ;;  %v9810_v58 = vrot.slane %v9485_v63, %v14940_v59  ;;  %v9814_v7 = vrot.slane %v9485_v63, %v14944_v16  ;;  %s12638_s12 = scalar_lea.vmem %s15772_s6, 16  ;;  %p12645_p0 = scmp.lt.s32.totalorder %s15772_s6, %s12643_s0 }
0x1113   : > { %v9347_v2 = vrot.slane %v9346_v46, 1  ;;  %v9389_v27 = vrot.slane %v9388_v52, 1  ;;  %p12639_p11 = scmp.ne.s32.totalorder %s15772_s6, %s12638_s12  ;;  %p12646_p1 = scmp.lt.s32.totalorder %s12644_s14, %s12638_s12 }
0x1114   : > { %v9368_v37 = vrot.slane %v9367_v14, 1  ;;  %v9410_v48 = vrot.slane %v9409_v36, 1 }
0x1115   : > { %v9348_v56 = vadd.f32 %v9347_v2, %v9346_v46  ;;  %v9390_v30 = vadd.f32 %v9389_v27, %v9388_v52  ;;  %p12640_p12 = pnand %p12639_p11, %p13029_p5  ;;  %p12647_p2 = por %p12646_p1, %p12645_p0 }
0x1116   : > { %v9369_v38 = vadd.f32 %v9368_v37, %v9367_v14  ;;  %v9411_v4 = vadd.f32 %v9410_v48, %v9409_v36 }
0x1117   : > { %v9413_v20 = vmul.f32 0.0078125, %v9348_v56  ;;  %v9415_v21 = vmul.f32 0.0078125, %v9390_v30  ;;  %p12641_p13 = pneg %p12640_p12 }
0x1118   : > { %v9414_v6 = vmul.f32 0.0078125, %v9369_v38  ;;  %v9416_v0 = vmul.f32 0.0078125, %v9411_v4  ;;  %v9935_v4 = vld [vmem:[%s12984_s27] sm:$0x1] }
0x1119   : > { %v9417_v10 = vpack.c.bf16 %v9413_v20, %v9413_v20  ;;  %v9419_v42 = vpack.c.bf16 %v9415_v21, %v9415_v21  ;;  %p12648_p3 = pnand %p12647_p2, %p12641_p13 }
0x111a   : > { %v9418_v29 = vpack.c.bf16 %v9414_v6, %v9414_v6  ;;  %v9420_v53 = vpack.c.bf16 %v9416_v0, %v9416_v0 }
0x111c   : > { %9849 = vmatprep.mubr.bf16.mxu1 %v9418_v29 }
0x111d   : > { %9850 = vmatmul.mubr.bf16.vlgmr.msra.gmra.mrb[0].mxu1 %v9417_v10 }
0x111e   : > { %9859 = vmatpush1.bf16.msra.mxu1 %v12570_v44  ;;  %9890 = vmatprep.mubr.bf16.mxu1 %v9420_v53 }
0x111f   : > { %9860 = vmatprep.subr.bf16.mxu1 %v12575_v15 }
0x1122   : > { %9861 = vmatpush1.bf16.msra.mxu1 %v12573_v28 }
0x1123   : > { %9862 = vmatprep.subr.bf16.mxu1 %v12578_v61 }
0x1126   : > { %9863 = vmatpush1.bf16.msra.mxu1 %v12576_v45 }
0x1127   : > { %9864 = vmatprep.subr.bf16.mxu1 %v12581_v17 }
0x112a   : > { %9865 = vmatpush1.bf16.msra.mxu1 %v12579_v26 }
0x112b   : > { %9866 = vmatprep.subr.bf16.mxu1 %v12584_v11 }
0x112e   : > { %9867 = vmatpush1.bf16.msra.mxu1 %v12582_v22 }
0x112f   : > { %9868 = vmatprep.subr.bf16.mxu1 %v12587_v8 }
0x1132   : > { %9869 = vmatpush1.bf16.msra.mxu1 %v12585_v1 }
0x1133   : > { %9870 = vmatprep.subr.bf16.mxu1 %v12590_v9 }
0x1136   : > { %9871 = vmatpush1.bf16.msra.mxu1 %v12588_v31 }
0x1137   : > { %9872 = vmatprep.subr.bf16.mxu1 %v12593_v32 }
0x113a   : > { %9873 = vmatpush1.bf16.msra.mxu1 %v12591_v13 }
0x113b   : > { %9874 = vmatprep.subr.bf16.mxu1 %v12596_v18 }
0x113e   : > { %9875 = vmatpush1.bf16.msra.mxu1 %v12594_v34 }
0x113f   : > { %9876 = vmatprep.subr.bf16.mxu1 %v12599_v3 }
0x1142   : > { %9877 = vmatpush1.bf16.msra.mxu1 %v12597_v41 }
0x1143   : > { %9878 = vmatprep.subr.bf16.mxu1 %v12602_v57 }
0x1146   : > { %9879 = vmatpush1.bf16.msra.mxu1 %v12600_v62 }
0x1147   : > { %9880 = vmatprep.subr.bf16.mxu1 %v12605_v40 }
0x114a   : > { %9881 = vmatpush1.bf16.msra.mxu1 %v12603_v39 }
0x114b   : > { %9882 = vmatprep.subr.bf16.mxu1 %v12608_v49 }
0x114e   : > { %9883 = vmatpush1.bf16.msra.mxu1 %v12606_v25 }
0x114f   : > { %9884 = vmatprep.subr.bf16.mxu1 %v12611_v35 }
0x1152   : > { %9885 = vmatpush1.bf16.msra.mxu1 %v12609_v33 }
0x1153   : > { %9886 = vmatprep.subr.bf16.mxu1 %v12614_v5 }
0x1156   : > { %9887 = vmatpush1.bf16.msra.mxu1 %v12612_v50 }
0x1157   : > { %9888 = vmatprep.subr.bf16.mxu1 %v12617_v23 }
0x115a   : > { %9889 = vmatpush1.bf16.msra.mxu1 %v12615_v51 }
0x115d   : > { %9891 = vmatmul.mubr.bf16.vlgmr.msra.gmra.mrb[0].mxu1 %v9419_v42 }
0x1230   : > { %v9892_v47 = vpop.f32.mrb[0].mxu1 }
0x1231   : > { %v11419_v24 = vadd.f32 %v9892_v47, %v9810_v58  ;;  %v9894_v60 = vpop.f32.mrb[1].mxu1 }
0x1232   : > { %v11420_v46 = vadd.f32 %v9894_v60, %v9814_v7  ;;  %v9896_v14 = vpop.f32.mrb[2].mxu1 }
0x1233   : > { %v9899_v36 = vmax.f32 %v11419_v24, 0.0  ;;  %v9897_v2 = vpop.f32.mrb[3].mxu1 }
0x1234   : > { %v9900_v37 = vmax.f32 %v11420_v46, 0.0 }
0x1235   : > { %v9901_v56 = vpack.c.bf16 %v9899_v36, %v9899_v36 }
0x1236   : > { %v9902_v48 = vpack.c.bf16 %v9900_v37, %v9900_v37 }
0x1238   : > { %10064 = vmatprep.mubr.bf16.mxu0 %v9902_v48 }
0x1239   : > { %10065 = vmatmul.mubr.bf16.vlgmr.msra.gmra.mrb[224].mxu0 %v9901_v56 }
0x130c   : > { %v10971_v38 = vpop.f32.mrb[224].mxu0 }
0x130d   : > { %v10972_v20 = vpop.f32.mrb[225].mxu0 }
0x130e   : > { %v10973_v59 = vadd.f32 %v10972_v20, %v10971_v38  ;;  %v10974_v16 = vpop.f32.mrb[226].mxu0 }
0x130f   : > { %v10975_v6 = vpop.f32.mrb[227].mxu0 }
0x1310   : > { %v10067_v0 = vadd.f32 %v10973_v59, %v9935_v4 }
0x1312   : > { %v10072_v29 = vsub.f32 0.0, %v10067_v0 }
0x1314   : > { %v10073_v44 = vmul.f32 1.442695, %v10072_v29 }
0x1316   : > { %12634 = vpow2.f32 %v10073_v44 }
0x1320   : > { %v12635_v10 = vpop.eup %12634 }
0x1321   : > { %v10075_v15 = vadd.f32 1.0, %v12635_v10 }
0x1323   : > { %12636 = vrcp.f32 %v10075_v15 }
0x132d   : > { %v12637_v53 = vpop.eup %12636 }
0x132e   : > { %10079 = vst.msk [vmem:[%s1342_s5] sm:$0x1] %vm10078_vm13, %v12637_v53 }
0x132f   : > { %12651 = shalt.err (!%p12648_p3)
}
0x1330   : > { %s12652_s3 = scalar_lea.hbm %s15770_s8, 16  ;;  %s12656_s13 = scalar_lea.hbm %s12989_s4, 32 }
0x1331   : > { %p12653_p4 = scmp.ne.s32.totalorder %s15770_s8, %s12652_s3  ;;  %p12657_p9 = scmp.lt.u32.totalorder %s15770_s8, %s12989_s4 }
0x1332   : > { %p12658_p10 = scmp.lt.u32.totalorder %s12656_s13, %s12652_s3  ;;  %p12660_p12 = scmp.lt.u32.totalorder %s12652_s3, %s15770_s8 }
0x1333   : > { %p12654_p7 = pnand %p12653_p4, %p13029_p5 }
0x1334   : > { %p12659_p11 = por %p12658_p10, %p12657_p9 }
0x1335   : > { %p12655_p8 = pneg %p12654_p7 }
0x1336   : > { %p12661_p0 = por %p12660_p12, %p12659_p11 }
0x1338   : > { %p12662_p13 = pnand %p12661_p0, %p12655_p8 }
0x133a   : > { %12665 = shalt.err (!%p12662_p13)
}
0x133b   : > { %11554 = dma.vmem_to_hbm [thread:$0]  (%p13029_p5), %s15772_s6, 16, %s15770_s8, %s10081_s9  }
0x133c PF: > { %p11560_p1 = scmp.ge.s32.totalorder %s12700_s15, 2  ;;  %s10105_s14 = sand.u32 1, %s12688_s7  }
0x133d   : > { %s10106_s12 = scalar_lea.sflag [#allocation3], %s10105_s14 }
0x133e   : > { %p11557_p2 = pnand %p11560_p1, %p13033_p6 }
0x1340   : > { %12683 = dma.done.wait (!%p11557_p2), %s10106_s12, 16  }
0x1341   : > { %12685 = vsyncadd (!%p11557_p2), %s10106_s12, 4294967280  ;;  %p101_p3 = scmp.ge.s32.totalorder %s13016_s18, 4   ;;  %s15921_s7 = smov %s12692_s10 }
0x1342   : > { %s15922_s10 = smov %s12696_s11  ;;  %s15923_s11 = smov %s13027_s26 }
0x1343   : > { %s15924_s15 = smov %s13016_s18  ;;  %103 = sbr.rel (!%p101_p3) target bundleno = 86 (0x56), region = 280 }
0x134a   :  { %10110 = vsyncpa [#allocation3], 1 }
0x134b   :  { %10112 = vsyncpa [#allocation3 + $0x1], 1 }

</bundles_post_ra>
